<compile_context>
chip_gen: v5e
topology: v5e:2x2
jax: 0.10.0
libtpu: 0.0.40
codegen_flags: <defaults>
</compile_context>

<pallas_src>
import functools

import jax
import jax.numpy as jnp
from jax.experimental import pallas as pl
from jax.experimental.pallas import tpu as pltpu

VMEM_LIMIT = 32 * 1024 * 1024  # well under v7x's 64 MiB physical VMEM


# ----------------------- fused fc1 + deconv1 kernel --------------------------
def _fc_deconv1_kernel(x_ref, w1_ref, b1_ref, w2_ref, b2_ref, o_ref):
    # x:(B,L) bf16  w1:(L,H) bf16  b1:(1,H) f32  w2:(H,tn) bf16  b2:(1,tn) f32
    h = jnp.dot(x_ref[...], w1_ref[...], preferred_element_type=jnp.float32)
    h = jnp.maximum(h + b1_ref[...], 0.0).astype(jnp.bfloat16)
    y = jnp.dot(h, w2_ref[...], preferred_element_type=jnp.float32)
    o_ref[...] = jnp.maximum(y + b2_ref[...], 0.0).astype(o_ref.dtype)


def fc_deconv1(x, pk, *, K, Cout):
    """relu(fc1(x)) then relu(ConvTranspose2d(1024,Cout,K,stride=2)) on a 1x1
    spatial input == one dense matmul with lane-dense (padded) N = K*K*Cout."""
    B, L = x.shape
    w1, b1, w2, b2 = pk["w1"], pk["b1"], pk["w2"], pk["b2"]
    H = w1.shape[1]                 # 1024
    Cin, Np = w2.shape              # (1024, 3328)  -- N padded to 2*128k
    N = K * K * Cout                # 3200
    tn = Np // 2                    # 1664 (multiple of 128) -> 2 even steps

    out = pl.pallas_call(
        _fc_deconv1_kernel,
        out_shape=jax.ShapeDtypeStruct((B, Np), jnp.bfloat16),
        grid=(Np // tn,),
        in_specs=[
            pl.BlockSpec((B, L), lambda i: (0, 0)),
            pl.BlockSpec((L, H), lambda i: (0, 0)),
            pl.BlockSpec((1, H), lambda i: (0, 0)),
            pl.BlockSpec((Cin, tn), lambda i: (0, i)),   # big weight: N-tiled DMA
            pl.BlockSpec((1, tn), lambda i: (0, i)),
        ],
        out_specs=pl.BlockSpec((B, tn), lambda i: (0, i)),
        compiler_params=pltpu.CompilerParams(
            dimension_semantics=("parallel",),
            vmem_limit_bytes=VMEM_LIMIT),
    )(x.astype(jnp.bfloat16), w1, b1, w2, b2)
    return out[:, :N].reshape(B, K, K, Cout)   # NHWC (B, 5, 5, 128) bf16


# --------------------- generic matmul + bias + activation --------------------
def _matmul_bias_act_kernel(x_ref, w_ref, b_ref, o_ref, *, act):
    y = jnp.dot(x_ref[...], w_ref[...], preferred_element_type=jnp.float32)
    y = y + b_ref[...]
    if act == "relu":
        y = jnp.maximum(y, 0.0)
    elif act == "sigmoid":
        y = jax.nn.sigmoid(y)
    o_ref[...] = y.astype(o_ref.dtype)


def matmul_bias_act(x, w, b_row, act, out_dtype):
    """(M,K)@(K,N) + bias row, then activation.  bf16 MXU inputs, f32 acc.
    M is split into 2 even, 8-aligned row tiles (pipelined DMA + v7x megacore);
    the (small) weight stays VMEM-resident."""
    M, K = x.shape
    N = w.shape[1]
    tm = M // 2 if (M % 16 == 0 and M >= 32) else M
    kern = functools.partial(_matmul_bias_act_kernel, act=act)
    return pl.pallas_call(
        kern,
        out_shape=jax.ShapeDtypeStruct((M, N), out_dtype),
        grid=(M // tm,),
        in_specs=[
            pl.BlockSpec((tm, K), lambda i: (i, 0)),
            pl.BlockSpec((K, N), lambda i: (0, 0)),
            pl.BlockSpec((1, N), lambda i: (0, 0)),
        ],
        out_specs=pl.BlockSpec((tm, N), lambda i: (i, 0)),
        compiler_params=pltpu.CompilerParams(
            dimension_semantics=("parallel",),
            vmem_limit_bytes=VMEM_LIMIT),
    )(x, w, b_row)


# ---------------- transposed matmul (lane-dense when N is tiny) --------------
def _matmulT_bias_sigmoid_kernel(w_ref, x_ref, b_ref, o_ref):
    # w:(n,K) bf16  x:(K,tm) bf16  b:(n,1) f32 -> o:(n,tm) f32
    y = jnp.dot(w_ref[...], x_ref[...], preferred_element_type=jnp.float32)
    o_ref[...] = jax.nn.sigmoid(y + b_ref[...])


def matmulT_bias_sigmoid(wT, xT, b_col):
    """Computes (w @ x) with the long M dim in lanes: output (n, M) is fully
    lane dense even when n (=4*Cout=12) is far below 128."""
    n, K = wT.shape
    M = xT.shape[1]
    tm = M // 2 if M % 256 == 0 else M
    return pl.pallas_call(
        _matmulT_bias_sigmoid_kernel,
        out_shape=jax.ShapeDtypeStruct((n, M), jnp.float32),
        grid=(M // tm,),
        in_specs=[
            pl.BlockSpec((n, K), lambda i: (0, 0)),
            pl.BlockSpec((K, tm), lambda i: (0, i)),
            pl.BlockSpec((n, 1), lambda i: (0, 0)),
        ],
        out_specs=pl.BlockSpec((n, tm), lambda i: (0, i)),
        compiler_params=pltpu.CompilerParams(
            dimension_semantics=("parallel",),
            vmem_limit_bytes=VMEM_LIMIT),
    )(wT, xT, b_col)


# ------------------ ConvTranspose2d(stride=2) via sub-pixel -------------------
# out[b, 2q+r, 2p+t, co] = b[co] + sum_{j,l,ci} x[b,q-j,p-l,ci] * W[ci,co,2j+r,2l+t]
# All 4 phases (r,t) share the same input patches -> one matmul per layer:
# im2col columns (j,l,ci), weight columns (r,t,co).

def _deconv_geom(Hin, Win, K):
    T = (K + 1) // 2            # taps per axis of each sub-kernel
    P = T - 1                   # spatial halo
    Hout = (Hin - 1) * 2 + K
    Wout = (Win - 1) * 2 + K
    Hq, Wq = Hin + P, Win + P   # per-phase output grid (>= ceil(Hout/2))
    return T, P, Hout, Wout, Hq, Wq


def deconv2x_relu(x_nhwc, pk, *, K):
    """ConvTranspose2d(stride=2) + ReLU.  bf16 in, bf16 out (NHWC)."""
    B, Hin, Win, Cin = x_nhwc.shape
    T, P, Hout, Wout, Hq, Wq = _deconv_geom(Hin, Win, K)
    Cout = pk["w2"].shape[1] // 4

    # pad Hq so M = B*Hq*Wq is 16-divisible -> 2 even 8-aligned row tiles
    Hq_pad = Hq
    while (B * Hq_pad * Wq) % 16 != 0:
        Hq_pad += 1
    dH = Hq_pad - Hq

    # wrapper layout plumbing: im2col over the T*T shared taps (tiny tensors)
    xpad = jnp.pad(x_nhwc, ((0, 0), (P, P + dH), (P, P), (0, 0)))
    cols = [xpad[:, P - j:P - j + Hq_pad, P - l:P - l + Wq, :]
            for j in range(T) for l in range(T)]
    xcol = jnp.concatenate(cols, axis=-1).reshape(B * Hq_pad * Wq, T * T * Cin)

    y = matmul_bias_act(xcol, pk["w2"], pk["b2"], "relu", jnp.bfloat16)

    # interleave phases: out[b, 2q+r, 2p+t, co] = y[b, q, p, r, t, co]; crop.
    y = y.reshape(B, Hq_pad, Wq, 2, 2, Cout)
    y = jnp.transpose(y, (0, 1, 3, 2, 4, 5)).reshape(B, 2 * Hq_pad, 2 * Wq, Cout)
    return y[:, :Hout, :Wout, :]


def deconv2x_sigmoid_nchw(x_nhwc, pk, *, K):
    """Final ConvTranspose2d(stride=2) + sigmoid, emitted directly as NCHW f32.
    Uses the transposed matmul so the 2048-long spatial dim is lane dense."""
    B, Hin, Win, Cin = x_nhwc.shape
    T, P, Hout, Wout, Hq, Wq = _deconv_geom(Hin, Win, K)
    Cout = pk["w2T"].shape[0] // 4

    Hq_pad = Hq
    while (B * Hq_pad * Wq) % 16 != 0:
        Hq_pad += 1
    dH = Hq_pad - Hq
    M = B * Hq_pad * Wq

    xT = jnp.transpose(x_nhwc, (3, 0, 1, 2))                 # (Cin, B, H, W)
    xTpad = jnp.pad(xT, ((0, 0), (0, 0), (P, P + dH), (P, P)))
    cols = [xTpad[:, :, P - j:P - j + Hq_pad, P - l:P - l + Wq].reshape(Cin, M)
            for j in range(T) for l in range(T)]
    xcolT = jnp.concatenate(cols, axis=0)                     # (T*T*Cin, M)

    yT = matmulT_bias_sigmoid(pk["w2T"], xcolT, pk["b2col"])  # (4*Cout, M) f32

    # yT rows index (r,t,co), cols index (b,q,p) -> NCHW interleave + crop.
    y = yT.reshape(2, 2, Cout, B, Hq_pad, Wq)
    y = jnp.transpose(y, (3, 2, 4, 0, 5, 1)).reshape(B, Cout, 2 * Hq_pad, 2 * Wq)
    return y[:, :, :Hout, :Wout]


# ----------------------------- weight pre-packing -----------------------------
def _pack_deconv(w_torch, b_torch, transpose_for_lanes=False):
    """Pack the 4 phase sub-kernels of a stride-2 ConvTranspose2d into one
    matmul weight: w2[(j,l,ci), (r,t,co)] = W[ci,co,2j+r,2l+t]."""
    Cin, Cout, K, _ = w_torch.shape
    T = (K + 1) // 2
    wp = jnp.pad(w_torch, ((0, 0), (0, 0), (0, 2 * T - K), (0, 2 * T - K)))
    w2 = jnp.transpose(wp.reshape(Cin, Cout, T, 2, T, 2), (2, 4, 0, 3, 5, 1))
    w2 = w2.reshape(T * T * Cin, 4 * Cout).astype(jnp.bfloat16)
    b2 = jnp.tile(b_torch, 4).astype(jnp.float32)
    if transpose_for_lanes:
        return {"w2T": w2.T, "b2col": b2.reshape(4 * Cout, 1)}
    return {"w2": w2, "b2": b2.reshape(1, 4 * Cout)}


def pack_decoder_params(p):
    """Run ONCE (outside the per-step forward): all transposes / bf16 casts /
    lane padding of weights are done here so the jitted forward only reads
    pre-packed tensors."""
    L, H = p["fc1_w"].shape
    Cin1, Cout1, K1, _ = p["d1_w"].shape
    N1 = K1 * K1 * Cout1
    Np1 = ((N1 + 255) // 256) * 256          # pad so Np1/2 is a 128 multiple
    w2 = jnp.transpose(p["d1_w"], (0, 2, 3, 1)).reshape(Cin1, N1)
    w2 = jnp.pad(w2, ((0, 0), (0, Np1 - N1))).astype(jnp.bfloat16)
    b2 = jnp.pad(jnp.tile(p["d1_b"], K1 * K1), (0, Np1 - N1))
    b2 = b2.reshape(1, Np1).astype(jnp.float32)

    packed = {
        "fc_d1": {
            "w1": p["fc1_w"].astype(jnp.bfloat16),
            "b1": p["fc1_b"].reshape(1, H).astype(jnp.float32),
            "w2": w2, "b2": b2,
        },
        "d2": _pack_deconv(p["d2_w"], p["d2_b"]),
        "d3": _pack_deconv(p["d3_w"], p["d3_b"]),
        "d4": _pack_deconv(p["d4_w"], p["d4_b"], transpose_for_lanes=True),
    }
    cfg = {"d1_K": K1, "d1_Cout": Cout1,
           "d2_K": p["d2_w"].shape[2],
           "d3_K": p["d3_w"].shape[2],
           "d4_K": p["d4_w"].shape[2]}
    return packed, cfg


# --------------------------------- Decoder ------------------------------------
def init_decoder_params(key, img_channels, latent_size):
    ks = jax.random.split(key, 10)
    s = 0.05
    return {
        "fc1_w": s * jax.random.normal(ks[0], (latent_size, 1024), jnp.float32),
        "fc1_b": s * jax.random.normal(ks[1], (1024,), jnp.float32),
        # ConvTranspose2d weights in PyTorch layout (Cin, Cout, K, K)
        "d1_w": s * jax.random.normal(ks[2], (1024, 128, 5, 5), jnp.float32),
        "d1_b": s * jax.random.normal(ks[3], (128,), jnp.float32),
        "d2_w": s * jax.random.normal(ks[4], (128, 64, 5, 5), jnp.float32),
        "d2_b": s * jax.random.normal(ks[5], (64,), jnp.float32),
        "d3_w": s * jax.random.normal(ks[6], (64, 32, 6, 6), jnp.float32),
        "d3_b": s * jax.random.normal(ks[7], (32,), jnp.float32),
        "d4_w": s * jax.random.normal(ks[8], (32, img_channels, 6, 6), jnp.float32),
        "d4_b": s * jax.random.normal(ks[9], (img_channels,), jnp.float32),
    }


def decoder_forward(packed, x, *, cfg):
    # x: (B, latent_size) -> (B, C, 64, 64), matching torch Decoder.forward.
    h = fc_deconv1(x, packed["fc_d1"],
                   K=cfg["d1_K"], Cout=cfg["d1_Cout"])          # (B,5,5,128) bf16
    h = deconv2x_relu(h, packed["d2"], K=cfg["d2_K"])           # (B,13,13,64) bf16
    h = deconv2x_relu(h, packed["d3"], K=cfg["d3_K"])           # (B,30,30,32) bf16
    return deconv2x_sigmoid_nchw(h, packed["d4"], K=cfg["d4_K"])  # (B,C,64,64) f32


# ---------------------------- pure-JAX f32 reference ---------------------------
def _ref_conv_t(x_nhwc, w_torch, b, stride, act):
    K = w_torch.shape[2]
    wf = jnp.transpose(w_torch[:, :, ::-1, ::-1], (2, 3, 0, 1))
    xpad = jax.lax.pad(
        x_nhwc, jnp.float32(0.0),
        [(0, 0, 0), (K - 1, K - 1, stride - 1), (K - 1, K - 1, stride - 1), (0, 0, 0)])
    Hout = (x_nhwc.shape[1] - 1) * stride + K
    Wout = (x_nhwc.shape[2] - 1) * stride + K
    acc = jnp.zeros((x_nhwc.shape[0], Hout, Wout, w_torch.shape[1]), jnp.float32)
    for kh in range(K):
        for kw in range(K):
            acc = acc + jnp.einsum(
                "bhwc,cd->bhwd", xpad[:, kh:kh + Hout, kw:kw + Wout, :], wf[kh, kw])
    y = acc + b.reshape(1, 1, 1, -1)
    return jnp.maximum(y, 0.0) if act == "relu" else jax.nn.sigmoid(y)


def decoder_reference(params, x):
    h = jnp.maximum(x @ params["fc1_w"] + params["fc1_b"], 0.0)
    h = h.reshape(h.shape[0], 1, 1, -1)
    h = _ref_conv_t(h, params["d1_w"], params["d1_b"], 2, "relu")
    h = _ref_conv_t(h, params["d2_w"], params["d2_b"], 2, "relu")
    h = _ref_conv_t(h, params["d3_w"], params["d3_b"], 2, "relu")
    h = _ref_conv_t(h, params["d4_w"], params["d4_b"], 2, "sigmoid")
    return jnp.transpose(h, (0, 3, 1, 2))


if __name__ == "__main__":
    B, IMG_CHANNELS, LATENT = 2, 3, 32

    key = jax.random.PRNGKey(0)
    pkey, xkey = jax.random.split(key)
    params = init_decoder_params(pkey, IMG_CHANNELS, LATENT)
    x = jax.random.normal(xkey, (B, LATENT), jnp.float32)

    # One-time weight packing (outside the per-step forward).
    packed, cfg = pack_decoder_params(params)
    packed = jax.block_until_ready(packed)

    fwd = jax.jit(functools.partial(decoder_forward, cfg=cfg))
    out = jax.block_until_ready(fwd(packed, x))
    assert out.shape == (B, IMG_CHANNELS, 64, 64), out.shape

    ref = jax.block_until_ready(jax.jit(decoder_reference)(params, x))
    max_err = float(jnp.max(jnp.abs(out - ref)))
    # bf16 MXU inputs / bf16 intermediate activations (f32 accumulation)
    # vs f32 reference -> loosened tolerance.
    assert jnp.allclose(out, ref, rtol=2e-2, atol=2e-2), max_err

    print("KERNEL_OK")
</pallas_src>

<mosaic_0001>
module attributes {stable_mosaic.version = 11 : i64} {
  func.func @_fc_deconv1_kernel(%arg0: i32, %arg1: memref<2x32xbf16, #tpu.memory_space<vmem>>, %arg2: memref<32x1024xbf16, #tpu.memory_space<vmem>>, %arg3: memref<1x1024xf32, #tpu.memory_space<vmem>>, %arg4: memref<1024x1664xbf16, #tpu.memory_space<vmem>>, %arg5: memref<1x1664xf32, #tpu.memory_space<vmem>>, %arg6: memref<2x1664xbf16, #tpu.memory_space<vmem>>) attributes {dimension_semantics = [#tpu.dimension_semantics<parallel>], iteration_bounds = array<i64: 2>, scalar_prefetch = 0 : i64, scratch_operands = 0 : i64, tpu.core_type = #tpu.core_type<tc>, window_params = [{pipeline_mode = #tpu.pipeline_mode<synchronous>, transform_indices = @transform_0, window_bounds = array<i64: 2, 32>}, {pipeline_mode = #tpu.pipeline_mode<synchronous>, transform_indices = @transform_1, window_bounds = array<i64: 32, 1024>}, {pipeline_mode = #tpu.pipeline_mode<synchronous>, transform_indices = @transform_2, window_bounds = array<i64: 1, 1024>}, {transform_indices = @transform_3, window_bounds = array<i64: 1024, 1664>}, {transform_indices = @transform_4, window_bounds = array<i64: 1, 1664>}, {transform_indices = @transform_5, window_bounds = array<i64: 2, 1664>}]} {
    %c0 = arith.constant 0 : index
    %c0_0 = arith.constant 0 : index
    %0 = vector.load %arg1[%c0, %c0_0] : memref<2x32xbf16, #tpu.memory_space<vmem>>, vector<2x32xbf16>
    %c0_1 = arith.constant 0 : index
    %c0_2 = arith.constant 0 : index
    %1 = vector.load %arg2[%c0_1, %c0_2] : memref<32x1024xbf16, #tpu.memory_space<vmem>>, vector<32x1024xbf16>
    %cst = arith.constant dense<0.000000e+00> : vector<2x1024xf32>
    %2 = tpu.matmul %0, %1, %cst {dimension_numbers = #tpu.dot_dimension_numbers<[1], [0], [0], [1], [0, 0, 1, 1], [], []>} : vector<2x32xbf16>, vector<32x1024xbf16>, vector<2x1024xf32> -> vector<2x1024xf32>
    %c0_3 = arith.constant 0 : index
    %c0_4 = arith.constant 0 : index
    %3 = vector.load %arg3[%c0_3, %c0_4] : memref<1x1024xf32, #tpu.memory_space<vmem>>, vector<1x1024xf32>
    %4 = vector.broadcast %3 : vector<1x1024xf32> to vector<2x1024xf32>
    %5 = arith.addf %2, %4 : vector<2x1024xf32>
    %cst_5 = arith.constant 0.000000e+00 : f32
    %6 = vector.broadcast %cst_5 : f32 to vector<2x1024xf32>
    %7 = arith.maximumf %5, %6 : vector<2x1024xf32>
    %8 = arith.truncf %7 : vector<2x1024xf32> to vector<2x1024xbf16>
    %c0_6 = arith.constant 0 : index
    %c0_7 = arith.constant 0 : index
    %9 = vector.load %arg4[%c0_6, %c0_7] : memref<1024x1664xbf16, #tpu.memory_space<vmem>>, vector<1024x1664xbf16>
    %cst_8 = arith.constant dense<0.000000e+00> : vector<2x1664xf32>
    %10 = tpu.matmul %8, %9, %cst_8 {dimension_numbers = #tpu.dot_dimension_numbers<[1], [0], [0], [1], [0, 0, 1, 1], [], []>} : vector<2x1024xbf16>, vector<1024x1664xbf16>, vector<2x1664xf32> -> vector<2x1664xf32>
    %c0_9 = arith.constant 0 : index
    %c0_10 = arith.constant 0 : index
    %11 = vector.load %arg5[%c0_9, %c0_10] : memref<1x1664xf32, #tpu.memory_space<vmem>>, vector<1x1664xf32>
    %12 = vector.broadcast %11 : vector<1x1664xf32> to vector<2x1664xf32>
    %13 = arith.addf %10, %12 : vector<2x1664xf32>
    %cst_11 = arith.constant 0.000000e+00 : f32
    %14 = vector.broadcast %cst_11 : f32 to vector<2x1664xf32>
    %15 = arith.maximumf %13, %14 : vector<2x1664xf32>
    %16 = arith.truncf %15 : vector<2x1664xf32> to vector<2x1664xbf16>
    %c0_12 = arith.constant 0 : index
    %c0_13 = arith.constant 0 : index
    %17 = vector.load %arg6[%c0_12, %c0_13] : memref<2x1664xbf16, #tpu.memory_space<vmem>>, vector<2x1664xbf16>
    tpu.vector_store %arg6[%c0_12, %c0_13], %16 {strides = array<i32>} : memref<2x1664xbf16, #tpu.memory_space<vmem>>, vector<2x1664xbf16>,
    return
  }
  func.func @transform_0(%arg0: i32) -> (i32, i32) {
    %c0_i32 = arith.constant 0 : i32
    %c0_i32_0 = arith.constant 0 : i32
    %c0_i32_1 = arith.constant 0 : i32
    return %c0_i32, %c0_i32_0 : i32, i32
  }
  func.func @transform_1(%arg0: i32) -> (i32, i32) {
    %c0_i32 = arith.constant 0 : i32
    %c0_i32_0 = arith.constant 0 : i32
    %c0_i32_1 = arith.constant 0 : i32
    return %c0_i32, %c0_i32_0 : i32, i32
  }
  func.func @transform_2(%arg0: i32) -> (i32, i32) {
    %c0_i32 = arith.constant 0 : i32
    %c0_i32_0 = arith.constant 0 : i32
    %c0_i32_1 = arith.constant 0 : i32
    return %c0_i32, %c0_i32_0 : i32, i32
  }
  func.func @transform_3(%arg0: i32) -> (i32, i32) {
    %c0_i32 = arith.constant 0 : i32
    %c0_i32_0 = arith.constant 0 : i32
    return %c0_i32, %arg0 : i32, i32
  }
  func.func @transform_4(%arg0: i32) -> (i32, i32) {
    %c0_i32 = arith.constant 0 : i32
    %c0_i32_0 = arith.constant 0 : i32
    return %c0_i32, %arg0 : i32, i32
  }
  func.func @transform_5(%arg0: i32) -> (i32, i32) {
    %c0_i32 = arith.constant 0 : i32
    %c0_i32_0 = arith.constant 0 : i32
    return %c0_i32, %arg0 : i32, i32
  }
}

module attributes {stable_mosaic.version = 11 : i64} {
  func.func @_matmul_bias_act_kernel(%arg0: i32, %arg1: memref<56x1152xbf16, #tpu.memory_space<vmem>>, %arg2: memref<1152x256xbf16, #tpu.memory_space<vmem>>, %arg3: memref<1x256xf32, #tpu.memory_space<vmem>>, %arg4: memref<56x256xbf16, #tpu.memory_space<vmem>>) attributes {dimension_semantics = [#tpu.dimension_semantics<parallel>], iteration_bounds = array<i64: 2>, scalar_prefetch = 0 : i64, scratch_operands = 0 : i64, tpu.core_type = #tpu.core_type<tc>, window_params = [{transform_indices = @transform_0, window_bounds = array<i64: 56, 1152>}, {pipeline_mode = #tpu.pipeline_mode<synchronous>, transform_indices = @transform_1, window_bounds = array<i64: 1152, 256>}, {pipeline_mode = #tpu.pipeline_mode<synchronous>, transform_indices = @transform_2, window_bounds = array<i64: 1, 256>}, {transform_indices = @transform_3, window_bounds = array<i64: 56, 256>}]} {
    %c0 = arith.constant 0 : index
    %c0_0 = arith.constant 0 : index
    %0 = vector.load %arg1[%c0, %c0_0] : memref<56x1152xbf16, #tpu.memory_space<vmem>>, vector<56x1152xbf16>
    %c0_1 = arith.constant 0 : index
    %c0_2 = arith.constant 0 : index
    %1 = vector.load %arg2[%c0_1, %c0_2] : memref<1152x256xbf16, #tpu.memory_space<vmem>>, vector<1152x256xbf16>
    %cst = arith.constant dense<0.000000e+00> : vector<56x256xf32>
    %2 = tpu.matmul %0, %1, %cst {dimension_numbers = #tpu.dot_dimension_numbers<[1], [0], [0], [1], [0, 0, 1, 1], [], []>} : vector<56x1152xbf16>, vector<1152x256xbf16>, vector<56x256xf32> -> vector<56x256xf32>
    %c0_3 = arith.constant 0 : index
    %c0_4 = arith.constant 0 : index
    %3 = vector.load %arg3[%c0_3, %c0_4] : memref<1x256xf32, #tpu.memory_space<vmem>>, vector<1x256xf32>
    %4 = vector.broadcast %3 : vector<1x256xf32> to vector<56x256xf32>
    %5 = arith.addf %2, %4 : vector<56x256xf32>
    %cst_5 = arith.constant 0.000000e+00 : f32
    %6 = vector.broadcast %cst_5 : f32 to vector<56x256xf32>
    %7 = arith.maximumf %5, %6 : vector<56x256xf32>
    %8 = arith.truncf %7 : vector<56x256xf32> to vector<56x256xbf16>
    %c0_6 = arith.constant 0 : index
    %c0_7 = arith.constant 0 : index
    %9 = vector.load %arg4[%c0_6, %c0_7] : memref<56x256xbf16, #tpu.memory_space<vmem>>, vector<56x256xbf16>
    tpu.vector_store %arg4[%c0_6, %c0_7], %8 {strides = array<i32>} : memref<56x256xbf16, #tpu.memory_space<vmem>>, vector<56x256xbf16>,
    return
  }
  func.func @transform_0(%arg0: i32) -> (i32, i32) {
    %c0_i32 = arith.constant 0 : i32
    %c0_i32_0 = arith.constant 0 : i32
    return %arg0, %c0_i32 : i32, i32
  }
  func.func @transform_1(%arg0: i32) -> (i32, i32) {
    %c0_i32 = arith.constant 0 : i32
    %c0_i32_0 = arith.constant 0 : i32
    %c0_i32_1 = arith.constant 0 : i32
    return %c0_i32, %c0_i32_0 : i32, i32
  }
  func.func @transform_2(%arg0: i32) -> (i32, i32) {
    %c0_i32 = arith.constant 0 : i32
    %c0_i32_0 = arith.constant 0 : i32
    %c0_i32_1 = arith.constant 0 : i32
    return %c0_i32, %c0_i32_0 : i32, i32
  }
  func.func @transform_3(%arg0: i32) -> (i32, i32) {
    %c0_i32 = arith.constant 0 : i32
    %c0_i32_0 = arith.constant 0 : i32
    return %arg0, %c0_i32 : i32, i32
  }
}

module attributes {stable_mosaic.version = 11 : i64} {
  func.func @_matmul_bias_act_kernel(%arg0: i32, %arg1: memref<240x576xbf16, #tpu.memory_space<vmem>>, %arg2: memref<576x128xbf16, #tpu.memory_space<vmem>>, %arg3: memref<1x128xf32, #tpu.memory_space<vmem>>, %arg4: memref<240x128xbf16, #tpu.memory_space<vmem>>) attributes {dimension_semantics = [#tpu.dimension_semantics<parallel>], iteration_bounds = array<i64: 2>, scalar_prefetch = 0 : i64, scratch_operands = 0 : i64, tpu.core_type = #tpu.core_type<tc>, window_params = [{transform_indices = @transform_0, window_bounds = array<i64: 240, 576>}, {pipeline_mode = #tpu.pipeline_mode<synchronous>, transform_indices = @transform_1, window_bounds = array<i64: 576, 128>}, {pipeline_mode = #tpu.pipeline_mode<synchronous>, transform_indices = @transform_2, window_bounds = array<i64: 1, 128>}, {transform_indices = @transform_3, window_bounds = array<i64: 240, 128>}]} {
    %c0 = arith.constant 0 : index
    %c0_0 = arith.constant 0 : index
    %0 = vector.load %arg1[%c0, %c0_0] : memref<240x576xbf16, #tpu.memory_space<vmem>>, vector<240x576xbf16>
    %c0_1 = arith.constant 0 : index
    %c0_2 = arith.constant 0 : index
    %1 = vector.load %arg2[%c0_1, %c0_2] : memref<576x128xbf16, #tpu.memory_space<vmem>>, vector<576x128xbf16>
    %cst = arith.constant dense<0.000000e+00> : vector<240x128xf32>
    %2 = tpu.matmul %0, %1, %cst {dimension_numbers = #tpu.dot_dimension_numbers<[1], [0], [0], [1], [0, 0, 1, 1], [], []>} : vector<240x576xbf16>, vector<576x128xbf16>, vector<240x128xf32> -> vector<240x128xf32>
    %c0_3 = arith.constant 0 : index
    %c0_4 = arith.constant 0 : index
    %3 = vector.load %arg3[%c0_3, %c0_4] : memref<1x128xf32, #tpu.memory_space<vmem>>, vector<1x128xf32>
    %4 = vector.broadcast %3 : vector<1x128xf32> to vector<240x128xf32>
    %5 = arith.addf %2, %4 : vector<240x128xf32>
    %cst_5 = arith.constant 0.000000e+00 : f32
    %6 = vector.broadcast %cst_5 : f32 to vector<240x128xf32>
    %7 = arith.maximumf %5, %6 : vector<240x128xf32>
    %8 = arith.truncf %7 : vector<240x128xf32> to vector<240x128xbf16>
    %c0_6 = arith.constant 0 : index
    %c0_7 = arith.constant 0 : index
    %9 = vector.load %arg4[%c0_6, %c0_7] : memref<240x128xbf16, #tpu.memory_space<vmem>>, vector<240x128xbf16>
    tpu.vector_store %arg4[%c0_6, %c0_7], %8 {strides = array<i32>} : memref<240x128xbf16, #tpu.memory_space<vmem>>, vector<240x128xbf16>,
    return
  }
  func.func @transform_0(%arg0: i32) -> (i32, i32) {
    %c0_i32 = arith.constant 0 : i32
    %c0_i32_0 = arith.constant 0 : i32
    return %arg0, %c0_i32 : i32, i32
  }
  func.func @transform_1(%arg0: i32) -> (i32, i32) {
    %c0_i32 = arith.constant 0 : i32
    %c0_i32_0 = arith.constant 0 : i32
    %c0_i32_1 = arith.constant 0 : i32
    return %c0_i32, %c0_i32_0 : i32, i32
  }
  func.func @transform_2(%arg0: i32) -> (i32, i32) {
    %c0_i32 = arith.constant 0 : i32
    %c0_i32_0 = arith.constant 0 : i32
    %c0_i32_1 = arith.constant 0 : i32
    return %c0_i32, %c0_i32_0 : i32, i32
  }
  func.func @transform_3(%arg0: i32) -> (i32, i32) {
    %c0_i32 = arith.constant 0 : i32
    %c0_i32_0 = arith.constant 0 : i32
    return %arg0, %c0_i32 : i32, i32
  }
}

module attributes {stable_mosaic.version = 11 : i64} {
  func.func @_matmulT_bias_sigmoid_kernel(%arg0: i32, %arg1: memref<12x288xbf16, #tpu.memory_space<vmem>>, %arg2: memref<288x1024xbf16, #tpu.memory_space<vmem>>, %arg3: memref<12x1xf32, #tpu.memory_space<vmem>>, %arg4: memref<12x1024xf32, #tpu.memory_space<vmem>>) attributes {dimension_semantics = [#tpu.dimension_semantics<parallel>], iteration_bounds = array<i64: 2>, scalar_prefetch = 0 : i64, scratch_operands = 0 : i64, tpu.core_type = #tpu.core_type<tc>, window_params = [{pipeline_mode = #tpu.pipeline_mode<synchronous>, transform_indices = @transform_0, window_bounds = array<i64: 12, 288>}, {transform_indices = @transform_1, window_bounds = array<i64: 288, 1024>}, {pipeline_mode = #tpu.pipeline_mode<synchronous>, transform_indices = @transform_2, window_bounds = array<i64: 12, 1>}, {transform_indices = @transform_3, window_bounds = array<i64: 12, 1024>}]} {
    %c0 = arith.constant 0 : index
    %c0_0 = arith.constant 0 : index
    %0 = vector.load %arg1[%c0, %c0_0] : memref<12x288xbf16, #tpu.memory_space<vmem>>, vector<12x288xbf16>
    %c0_1 = arith.constant 0 : index
    %c0_2 = arith.constant 0 : index
    %1 = vector.load %arg2[%c0_1, %c0_2] : memref<288x1024xbf16, #tpu.memory_space<vmem>>, vector<288x1024xbf16>
    %cst = arith.constant dense<0.000000e+00> : vector<12x1024xf32>
    %2 = tpu.matmul %0, %1, %cst {dimension_numbers = #tpu.dot_dimension_numbers<[1], [0], [0], [1], [0, 0, 1, 1], [], []>} : vector<12x288xbf16>, vector<288x1024xbf16>, vector<12x1024xf32> -> vector<12x1024xf32>
    %c0_3 = arith.constant 0 : index
    %c0_4 = arith.constant 0 : index
    %3 = vector.load %arg3[%c0_3, %c0_4] : memref<12x1xf32, #tpu.memory_space<vmem>>, vector<12x1xf32>
    %4 = vector.broadcast %3 : vector<12x1xf32> to vector<12x1024xf32>
    %5 = arith.addf %2, %4 : vector<12x1024xf32>
    %6 = arith.negf %5 : vector<12x1024xf32>
    %7 = math.exp %6 : vector<12x1024xf32>
    %cst_5 = arith.constant 1.000000e+00 : f32
    %8 = vector.broadcast %cst_5 : f32 to vector<12x1024xf32>
    %9 = arith.addf %8, %7 : vector<12x1024xf32>
    %10 = arith.divf %8, %9 : vector<12x1024xf32>
    %c0_6 = arith.constant 0 : index
    %c0_7 = arith.constant 0 : index
    %11 = vector.load %arg4[%c0_6, %c0_7] : memref<12x1024xf32, #tpu.memory_space<vmem>>, vector<12x1024xf32>
    tpu.vector_store %arg4[%c0_6, %c0_7], %10 {strides = array<i32>} : memref<12x1024xf32, #tpu.memory_space<vmem>>, vector<12x1024xf32>,
    return
  }
  func.func @transform_0(%arg0: i32) -> (i32, i32) {
    %c0_i32 = arith.constant 0 : i32
    %c0_i32_0 = arith.constant 0 : i32
    %c0_i32_1 = arith.constant 0 : i32
    return %c0_i32, %c0_i32_0 : i32, i32
  }
  func.func @transform_1(%arg0: i32) -> (i32, i32) {
    %c0_i32 = arith.constant 0 : i32
    %c0_i32_0 = arith.constant 0 : i32
    return %c0_i32, %arg0 : i32, i32
  }
  func.func @transform_2(%arg0: i32) -> (i32, i32) {
    %c0_i32 = arith.constant 0 : i32
    %c0_i32_0 = arith.constant 0 : i32
    %c0_i32_1 = arith.constant 0 : i32
    return %c0_i32, %c0_i32_0 : i32, i32
  }
  func.func @transform_3(%arg0: i32) -> (i32, i32) {
    %c0_i32 = arith.constant 0 : i32
    %c0_i32_0 = arith.constant 0 : i32
    return %c0_i32, %arg0 : i32, i32
  }
}

</mosaic_0001>

<bundles_post_ra>
// kernel: decoder_forward.5
= control target key start
LH: loop header
LB: loop body
LE: loop exit
PB: predicated region body
PF: predicated region fallthrough
CT: control target
= control target key end

     0   :  { %8 = vsyncpa [#allocation3], 0  ;;  %s3292_s0 = inlined_call_operand.vmem [shape: bf16[112,1152], index: 0, kind: input, shape index: {}]   ;;  %s3293_s1 = inlined_call_operand.hbm [shape: bf16[1152,256], index: 1, kind: input, shape index: {}]   ;;  %s3294_s2 = inlined_call_operand.hbm [shape: f32[1,256], index: 2, kind: input, shape index: {}]   ;;  %s3295_s3 = inlined_call_operand.vmem [shape: bf16[112,256], index: 3, kind: output, shape index: {}]  }
   0x1   :  { %9 = vsyncpa [#allocation5], 0  ;;  %s2916_s12 = smov 0  }
   0x2 LB: > { %s125_s15 = sshll.u32 %s3293_s1, 4  ;;  %s1898_s16 = sadd.s32 4294967295, %s2890_s12   ;;  %s2890_s12 = sphi %s2916_s12, %s15_s12   ;;  %s126_s15 = int_to_ptr.hbm [resolvable:$true] %s125_s15 }
   0x3   : > { %p1900_p0 = scmp.ge.s32.totalorder %s2890_s12, 1  ;;  %p114_p1 = scmp.lt.s32.totalorder %s2890_s12, 3 }
   0x4   : > { %p2929_p2 = scmp.eq.s32.totalorder %s1898_s16, 0  ;;  %s2892_s19 = smov [#allocation2]  }
   0x5   : > { %p2933_p3 = pnand %p1900_p0, %p114_p1  ;;  %s127_s20 = sshll.u32 %s2892_s19, 4  ;;  %s128_s20 = int_to_ptr.vmem [resolvable:$true] %s127_s20 }
   0x6   : > { %s140_s23 = sshll.u32 %s3294_s2, 4  ;;  %s2893_s24 = smov [#allocation4]   ;;  %s141_s23 = int_to_ptr.hbm [resolvable:$true] %s140_s23 }
   0x7   : > { %p2793_p4 = pneg %p2933_p3  ;;  %s142_s25 = sshll.u32 %s2893_s24, 4  ;;  %s143_s25 = int_to_ptr.vmem [resolvable:$true] %s142_s25 }
   0x8   : > { %s2894_s26 = smov 128   ;;  %s2895_s27 = smov 8  }
   0x9   : > { %p2794_p5 = pnand %p2929_p2, %p2793_p4  ;;  %165 = sbr.rel (%p2933_p3) target bundleno = 468 (0x1d4), region = 32 }
   0xb   : > { %2796 = dma.hbm_to_vmem [thread:$0]  (!%p2794_p5), %s126_s15, 18432, %s128_s20, [#allocation3], %s2894_s26, %s2894_s26, %s2895_s27  }
   0xc   : > { %2799 = dma.hbm_to_vmem [thread:$0]  (!%p2794_p5), %s141_s23, 32, %s143_s25, [#allocation5]  }
   0xe   : > { %2881 = dma.done.wait (%p2929_p2), [#allocation3], 18432  }
   0xf   : > { %2883 = vsyncadd (%p2929_p2), [#allocation3], 4294948864 }
  0x10   : > { %2885 = dma.done.wait (%p2929_p2), [#allocation5], 32  }
  0x11   : > { %2887 = vsyncadd (%p2929_p2), [#allocation5], 4294967264  ;;  %v2076_v0 = vld [vmem:[#allocation2 + $0x70] sm:$0xf]  ;;  %v2639_v1 = vld [vmem:[#allocation2 + $0x74] sm:$0xf0] }
  0x12   : > { %v2140_v2 = vld [vmem:[#allocation2 + $0xf0] sm:$0xf]  ;;  %v2077_v3 = vor.u32 %v2639_v1, %v2076_v0  ;;  %v2655_v4 = vld [vmem:[#allocation2 + $0xf4] sm:$0xf0]  ;;  %v2068_v5 = vld [vmem:[#allocation2 + $0x60] sm:$0xf] }
  0x13   : > { %v2637_v6 = vld [vmem:[#allocation2 + $0x64] sm:$0xf0]  ;;  %v2141_v7 = vor.u32 %v2655_v4, %v2140_v2  ;;  %v2132_v8 = vld [vmem:[#allocation2 + $0xe0] sm:$0xf]  ;;  %v2060_v12 = vld [vmem:[#allocation2 + $0x50] sm:$0xf] }
  0x14   : > { %v2653_v9 = vld [vmem:[#allocation2 + $0xe4] sm:$0xf0]  ;;  %2768 = vmatpush.bf16.msra.mxu2 %v2077_v3  ;;  %1286 = vmatpush.bf16.msra.mxu0 %v2077_v3  ;;  %v2069_v10 = vor.u32 %v2637_v6, %v2068_v5  ;;  %v2635_v13 = vld [vmem:[#allocation2 + $0x54] sm:$0xf0]  ;;  %v2124_v14 = vld [vmem:[#allocation2 + $0xd0] sm:$0xf] }
  0x15   : > { %2776 = vmatpush.bf16.msra.mxu3 %v2141_v7  ;;  %1314 = vmatpush.bf16.msra.mxu1 %v2141_v7  ;;  %v2133_v11 = vor.u32 %v2653_v9, %v2132_v8  ;;  %v2651_v15 = vld [vmem:[#allocation2 + $0xd4] sm:$0xf0]  ;;  %s197_s28 = smul.u32 7, %s1898_s16  ;;  %v2061_v16 = vor.u32 %v2635_v13, %v2060_v12  ;;  %v2052_v18 = vld [vmem:[#allocation2 + $0x40] sm:$0xf] }
  0x16   : > { %v2125_v17 = vor.u32 %v2651_v15, %v2124_v14  ;;  %v2633_v19 = vld [vmem:[#allocation2 + $0x44] sm:$0xf0]  ;;  %v2116_v20 = vld [vmem:[#allocation2 + $0xc0] sm:$0xf]  ;;  %v2044_v24 = vld [vmem:[#allocation2 + $0x30] sm:$0xf] }
  0x17   : > { %v2649_v21 = vld [vmem:[#allocation2 + $0xc4] sm:$0xf0]  ;;  %p198_p6 = scmp.lt.s32.totalorder %s197_s28, 13  ;;  %v2053_v22 = vor.u32 %v2633_v19, %v2052_v18  ;;  %v2631_v25 = vld [vmem:[#allocation2 + $0x34] sm:$0xf0] }
  0x18   : > { %2769 = vmatpush.bf16.msra.mxu2 %v2069_v10  ;;  %1287 = vmatpush.bf16.msra.mxu0 %v2069_v10  ;;  %v2117_v23 = vor.u32 %v2649_v21, %v2116_v20  ;;  %v2108_v26 = vld [vmem:[#allocation2 + $0xb0] sm:$0xf]  ;;  %v2647_v27 = vld [vmem:[#allocation2 + $0xb4] sm:$0xf0]  ;;  %v2045_v28 = vor.u32 %v2631_v25, %v2044_v24  ;;  %v2036_v30 = vld [vmem:[#allocation2 + $0x20] sm:$0xf] }
  0x19   : > { %2777 = vmatpush.bf16.msra.mxu3 %v2133_v11  ;;  %1315 = vmatpush.bf16.msra.mxu1 %v2133_v11  ;;  %s3299_s28 = smov (!%p198_p6, %s197_s28), 13  ;;  %v2109_v29 = vor.u32 %v2647_v27, %v2108_v26  ;;  %v2629_v31 = vld [vmem:[#allocation2 + $0x24] sm:$0xf0]  ;;  %v2100_v32 = vld [vmem:[#allocation2 + $0xa0] sm:$0xf] }
  0x1a   : > { %v2645_v33 = vld [vmem:[#allocation2 + $0xa4] sm:$0xf0]  ;;  %s2784_s29 = smul.u32 36, %s3299_s28  ;;  %v2037_v34 = vor.u32 %v2629_v31, %v2036_v30  ;;  %v2028_v36 = vld [vmem:[#allocation2 + $0x10] sm:$0xf]  ;;  %s2596_s6 = sshll.u32 %s3299_s28, 3 }
  0x1b   : > { %v2101_v35 = vor.u32 %v2645_v33, %v2100_v32  ;;  %v2627_v37 = vld [vmem:[#allocation2 + $0x14] sm:$0xf0]  ;;  %v2092_v38 = vld [vmem:[#allocation2 + $0x90] sm:$0xf]  ;;  %v2020_v41 = vld [vmem:[#allocation2] sm:$0xf]  ;;  %s3269_s9 = scalar_lea.vmem %s3295_s3, %s2596_s6 }
  0x1c   : > { %2770 = vmatpush.bf16.msra.mxu2 %v2061_v16  ;;  %1288 = vmatpush.bf16.msra.mxu0 %v2061_v16  ;;  %v2643_v39 = vld [vmem:[#allocation2 + $0x94] sm:$0xf0]  ;;  %s2962_s5 = scalar_lea.vmem %s3292_s0, %s2784_s29  ;;  %v2029_v40 = vor.u32 %v2627_v37, %v2028_v36  ;;  %v2625_v43 = vld [vmem:[#allocation2 + $0x4] sm:$0xf0]  ;;  %v2084_v44 = vld [vmem:[#allocation2 + $0x80] sm:$0xf] }
  0x1d   : > { %2778 = vmatpush.bf16.msra.mxu3 %v2125_v17  ;;  %1316 = vmatpush.bf16.msra.mxu1 %v2125_v17  ;;  %v2093_v42 = vor.u32 %v2643_v39, %v2092_v38  ;;  %v2641_v45 = vld [vmem:[#allocation2 + $0x84] sm:$0xf0]  ;;  %v1984_v46 = vld [vmem:[%s2962_s5 + $0x90] sm:$0xf]  ;;  %v2619_v47 = vld [vmem:[%s2962_s5 + $0xb0] sm:$0xf0]  ;;  %v2021_v54 = vor.u32 %v2625_v43, %v2020_v41 }
  0x1e   : > { %v2204_v48 = vld [vmem:[#allocation2 + $0x170] sm:$0xf]  ;;  %v2615_v49 = vld [vmem:[%s2962_s5 + $0x94] sm:$0xf]  ;;  %v1986_v50 = vld [vmem:[%s2962_s5 + $0xb4] sm:$0xf0]  ;;  %v2085_v58 = vor.u32 %v2641_v45, %v2084_v44  ;;  %v2972_v3 = vor.u32 %v2619_v47, %v1984_v46 }
  0x1f   : > { %v2671_v51 = vld [vmem:[#allocation2 + $0x174] sm:$0xf0]  ;;  %v2268_v52 = vld [vmem:[#allocation2 + $0x1f0] sm:$0xf]  ;;  %v1912_v55 = vld [vmem:[%s2962_s5] sm:$0xf]  ;;  %v2976_v8 = vor.u32 %v2615_v49, %v1986_v50 }
  0x20   : > { %2771 = vmatpush.bf16.msra.mxu2 %v2053_v22  ;;  %1289 = vmatpush.bf16.msra.mxu0 %v2053_v22  ;;  %v2687_v53 = vld [vmem:[#allocation2 + $0x1f4] sm:$0xf0]  ;;  %v2601_v56 = vld [vmem:[%s2962_s5 + $0x20] sm:$0xf0]  ;;  %v1914_v59 = vld [vmem:[%s2962_s5 + $0x24] sm:$0xf0]  ;;  %v2205_v62 = vor.u32 %v2671_v51, %v2204_v48 }
  0x21   : > { %2779 = vmatpush.bf16.msra.mxu3 %v2117_v23  ;;  %1317 = vmatpush.bf16.msra.mxu1 %v2117_v23  ;;  %v2597_v57 = vld [vmem:[%s2962_s5 + $0x4] sm:$0xf]  ;;  %v2332_v60 = vld [vmem:[#allocation2 + $0x270] sm:$0xf]  ;;  %v2703_v61 = vld [vmem:[#allocation2 + $0x274] sm:$0xf0]  ;;  %v2269_v63 = vor.u32 %v2687_v53, %v2268_v52  ;;  %v2974_v4 = vor.u32 %v2601_v56, %v1912_v55 }
  0x22   : > { %v2196_v0 = vld [vmem:[#allocation2 + $0x160] sm:$0xf]  ;;  %v2396_v1 = vld [vmem:[#allocation2 + $0x2f0] sm:$0xf]  ;;  %v2719_v2 = vld [vmem:[#allocation2 + $0x2f4] sm:$0xf0]  ;;  %v2978_v9 = vor.u32 %v2597_v57, %v1914_v59  ;;  %v2333_v10 = vor.u32 %v2703_v61, %v2332_v60 }
  0x23   : > { %v2669_v5 = vld [vmem:[#allocation2 + $0x164] sm:$0xf0]  ;;  %v2260_v6 = vld [vmem:[#allocation2 + $0x1e0] sm:$0xf]  ;;  %v2397_v11 = vor.u32 %v2719_v2, %v2396_v1  ;;  %v2188_v16 = vld [vmem:[#allocation2 + $0x150] sm:$0xf] }
  0x24   : > { %2772 = vmatpush.bf16.msra.mxu2 %v2045_v28  ;;  %1290 = vmatpush.bf16.msra.mxu0 %v2045_v28  ;;  %v2685_v7 = vld [vmem:[#allocation2 + $0x1e4] sm:$0xf0]  ;;  %v2324_v12 = vld [vmem:[#allocation2 + $0x260] sm:$0xf]  ;;  %v2197_v14 = vor.u32 %v2669_v5, %v2196_v0  ;;  %v2667_v19 = vld [vmem:[#allocation2 + $0x154] sm:$0xf0] }
  0x25   : > { %2780 = vmatpush.bf16.msra.mxu3 %v2109_v29  ;;  %1318 = vmatpush.bf16.msra.mxu1 %v2109_v29  ;;  %v2701_v13 = vld [vmem:[#allocation2 + $0x264] sm:$0xf0]  ;;  %v2261_v15 = vor.u32 %v2685_v7, %v2260_v6  ;;  %v2388_v17 = vld [vmem:[#allocation2 + $0x2e0] sm:$0xf]  ;;  %v2252_v20 = vld [vmem:[#allocation2 + $0x1d0] sm:$0xf]  ;;  %v2189_v26 = vor.u32 %v2667_v19, %v2188_v16 }
  0x26   : > { %v2717_v18 = vld [vmem:[#allocation2 + $0x2e4] sm:$0xf0]  ;;  %v2683_v21 = vld [vmem:[#allocation2 + $0x1d4] sm:$0xf0]  ;;  %v2325_v22 = vor.u32 %v2701_v13, %v2324_v12  ;;  %v2316_v24 = vld [vmem:[#allocation2 + $0x250] sm:$0xf] }
  0x27   : > { %v2389_v23 = vor.u32 %v2717_v18, %v2388_v17  ;;  %v2699_v25 = vld [vmem:[#allocation2 + $0x254] sm:$0xf0]  ;;  %v2253_v27 = vor.u32 %v2683_v21, %v2252_v20  ;;  %v2180_v28 = vld [vmem:[#allocation2 + $0x140] sm:$0xf]  ;;  %v2380_v29 = vld [vmem:[#allocation2 + $0x2d0] sm:$0xf] }
  0x28   : > { %2773 = vmatpush.bf16.msra.mxu2 %v2037_v34  ;;  %1291 = vmatpush.bf16.msra.mxu0 %v2037_v34  ;;  %v2715_v30 = vld [vmem:[#allocation2 + $0x2d4] sm:$0xf0]  ;;  %v2665_v31 = vld [vmem:[#allocation2 + $0x144] sm:$0xf0]  ;;  %v2244_v32 = vld [vmem:[#allocation2 + $0x1c0] sm:$0xf] }
  0x29   : > { %2781 = vmatpush.bf16.msra.mxu3 %v2101_v35  ;;  %1319 = vmatpush.bf16.msra.mxu1 %v2101_v35  ;;  %v2681_v33 = vld [vmem:[#allocation2 + $0x1c4] sm:$0xf0]  ;;  %v241_v34 = vld [vmem:[%s2962_s5 + $0xd8] sm:$0xff]  ;;  %v2317_v35 = vor.u32 %v2699_v25, %v2316_v24  ;;  %v2381_v36 = vor.u32 %v2715_v30, %v2380_v29  ;;  %v2308_v37 = vld [vmem:[#allocation2 + $0x240] sm:$0xf]  ;;  %v2181_v39 = vor.u32 %v2665_v31, %v2180_v28 }
  0x2a   : > { %v2697_v38 = vld [vmem:[#allocation2 + $0x244] sm:$0xf0]  ;;  %v2172_v41 = vld [vmem:[#allocation2 + $0x130] sm:$0xf]  ;;  %v485_v44 = vunpack.c.l.b16 %v241_v34  ;;  %v2663_v45 = vld [vmem:[#allocation2 + $0x134] sm:$0xf0]  ;;  %v486_v48 = vunpack.c.h.b16 %v241_v34 }
  0x2b   : > { %v2713_v43 = vld [vmem:[#allocation2 + $0x2c4] sm:$0xf0]  ;;  %v2236_v46 = vld [vmem:[#allocation2 + $0x1b0] sm:$0xf]  ;;  %v2679_v47 = vld [vmem:[#allocation2 + $0x1b4] sm:$0xf0]  ;;  %v2309_v52 = vor.u32 %v2697_v38, %v2308_v37  ;;  %v2173_v57 = vor.u32 %v2663_v45, %v2172_v41 }
  0x2c   : > { %2774 = vmatpush.bf16.msra.mxu2 %v2029_v40  ;;  %1292 = vmatpush.bf16.msra.mxu0 %v2029_v40  ;;  %v2245_v40 = vor.u32 %v2681_v33, %v2244_v32  ;;  %v1948_v49 = vld [vmem:[%s2962_s5 + $0x48] sm:$0xf]  ;;  %v2610_v50 = vld [vmem:[%s2962_s5 + $0x68] sm:$0xf0]  ;;  %v2300_v55 = vld [vmem:[#allocation2 + $0x230] sm:$0xf]  ;;  %v2993_v5 = vpack.c.b16 %v486_v48, %v486_v48 }
  0x2d   : > { %2782 = vmatpush.bf16.msra.mxu3 %v2093_v42  ;;  %1320 = vmatpush.bf16.msra.mxu1 %v2093_v42  ;;  %v2372_v42 = vld [vmem:[#allocation2 + $0x2c0] sm:$0xf]  ;;  %v2606_v51 = vld [vmem:[%s2962_s5 + $0x4c] sm:$0xf]  ;;  %v2695_v56 = vld [vmem:[#allocation2 + $0x234] sm:$0xf0] }
  0x2e   : > { %v2373_v53 = vor.u32 %v2713_v43, %v2372_v42  ;;  %v2164_v59 = vld [vmem:[#allocation2 + $0x120] sm:$0xf]  ;;  %v2364_v60 = vld [vmem:[#allocation2 + $0x2b0] sm:$0xf]  ;;  %v2711_v61 = vld [vmem:[#allocation2 + $0x2b4] sm:$0xf0]  ;;  %v2301_v7 = vor.u32 %v2695_v56, %v2300_v55 }
  0x2f   : > { %v2661_v0 = vld [vmem:[#allocation2 + $0x124] sm:$0xf0]  ;;  %v2228_v1 = vld [vmem:[#allocation2 + $0x1a0] sm:$0xf]  ;;  %v2659_v18 = vld [vmem:[#allocation2 + $0x114] sm:$0xf0] }
  0x30   : > { %2775 = vmatpush.bf16.msra.mxu2 %v2021_v54  ;;  %1293 = vmatpush.bf16.msra.mxu0 %v2021_v54  ;;  %v1950_v54 = vld [vmem:[%s2962_s5 + $0x6c] sm:$0xf0]  ;;  %v2677_v2 = vld [vmem:[#allocation2 + $0x1a4] sm:$0xf0]  ;;  %v2165_v13 = vor.u32 %v2661_v0, %v2164_v59  ;;  %v2356_v16 = vld [vmem:[#allocation2 + $0x2a0] sm:$0xf] }
  0x31   : > { %2783 = vmatpush.bf16.msra.mxu3 %v2085_v58  ;;  %1321 = vmatpush.bf16.msra.mxu1 %v2085_v58  ;;  %v2237_v58 = vor.u32 %v2679_v47, %v2236_v46  ;;  %v2995_v6 = vor.u32 %v2606_v51, %v1950_v54  ;;  %v2693_v12 = vld [vmem:[#allocation2 + $0x224] sm:$0xf0]  ;;  %v2220_v19 = vld [vmem:[#allocation2 + $0x190] sm:$0xf]  ;;  %v2675_v20 = vld [vmem:[#allocation2 + $0x194] sm:$0xf0] }
  0x32   : > { %v2709_v17 = vld [vmem:[#allocation2 + $0x2a4] sm:$0xf0]  ;;  %v2691_v24 = vld [vmem:[#allocation2 + $0x214] sm:$0xf0]  ;;  %v2148_v25 = vld [vmem:[#allocation2 + $0x100] sm:$0xf] }
  0x33   : > { %1304 = vmatmul.bf16.vlgmr.msra.gmra.mxu2 %v2972_v3  ;;  %1294 = vmatmul.bf16.vlgmr.msra.gmra.mxu0 %v2974_v4  ;;  %v2657_v28 = vld [vmem:[#allocation2 + $0x104] sm:$0xf0]  ;;  %v2348_v29 = vld [vmem:[#allocation2 + $0x290] sm:$0xf]  ;;  %v2707_v30 = vld [vmem:[#allocation2 + $0x294] sm:$0xf0] }
  0x34   : > { %1342 = vmatpush.bf16.msrb.mxu2 %v2205_v62  ;;  %1332 = vmatmul.bf16.vlgmr.msra.gmra.mxu3 %v2976_v8  ;;  %v2989_v62 = vpack.c.b16 %v485_v44, %v485_v44  ;;  %v2212_v31 = vld [vmem:[#allocation2 + $0x180] sm:$0xf]  ;;  %v2673_v32 = vld [vmem:[#allocation2 + $0x184] sm:$0xf0]  ;;  %v2460_v33 = vld [vmem:[#allocation2 + $0x370] sm:$0xf]  ;;  %v2349_v38 = vor.u32 %v2707_v30, %v2348_v29  ;;  %v2149_v41 = vor.u32 %v2657_v28, %v2148_v25 }
  0x35   : > { %1370 = vmatpush.bf16.msrb.mxu3 %v2269_v63  ;;  %1322 = vmatmul.bf16.vlgmr.msra.gmra.mxu1 %v2978_v9  ;;  %v2991_v63 = vor.u32 %v2610_v50, %v1948_v49  ;;  %v2735_v34 = vld [vmem:[#allocation2 + $0x374] sm:$0xf0]  ;;  %v2213_v42 = vor.u32 %v2673_v32, %v2212_v31  ;;  %v1920_v43 = vld [vmem:[%s2962_s5 + $0x8] sm:$0xf]  ;;  %v2602_v44 = vld [vmem:[%s2962_s5 + $0x28] sm:$0xf0] }
  0x36   : > { %1398 = vmatpush.bf16.msrb.mxu0 %v2333_v10  ;;  %1426 = vmatpush.bf16.msrb.mxu1 %v2397_v11  ;;  %v2365_v10 = vor.u32 %v2711_v61, %v2364_v60  ;;  %v2292_v11 = vld [vmem:[#allocation2 + $0x220] sm:$0xf]  ;;  %v2705_v46 = vld [vmem:[#allocation2 + $0x284] sm:$0xf0]  ;;  %v2588_v47 = vld [vmem:[#allocation2 + $0x470] sm:$0xf]  ;;  %v2461_v50 = vor.u32 %v2735_v34, %v2460_v33 }
  0x37   : > { %v2293_v21 = vor.u32 %v2693_v12, %v2292_v11  ;;  %v2340_v45 = vld [vmem:[#allocation2 + $0x280] sm:$0xf]  ;;  %v2598_v48 = vld [vmem:[%s2962_s5 + $0xc] sm:$0xf]  ;;  %v1922_v49 = vld [vmem:[%s2962_s5 + $0x2c] sm:$0xf0]  ;;  %v3009_v12 = vor.u32 %v2602_v44, %v1920_v43 }
  0x38   : > { %1343 = vmatpush.bf16.msrb.mxu2 %v2197_v14  ;;  %v2229_v14 = vor.u32 %v2677_v2, %v2228_v1  ;;  %v2078_v54 = vld [vmem:[#allocation2 + $0x78] sm:$0xf0]  ;;  %v1928_v55 = vld [vmem:[%s2962_s5 + $0x10] sm:$0xf]  ;;  %v2516_v56 = vld [vmem:[#allocation2 + $0x3e0] sm:$0xf]  ;;  %v2341_v59 = vor.u32 %v2705_v46, %v2340_v45 }
  0x39   : > { %1371 = vmatpush.bf16.msrb.mxu3 %v2261_v15  ;;  %v2156_v15 = vld [vmem:[#allocation2 + $0x110] sm:$0xf]  ;;  %v2603_v60 = vld [vmem:[%s2962_s5 + $0x30] sm:$0xf0]  ;;  %v1930_v0 = vld [vmem:[%s2962_s5 + $0x34] sm:$0xf0] }
  0x3a   : > { %1399 = vmatpush.bf16.msrb.mxu0 %v2325_v22  ;;  %1427 = vmatpush.bf16.msrb.mxu1 %v2389_v23  ;;  %v2357_v22 = vor.u32 %v2709_v17, %v2356_v16  ;;  %v2284_v23 = vld [vmem:[#allocation2 + $0x210] sm:$0xf]  ;;  %v2599_v61 = vld [vmem:[%s2962_s5 + $0x14] sm:$0xf]  ;;  %v2452_v1 = vld [vmem:[#allocation2 + $0x360] sm:$0xf]  ;;  %v3011_v17 = vor.u32 %v2598_v48, %v1922_v49 }
  0x3b   : > { %v2285_v37 = vor.u32 %v2691_v24, %v2284_v23  ;;  %v2733_v2 = vld [vmem:[#allocation2 + $0x364] sm:$0xf0]  ;;  %v2580_v11 = vld [vmem:[#allocation2 + $0x460] sm:$0xf]  ;;  %v2070_v16 = vld [vmem:[#allocation2 + $0x68] sm:$0xf0] }
  0x3c   : > { %1344 = vmatpush.bf16.msrb.mxu2 %v2189_v26  ;;  %v2157_v26 = vor.u32 %v2659_v18, %v2156_v15  ;;  %v2636_v15 = vld [vmem:[#allocation2 + $0x64] sm:$0xf]  ;;  %v3013_v18 = vor.u32 %v2603_v60, %v1928_v55  ;;  %v2444_v23 = vld [vmem:[#allocation2 + $0x350] sm:$0xf]  ;;  %v2731_v24 = vld [vmem:[#allocation2 + $0x354] sm:$0xf0] }
  0x3d   : > { %1372 = vmatpush.bf16.msrb.mxu3 %v2253_v27  ;;  %v2221_v27 = vor.u32 %v2675_v20, %v2220_v19  ;;  %v2508_v19 = vld [vmem:[#allocation2 + $0x3d0] sm:$0xf]  ;;  %v2747_v20 = vld [vmem:[#allocation2 + $0x3d4] sm:$0xf0]  ;;  %v2634_v30 = vld [vmem:[#allocation2 + $0x54] sm:$0xf]  ;;  %v2445_v34 = vor.u32 %v2731_v24, %v2444_v23 }
  0x3e   : > { %1400 = vmatpush.bf16.msrb.mxu0 %v2317_v35  ;;  %1428 = vmatpush.bf16.msrb.mxu1 %v2381_v36  ;;  %v2524_v35 = vld [vmem:[#allocation2 + $0x3f0] sm:$0xf]  ;;  %v2751_v36 = vld [vmem:[#allocation2 + $0x3f4] sm:$0xf0]  ;;  %v2509_v28 = vor.u32 %v2747_v20, %v2508_v19  ;;  %v2062_v31 = vld [vmem:[#allocation2 + $0x58] sm:$0xf0] }
  0x3f   : > { %v2525_v51 = vor.u32 %v2751_v36, %v2524_v35  ;;  %v2763_v29 = vld [vmem:[#allocation2 + $0x454] sm:$0xf0]  ;;  %v2500_v32 = vld [vmem:[#allocation2 + $0x3c0] sm:$0xf]  ;;  %v2745_v33 = vld [vmem:[#allocation2 + $0x3c4] sm:$0xf0] }
  0x40   : > { %1345 = vmatpush.bf16.msrb.mxu2 %v2181_v39  ;;  %v2276_v39 = vld [vmem:[#allocation2 + $0x200] sm:$0xf]  ;;  %v2729_v36 = vld [vmem:[#allocation2 + $0x344] sm:$0xf0]  ;;  %v2054_v43 = vld [vmem:[#allocation2 + $0x48] sm:$0xf0] }
  0x41   : > { %1373 = vmatpush.bf16.msrb.mxu3 %v2245_v40  ;;  %v2689_v40 = vld [vmem:[#allocation2 + $0x204] sm:$0xf0]  ;;  %v2436_v35 = vld [vmem:[#allocation2 + $0x340] sm:$0xf]  ;;  %v2492_v44 = vld [vmem:[#allocation2 + $0x3b0] sm:$0xf] }
  0x42   : > { %1401 = vmatpush.bf16.msrb.mxu0 %v2309_v52  ;;  %1429 = vmatpush.bf16.msrb.mxu1 %v2373_v53  ;;  %v2767_v52 = vld [vmem:[#allocation2 + $0x474] sm:$0xf0]  ;;  %v2638_v53 = vld [vmem:[#allocation2 + $0x74] sm:$0xf]  ;;  %v2437_v46 = vor.u32 %v2729_v36, %v2436_v35  ;;  %v2428_v49 = vld [vmem:[#allocation2 + $0x330] sm:$0xf] }
  0x43   : > { %1309 = vmatmul.bf16.gmra.mxu2 %v2989_v62  ;;  %1299 = vmatmul.bf16.gmra.mxu0 %v2991_v63  ;;  %v2743_v45 = vld [vmem:[#allocation2 + $0x3b4] sm:$0xf0]  ;;  %v2611_v48 = vld [vmem:[%s2962_s5 + $0x70] sm:$0xf0]  ;;  %v2484_v60 = vld [vmem:[#allocation2 + $0x3a0] sm:$0xf] }
  0x44   : > { %1346 = vmatpush.bf16.msrb.mxu2 %v2173_v57  ;;  %1337 = vmatmul.bf16.gmra.mxu3 %v2993_v5  ;;  %v2749_v57 = vld [vmem:[#allocation2 + $0x3e4] sm:$0xf0]  ;;  %v2493_v55 = vor.u32 %v2743_v45, %v2492_v44  ;;  %v2038_v35 = vld [vmem:[#allocation2 + $0x28] sm:$0xf0]  ;;  %v2404_v36 = vld [vmem:[#allocation2 + $0x300] sm:$0xf] }
  0x45   : > { %1374 = vmatpush.bf16.msrb.mxu3 %v2237_v58  ;;  %1327 = vmatmul.bf16.gmra.mxu1 %v2995_v6  ;;  %v2277_v58 = vor.u32 %v2689_v40, %v2276_v39  ;;  %v2564_v39 = vld [vmem:[#allocation2 + $0x440] sm:$0xf]  ;;  %v2501_v40 = vor.u32 %v2745_v33, %v2500_v32  ;;  %v2626_v44 = vld [vmem:[#allocation2 + $0x14] sm:$0xf] }
  0x46   : > { %1402 = vmatpush.bf16.msrb.mxu0 %v2301_v7  ;;  %1430 = vmatpush.bf16.msrb.mxu1 %v2365_v10  ;;  %v2589_v7 = vor.u32 %v2767_v52, %v2588_v47  ;;  %v2081_v10 = vor.u32 %v2638_v53, %v2078_v54  ;;  %v1956_v47 = vld [vmem:[%s2962_s5 + $0x50] sm:$0xf]  ;;  %v2607_v54 = vld [vmem:[%s2962_s5 + $0x54] sm:$0xf] }
  0x47   : > { %v2556_v53 = vld [vmem:[#allocation2 + $0x430] sm:$0xf] }
  0x48   : > { %1347 = vmatpush.bf16.msrb.mxu2 %v2165_v13  ;;  %v2517_v13 = vor.u32 %v2749_v57, %v2516_v56  ;;  %v2759_v56 = vld [vmem:[#allocation2 + $0x434] sm:$0xf0]  ;;  %v2630_v57 = vld [vmem:[#allocation2 + $0x34] sm:$0xf] }
  0x49   : > { %1375 = vmatpush.bf16.msrb.mxu3 %v2229_v14  ;;  %v2765_v14 = vld [vmem:[#allocation2 + $0x464] sm:$0xf0] }
  0x4a   : > { %1403 = vmatpush.bf16.msrb.mxu0 %v2293_v21  ;;  %1431 = vmatpush.bf16.msrb.mxu1 %v2357_v22  ;;  %v3015_v21 = vor.u32 %v2599_v61, %v1930_v0  ;;  %v2453_v22 = vor.u32 %v2733_v2, %v2452_v1  ;;  %v2581_v25 = vor.u32 %v2765_v14, %v2580_v11  ;;  %v2741_v61 = vld [vmem:[#allocation2 + $0x3a4] sm:$0xf0]  ;;  %v1964_v0 = vld [vmem:[%s2962_s5 + $0x58] sm:$0xf]  ;;  %v2612_v1 = vld [vmem:[%s2962_s5 + $0x78] sm:$0xf0] }
  0x4b   : > { %v2608_v2 = vld [vmem:[%s2962_s5 + $0x5c] sm:$0xf]  ;;  %v2420_v11 = vld [vmem:[#allocation2 + $0x320] sm:$0xf]  ;;  %v2557_v14 = vor.u32 %v2759_v56, %v2556_v53  ;;  %v2485_v19 = vor.u32 %v2741_v61, %v2484_v60 }
  0x4c   : > { %1348 = vmatpush.bf16.msrb.mxu2 %v2157_v26  ;;  %v2073_v26 = vor.u32 %v2636_v15, %v2070_v16  ;;  %v3029_v16 = vor.u32 %v2611_v48, %v1956_v47  ;;  %v2030_v47 = vld [vmem:[#allocation2 + $0x18] sm:$0xf0]  ;;  %v2532_v48 = vld [vmem:[#allocation2 + $0x400] sm:$0xf] }
  0x4d   : > { %1376 = vmatpush.bf16.msrb.mxu3 %v2221_v27  ;;  %v2572_v27 = vld [vmem:[#allocation2 + $0x450] sm:$0xf]  ;;  %v2616_v53 = vld [vmem:[%s2962_s5 + $0x9c] sm:$0xf]  ;;  %v2000_v56 = vld [vmem:[%s2962_s5 + $0xa0] sm:$0xf] }
  0x4e   : > { %1404 = vmatpush.bf16.msrb.mxu0 %v2285_v37  ;;  %1432 = vmatpush.bf16.msrb.mxu1 %v2349_v38  ;;  %v2573_v37 = vor.u32 %v2763_v29, %v2572_v27  ;;  %v2065_v38 = vor.u32 %v2634_v30, %v2062_v31  ;;  %v2476_v27 = vld [vmem:[#allocation2 + $0x390] sm:$0xf]  ;;  %v2739_v29 = vld [vmem:[#allocation2 + $0x394] sm:$0xf0]  ;;  %v2548_v30 = vld [vmem:[#allocation2 + $0x420] sm:$0xf] }
  0x4f   : > { %v2757_v31 = vld [vmem:[#allocation2 + $0x424] sm:$0xf0]  ;;  %v2477_v32 = vor.u32 %v2739_v29, %v2476_v27  ;;  %v2668_v27 = vld [vmem:[#allocation2 + $0x164] sm:$0xf]  ;;  %v2686_v29 = vld [vmem:[#allocation2 + $0x1f4] sm:$0xf] }
  0x50   : > { %1349 = vmatpush.bf16.msrb.mxu2 %v2149_v41  ;;  %v2761_v41 = vld [vmem:[#allocation2 + $0x444] sm:$0xf0]  ;;  %v2549_v33 = vor.u32 %v2757_v31, %v2548_v30  ;;  %v2270_v31 = vld [vmem:[#allocation2 + $0x1f8] sm:$0xf0] }
  0x51   : > { %1377 = vmatpush.bf16.msrb.mxu3 %v2213_v42  ;;  %v2632_v42 = vld [vmem:[#allocation2 + $0x44] sm:$0xf] }
  0x52   : > { %1405 = vmatpush.bf16.msrb.mxu0 %v2277_v58  ;;  %1433 = vmatpush.bf16.msrb.mxu1 %v2341_v59  ;;  %v2057_v52 = vor.u32 %v2632_v42, %v2054_v43  ;;  %v2046_v58 = vld [vmem:[#allocation2 + $0x38] sm:$0xf0]  ;;  %v1958_v59 = vld [vmem:[%s2962_s5 + $0x74] sm:$0xf0]  ;;  %v2540_v42 = vld [vmem:[#allocation2 + $0x410] sm:$0xf] }
  0x53   : > { %1350 = vmatmul.bf16.vlgmr.msrb.gmra.mxu2 %v3009_v12  ;;  %v2049_v15 = vor.u32 %v2630_v57, %v2046_v58  ;;  %v3031_v20 = vor.u32 %v2607_v54, %v1958_v59  ;;  %v2755_v43 = vld [vmem:[#allocation2 + $0x414] sm:$0xf0]  ;;  %v2621_v57 = vld [vmem:[%s2962_s5 + $0xc0] sm:$0xf0]  ;;  %v2002_v59 = vld [vmem:[%s2962_s5 + $0xc4] sm:$0xf0] }
  0x54   : > { %1454 = vmatpush.bf16.msra.mxu2 %v2461_v50  ;;  %1378 = vmatmul.bf16.vlgmr.msrb.gmra.mxu3 %v3011_v17  ;;  %v2727_v50 = vld [vmem:[#allocation2 + $0x334] sm:$0xf0]  ;;  %v2617_v58 = vld [vmem:[%s2962_s5 + $0xa4] sm:$0xf] }
  0x55   : > { %1482 = vmatpush.bf16.msra.mxu3 %v2525_v51  ;;  %1406 = vmatmul.bf16.vlgmr.msrb.gmra.mxu0 %v3013_v18  ;;  %v2565_v51 = vor.u32 %v2761_v41, %v2564_v39  ;;  %v2468_v39 = vld [vmem:[#allocation2 + $0x380] sm:$0xf] }
  0x56   : > { %1510 = vmatpush.bf16.msra.mxu0 %v2589_v7  ;;  %1538 = vmatpush.bf16.msra.mxu1 %v2081_v10  ;;  %v2429_v7 = vor.u32 %v2727_v50, %v2428_v49  ;;  %v1966_v10 = vld [vmem:[%s2962_s5 + $0x7c] sm:$0xf0]  ;;  %v2753_v49 = vld [vmem:[#allocation2 + $0x404] sm:$0xf0]  ;;  %v2033_v50 = vor.u32 %v2626_v44, %v2030_v47  ;;  %v2650_v47 = vld [vmem:[#allocation2 + $0xd4] sm:$0xf] }
  0x57   : > { %1434 = vmatmul.bf16.vlgmr.msrb.gmra.mxu1 %v3015_v21  ;;  %v3035_v23 = vor.u32 %v2608_v2, %v1966_v10  ;;  %v2533_v54 = vor.u32 %v2753_v49, %v2532_v48  ;;  %v2624_v2 = vld [vmem:[#allocation2 + $0x4] sm:$0xf]  ;;  %v2126_v48 = vld [vmem:[#allocation2 + $0xd8] sm:$0xf0]  ;;  %v2666_v49 = vld [vmem:[#allocation2 + $0x154] sm:$0xf] }
  0x58   : > { %1455 = vmatpush.bf16.msra.mxu2 %v2453_v22  ;;  %v3033_v22 = vor.u32 %v2612_v1, %v1964_v0  ;;  %v3053_v0 = vor.u32 %v2621_v57, %v2000_v56  ;;  %v3055_v1 = vor.u32 %v2617_v58, %v2002_v59  ;;  %v2700_v56 = vld [vmem:[#allocation2 + $0x264] sm:$0xf]  ;;  %v2326_v57 = vld [vmem:[#allocation2 + $0x268] sm:$0xf0] }
  0x59   : > { %1483 = vmatpush.bf16.msra.mxu3 %v2517_v13  ;;  %v2725_v13 = vld [vmem:[#allocation2 + $0x324] sm:$0xf0]  ;;  %v2648_v58 = vld [vmem:[#allocation2 + $0xc4] sm:$0xf]  ;;  %v2329_v59 = vor.u32 %v2700_v56, %v2326_v57 }
  0x5a   : > { %1511 = vmatpush.bf16.msra.mxu0 %v2581_v25  ;;  %1539 = vmatpush.bf16.msra.mxu1 %v2073_v26  ;;  %v2421_v24 = vor.u32 %v2725_v13, %v2420_v11  ;;  %v2412_v25 = vld [vmem:[#allocation2 + $0x310] sm:$0xf]  ;;  %v2723_v26 = vld [vmem:[#allocation2 + $0x314] sm:$0xf0]  ;;  %v2654_v11 = vld [vmem:[#allocation2 + $0xf4] sm:$0xf] }
  0x5b   : > { %v2142_v13 = vld [vmem:[#allocation2 + $0xf8] sm:$0xf0]  ;;  %v2660_v56 = vld [vmem:[#allocation2 + $0x124] sm:$0xf] }
  0x5c   : > { %1456 = vmatpush.bf16.msra.mxu2 %v2445_v34  ;;  %v2628_v34 = vld [vmem:[#allocation2 + $0x24] sm:$0xf] }
  0x5d   : > { %1484 = vmatpush.bf16.msra.mxu3 %v2509_v28  ;;  %v2413_v28 = vor.u32 %v2723_v26, %v2412_v25  ;;  %v2134_v25 = vld [vmem:[#allocation2 + $0xe8] sm:$0xf0] }
  0x5e   : > { %1512 = vmatpush.bf16.msra.mxu0 %v2573_v37  ;;  %1540 = vmatpush.bf16.msra.mxu1 %v2065_v38  ;;  %v2041_v37 = vor.u32 %v2628_v34, %v2038_v35  ;;  %v2721_v38 = vld [vmem:[#allocation2 + $0x304] sm:$0xf0]  ;;  %v242_v34 = vld [vmem:[%s2962_s5 + $0xe0] sm:$0xff] }
  0x5f   : > { %v2405_v45 = vor.u32 %v2721_v38, %v2404_v36  ;;  %v2273_v36 = vor.u32 %v2686_v29, %v2270_v31  ;;  %v243_v38 = vld [vmem:[%s2962_s5 + $0xe8] sm:$0xff]  ;;  %v2600_v29 = vld [vmem:[%s2962_s5 + $0x1c] sm:$0xf]  ;;  %v1944_v31 = vld [vmem:[%s2962_s5 + $0x20] sm:$0xf] }
  0x60   : > { %1457 = vmatpush.bf16.msra.mxu2 %v2437_v46  ;;  %v2541_v46 = vor.u32 %v2755_v43, %v2540_v42  ;;  %v490_v42 = vunpack.c.h.b16 %v243_v38 }
  0x61   : > { %1485 = vmatpush.bf16.msra.mxu3 %v2501_v40  ;;  %v2737_v40 = vld [vmem:[#allocation2 + $0x384] sm:$0xf0] }
  0x62   : > { %1513 = vmatpush.bf16.msra.mxu0 %v2565_v51  ;;  %1541 = vmatpush.bf16.msra.mxu1 %v2057_v52  ;;  %v2469_v41 = vor.u32 %v2737_v40, %v2468_v39  ;;  %v1992_v51 = vld [vmem:[%s2962_s5 + $0x98] sm:$0xf]  ;;  %v2620_v52 = vld [vmem:[%s2962_s5 + $0xb8] sm:$0xf0]  ;;  %v487_v39 = vunpack.c.l.b16 %v242_v34  ;;  %v488_v40 = vunpack.c.h.b16 %v242_v34 }
  0x63   : > { %1355 = vmatmul.bf16.gmra.mxu2 %v3029_v16  ;;  %v3049_v60 = vor.u32 %v2620_v52, %v1992_v51  ;;  %v2190_v51 = vld [vmem:[#allocation2 + $0x158] sm:$0xf0]  ;;  %v2684_v52 = vld [vmem:[#allocation2 + $0x1e4] sm:$0xf] }
  0x64   : > { %1458 = vmatpush.bf16.msra.mxu2 %v2429_v7  ;;  %1383 = vmatmul.bf16.gmra.mxu3 %v3031_v20  ;;  %v2022_v7 = vld [vmem:[#allocation2 + $0x8] sm:$0xf0]  ;;  %v3063_v43 = vpack.c.b16 %v487_v39, %v487_v39  ;;  %v3065_v44 = vpack.c.b16 %v488_v40, %v488_v40  ;;  %v2174_v40 = vld [vmem:[#allocation2 + $0x138] sm:$0xf0] }
  0x65   : > { %1486 = vmatpush.bf16.msra.mxu3 %v2493_v55  ;;  %1411 = vmatmul.bf16.gmra.mxu0 %v3033_v22  ;;  %v1994_v55 = vld [vmem:[%s2962_s5 + $0xbc] sm:$0xf0]  ;;  %v2025_v10 = vor.u32 %v2624_v2, %v2022_v7  ;;  %v2118_v2 = vld [vmem:[#allocation2 + $0xc8] sm:$0xf0]  ;;  %v2664_v7 = vld [vmem:[#allocation2 + $0x144] sm:$0xf] }
  0x66   : > { %1514 = vmatpush.bf16.msra.mxu0 %v2557_v14  ;;  %1542 = vmatpush.bf16.msra.mxu1 %v2049_v15  ;;  %v3051_v61 = vor.u32 %v2616_v53, %v1994_v55  ;;  %v2670_v14 = vld [vmem:[#allocation2 + $0x174] sm:$0xf]  ;;  %v2145_v15 = vor.u32 %v2654_v11, %v2142_v13  ;;  %v2262_v53 = vld [vmem:[#allocation2 + $0x1e8] sm:$0xf0]  ;;  %v2121_v11 = vor.u32 %v2648_v58, %v2118_v2  ;;  %v2238_v2 = vld [vmem:[#allocation2 + $0x1b8] sm:$0xf0] }
  0x67   : > { %1439 = vmatmul.bf16.gmra.mxu1 %v3035_v23  ;;  %v2265_v55 = vor.u32 %v2684_v52, %v2262_v53  ;;  %v2613_v52 = vld [vmem:[%s2962_s5 + $0x80] sm:$0xf0]  ;;  %v2166_v58 = vld [vmem:[#allocation2 + $0x128] sm:$0xf0] }
  0x68   : > { %1459 = vmatpush.bf16.msra.mxu2 %v2421_v24  ;;  %v2652_v24 = vld [vmem:[#allocation2 + $0xe4] sm:$0xf] }
  0x69   : > { %1487 = vmatpush.bf16.msra.mxu3 %v2485_v19  ;;  %v2206_v19 = vld [vmem:[#allocation2 + $0x178] sm:$0xf0]  ;;  %v2137_v30 = vor.u32 %v2652_v24, %v2134_v25 }
  0x6a   : > { %1515 = vmatpush.bf16.msra.mxu0 %v2549_v33  ;;  %1543 = vmatpush.bf16.msra.mxu1 %v2041_v37  ;;  %v2209_v26 = vor.u32 %v2670_v14, %v2206_v19  ;;  %v2334_v33 = vld [vmem:[#allocation2 + $0x278] sm:$0xf0]  ;;  %v2682_v14 = vld [vmem:[#allocation2 + $0x1d4] sm:$0xf] }
  0x6b   : > { %v2698_v19 = vld [vmem:[#allocation2 + $0x254] sm:$0xf]  ;;  %v2318_v25 = vld [vmem:[#allocation2 + $0x258] sm:$0xf0] }
  0x6c   : > { %1460 = vmatpush.bf16.msra.mxu2 %v2413_v28  ;;  %v2198_v28 = vld [vmem:[#allocation2 + $0x168] sm:$0xf0] }
  0x6d   : > { %1488 = vmatpush.bf16.msra.mxu3 %v2477_v32  ;;  %v2702_v32 = vld [vmem:[#allocation2 + $0x274] sm:$0xf]  ;;  %v2201_v35 = vor.u32 %v2668_v27, %v2198_v28  ;;  %v1936_v27 = vld [vmem:[%s2962_s5 + $0x18] sm:$0xf]  ;;  %v2604_v28 = vld [vmem:[%s2962_s5 + $0x38] sm:$0xf0] }
  0x6e   : > { %1516 = vmatpush.bf16.msra.mxu0 %v2541_v46  ;;  %1544 = vmatpush.bf16.msra.mxu1 %v2033_v50  ;;  %v2337_v37 = vor.u32 %v2702_v32, %v2334_v33  ;;  %v3069_v46 = vpack.c.b16 %v490_v42, %v490_v42  ;;  %v2129_v50 = vor.u32 %v2650_v47, %v2126_v48  ;;  %v2605_v32 = vld [vmem:[%s2962_s5 + $0x40] sm:$0xf0]  ;;  %v2246_v42 = vld [vmem:[#allocation2 + $0x1c8] sm:$0xf0] }
  0x6f   : > { %v3081_v33 = vor.u32 %v2604_v28, %v1936_v27  ;;  %v2642_v28 = vld [vmem:[#allocation2 + $0x94] sm:$0xf] }
  0x70   : > { %1461 = vmatpush.bf16.msra.mxu2 %v2405_v45 }
  0x71   : > { %1489 = vmatpush.bf16.msra.mxu3 %v2469_v41  ;;  %v489_v41 = vunpack.c.l.b16 %v243_v38  ;;  %v2662_v38 = vld [vmem:[#allocation2 + $0x134] sm:$0xf] }
  0x72   : > { %1517 = vmatpush.bf16.msra.mxu0 %v2533_v54  ;;  %1545 = vmatpush.bf16.msra.mxu1 %v2025_v10  ;;  %v2193_v54 = vor.u32 %v2666_v49, %v2190_v51  ;;  %v2182_v10 = vld [vmem:[#allocation2 + $0x148] sm:$0xf0]  ;;  %v2177_v47 = vor.u32 %v2662_v38, %v2174_v40  ;;  %v2696_v49 = vld [vmem:[#allocation2 + $0x244] sm:$0xf]  ;;  %v1972_v51 = vld [vmem:[%s2962_s5 + $0x60] sm:$0xf] }
  0x73   : > { %1360 = vmatmul.bf16.gmra.mxu2 %v3049_v60  ;;  %v3067_v45 = vpack.c.b16 %v489_v41, %v489_v41  ;;  %v2185_v13 = vor.u32 %v2664_v7, %v2182_v10  ;;  %v2680_v41 = vld [vmem:[#allocation2 + $0x1c4] sm:$0xf]  ;;  %v1974_v7 = vld [vmem:[%s2962_s5 + $0x84] sm:$0xf0] }
  0x74   : > { %1388 = vmatmul.bf16.gmra.mxu3 %v3051_v61  ;;  %1566 = vmatpush.bf16.msrb.mxu2 %v2145_v15  ;;  %v2254_v15 = vld [vmem:[#allocation2 + $0x1d8] sm:$0xf0]  ;;  %v2249_v48 = vor.u32 %v2680_v41, %v2246_v42  ;;  %v1980_v10 = vld [vmem:[%s2962_s5 + $0x68] sm:$0xf]  ;;  %v2692_v40 = vld [vmem:[#allocation2 + $0x224] sm:$0xf] }
  0x75   : > { %1416 = vmatmul.bf16.gmra.mxu0 %v3053_v0  ;;  %1594 = vmatpush.bf16.msrb.mxu3 %v2209_v26  ;;  %v2257_v24 = vor.u32 %v2682_v14, %v2254_v15  ;;  %v2321_v26 = vor.u32 %v2698_v19, %v2318_v25  ;;  %v3097_v15 = vor.u32 %v2613_v52, %v1972_v51  ;;  %v2694_v25 = vld [vmem:[#allocation2 + $0x234] sm:$0xf]  ;;  %v2294_v41 = vld [vmem:[#allocation2 + $0x228] sm:$0xf0]  ;;  %v3107_v42 = vld [vmem:[#allocation4] sm:$0x3] }
  0x76   : > { %1622 = vmatpush.bf16.msrb.mxu0 %v2273_v36  ;;  %1650 = vmatpush.bf16.msrb.mxu1 %v2337_v37  ;;  %v2646_v36 = vld [vmem:[#allocation2 + $0xb4] sm:$0xf]  ;;  %v2110_v37 = vld [vmem:[#allocation2 + $0xb8] sm:$0xf0]  ;;  %v2016_v51 = vld [vmem:[%s2962_s5 + $0xb0] sm:$0xf] }
  0x77   : > { %1444 = vmatmul.bf16.gmra.mxu1 %v3055_v1  ;;  %v2113_v39 = vor.u32 %v2646_v36, %v2110_v37  ;;  %v2676_v36 = vld [vmem:[#allocation2 + $0x1a4] sm:$0xf]  ;;  %v2230_v37 = vld [vmem:[#allocation2 + $0x1a8] sm:$0xf0] }
  0x78   : > { %1567 = vmatpush.bf16.msrb.mxu2 %v2137_v30  ;;  %v1938_v30 = vld [vmem:[%s2962_s5 + $0x3c] sm:$0xf0]  ;;  %v2640_v52 = vld [vmem:[#allocation2 + $0x84] sm:$0xf] }
  0x79   : > { %1595 = vmatpush.bf16.msrb.mxu3 %v2201_v35  ;;  %v3083_v34 = vor.u32 %v2600_v29, %v1938_v30  ;;  %v3085_v35 = vor.u32 %v2605_v32, %v1944_v31  ;;  %v2094_v29 = vld [vmem:[#allocation2 + $0x98] sm:$0xf0]  ;;  %v2658_v30 = vld [vmem:[#allocation2 + $0x114] sm:$0xf] }
  0x7a   : > { %1623 = vmatpush.bf16.msrb.mxu0 %v2265_v55  ;;  %1651 = vmatpush.bf16.msrb.mxu1 %v2329_v59  ;;  %v2644_v55 = vld [vmem:[#allocation2 + $0xa4] sm:$0xf]  ;;  %v2678_v59 = vld [vmem:[#allocation2 + $0x1b4] sm:$0xf]  ;;  %v2097_v31 = vor.u32 %v2642_v28, %v2094_v29  ;;  %v2158_v32 = vld [vmem:[#allocation2 + $0x118] sm:$0xf0] }
  0x7b   : > { %v2241_v14 = vor.u32 %v2678_v59, %v2238_v2  ;;  %v2161_v38 = vor.u32 %v2658_v30, %v2158_v32  ;;  %v2672_v28 = vld [vmem:[#allocation2 + $0x184] sm:$0xf]  ;;  %v2214_v29 = vld [vmem:[#allocation2 + $0x188] sm:$0xf0] }
  0x7c   : > { %1568 = vmatpush.bf16.msrb.mxu2 %v2129_v50  ;;  %v2310_v50 = vld [vmem:[#allocation2 + $0x248] sm:$0xf0]  ;;  %v2217_v32 = vor.u32 %v2672_v28, %v2214_v29  ;;  %v2750_v29 = vld [vmem:[#allocation2 + $0x3f4] sm:$0xf] }
  0x7d   : > { %1596 = vmatpush.bf16.msrb.mxu3 %v2193_v54  ;;  %v2313_v53 = vor.u32 %v2696_v49, %v2310_v50  ;;  %v2609_v54 = vld [vmem:[%s2962_s5 + $0x64] sm:$0xf]  ;;  %v2618_v49 = vld [vmem:[%s2962_s5 + $0xac] sm:$0xf]  ;;  %v2010_v50 = vld [vmem:[%s2962_s5 + $0xcc] sm:$0xf0] }
  0x7e   : > { %1624 = vmatpush.bf16.msrb.mxu0 %v2257_v24  ;;  %1652 = vmatpush.bf16.msrb.mxu1 %v2321_v26  ;;  %v3099_v19 = vor.u32 %v2609_v54, %v1974_v7  ;;  %v2302_v26 = vld [vmem:[#allocation2 + $0x238] sm:$0xf0]  ;;  %v2656_v54 = vld [vmem:[#allocation2 + $0x104] sm:$0xf]  ;;  %v2690_v7 = vld [vmem:[#allocation2 + $0x214] sm:$0xf] }
  0x7f   : > { %v2305_v27 = vor.u32 %v2694_v25, %v2302_v26  ;;  %v3120_v26 = vor.u32 %v2618_v49, %v2010_v50  ;;  %v2454_v28 = vld [vmem:[#allocation2 + $0x368] sm:$0xf0] }
  0x80   : > { %1569 = vmatpush.bf16.msrb.mxu2 %v2121_v11  ;;  %v2614_v11 = vld [vmem:[%s2962_s5 + $0x88] sm:$0xf0] }
  0x81   : > { %1597 = vmatpush.bf16.msrb.mxu3 %v2185_v13  ;;  %v2169_v13 = vor.u32 %v2660_v56, %v2166_v58  ;;  %v3101_v24 = vor.u32 %v2614_v11, %v1980_v10  ;;  %v2674_v56 = vld [vmem:[#allocation2 + $0x194] sm:$0xf]  ;;  %v2286_v10 = vld [vmem:[#allocation2 + $0x218] sm:$0xf0] }
  0x82   : > { %1625 = vmatpush.bf16.msrb.mxu0 %v2249_v48  ;;  %1653 = vmatpush.bf16.msrb.mxu1 %v2313_v53  ;;  %v2297_v48 = vor.u32 %v2692_v40, %v2294_v41  ;;  %v2086_v53 = vld [vmem:[#allocation2 + $0x88] sm:$0xf0]  ;;  %v2623_v58 = vld [vmem:[%s2962_s5 + $0xd0] sm:$0xf0]  ;;  %v2289_v11 = vor.u32 %v2690_v7, %v2286_v10  ;;  %v2398_v41 = vld [vmem:[#allocation2 + $0x2f8] sm:$0xf0] }
  0x83   : > { %1365 = vmatmul.bf16.gmra.mxu2 %v3063_v43  ;;  %v2718_v40 = vld [vmem:[#allocation2 + $0x2f4] sm:$0xf]  ;;  %v2732_v7 = vld [vmem:[#allocation2 + $0x364] sm:$0xf] }
  0x84   : > { %1393 = vmatmul.bf16.gmra.mxu3 %v3065_v44  ;;  %1570 = vmatpush.bf16.msrb.mxu2 %v2113_v39  ;;  %v2233_v39 = vor.u32 %v2676_v36, %v2230_v37  ;;  %v2688_v36 = vld [vmem:[#allocation2 + $0x204] sm:$0xf]  ;;  %v2278_v37 = vld [vmem:[#allocation2 + $0x208] sm:$0xf0] }
  0x85   : > { %1421 = vmatmul.bf16.gmra.mxu0 %v3067_v45  ;;  %1598 = vmatpush.bf16.msrb.mxu3 %v2177_v47  ;;  %v2008_v47 = vld [vmem:[%s2962_s5 + $0xa8] sm:$0xf] }
  0x86   : > { %1626 = vmatpush.bf16.msrb.mxu0 %v2241_v14  ;;  %1654 = vmatpush.bf16.msrb.mxu1 %v2305_v27  ;;  %v3122_v27 = vor.u32 %v2623_v58, %v2016_v51 }
  0x87   : > { %1449 = vmatmul.bf16.gmra.mxu1 %v3069_v46 }
  0x89   : > { %1599 = vmatpush.bf16.msrb.mxu3 %v2169_v13  ;;  %v3116_v13 = vperm.slane %v3107_v42, 0 }
  0x8a   : > { %1627 = vmatpush.bf16.msrb.mxu0 %v2233_v39  ;;  %1655 = vmatpush.bf16.msrb.mxu1 %v2297_v48  ;;  %v2462_v48 = vld [vmem:[#allocation2 + $0x378] sm:$0xf0] }
  0x8d   : > { %1600 = vmatpush.bf16.msrb.mxu3 %v2161_v38  ;;  %v2281_v38 = vor.u32 %v2688_v36, %v2278_v37 }
  0x8e   : > { %1656 = vmatpush.bf16.msrb.mxu1 %v2289_v11 }
  0x92   : > { %1657 = vmatpush.bf16.msrb.mxu1 %v2281_v38 }
  0x93   : > { %1462 = vmatmul.bf16.vlgmr.msra.gmra.mxu2 %v3081_v33 }
  0x94   : > { %1490 = vmatmul.bf16.vlgmr.msra.gmra.mxu3 %v3083_v34 }
  0x95   : > { %1518 = vmatmul.bf16.vlgmr.msra.gmra.mxu0 %v3085_v35 }
  0x97   : > { %1546 = vmatmul.bf16.vlgmr.msra.gmra.mxu1 %v2974_v4  ;;  %v2102_v4 = vld [vmem:[#allocation2 + $0xa8] sm:$0xf0] }
  0x98   : > { %v2105_v57 = vor.u32 %v2644_v55, %v2102_v4  ;;  %v2089_v55 = vor.u32 %v2640_v52, %v2086_v53  ;;  %v2150_v4 = vld [vmem:[#allocation2 + $0x108] sm:$0xf0] }
  0x99   : > { %v2153_v59 = vor.u32 %v2656_v54, %v2150_v4  ;;  %v244_v54 = vld [vmem:[%s2962_s5 + $0xf0] sm:$0xff] }
  0x9a   : > { %1571 = vmatpush.bf16.msrb.mxu2 %v2105_v57  ;;  %v2222_v57 = vld [vmem:[#allocation2 + $0x198] sm:$0xf0]  ;;  %v492_v10 = vunpack.c.h.b16 %v244_v54 }
  0x9b   : > { %v2225_v2 = vor.u32 %v2674_v56, %v2222_v57  ;;  %1601 = vmatpush.bf16.msrb.mxu3 %v2153_v59  ;;  %v245_v57 = vld [vmem:[%s2962_s5 + $0xf8] sm:$0xf]  ;;  %v2716_v59 = vld [vmem:[#allocation2 + $0x2e4] sm:$0xf] }
  0x9c   : > { %v493_v11 = vunpack.c.l.b16 %v245_v57  ;;  %v2730_v57 = vld [vmem:[#allocation2 + $0x354] sm:$0xf] }
  0x9d   : > { %1628 = vmatpush.bf16.msrb.mxu0 %v2225_v2  ;;  %v2390_v2 = vld [vmem:[#allocation2 + $0x2e8] sm:$0xf0] }
  0x9e   : > { %1572 = vmatpush.bf16.msrb.mxu2 %v2097_v31 }
  0xa1   : > { %1629 = vmatpush.bf16.msrb.mxu0 %v2217_v32 }
  0xa2   : > { %1573 = vmatpush.bf16.msrb.mxu2 %v2089_v55 }
  0xa3   : > { %1467 = vmatmul.bf16.gmra.mxu2 %v3097_v15 }
  0xa4   : > { %1495 = vmatmul.bf16.gmra.mxu3 %v3099_v19 }
  0xa5   : > { %1523 = vmatmul.bf16.gmra.mxu0 %v3101_v24 }
  0xa7   : > { %1551 = vmatmul.bf16.gmra.mxu1 %v2991_v63  ;;  %v2622_v63 = vld [vmem:[%s2962_s5 + $0xc8] sm:$0xf0] }
  0xa8   : > { %v3118_v14 = vor.u32 %v2622_v63, %v2008_v47  ;;  %v2734_v47 = vld [vmem:[#allocation2 + $0x374] sm:$0xf]  ;;  %v2401_v63 = vor.u32 %v2718_v40, %v2398_v41 }
  0xa9   : > { %v2465_v50 = vor.u32 %v2734_v47, %v2462_v48  ;;  %v3142_v47 = vpack.c.b16 %v492_v10, %v492_v10 }
  0xaa   : > { %1678 = vmatpush.bf16.msra.mxu2 %v2401_v63  ;;  %v3144_v63 = vpack.c.b16 %v493_v11, %v493_v11 }
  0xab   : > { %1706 = vmatpush.bf16.msra.mxu3 %v2465_v50 }
  0xb0   : > { %v1295_v25 = vpop.f32.mrf.mxu0 }
  0xb1   : > { %v1296_v30 = vadd.f32 %v1295_v25, %v3116_v13  ;;  %v2393_v25 = vor.u32 %v2716_v59, %v2390_v2  ;;  %v2446_v59 = vld [vmem:[#allocation2 + $0x358] sm:$0xf0]  ;;  %v2748_v2 = vld [vmem:[#allocation2 + $0x3e4] sm:$0xf] }
  0xb2   : > { %v1323_v31 = vpop.f32.mrf.mxu1  ;;  %v2449_v11 = vor.u32 %v2730_v57, %v2446_v59  ;;  %v2510_v57 = vld [vmem:[#allocation2 + $0x3d8] sm:$0xf0] }
  0xb3   : > { %v3125_v39 = vadd.f32 %v1323_v31, %v1296_v30  ;;  %1472 = vmatmul.bf16.gmra.mxu2 %v3118_v14  ;;  %v2526_v30 = vld [vmem:[#allocation2 + $0x3f8] sm:$0xf0]  ;;  %v2457_v31 = vor.u32 %v2732_v7, %v2454_v28  ;;  %v2518_v7 = vld [vmem:[#allocation2 + $0x3e8] sm:$0xf0] }
  0xb4   : > { %1500 = vmatmul.bf16.gmra.mxu3 %v3120_v26  ;;  %v2529_v32 = vor.u32 %v2750_v29, %v2526_v30  ;;  %1679 = vmatpush.bf16.msra.mxu2 %v2393_v25  ;;  %v2521_v25 = vor.u32 %v2748_v2, %v2518_v7 }
  0xb5   : > { %1528 = vmatmul.bf16.gmra.mxu0 %v3122_v27  ;;  %1707 = vmatpush.bf16.msra.mxu3 %v2457_v31 }
  0xb6   : > { %v1305_v49 = vpop.f32.mrf.mxu2  ;;  %1734 = vmatpush.bf16.msra.mxu0 %v2529_v32 }
  0xb7   : > { %1556 = vmatmul.bf16.gmra.mxu1 %v2972_v3  ;;  %v1306_v51 = vadd.f32 %v1305_v49, %v3116_v13  ;;  %v1333_v52 = vpop.f32.mrf.mxu3  ;;  %v491_v3 = vunpack.c.l.b16 %v244_v54 }
  0xb8   : > { %v1297_v53 = vpop.f32.mrf.mxu0 }
  0xb9   : > { %v3133_v55 = vadd.f32 %v1333_v52, %v1306_v51  ;;  %v1298_v4 = vadd.f32 %v1297_v53, %v3116_v13  ;;  %v3140_v40 = vpack.c.b16 %v491_v3, %v491_v3  ;;  %v2766_v52 = vld [vmem:[#allocation2 + $0x474] sm:$0xf]  ;;  %v2590_v53 = vld [vmem:[#allocation2 + $0x478] sm:$0xf0]  ;;  %1708 = vmatpush.bf16.msra.mxu3 %v2449_v11 }
  0xba   : > { %v1325_v56 = vpop.f32.mrf.mxu1  ;;  %v2593_v54 = vor.u32 %v2766_v52, %v2590_v53  ;;  %1735 = vmatpush.bf16.msra.mxu0 %v2521_v25  ;;  %v2728_v52 = vld [vmem:[#allocation2 + $0x344] sm:$0xf]  ;;  %v2438_v53 = vld [vmem:[#allocation2 + $0x348] sm:$0xf0]  ;;  %v2574_v11 = vld [vmem:[#allocation2 + $0x458] sm:$0xf0] }
  0xbb   : > { %v3137_v58 = vadd.f32 %v1325_v56, %v1298_v4  ;;  %v2714_v4 = vld [vmem:[#allocation2 + $0x2d4] sm:$0xf]  ;;  %v2382_v56 = vld [vmem:[#allocation2 + $0x2d8] sm:$0xf0] }
  0xbc   : > { %v2385_v3 = vor.u32 %v2714_v4, %v2382_v56  ;;  %1762 = vmatpush.bf16.msra.mxu1 %v2593_v54  ;;  %v2441_v4 = vor.u32 %v2728_v52, %v2438_v53  ;;  %v2746_v56 = vld [vmem:[#allocation2 + $0x3d4] sm:$0xf] }
  0xbd   : > { %v2513_v59 = vor.u32 %v2746_v56, %v2510_v57  ;;  %v2708_v56 = vld [vmem:[#allocation2 + $0x2a4] sm:$0xf] }
  0xbe   : > { %v1307_v36 = vpop.f32.mrf.mxu2  ;;  %1680 = vmatpush.bf16.msra.mxu2 %v2385_v3  ;;  %1709 = vmatpush.bf16.msra.mxu3 %v2441_v4  ;;  %v2760_v4 = vld [vmem:[#allocation2 + $0x444] sm:$0xf] }
  0xbf   : > { %v1308_v37 = vadd.f32 %v1307_v36, %v3116_v13  ;;  %v1335_v38 = vpop.f32.mrf.mxu3  ;;  %1736 = vmatpush.bf16.msra.mxu0 %v2513_v59  ;;  %v2724_v59 = vld [vmem:[#allocation2 + $0x324] sm:$0xf] }
  0xc0   : > { %v1300_v41 = vpop.f32.mrf.mxu0 }
  0xc1   : > { %v3146_v48 = vadd.f32 %v1335_v38, %v1308_v37  ;;  %v1301_v49 = vadd.f32 %v1300_v41, %v3116_v13  ;;  %v2764_v37 = vld [vmem:[#allocation2 + $0x464] sm:$0xf]  ;;  %v2582_v38 = vld [vmem:[#allocation2 + $0x468] sm:$0xf0] }
  0xc2   : > { %v1328_v50 = vpop.f32.mrf.mxu1  ;;  %v2712_v41 = vld [vmem:[#allocation2 + $0x2c4] sm:$0xf] }
  0xc3   : > { %v3149_v51 = vadd.f32 %v1328_v50, %v1301_v49  ;;  %1477 = vmatmul.bf16.gmra.mxu2 %v3140_v40  ;;  %v2585_v49 = vor.u32 %v2764_v37, %v2582_v38  ;;  %v2374_v50 = vld [vmem:[#allocation2 + $0x2c8] sm:$0xf0]  ;;  %v2744_v37 = vld [vmem:[#allocation2 + $0x3c4] sm:$0xf] }
  0xc4   : > { %1505 = vmatmul.bf16.gmra.mxu3 %v3142_v47  ;;  %v2377_v54 = vor.u32 %v2712_v41, %v2374_v50  ;;  %v2502_v38 = vld [vmem:[#allocation2 + $0x3c8] sm:$0xf0] }
  0xc5   : > { %1533 = vmatmul.bf16.gmra.mxu0 %v3144_v63  ;;  %1763 = vmatpush.bf16.msra.mxu1 %v2585_v49 }
  0xc6   : > { %v1310_v10 = vpop.f32.mrf.mxu2  ;;  %1681 = vmatpush.bf16.msra.mxu2 %v2377_v54 }
  0xc7   : > { %1561 = vmatmul.bf16.gmra.mxu1 %v2989_v62  ;;  %v1311_v28 = vadd.f32 %v1310_v10, %v3116_v13  ;;  %v1338_v29 = vpop.f32.mrf.mxu3  ;;  %v2762_v10 = vld [vmem:[#allocation2 + $0x454] sm:$0xf] }
  0xc8   : > { %v1302_v30 = vpop.f32.mrf.mxu0  ;;  %v2577_v25 = vor.u32 %v2762_v10, %v2574_v11 }
  0xc9   : > { %v3156_v31 = vadd.f32 %v1338_v29, %v1311_v28  ;;  %v1303_v32 = vadd.f32 %v1302_v30, %v3116_v13  ;;  %v2710_v28 = vld [vmem:[#allocation2 + $0x2b4] sm:$0xf]  ;;  %v2366_v29 = vld [vmem:[#allocation2 + $0x2b8] sm:$0xf0] }
  0xca   : > { %v1330_v62 = vpop.f32.mrf.mxu1  ;;  %v2726_v30 = vld [vmem:[#allocation2 + $0x334] sm:$0xf]  ;;  %1764 = vmatpush.bf16.msra.mxu1 %v2577_v25 }
  0xcb   : > { %v3159_v36 = vadd.f32 %v1330_v62, %v1303_v32  ;;  %v2369_v32 = vor.u32 %v2710_v28, %v2366_v29  ;;  %v2430_v62 = vld [vmem:[#allocation2 + $0x338] sm:$0xf0]  ;;  %v2742_v25 = vld [vmem:[#allocation2 + $0x3b4] sm:$0xf] }
  0xcc   : > { %v2433_v49 = vor.u32 %v2726_v30, %v2430_v62  ;;  %v2494_v28 = vld [vmem:[#allocation2 + $0x3b8] sm:$0xf0] }
  0xcd   : > { %1682 = vmatpush.bf16.msra.mxu2 %v2369_v32  ;;  %v2497_v30 = vor.u32 %v2742_v25, %v2494_v28  ;;  %v2704_v28 = vld [vmem:[#allocation2 + $0x284] sm:$0xf] }
  0xce   : > { %v1312_v3 = vpop.f32.mrf.mxu2  ;;  %1710 = vmatpush.bf16.msra.mxu3 %v2433_v49  ;;  %v2758_v49 = vld [vmem:[#allocation2 + $0x434] sm:$0xf] }
  0xcf   : > { %v1340_v2 = vpop.f32.mrf.mxu3  ;;  %v2358_v3 = vld [vmem:[#allocation2 + $0x2a8] sm:$0xf0] }
  0xd0   : > { %v2422_v2 = vld [vmem:[#allocation2 + $0x328] sm:$0xf0]  ;;  %v2361_v10 = vor.u32 %v2708_v56, %v2358_v3 }
  0xd1   : > { %v2425_v11 = vor.u32 %v2724_v59, %v2422_v2  ;;  %v2756_v2 = vld [vmem:[#allocation2 + $0x424] sm:$0xf] }
  0xd2   : > { %v1407_v13 = vpop.f32.mrf.mxu0  ;;  %1683 = vmatpush.bf16.msra.mxu2 %v2361_v10 }
  0xd3   : > { %1574 = vmatmul.bf16.vlgmr.msrb.gmra.mxu2 %v2978_v9  ;;  %v2505_v9 = vor.u32 %v2744_v37, %v2502_v38  ;;  %1711 = vmatpush.bf16.msra.mxu3 %v2425_v11 }
  0xd4   : > { %v1435_v7 = vpop.f32.mrf.mxu1  ;;  %1602 = vmatmul.bf16.vlgmr.msrb.gmra.mxu3 %v3009_v12 }
  0xd5   : > { %1630 = vmatmul.bf16.vlgmr.msrb.gmra.mxu0 %v3011_v17 }
  0xd6   : > { %v1351_v41 = vpop.f32.mrf.mxu2  ;;  %1737 = vmatpush.bf16.msra.mxu0 %v2505_v9  ;;  %v2558_v9 = vld [vmem:[#allocation2 + $0x438] sm:$0xf0] }
  0xd7   : > { %1658 = vmatmul.bf16.vlgmr.msrb.gmra.mxu1 %v3013_v18  ;;  %v1352_v50 = vadd.f32 %v1351_v41, %v3125_v39  ;;  %v1379_v52 = vpop.f32.mrf.mxu3  ;;  %v2566_v18 = vld [vmem:[#allocation2 + $0x448] sm:$0xf0] }
  0xd8   : > { %v2569_v57 = vor.u32 %v2760_v4, %v2566_v18  ;;  %v2740_v4 = vld [vmem:[#allocation2 + $0x3a4] sm:$0xf]  ;;  %v2486_v18 = vld [vmem:[#allocation2 + $0x3a8] sm:$0xf0] }
  0xd9   : > { %v1380_v12 = vadd.f32 %v1379_v52, %v1352_v50  ;;  %v2706_v50 = vld [vmem:[#allocation2 + $0x294] sm:$0xf]  ;;  %v2350_v52 = vld [vmem:[#allocation2 + $0x298] sm:$0xf0] }
  0xda   : > { %v1409_v17 = vpop.f32.mrf.mxu0  ;;  %1765 = vmatpush.bf16.msra.mxu1 %v2569_v57  ;;  %1738 = vmatpush.bf16.msra.mxu0 %v2497_v30  ;;  %v2489_v57 = vor.u32 %v2740_v4, %v2486_v18 }
  0xdb   : > { %v1408_v54 = vadd.f32 %v1407_v13, %v1380_v12  ;;  %v2353_v12 = vor.u32 %v2706_v50, %v2350_v52 }
  0xdc   : > { %v1437_v53 = vpop.f32.mrf.mxu1 }
  0xdd   : > { %v3166_v39 = vadd.f32 %v1435_v7, %v1408_v54  ;;  %v2561_v7 = vor.u32 %v2758_v49, %v2558_v9  ;;  %v2414_v54 = vld [vmem:[#allocation2 + $0x318] sm:$0xf0]  ;;  %1684 = vmatpush.bf16.msra.mxu2 %v2353_v12  ;;  %v2754_v49 = vld [vmem:[#allocation2 + $0x414] sm:$0xf]  ;;  %v2736_v12 = vld [vmem:[#allocation2 + $0x384] sm:$0xf] }
  0xde   : > { %v1353_v29 = vpop.f32.mrf.mxu2  ;;  %1739 = vmatpush.bf16.msra.mxu0 %v2489_v57  ;;  %v2542_v9 = vld [vmem:[#allocation2 + $0x418] sm:$0xf0]  ;;  %v2534_v57 = vld [vmem:[#allocation2 + $0x408] sm:$0xf0] }
  0xdf   : > { %v1354_v32 = vadd.f32 %v1353_v29, %v3137_v58  ;;  %v1381_v62 = vpop.f32.mrf.mxu3  ;;  %v2722_v58 = vld [vmem:[#allocation2 + $0x314] sm:$0xf]  ;;  %1766 = vmatpush.bf16.msra.mxu1 %v2561_v7  ;;  %v2720_v29 = vld [vmem:[#allocation2 + $0x304] sm:$0xf]  ;;  %v2545_v52 = vor.u32 %v2754_v49, %v2542_v9 }
  0xe1   : > { %v1382_v13 = vadd.f32 %v1381_v62, %v1354_v32  ;;  %v2406_v32 = vld [vmem:[#allocation2 + $0x308] sm:$0xf0]  ;;  %v2738_v62 = vld [vmem:[#allocation2 + $0x394] sm:$0xf] }
  0xe2   : > { %v1412_v37 = vpop.f32.mrf.mxu0 }
  0xe3   : > { %v1410_v41 = vadd.f32 %v1409_v17, %v1382_v13  ;;  %1579 = vmatmul.bf16.gmra.mxu2 %v2995_v6  ;;  %v2417_v6 = vor.u32 %v2722_v58, %v2414_v54  ;;  %v2478_v13 = vld [vmem:[#allocation2 + $0x398] sm:$0xf0]  ;;  %v2470_v54 = vld [vmem:[#allocation2 + $0x388] sm:$0xf0] }
  0xe4   : > { %v1440_v38 = vpop.f32.mrf.mxu1  ;;  %1607 = vmatmul.bf16.gmra.mxu3 %v3029_v16 }
  0xe5   : > { %1635 = vmatmul.bf16.gmra.mxu0 %v3031_v20  ;;  %v3173_v56 = vadd.f32 %v1437_v53, %v1410_v41  ;;  %1712 = vmatpush.bf16.msra.mxu3 %v2417_v6  ;;  %v2342_v53 = vld [vmem:[#allocation2 + $0x288] sm:$0xf0]  ;;  %v2481_v41 = vor.u32 %v2738_v62, %v2478_v13  ;;  %v2752_v6 = vld [vmem:[#allocation2 + $0x404] sm:$0xf] }
  0xe6   : > { %v1356_v17 = vpop.f32.mrf.mxu2  ;;  %v2345_v30 = vor.u32 %v2704_v28, %v2342_v53 }
  0xe7   : > { %1663 = vmatmul.bf16.gmra.mxu1 %v3033_v22  ;;  %v1357_v16 = vadd.f32 %v1356_v17, %v3149_v51  ;;  %v1384_v3 = vpop.f32.mrf.mxu3  ;;  %v2550_v22 = vld [vmem:[#allocation2 + $0x428] sm:$0xf0]  ;;  %v2409_v51 = vor.u32 %v2720_v29, %v2406_v32  ;;  %1740 = vmatpush.bf16.msra.mxu0 %v2481_v41  ;;  %v2473_v17 = vor.u32 %v2736_v12, %v2470_v54 }
  0xe8   : > { %v2553_v11 = vor.u32 %v2756_v2, %v2550_v22  ;;  %1685 = vmatpush.bf16.msra.mxu2 %v2345_v30 }
  0xe9   : > { %v1385_v20 = vadd.f32 %v1384_v3, %v1357_v16  ;;  %1713 = vmatpush.bf16.msra.mxu3 %v2409_v51  ;;  %v2537_v3 = vor.u32 %v2752_v6, %v2534_v57 }
  0xea   : > { %v1414_v59 = vpop.f32.mrf.mxu0  ;;  %1767 = vmatpush.bf16.msra.mxu1 %v2553_v11 }
  0xeb   : > { %v1413_v25 = vadd.f32 %v1412_v37, %v1385_v20  ;;  %1741 = vmatpush.bf16.msra.mxu0 %v2473_v17 }
  0xec   : > { %v1442_v10 = vpop.f32.mrf.mxu1 }
  0xed   : > { %v3176_v7 = vadd.f32 %v1440_v38, %v1413_v25 }
  0xee   : > { %v1358_v50 = vpop.f32.mrf.mxu2  ;;  %1768 = vmatpush.bf16.msra.mxu1 %v2545_v52 }
  0xef   : > { %v1359_v58 = vadd.f32 %v1358_v50, %v3159_v36  ;;  %v1386_v37 = vpop.f32.mrf.mxu3 }
  0xf1   : > { %v1387_v4 = vadd.f32 %v1386_v37, %v1359_v58 }
  0xf2   : > { %v1417_v18 = vpop.f32.mrf.mxu0  ;;  %1769 = vmatpush.bf16.msra.mxu1 %v2537_v3 }
  0xf3   : > { %v1415_v38 = vadd.f32 %v1414_v59, %v1387_v4  ;;  %1584 = vmatmul.bf16.gmra.mxu2 %v2976_v8 }
  0xf4   : > { %v1445_v16 = vpop.f32.mrf.mxu1  ;;  %1612 = vmatmul.bf16.gmra.mxu3 %v3049_v60 }
  0xf5   : > { %1640 = vmatmul.bf16.gmra.mxu0 %v3051_v61  ;;  %v3183_v36 = vadd.f32 %v1442_v10, %v1415_v38 }
  0xf6   : > { %v1361_v20 = vpop.f32.mrf.mxu2 }
  0xf7   : > { %1668 = vmatmul.bf16.gmra.mxu1 %v3053_v0  ;;  %v1362_v2 = vadd.f32 %v1361_v20, %v3133_v55  ;;  %v1389_v22 = vpop.f32.mrf.mxu3 }
  0xf9   : > { %v1390_v11 = vadd.f32 %v1389_v22, %v1362_v2 }
  0xfa   : > { %v1419_v25 = vpop.f32.mrf.mxu0 }
  0xfb   : > { %v1418_v59 = vadd.f32 %v1417_v18, %v1390_v11 }
  0xfc   : > { %v1447_v28 = vpop.f32.mrf.mxu1 }
  0xfd   : > { %v3186_v53 = vadd.f32 %v1445_v16, %v1418_v59 }
  0xfe   : > { %v1363_v8 = vpop.f32.mrf.mxu2 }
  0xff   : > { %v1364_v60 = vadd.f32 %v1363_v8, %v3146_v48  ;;  %v1391_v29 = vpop.f32.mrf.mxu3 }
 0x101   : > { %v1392_v61 = vadd.f32 %v1391_v29, %v1364_v60 }
 0x102   : > { %v1422_v30 = vpop.f32.mrf.mxu0 }
 0x103   : > { %v1420_v10 = vadd.f32 %v1419_v25, %v1392_v61  ;;  %1589 = vmatmul.bf16.gmra.mxu2 %v2993_v5 }
 0x104   : > { %v1450_v0 = vpop.f32.mrf.mxu1  ;;  %1617 = vmatmul.bf16.gmra.mxu3 %v3063_v43 }
 0x105   : > { %1645 = vmatmul.bf16.gmra.mxu0 %v3065_v44  ;;  %v1448_v55 = vadd.f32 %v1447_v28, %v1420_v10 }
 0x106   : > { %v1366_v32 = vpop.f32.mrf.mxu2 }
 0x107   : > { %1673 = vmatmul.bf16.gmra.mxu1 %v3067_v45  ;;  %v1367_v62 = vadd.f32 %v1366_v32, %v3156_v31  ;;  %v1394_v13 = vpop.f32.mrf.mxu3 }
 0x109   : > { %v1395_v51 = vadd.f32 %v1394_v13, %v1367_v62 }
 0x10a   : > { %v1424_v48 = vpop.f32.mrf.mxu0 }
 0x10b   : > { %v1423_v49 = vadd.f32 %v1422_v30, %v1395_v51  ;;  %v393_v48 = vperm.slane %v3107_v42, 1 }
 0x10c   : > { %v1452_v41 = vpop.f32.mrf.mxu1 }
 0x10d   : > { %v3194_v9 = vadd.f32 %v1450_v0, %v1423_v49 }
 0x10e   : > { %v1368_v50 = vpop.f32.mrf.mxu2 }
 0x10f   : > { %v1396_v52 = vpop.f32.mrf.mxu3 }
 0x112   : > { %v1519_v5 = vpop.f32.mrf.mxu0 }
 0x113   : > { %1686 = vmatmul.bf16.vlgmr.msra.gmra.mxu2 %v3015_v21 }
 0x114   : > { %v3196_v58 = vpop.f32.mrf.mxu1  ;;  %1714 = vmatmul.bf16.vlgmr.msra.gmra.mxu3 %v3081_v33 }
 0x115   : > { %1742 = vmatmul.bf16.vlgmr.msra.gmra.mxu0 %v3083_v34 }
 0x116   : > { %v1463_v43 = vpop.f32.mrf.mxu2 }
 0x117   : > { %1770 = vmatmul.bf16.vlgmr.msra.gmra.mxu1 %v3085_v35  ;;  %v1464_v44 = vadd.f32 %v1463_v43, %v3166_v39  ;;  %v1491_v45 = vpop.f32.mrf.mxu3 }
 0x119   : > { %v1492_v31 = vadd.f32 %v1491_v45, %v1464_v44 }
 0x11a   : > { %v1521_v37 = vpop.f32.mrf.mxu0 }
 0x11b   : > { %v3205_v54 = vadd.f32 %v1519_v5, %v1492_v31 }
 0x11c   : > { %v3203_v12 = vpop.f32.mrf.mxu1 }
 0x11d   : > { %v1550_v43 = vadd.f32 %v3203_v12, %v393_v48 }
 0x11e   : > { %v1465_v4 = vpop.f32.mrf.mxu2 }
 0x11f   : > { %v1466_v18 = vadd.f32 %v1465_v4, %v3173_v56  ;;  %v1493_v21 = vpop.f32.mrf.mxu3 }
 0x121   : > { %v1494_v17 = vadd.f32 %v1493_v21, %v1466_v18 }
 0x122   : > { %v1524_v33 = vpop.f32.mrf.mxu0 }
 0x123   : > { %v3210_v34 = vadd.f32 %v1521_v37, %v1494_v17  ;;  %1691 = vmatmul.bf16.gmra.mxu2 %v3035_v23 }
 0x124   : > { %v3208_v6 = vpop.f32.mrf.mxu1  ;;  %1719 = vmatmul.bf16.gmra.mxu3 %v3097_v15 }
 0x125   : > { %1747 = vmatmul.bf16.gmra.mxu0 %v3099_v19  ;;  %v1553_v17 = vadd.f32 %v3208_v6, %v393_v48 }
 0x126   : > { %v1468_v35 = vpop.f32.mrf.mxu2 }
 0x127   : > { %1775 = vmatmul.bf16.gmra.mxu1 %v3101_v24  ;;  %v1469_v39 = vadd.f32 %v1468_v35, %v3176_v7  ;;  %v1496_v57 = vpop.f32.mrf.mxu3 }
 0x129   : > { %v1497_v56 = vadd.f32 %v1496_v57, %v1469_v39 }
 0x12a   : > { %v1526_v16 = vpop.f32.mrf.mxu0 }
 0x12b   : > { %v3219_v38 = vadd.f32 %v1524_v33, %v1497_v56 }
 0x12c   : > { %v3217_v3 = vpop.f32.mrf.mxu1 }
 0x12d   : > { %v1555_v12 = vadd.f32 %v3217_v3, %v393_v48 }
 0x12e   : > { %v1470_v20 = vpop.f32.mrf.mxu2 }
 0x12f   : > { %v1471_v2 = vadd.f32 %v1470_v20, %v3183_v36  ;;  %v1498_v23 = vpop.f32.mrf.mxu3 }
 0x131   : > { %v1499_v22 = vadd.f32 %v1498_v23, %v1471_v2 }
 0x132   : > { %v1529_v15 = vpop.f32.mrf.mxu0 }
 0x133   : > { %v3224_v19 = vadd.f32 %v1526_v16, %v1499_v22  ;;  %1696 = vmatmul.bf16.gmra.mxu2 %v3055_v1 }
 0x134   : > { %v3222_v11 = vpop.f32.mrf.mxu1  ;;  %1724 = vmatmul.bf16.gmra.mxu3 %v3118_v14 }
 0x135   : > { %1752 = vmatmul.bf16.gmra.mxu0 %v3120_v26  ;;  %v1558_v6 = vadd.f32 %v3222_v11, %v393_v48 }
 0x136   : > { %v1473_v24 = vpop.f32.mrf.mxu2 }
 0x137   : > { %1780 = vmatmul.bf16.gmra.mxu1 %v3122_v27  ;;  %v1474_v7 = vadd.f32 %v1473_v24, %v3186_v53  ;;  %v1501_v25 = vpop.f32.mrf.mxu3 }
 0x139   : > { %v1502_v36 = vadd.f32 %v1501_v25, %v1474_v7 }
 0x13a   : > { %v1531_v28 = vpop.f32.mrf.mxu0 }
 0x13b   : > { %v3233_v8 = vadd.f32 %v1529_v15, %v1502_v36 }
 0x13c   : > { %v3231_v59 = vpop.f32.mrf.mxu1 }
 0x13e   : > { %v1475_v60 = vpop.f32.mrf.mxu2 }
 0x13f   : > { %v1476_v29 = vadd.f32 %v1475_v60, %v1448_v55  ;;  %v1503_v61 = vpop.f32.mrf.mxu3 }
 0x141   : > { %v1504_v1 = vadd.f32 %v1503_v61, %v1476_v29 }
 0x142   : > { %v1534_v30 = vpop.f32.mrf.mxu0 }
 0x143   : > { %v3237_v26 = vadd.f32 %v1531_v28, %v1504_v1  ;;  %1701 = vmatmul.bf16.gmra.mxu2 %v3069_v46 }
 0x144   : > { %v3235_v14 = vpop.f32.mrf.mxu1  ;;  %1729 = vmatmul.bf16.gmra.mxu3 %v3140_v40  ;;  %v1548_v40 = vadd.f32 %v3196_v58, %v393_v48 }
 0x145   : > { %1757 = vmatmul.bf16.gmra.mxu0 %v3142_v47 }
 0x146   : > { %v1478_v27 = vpop.f32.mrf.mxu2 }
 0x147   : > { %1785 = vmatmul.bf16.gmra.mxu1 %v3144_v63  ;;  %v1479_v53 = vadd.f32 %v1478_v27, %v3194_v9  ;;  %v1506_v0 = vpop.f32.mrf.mxu3 }
 0x149   : > { %v1507_v10 = vadd.f32 %v1506_v0, %v1479_v53  ;;  %v1560_v53 = vadd.f32 %v3231_v59, %v393_v48 }
 0x14a   : > { %v1536_v55 = vpop.f32.mrf.mxu0 }
 0x14b   : > { %v3244_v62 = vadd.f32 %v1534_v30, %v1507_v10 }
 0x14c   : > { %v1564_v32 = vpop.f32.mrf.mxu1 }
 0x14e   : > { %v1480_v13 = vpop.f32.mrf.mxu2 }
 0x14f   : > { %v1508_v51 = vpop.f32.mrf.mxu3 }
 0x152   : > { %v1631_v46 = vpop.f32.mrf.mxu0 }
 0x154   : > { %v1659_v41 = vpop.f32.mrf.mxu1 }
 0x156   : > { %v1575_v47 = vpop.f32.mrf.mxu2 }
 0x157   : > { %v1576_v49 = vadd.f32 %v1575_v47, %v1548_v40  ;;  %v1603_v63 = vpop.f32.mrf.mxu3 }
 0x159   : > { %v1604_v50 = vadd.f32 %v1603_v63, %v1576_v49 }
 0x15a   : > { %v1633_v52 = vpop.f32.mrf.mxu0 }
 0x15b   : > { %v1632_v5 = vadd.f32 %v1631_v46, %v1604_v50 }
 0x15c   : > { %v1661_v9 = vpop.f32.mrf.mxu1 }
 0x15d   : > { %v1660_v44 = vadd.f32 %v1659_v41, %v1632_v5  ;;  %v1563_v41 = vadd.f32 %v3235_v14, %v393_v48 }
 0x15e   : > { %v1577_v45 = vpop.f32.mrf.mxu2 }
 0x15f   : > { %v1578_v31 = vadd.f32 %v1577_v45, %v1550_v43  ;;  %v1605_v37 = vpop.f32.mrf.mxu3 }
 0x161   : > { %v1606_v4 = vadd.f32 %v1605_v37, %v1578_v31 }
 0x162   : > { %v1636_v18 = vpop.f32.mrf.mxu0 }
 0x163   : > { %v1634_v21 = vadd.f32 %v1633_v52, %v1606_v4 }
 0x164   : > { %v1664_v42 = vpop.f32.mrf.mxu1 }
 0x165   : > { %v1662_v58 = vadd.f32 %v1661_v9, %v1634_v21 }
 0x166   : > { %v1580_v33 = vpop.f32.mrf.mxu2 }
 0x167   : > { %v1581_v35 = vadd.f32 %v1580_v33, %v1553_v17  ;;  %v1608_v39 = vpop.f32.mrf.mxu3 }
 0x169   : > { %v1609_v57 = vadd.f32 %v1608_v39, %v1581_v35  ;;  %v1790_v39 = vmax.f32 %v3205_v54, 0.0  ;;  %v1792_v54 = vmax.f32 %v3210_v34, 0.0 }
 0x16a   : > { %v1638_v56 = vpop.f32.mrf.mxu0 }
 0x16b   : > { %v1637_v20 = vadd.f32 %v1636_v18, %v1609_v57 }
 0x16c   : > { %v1666_v16 = vpop.f32.mrf.mxu1 }
 0x16d   : > { %v3251_v2 = vadd.f32 %v1664_v42, %v1637_v20 }
 0x16e   : > { %v1582_v23 = vpop.f32.mrf.mxu2 }
 0x16f   : > { %v1583_v22 = vadd.f32 %v1582_v23, %v1555_v12  ;;  %v1610_v15 = vpop.f32.mrf.mxu3 }
 0x171   : > { %v1611_v24 = vadd.f32 %v1610_v15, %v1583_v22 }
 0x172   : > { %v1641_v7 = vpop.f32.mrf.mxu0 }
 0x173   : > { %v1639_v36 = vadd.f32 %v1638_v56, %v1611_v24 }
 0x174   : > { %v1669_v25 = vpop.f32.mrf.mxu1 }
 0x175   : > { %v3254_v28 = vadd.f32 %v1666_v16, %v1639_v36 }
 0x176   : > { %v1585_v60 = vpop.f32.mrf.mxu2 }
 0x177   : > { %v1586_v29 = vadd.f32 %v1585_v60, %v1558_v6  ;;  %v1613_v61 = vpop.f32.mrf.mxu3 }
 0x179   : > { %v1614_v1 = vadd.f32 %v1613_v61, %v1586_v29 }
 0x17a   : > { %v1643_v30 = vpop.f32.mrf.mxu0 }
 0x17b   : > { %v1642_v3 = vadd.f32 %v1641_v7, %v1614_v1 }
 0x17c   : > { %v1671_v27 = vpop.f32.mrf.mxu1 }
 0x17d   : > { %v3257_v0 = vadd.f32 %v1669_v25, %v1642_v3 }
 0x17e   : > { %v1587_v10 = vpop.f32.mrf.mxu2 }
 0x17f   : > { %v1588_v55 = vadd.f32 %v1587_v10, %v1560_v53  ;;  %v1615_v32 = vpop.f32.mrf.mxu3 }
 0x181   : > { %v1616_v13 = vadd.f32 %v1615_v32, %v1588_v55 }
 0x182   : > { %v1646_v51 = vpop.f32.mrf.mxu0 }
 0x183   : > { %v1644_v11 = vadd.f32 %v1643_v30, %v1616_v13 }
 0x184   : > { %v1674_v46 = vpop.f32.mrf.mxu1 }
 0x185   : > { %v3260_v40 = vadd.f32 %v1671_v27, %v1644_v11  ;;  %v1794_v27 = vmax.f32 %v3219_v38, 0.0  ;;  %v1796_v11 = vmax.f32 %v3224_v19, 0.0 }
 0x186   : > { %v1590_v47 = vpop.f32.mrf.mxu2 }
 0x187   : > { %v1591_v49 = vadd.f32 %v1590_v47, %v1563_v41  ;;  %v1618_v63 = vpop.f32.mrf.mxu3 }
 0x189   : > { %v1619_v50 = vadd.f32 %v1618_v63, %v1591_v49 }
 0x18a   : > { %v1648_v52 = vpop.f32.mrf.mxu0 }
 0x18b   : > { %v1647_v9 = vadd.f32 %v1646_v51, %v1619_v50 }
 0x18c   : > { %v1676_v59 = vpop.f32.mrf.mxu1 }
 0x18d   : > { %v3262_v5 = vadd.f32 %v1674_v46, %v1647_v9 }
 0x18e   : > { %v1592_v43 = vpop.f32.mrf.mxu2 }
 0x18f   : > { %v1620_v45 = vpop.f32.mrf.mxu3  ;;  %v1798_v43 = vmax.f32 %v3233_v8, 0.0 }
 0x192   : > { %v1743_v31 = vpop.f32.mrf.mxu0 }
 0x194   : > { %v1771_v37 = vpop.f32.mrf.mxu1 }
 0x196   : > { %v1687_v4 = vpop.f32.mrf.mxu2 }
 0x197   : > { %v1688_v18 = vadd.f32 %v1687_v4, %v1660_v44  ;;  %v1715_v42 = vpop.f32.mrf.mxu3 }
 0x199   : > { %v1716_v14 = vadd.f32 %v1715_v42, %v1688_v18 }
 0x19a   : > { %v1745_v48 = vpop.f32.mrf.mxu0 }
 0x19b   : > { %v1744_v17 = vadd.f32 %v1743_v31, %v1716_v14 }
 0x19c   : > { %v1773_v21 = vpop.f32.mrf.mxu1 }
 0x19d   : > { %v1772_v33 = vadd.f32 %v1771_v37, %v1744_v17 }
 0x19e   : > { %v1689_v35 = vpop.f32.mrf.mxu2 }
 0x19f   : > { %v1791_v57 = vmax.f32 %v1772_v33, 0.0  ;;  %v1690_v56 = vadd.f32 %v1689_v35, %v1662_v58  ;;  %v1717_v16 = vpop.f32.mrf.mxu3 }
 0x1a1   : > { %v1804_v44 = vpack.c.bf16 %v1791_v57, %v1790_v39  ;;  %v1718_v20 = vadd.f32 %v1717_v16, %v1690_v56 }
 0x1a2   : > { %v1748_v12 = vpop.f32.mrf.mxu0 }
 0x1a3   : > { %1811 = vst [vmem:[%s3269_s9] sm:$0xff] %v1804_v44  ;;  %v1746_v22 = vadd.f32 %v1745_v48, %v1718_v20  ;;  %v1802_v20 = vmax.f32 %v3244_v62, 0.0 }
 0x1a4   : > { %v1776_v23 = vpop.f32.mrf.mxu1 }
 0x1a5   : > { %v1774_v15 = vadd.f32 %v1773_v21, %v1746_v22  ;;  %v1800_v21 = vmax.f32 %v3237_v26, 0.0 }
 0x1a6   : > { %v1692_v24 = vpop.f32.mrf.mxu2 }
 0x1a7   : > { %v1793_v7 = vmax.f32 %v1774_v15, 0.0  ;;  %v1693_v58 = vadd.f32 %v1692_v24, %v3251_v2  ;;  %v1720_v25 = vpop.f32.mrf.mxu3 }
 0x1a9   : > { %v1805_v36 = vpack.c.bf16 %v1793_v7, %v1792_v54  ;;  %v1721_v6 = vadd.f32 %v1720_v25, %v1693_v58 }
 0x1aa   : > { %v1750_v60 = vpop.f32.mrf.mxu0 }
 0x1ab   : > { %1812 = vst [vmem:[%s3269_s9 + $0x8] sm:$0xff] %v1805_v36  ;;  %v1749_v61 = vadd.f32 %v1748_v12, %v1721_v6 }
 0x1ac   : > { %v1778_v29 = vpop.f32.mrf.mxu1 }
 0x1ad   : > { %v1777_v1 = vadd.f32 %v1776_v23, %v1749_v61 }
 0x1ae   : > { %v1694_v30 = vpop.f32.mrf.mxu2 }
 0x1af   : > { %v1795_v3 = vmax.f32 %v1777_v1, 0.0  ;;  %v1695_v53 = vadd.f32 %v1694_v30, %v3254_v28  ;;  %v1722_v10 = vpop.f32.mrf.mxu3 }
 0x1b1   : > { %v1806_v34 = vpack.c.bf16 %v1795_v3, %v1794_v27  ;;  %v1723_v55 = vadd.f32 %v1722_v10, %v1695_v53 }
 0x1b2   : > { %v1753_v2 = vpop.f32.mrf.mxu0 }
 0x1b3   : > { %1813 = vst [vmem:[%s3269_s9 + $0x10] sm:$0xff] %v1806_v34  ;;  %v1751_v13 = vadd.f32 %v1750_v60, %v1723_v55 }
 0x1b4   : > { %v1781_v32 = vpop.f32.mrf.mxu1 }
 0x1b5   : > { %v1779_v51 = vadd.f32 %v1778_v29, %v1751_v13 }
 0x1b6   : > { %v1697_v46 = vpop.f32.mrf.mxu2 }
 0x1b7   : > { %v1797_v41 = vmax.f32 %v1779_v51, 0.0  ;;  %v1698_v47 = vadd.f32 %v1697_v46, %v3257_v0  ;;  %v1725_v49 = vpop.f32.mrf.mxu3 }
 0x1b9   : > { %v1807_v38 = vpack.c.bf16 %v1797_v41, %v1796_v11  ;;  %v1726_v63 = vadd.f32 %v1725_v49, %v1698_v47 }
 0x1ba   : > { %v1755_v28 = vpop.f32.mrf.mxu0 }
 0x1bb   : > { %1814 = vst [vmem:[%s3269_s9 + $0x18] sm:$0xff] %v1807_v38  ;;  %v1754_v52 = vadd.f32 %v1753_v2, %v1726_v63 }
 0x1bc   : > { %v1783_v50 = vpop.f32.mrf.mxu1 }
 0x1bd   : > { %v1782_v59 = vadd.f32 %v1781_v32, %v1754_v52 }
 0x1be   : > { %v1699_v9 = vpop.f32.mrf.mxu2 }
 0x1bf   : > { %v1799_v45 = vmax.f32 %v1782_v59, 0.0  ;;  %v1700_v31 = vadd.f32 %v1699_v9, %v3260_v40  ;;  %v1727_v37 = vpop.f32.mrf.mxu3 }
 0x1c1   : > { %v1808_v19 = vpack.c.bf16 %v1799_v45, %v1798_v43  ;;  %v1728_v4 = vadd.f32 %v1727_v37, %v1700_v31 }
 0x1c2   : > { %v1758_v0 = vpop.f32.mrf.mxu0 }
 0x1c3   : > { %1815 = vst [vmem:[%s3269_s9 + $0x20] sm:$0xff] %v1808_v19  ;;  %v1756_v42 = vadd.f32 %v1755_v28, %v1728_v4 }
 0x1c4   : > { %v1786_v18 = vpop.f32.mrf.mxu1 }
 0x1c5   : > { %v1784_v14 = vadd.f32 %v1783_v50, %v1756_v42 }
 0x1c6   : > { %v1702_v48 = vpop.f32.mrf.mxu2 }
 0x1c7   : > { %v1801_v17 = vmax.f32 %v1784_v14, 0.0  ;;  %v1703_v33 = vadd.f32 %v1702_v48, %v3262_v5  ;;  %v1730_v8 = vpop.f32.mrf.mxu3 }
 0x1c9   : > { %v1809_v35 = vpack.c.bf16 %v1801_v17, %v1800_v21  ;;  %v1731_v39 = vadd.f32 %v1730_v8, %v1703_v33 }
 0x1ca   : > { %v1760_v40 = vpop.f32.mrf.mxu0 }
 0x1cb   : > { %1816 = vst [vmem:[%s3269_s9 + $0x28] sm:$0xff] %v1809_v35  ;;  %v1759_v56 = vadd.f32 %v1758_v0, %v1731_v39 }
 0x1cc   : > { %v1788_v57 = vpop.f32.mrf.mxu1 }
 0x1cd   : > { %v1787_v16 = vadd.f32 %v1786_v18, %v1759_v56 }
 0x1ce   : > { %v1704_v44 = vpop.f32.mrf.mxu2 }
 0x1cf   : > { %v1803_v12 = vmax.f32 %v1787_v16, 0.0  ;;  %v1732_v23 = vpop.f32.mrf.mxu3 }
 0x1d1   : > { %v1810_v22 = vpack.c.bf16 %v1803_v12, %v1802_v20 }
 0x1d3   : > { %1817 = vst [vmem:[%s3269_s9 + $0x30] sm:$0xff] %v1810_v22 }
 0x1d4 PF: > { %s15_s12 = sadd.s32 1, %s2890_s12  }
 0x1d5   : > { %p12_p7 = scmp.ge.s32.totalorder %s15_s12, 4  }
 0x1d7   :  { %14 = sbr.rel (!%p12_p7) target bundleno = 2 (0x2), region = 71 }
 0x1dc   :  { %1842 = vsyncpa [#allocation3], 1 }
 0x1dd   :  { %1844 = vsyncpa [#allocation3 + $0x1], 1 }
 0x1de   :  { %1845 = vsyncpa [#allocation5], 1 }

// kernel: decoder_forward.4
= control target key start
LH: loop header
LB: loop body
LE: loop exit
PB: predicated region body
PF: predicated region fallthrough
CT: control target
= control target key end

     0   :  { %s13877_s0 = inlined_call_operand.vmem [shape: bf16[2,32], index: 0, kind: input, shape index: {}]   ;;  %s13878_s1 = inlined_call_operand.hbm [shape: bf16[32,1024], index: 1, kind: input, shape index: {}]   ;;  %s13879_s2 = inlined_call_operand.hbm [shape: f32[1,1024], index: 2, kind: input, shape index: {}]   ;;  %s13880_s3 = inlined_call_operand.hbm [shape: bf16[1024,3328], index: 3, kind: input, shape index: {}]   ;;  %s13881_s4 = inlined_call_operand.hbm [shape: f32[1,3328], index: 4, kind: input, shape index: {}]   ;;  %s13882_s5 = inlined_call_operand.vmem [shape: bf16[2,3328], index: 5, kind: output, shape index: {}]  }
   0x1   :  { %13883 = sst [smem:[#allocation11_spill]] %s13878_s1 }
   0x2   :  { %13884 = sst [smem:[#allocation12_spill]] %s13879_s2 }
   0x3   :  { %13885 = sst [smem:[#allocation13_spill]] %s13880_s3 }
   0x4   :  { %10 = vsyncpa [#allocation3], 0 }
   0x5   :  { %11 = vsyncpa [#allocation5], 0  ;;  %s11774_s18 = smov 0   ;;  %s11776_s19 = smov 0  }
   0x6   :  { %s11778_s20 = smov 0   ;;  %s11780_s21 = smov 0  }
   0x7 LB: > { %s11793_s22 = sadd.s32 4294967295, %s11735_s21   ;;  %s11796_s23 = sadd.s32 1, %s11735_s21   ;;  %s11735_s21 = sphi %s11780_s21, %s13898_s21   ;;  %s11731_s20 = sphi %s11778_s20, %s13897_s20   ;;  %s11727_s19 = sphi %s11776_s19, %s13896_s19   ;;  %s11723_s18 = sphi %s11774_s18, %s13895_s18  }
   0x8   : > { %s84_s24 = ssub.s32 %s11735_s21, %s11796_s23  ;;  %s87_s25 = sadd.s32 1, %s11731_s20 }
   0x9   : > { %p85_p0 = scmp.eq.s32.totalorder %s84_s24, 0  ;;  %p94_p1 = scmp.ne.s32.totalorder %s11731_s20, %s11727_s19 }
   0xa   : > { %p95_p2 = scmp.eq.s32.totalorder %s11735_s21, 0  ;;  %p100_p3 = scmp.ne.s32.totalorder %s11727_s19, %s11723_s18 }
   0xb   : > { %s11806_s26 = scalar_select %p85_p0, %s11731_s20, %s87_s25  }
   0xc   : > { %p11808_p4 = por %p95_p2, %p94_p1  ;;  %p101_p5 = scmp.eq.s32.totalorder %s11793_s22, 0 }
   0xd   : > { %p7236_p6 = scmp.ge.s32.totalorder %s11735_s21, 1  ;;  %p163_p7 = scmp.lt.s32.totalorder %s11735_s21, 3 }
   0xe   : > { %p11817_p8 = por %p101_p5, %p100_p3  ;;  %s13889_s1 = sld [smem:[#allocation11_spill]] }
   0xf   : > { %p11821_p9 = pnand %p7236_p6, %p163_p7  ;;  %s11737_s8 = smov [#allocation2]  }
  0x10   : > { %s179_s9 = sshll.u32 %s11737_s8, 4  ;;  %p11527_p12 = scmp.lt.s32.totalorder %s11735_s21, 2  ;;  %s180_s9 = int_to_ptr.vmem [resolvable:$true] %s179_s9 }
  0x11   : > { %p11511_p10 = pneg %p11821_p9  ;;  %s205_s11 = sand.u32 1, %s11735_s21  }
  0x12   : > { %s11738_s12 = smov 512   ;;  %s11739_s13 = smov 32  }
  0x13   : > { %p11832_p11 = pnand %p11511_p10, %p101_p5  ;;  %p11842_p13 = pnand %p11527_p12, %p11808_p4 }
  0x14   : > { %s177_s7 = sshll.u32 %s13889_s1, 4  ;;  %s207_s15 = sand.u32 1, %s11731_s20   ;;  %s178_s7 = int_to_ptr.hbm [resolvable:$true] %s177_s7 }
  0x15   : > { %11514 = dma.hbm_to_vmem [thread:$0]  (!%p11832_p11), %s178_s7, 2048, %s180_s9, [#allocation3], %s11738_s12, %s11738_s12, %s11739_s13  }
  0x16   : > { %s10646_s16 = smul.u32 52, %s11735_s21  ;;  %s13892_s3 = sld [smem:[#allocation13_spill]] }
  0x17   : > { %s11495_s17 = smul.u32 6656, %s207_s15  ;;  %s13893_s2 = sld [smem:[#allocation12_spill]] }
  0x18   : > { %s11856_s12 = scalar_lea.sflag [#allocation3], %s205_s11  ;;  %p11607_p1 = pneg %p11842_p13 }
  0x19   : > { %s209_s6 = scalar_lea.vmem [#allocation6], %s11495_s17 }
  0x1a   : > { %s217_s8 = sshll.u32 %s209_s6, 4  ;;  %s218_s8 = int_to_ptr.vmem [resolvable:$true] %s217_s8 }
  0x1c   : > { %s214_s25 = scalar_lea.hbm %s13892_s3, %s10646_s16  ;;  %s11610_s18 = scalar_lea.hbm %s13892_s3, 13312 }
  0x1d   : > { %s215_s30 = sshll.u32 %s214_s25, 4  ;;  %s192_s9 = sshll.u32 %s13893_s2, 4  ;;  %s216_s30 = int_to_ptr.hbm [resolvable:$true] %s215_s30  ;;  %s193_s9 = int_to_ptr.hbm [resolvable:$true] %s192_s9 }
  0x1e   : > { %s11603_s13 = sshra.s32 %s216_s30, 4  ;;  %s11604_s13 = int_to_ptr.hbm [resolvable:$true] %s11603_s13 }
  0x1f   : > { %s11605_s1 = scalar_lea.hbm %s11604_s13, 6656  ;;  %p11611_p4 = scmp.lt.s32.totalorder %s11604_s13, %s13892_s3 }
  0x20   : > { %p11606_p0 = scmp.ne.s32.totalorder %s11604_s13, %s11605_s1  ;;  %p11612_p6 = scmp.lt.s32.totalorder %s11610_s18, %s11605_s1 }
  0x22   : > { %p11608_p2 = pnand %p11607_p1, %p11606_p0  ;;  %p11613_p7 = por %p11612_p6, %p11611_p4 }
  0x24   : > { %p11609_p3 = pneg %p11608_p2 }
  0x26   : > { %p11614_p10 = pnand %p11613_p7, %p11609_p3 }
  0x28   : > { %11617 = shalt.err (!%p11614_p10)
}
  0x29   : > { %s11740_s11 = smov 1664   ;;  %s11741_s6 = smov 832  }
  0x2a   : > { %s11742_s27 = smov 52   ;;  %s11743_s7 = smov [#allocation4]  }
  0x2b   : > { %11521 = dma.hbm_to_vmem [thread:$0]  (!%p11842_p13), %s216_s30, 106496, %s218_s8, %s11856_s12, %s11740_s11, %s11741_s6, %s11742_s27  }
  0x2c   : > { %s194_s16 = sshll.u32 %s11743_s7, 4  ;;  %s11496_s13 = smul.u32 13, %s207_s15  ;;  %s195_s16 = int_to_ptr.vmem [resolvable:$true] %s194_s16 }
  0x2d   : > { %s232_s1 = smul.u32 13, %s11735_s21  ;;  %s11670_s15 = scalar_lea.hbm %s13881_s4, 26 }
  0x2e   : > { %11517 = dma.hbm_to_vmem [thread:$0]  (!%p11832_p11), %s193_s9, 128, %s195_s16, [#allocation5]  }
  0x2f   : > { %s235_s24 = scalar_lea.hbm %s13881_s4, %s232_s1  ;;  %s231_s2 = scalar_lea.vmem [#allocation7], %s11496_s13 }
  0x30   : > { %s237_s25 = sshll.u32 %s235_s24, 4  ;;  %s239_s3 = sshll.u32 %s231_s2, 4  ;;  %s238_s25 = int_to_ptr.hbm [resolvable:$true] %s237_s25  ;;  %s240_s3 = int_to_ptr.vmem [resolvable:$true] %s239_s3 }
  0x31   : > { %s11663_s30 = sshra.s32 %s238_s25, 4  ;;  %s11664_s30 = int_to_ptr.hbm [resolvable:$true] %s11663_s30 }
  0x32   : > { %s11665_s8 = scalar_lea.hbm %s11664_s30, 13  ;;  %p11671_p11 = scmp.lt.s32.totalorder %s11664_s30, %s13881_s4 }
  0x33   : > { %p11666_p12 = scmp.ne.s32.totalorder %s11664_s30, %s11665_s8  ;;  %p11672_p3 = scmp.lt.s32.totalorder %s11670_s15, %s11665_s8 }
  0x35   : > { %p11668_p0 = pnand %p11666_p12, %p11607_p1  ;;  %p11673_p4 = por %p11672_p3, %p11671_p11 }
  0x37   : > { %p11669_p2 = pneg %p11668_p0 }
  0x39   : > { %p11674_p6 = pnand %p11673_p4, %p11669_p2 }
  0x3b   : > { %11677 = shalt.err (!%p11674_p6)
}
  0x3c   : > { %11524 = dma.hbm_to_vmem [thread:$0]  (!%p11842_p13), %s238_s25, 208, %s240_s3, %s11856_s12  }
  0x3d   : > { %248 = sbr.rel (%p11821_p9) target bundleno = 1139 (0x473), region = 40 }
  0x42   : > { %11710 = dma.done.wait (%p101_p5), [#allocation3], 2048  }
  0x43   : > { %11712 = vsyncadd (%p101_p5), [#allocation3], 4294965248 }
  0x44   : > { %11714 = dma.done.wait (%p101_p5), [#allocation5], 128  }
  0x45   : > { %11716 = vsyncadd (%p101_p5), [#allocation5], 4294967168  ;;  %s260_s2 = sand.u32 1, %s11793_s22   ;;  %s262_s3 = sand.u32 1, %s11727_s19  }
  0x46   : > { %s11497_s29 = smul.u32 6656, %s262_s3  ;;  %s261_s14 = scalar_lea.sflag [#allocation3], %s260_s2 }
  0x48   : > { %s11906_s12 = scalar_lea.vmem [#allocation6], %s11497_s29 }
  0x49   : > { %11718 = dma.done.wait (%p11817_p8), %s261_s14, 106704  }
  0x4a   : > { %11720 = vsyncadd (%p11817_p8), %s261_s14, 4294860592  ;;  %vm429_vm0 = vcmask 261120   ;;  %v7278_v0 = vld [vmem:[#allocation2 + $0x40] sm:$0xf]  ;;  %v10655_v2 = vld [vmem:[#allocation2 + $0x44] sm:$0xf] }
  0x4b   : > { %v10659_v1 = vld [vmem:[#allocation2 + $0x5c] sm:$0xf0]  ;;  %v7280_v4 = vld [vmem:[#allocation2 + $0x60] sm:$0xf0]  ;;  %v7286_v5 = vld [vmem:[#allocation2 + $0x48] sm:$0xf] }
  0x4c   : > { %v7279_v3 = vor.u32 %v10659_v1, %v7278_v0  ;;  %v10660_v6 = vld [vmem:[#allocation2 + $0x64] sm:$0xf0]  ;;  %v7283_v7 = vor.u32 %v10655_v2, %v7280_v4  ;;  %v10656_v9 = vld [vmem:[#allocation2 + $0x4c] sm:$0xf]  ;;  %v7246_v11 = vld [vmem:[#allocation2] sm:$0xf] }
  0x4d   : > { %v7287_v8 = vor.u32 %v10660_v6, %v7286_v5  ;;  %v7288_v10 = vld [vmem:[#allocation2 + $0x68] sm:$0xf0]  ;;  %v10651_v13 = vld [vmem:[#allocation2 + $0x1c] sm:$0xf0]  ;;  %v10647_v14 = vld [vmem:[#allocation2 + $0x4] sm:$0xf] }
  0x4e   : > { %439 = vmatpush.bf16.msra.mxu0 %v7279_v3  ;;  %v7291_v12 = vor.u32 %v10656_v9, %v7288_v10  ;;  %v7248_v15 = vld [vmem:[#allocation2 + $0x20] sm:$0xf0]  ;;  %452 = vmatpush.bf16.msra.mxu1 %v7283_v7  ;;  %v7247_v16 = vor.u32 %v10651_v13, %v7246_v11  ;;  %v7254_v18 = vld [vmem:[#allocation2 + $0x8] sm:$0xf]  ;;  %v10648_v20 = vld [vmem:[#allocation2 + $0xc] sm:$0xf] }
  0x4f   : > { %465 = vmatpush.bf16.msra.mxu2 %v7287_v8  ;;  %v7251_v17 = vor.u32 %v10647_v14, %v7248_v15  ;;  %v10652_v19 = vld [vmem:[#allocation2 + $0x24] sm:$0xf0]  ;;  %v7256_v22 = vld [vmem:[#allocation2 + $0x28] sm:$0xf0]  ;;  %v11915_v23 = vld [vmem:[%s13877_s0] sm:$0x1] }
  0x50   : > { %478 = vmatpush.bf16.msra.mxu3 %v7291_v12  ;;  %v7255_v21 = vor.u32 %v10652_v19, %v7254_v18  ;;  %v7294_v24 = vld [vmem:[#allocation2 + $0x50] sm:$0xf]  ;;  %v7259_v25 = vor.u32 %v10648_v20, %v7256_v22  ;;  %v10657_v27 = vld [vmem:[#allocation2 + $0x54] sm:$0xf]  ;;  %v7302_v31 = vld [vmem:[#allocation2 + $0x58] sm:$0xf] }
  0x51   : > { %v10661_v26 = vld [vmem:[#allocation2 + $0x6c] sm:$0xf0]  ;;  %v7296_v28 = vld [vmem:[#allocation2 + $0x70] sm:$0xf0]  ;;  %v10662_v32 = vld [vmem:[#allocation2 + $0x74] sm:$0xf0] }
  0x52   : > { %440 = vmatpush.bf16.msra.mxu0 %v7247_v16  ;;  %v7295_v29 = vor.u32 %v10661_v26, %v7294_v24  ;;  %v7299_v30 = vor.u32 %v10657_v27, %v7296_v28  ;;  %v10658_v33 = vld [vmem:[#allocation2 + $0x5c] sm:$0xf]  ;;  %453 = vmatpush.bf16.msra.mxu1 %v7251_v17  ;;  %v7303_v34 = vor.u32 %v10662_v32, %v7302_v31  ;;  %v7262_v36 = vld [vmem:[#allocation2 + $0x10] sm:$0xf]  ;;  %v10649_v40 = vld [vmem:[#allocation2 + $0x14] sm:$0xf] }
  0x53   : > { %466 = vmatpush.bf16.msra.mxu2 %v7255_v21  ;;  %v7304_v35 = vld [vmem:[#allocation2 + $0x78] sm:$0xf0]  ;;  %v10653_v37 = vld [vmem:[#allocation2 + $0x2c] sm:$0xf0]  ;;  %v7264_v41 = vld [vmem:[#allocation2 + $0x30] sm:$0xf0] }
  0x54   : > { %479 = vmatpush.bf16.msra.mxu3 %v7259_v25  ;;  %v7307_v38 = vor.u32 %v10658_v33, %v7304_v35  ;;  %v7263_v39 = vor.u32 %v10653_v37, %v7262_v36  ;;  %v7270_v42 = vld [vmem:[#allocation2 + $0x18] sm:$0xf]  ;;  %v7267_v43 = vor.u32 %v10649_v40, %v7264_v41  ;;  %v10650_v45 = vld [vmem:[#allocation2 + $0x1c] sm:$0xf]  ;;  %v7682_v47 = vld [vmem:[%s11906_s12 + $0x2d8] sm:$0xf] }
  0x55   : > { %7308 = vmatmul.msk.bf16.vlgmr.msra.gmra.mxu0 %vm429_vm0, %v11915_v23  ;;  %v10654_v44 = vld [vmem:[#allocation2 + $0x34] sm:$0xf0]  ;;  %v7272_v46 = vld [vmem:[#allocation2 + $0x38] sm:$0xf0]  ;;  %7309 = vmatmul.msk.bf16.vlgmr.msra.gmra.mxu1 %vm429_vm0, %v11915_v23  ;;  %v10760_v48 = vld [vmem:[%s11906_s12 + $0x308] sm:$0xf0] }
  0x56   : > { %491 = vmatpush.bf16.msrb.mxu0 %v7295_v29  ;;  %504 = vmatpush.bf16.msrb.mxu1 %v7299_v30  ;;  %v8098_v49 = vld [vmem:[%s11906_s12 + $0x618] sm:$0xf]  ;;  %v7271_v50 = vor.u32 %v10654_v44, %v7270_v42  ;;  %v7683_v51 = vor.u32 %v10760_v48, %v7682_v47  ;;  %v10864_v52 = vld [vmem:[%s11906_s12 + $0x648] sm:$0xf0]  ;;  %v7630_v53 = vld [vmem:[%s11906_s12 + $0x270] sm:$0xf]  ;;  %v7275_v55 = vor.u32 %v10650_v45, %v7272_v46 }
  0x57   : > { %7310 = vmatmul.msk.bf16.vlgmr.msra.gmra.mxu2 %vm429_vm0, %v11915_v23  ;;  %7311 = vmatmul.msk.bf16.vlgmr.msra.gmra.mxu3 %vm429_vm0, %v11915_v23  ;;  %v10747_v54 = vld [vmem:[%s11906_s12 + $0x2a0] sm:$0xf0]  ;;  %v8099_v56 = vor.u32 %v10864_v52, %v8098_v49  ;;  %v8046_v57 = vld [vmem:[%s11906_s12 + $0x5b0] sm:$0xf]  ;;  %v8514_v59 = vld [vmem:[%s11906_s12 + $0x958] sm:$0xf] }
  0x58   : > { %517 = vmatpush.bf16.msrb.mxu2 %v7303_v34  ;;  %530 = vmatpush.bf16.msrb.mxu3 %v7307_v38  ;;  %v10851_v58 = vld [vmem:[%s11906_s12 + $0x5e0] sm:$0xf0]  ;;  %v7631_v60 = vor.u32 %v10747_v54, %v7630_v53  ;;  %v10968_v61 = vld [vmem:[%s11906_s12 + $0x988] sm:$0xf0]  ;;  %v8930_v62 = vld [vmem:[%s11906_s12 + $0xc98] sm:$0xf] }
  0x59   : > { %v11072_v63 = vld [vmem:[%s11906_s12 + $0xcc8] sm:$0xf0]  ;;  %v8047_v0 = vor.u32 %v10851_v58, %v8046_v57  ;;  %v8515_v1 = vor.u32 %v10968_v61, %v8514_v59  ;;  %v7578_v3 = vld [vmem:[%s11906_s12 + $0x208] sm:$0xf]  ;;  %v10734_v4 = vld [vmem:[%s11906_s12 + $0x238] sm:$0xf0] }
  0x5a   : > { %492 = vmatpush.bf16.msrb.mxu0 %v7263_v39  ;;  %505 = vmatpush.bf16.msrb.mxu1 %v7267_v43  ;;  %v8931_v2 = vor.u32 %v11072_v63, %v8930_v62  ;;  %v7994_v5 = vld [vmem:[%s11906_s12 + $0x548] sm:$0xf]  ;;  %v10838_v6 = vld [vmem:[%s11906_s12 + $0x578] sm:$0xf0]  ;;  %v8462_v7 = vld [vmem:[%s11906_s12 + $0x8f0] sm:$0xf]  ;;  %v7579_v12 = vor.u32 %v10734_v4, %v7578_v3 }
  0x5b   : > { %v10955_v8 = vld [vmem:[%s11906_s12 + $0x920] sm:$0xf0]  ;;  %v8878_v10 = vld [vmem:[%s11906_s12 + $0xc30] sm:$0xf]  ;;  %v7995_v14 = vor.u32 %v10838_v6, %v7994_v5  ;;  %v8410_v15 = vld [vmem:[%s11906_s12 + $0x888] sm:$0xf] }
  0x5c   : > { %518 = vmatpush.bf16.msrb.mxu2 %v7271_v50  ;;  %531 = vmatpush.bf16.msrb.mxu3 %v7275_v55  ;;  %v8463_v9 = vor.u32 %v10955_v8, %v8462_v7  ;;  %v11059_v11 = vld [vmem:[%s11906_s12 + $0xc60] sm:$0xf0]  ;;  %v10942_v16 = vld [vmem:[%s11906_s12 + $0x8b8] sm:$0xf0]  ;;  %v8826_v17 = vld [vmem:[%s11906_s12 + $0xbc8] sm:$0xf] }
  0x5d   : > { %v8879_v13 = vor.u32 %v11059_v11, %v8878_v10  ;;  %v11046_v18 = vld [vmem:[%s11906_s12 + $0xbf8] sm:$0xf0]  ;;  %v7526_v19 = vld [vmem:[%s11906_s12 + $0x1a0] sm:$0xf]  ;;  %v10721_v20 = vld [vmem:[%s11906_s12 + $0x1d0] sm:$0xf0]  ;;  %v8411_v22 = vor.u32 %v10942_v16, %v8410_v15 }
  0x5e   : > { %5703 = vmatpush.bf16.msra.mxu0 %v7683_v51  ;;  %5716 = vmatpush.bf16.msra.mxu1 %v8099_v56  ;;  %v7942_v21 = vld [vmem:[%s11906_s12 + $0x4e0] sm:$0xf]  ;;  %v10825_v24 = vld [vmem:[%s11906_s12 + $0x510] sm:$0xf0]  ;;  %v8827_v25 = vor.u32 %v11046_v18, %v8826_v17  ;;  %v7527_v30 = vor.u32 %v10721_v20, %v7526_v19  ;;  %v7474_v32 = vld [vmem:[%s11906_s12 + $0x138] sm:$0xf] }
  0x5f   : > { %v8358_v26 = vld [vmem:[%s11906_s12 + $0x820] sm:$0xf]  ;;  %v10929_v27 = vld [vmem:[%s11906_s12 + $0x850] sm:$0xf0]  ;;  %v7943_v31 = vor.u32 %v10825_v24, %v7942_v21  ;;  %v10708_v33 = vld [vmem:[%s11906_s12 + $0x168] sm:$0xf0] }
  0x60   : > { %5729 = vmatpush.bf16.msra.mxu2 %v8515_v1  ;;  %5742 = vmatpush.bf16.msra.mxu3 %v8931_v2  ;;  %v8774_v28 = vld [vmem:[%s11906_s12 + $0xb60] sm:$0xf]  ;;  %v11033_v29 = vld [vmem:[%s11906_s12 + $0xb90] sm:$0xf0]  ;;  %v7890_v34 = vld [vmem:[%s11906_s12 + $0x478] sm:$0xf]  ;;  %v8359_v35 = vor.u32 %v10929_v27, %v8358_v26  ;;  %v7475_v42 = vor.u32 %v10708_v33, %v7474_v32 }
  0x61   : > { %v10812_v36 = vld [vmem:[%s11906_s12 + $0x4a8] sm:$0xf0]  ;;  %v8775_v37 = vor.u32 %v11033_v29, %v8774_v28  ;;  %v8306_v38 = vld [vmem:[%s11906_s12 + $0x7b8] sm:$0xf]  ;;  %v7422_v44 = vld [vmem:[%s11906_s12 + $0xd0] sm:$0xf] }
  0x62   : > { %5704 = vmatpush.bf16.msra.mxu0 %v7631_v60  ;;  %5717 = vmatpush.bf16.msra.mxu1 %v8047_v0  ;;  %v10916_v39 = vld [vmem:[%s11906_s12 + $0x7e8] sm:$0xf0]  ;;  %v8722_v40 = vld [vmem:[%s11906_s12 + $0xaf8] sm:$0xf]  ;;  %v7891_v43 = vor.u32 %v10812_v36, %v7890_v34  ;;  %v10695_v45 = vld [vmem:[%s11906_s12 + $0x100] sm:$0xf0] }
  0x63   : > { %v11020_v41 = vld [vmem:[%s11906_s12 + $0xb28] sm:$0xf0]  ;;  %v7838_v46 = vld [vmem:[%s11906_s12 + $0x410] sm:$0xf]  ;;  %v8307_v47 = vor.u32 %v10916_v39, %v8306_v38  ;;  %v10799_v48 = vld [vmem:[%s11906_s12 + $0x440] sm:$0xf0]  ;;  %v7423_v53 = vor.u32 %v10695_v45, %v7422_v44 }
  0x64   : > { %5730 = vmatpush.bf16.msra.mxu2 %v8463_v9  ;;  %5743 = vmatpush.bf16.msra.mxu3 %v8879_v13  ;;  %v8723_v49 = vor.u32 %v11020_v41, %v8722_v40  ;;  %v8254_v50 = vld [vmem:[%s11906_s12 + $0x750] sm:$0xf]  ;;  %v11007_v52 = vld [vmem:[%s11906_s12 + $0xac0] sm:$0xf0]  ;;  %v7839_v54 = vor.u32 %v10799_v48, %v7838_v46  ;;  %v7370_v55 = vld [vmem:[%s11906_s12 + $0x68] sm:$0xf] }
  0x65   : > { %7312 = vmatmul.msk.bf16.vlgmr.msrb.gmra.mxu0 %vm429_vm0, %v11915_v23  ;;  %7313 = vmatmul.msk.bf16.vlgmr.msrb.gmra.mxu1 %vm429_vm0, %v11915_v23  ;;  %v8670_v51 = vld [vmem:[%s11906_s12 + $0xa90] sm:$0xf]  ;;  %v10682_v56 = vld [vmem:[%s11906_s12 + $0x98] sm:$0xf0]  ;;  %v7786_v57 = vld [vmem:[%s11906_s12 + $0x3a8] sm:$0xf] }
  0x66   : > { %5705 = vmatpush.bf16.msra.mxu0 %v7579_v12  ;;  %5718 = vmatpush.bf16.msra.mxu1 %v7995_v14  ;;  %v10786_v59 = vld [vmem:[%s11906_s12 + $0x3d8] sm:$0xf0]  ;;  %v8671_v60 = vor.u32 %v11007_v52, %v8670_v51  ;;  %v8202_v61 = vld [vmem:[%s11906_s12 + $0x6e8] sm:$0xf]  ;;  %v7371_v1 = vor.u32 %v10682_v56, %v7370_v55  ;;  %v7318_v2 = vld [vmem:[%s11906_s12] sm:$0xf] }
  0x67   : > { %7314 = vmatmul.msk.bf16.vlgmr.msrb.gmra.mxu2 %vm429_vm0, %v11915_v23  ;;  %7315 = vmatmul.msk.bf16.vlgmr.msrb.gmra.mxu3 %vm429_vm0, %v11915_v23  ;;  %v10903_v23 = vld [vmem:[%s11906_s12 + $0x780] sm:$0xf0]  ;;  %v10890_v62 = vld [vmem:[%s11906_s12 + $0x718] sm:$0xf0]  ;;  %v8618_v63 = vld [vmem:[%s11906_s12 + $0xa28] sm:$0xf]  ;;  %v7787_v4 = vor.u32 %v10786_v59, %v7786_v57 }
  0x68   : > { %5731 = vmatpush.bf16.msra.mxu2 %v8411_v22  ;;  %5744 = vmatpush.bf16.msra.mxu3 %v8827_v25  ;;  %v8255_v58 = vor.u32 %v10903_v23, %v8254_v50  ;;  %v10994_v0 = vld [vmem:[%s11906_s12 + $0xa58] sm:$0xf0]  ;;  %v10669_v3 = vld [vmem:[%s11906_s12 + $0x30] sm:$0xf0]  ;;  %v7734_v5 = vld [vmem:[%s11906_s12 + $0x340] sm:$0xf]  ;;  %v8203_v8 = vor.u32 %v10890_v62, %v8202_v61 }
  0x69   : > { %v10773_v6 = vld [vmem:[%s11906_s12 + $0x370] sm:$0xf0]  ;;  %v9346_v7 = vld [vmem:[%s11906_s12 + $0xfd8] sm:$0xf]  ;;  %v11176_v9 = vld [vmem:[%s11906_s12 + $0x1008] sm:$0xf0]  ;;  %v8619_v12 = vor.u32 %v10994_v0, %v8618_v63  ;;  %v7319_v16 = vor.u32 %v10669_v3, %v7318_v2 }
  0x6a   : > { %5706 = vmatpush.bf16.msra.mxu0 %v7527_v30  ;;  %5719 = vmatpush.bf16.msra.mxu1 %v7943_v31  ;;  %v9762_v10 = vld [vmem:[%s11906_s12 + $0x1318] sm:$0xf]  ;;  %v11280_v11 = vld [vmem:[%s11906_s12 + $0x1348] sm:$0xf0]  ;;  %v8150_v13 = vld [vmem:[%s11906_s12 + $0x680] sm:$0xf]  ;;  %v7735_v20 = vor.u32 %v10773_v6, %v7734_v5  ;;  %v9347_v21 = vor.u32 %v11176_v9, %v9346_v7 }
  0x6b   : > { %v10877_v14 = vld [vmem:[%s11906_s12 + $0x6b0] sm:$0xf0]  ;;  %v8566_v15 = vld [vmem:[%s11906_s12 + $0x9c0] sm:$0xf]  ;;  %v10178_v18 = vld [vmem:[%s11906_s12 + $0x1658] sm:$0xf]  ;;  %v9763_v25 = vor.u32 %v11280_v11, %v9762_v10 }
  0x6c   : > { %5732 = vmatpush.bf16.msra.mxu2 %v8359_v35  ;;  %5745 = vmatpush.bf16.msra.mxu3 %v8775_v37  ;;  %v10981_v17 = vld [vmem:[%s11906_s12 + $0x9f0] sm:$0xf0]  ;;  %v11384_v19 = vld [vmem:[%s11906_s12 + $0x1688] sm:$0xf0]  ;;  %v10594_v22 = vld [vmem:[%s11906_s12 + $0x1998] sm:$0xf]  ;;  %v8151_v28 = vor.u32 %v10877_v14, %v8150_v13 }
  0x6d   : > { %v11488_v24 = vld [vmem:[%s11906_s12 + $0x19c8] sm:$0xf0]  ;;  %v9294_v26 = vld [vmem:[%s11906_s12 + $0xf70] sm:$0xf]  ;;  %v11163_v27 = vld [vmem:[%s11906_s12 + $0xfa0] sm:$0xf0]  ;;  %v8567_v31 = vor.u32 %v10981_v17, %v8566_v15  ;;  %v10179_v32 = vor.u32 %v11384_v19, %v10178_v18 }
  0x6e   : > { %5707 = vmatpush.bf16.msra.mxu0 %v7475_v42  ;;  %5720 = vmatpush.bf16.msra.mxu1 %v7891_v43  ;;  %v9710_v29 = vld [vmem:[%s11906_s12 + $0x12b0] sm:$0xf]  ;;  %v11267_v30 = vld [vmem:[%s11906_s12 + $0x12e0] sm:$0xf0]  ;;  %v10595_v33 = vor.u32 %v11488_v24, %v10594_v22  ;;  %v9295_v36 = vor.u32 %v11163_v27, %v9294_v26  ;;  %v9242_v40 = vld [vmem:[%s11906_s12 + $0xf08] sm:$0xf] }
  0x6f   : > { %v10126_v34 = vld [vmem:[%s11906_s12 + $0x15f0] sm:$0xf]  ;;  %v11371_v35 = vld [vmem:[%s11906_s12 + $0x1620] sm:$0xf0]  ;;  %v9711_v39 = vor.u32 %v11267_v30, %v9710_v29  ;;  %v11150_v41 = vld [vmem:[%s11906_s12 + $0xf38] sm:$0xf0] }
  0x70   : > { %5733 = vmatpush.bf16.msra.mxu2 %v8307_v47  ;;  %5746 = vmatpush.bf16.msra.mxu3 %v8723_v49  ;;  %v10542_v37 = vld [vmem:[%s11906_s12 + $0x1930] sm:$0xf]  ;;  %v11475_v38 = vld [vmem:[%s11906_s12 + $0x1960] sm:$0xf0]  ;;  %v9658_v42 = vld [vmem:[%s11906_s12 + $0x1248] sm:$0xf]  ;;  %v10127_v44 = vor.u32 %v11371_v35, %v10126_v34  ;;  %v9243_v48 = vor.u32 %v11150_v41, %v9242_v40 }
  0x71   : > { %v11254_v43 = vld [vmem:[%s11906_s12 + $0x1278] sm:$0xf0]  ;;  %v10543_v45 = vor.u32 %v11475_v38, %v10542_v37  ;;  %v10074_v46 = vld [vmem:[%s11906_s12 + $0x1588] sm:$0xf]  ;;  %v9190_v51 = vld [vmem:[%s11906_s12 + $0xea0] sm:$0xf] }
  0x72   : > { %5708 = vmatpush.bf16.msra.mxu0 %v7423_v53  ;;  %5721 = vmatpush.bf16.msra.mxu1 %v7839_v54  ;;  %v11358_v47 = vld [vmem:[%s11906_s12 + $0x15b8] sm:$0xf0]  ;;  %v10490_v49 = vld [vmem:[%s11906_s12 + $0x18c8] sm:$0xf]  ;;  %v9659_v23 = vor.u32 %v11254_v43, %v9658_v42  ;;  %v11137_v52 = vld [vmem:[%s11906_s12 + $0xed0] sm:$0xf0] }
  0x73   : > { %v11462_v50 = vld [vmem:[%s11906_s12 + $0x18f8] sm:$0xf0]  ;;  %v9606_v53 = vld [vmem:[%s11906_s12 + $0x11e0] sm:$0xf]  ;;  %v11241_v54 = vld [vmem:[%s11906_s12 + $0x1210] sm:$0xf0]  ;;  %v10075_v55 = vor.u32 %v11358_v47, %v10074_v46  ;;  %v9191_v59 = vor.u32 %v11137_v52, %v9190_v51 }
  0x74   : > { %5734 = vmatpush.bf16.msra.mxu2 %v8255_v58  ;;  %5747 = vmatpush.bf16.msra.mxu3 %v8671_v60  ;;  %v10491_v56 = vor.u32 %v11462_v50, %v10490_v49  ;;  %v10022_v57 = vld [vmem:[%s11906_s12 + $0x1520] sm:$0xf]  ;;  %v11345_v58 = vld [vmem:[%s11906_s12 + $0x1550] sm:$0xf0]  ;;  %v9607_v62 = vor.u32 %v11241_v54, %v9606_v53  ;;  %v9138_v63 = vld [vmem:[%s11906_s12 + $0xe38] sm:$0xf] }
  0x75   : > { %v10438_v60 = vld [vmem:[%s11906_s12 + $0x1860] sm:$0xf]  ;;  %v11449_v61 = vld [vmem:[%s11906_s12 + $0x1890] sm:$0xf0]  ;;  %v11124_v0 = vld [vmem:[%s11906_s12 + $0xe68] sm:$0xf0]  ;;  %v10023_v3 = vor.u32 %v11345_v58, %v10022_v57 }
  0x76   : > { %5709 = vmatpush.bf16.msra.mxu0 %v7371_v1  ;;  %5722 = vmatpush.bf16.msra.mxu1 %v7787_v4  ;;  %v9554_v1 = vld [vmem:[%s11906_s12 + $0x1178] sm:$0xf]  ;;  %v11228_v2 = vld [vmem:[%s11906_s12 + $0x11a8] sm:$0xf0]  ;;  %v10439_v4 = vor.u32 %v11449_v61, %v10438_v60  ;;  %v9139_v5 = vor.u32 %v11124_v0, %v9138_v63  ;;  %v9086_v7 = vld [vmem:[%s11906_s12 + $0xdd0] sm:$0xf] }
  0x77   : > { %v9555_v6 = vor.u32 %v11228_v2, %v9554_v1  ;;  %v9502_v9 = vld [vmem:[%s11906_s12 + $0x1110] sm:$0xf]  ;;  %v11215_v10 = vld [vmem:[%s11906_s12 + $0x1140] sm:$0xf0]  ;;  %v9970_v13 = vld [vmem:[%s11906_s12 + $0x14b8] sm:$0xf] }
  0x78   : > { %5735 = vmatpush.bf16.msra.mxu2 %v8203_v8  ;;  %5748 = vmatpush.bf16.msra.mxu3 %v8619_v12  ;;  %v11111_v8 = vld [vmem:[%s11906_s12 + $0xe00] sm:$0xf0]  ;;  %v9503_v12 = vor.u32 %v11215_v10, %v9502_v9  ;;  %v11332_v14 = vld [vmem:[%s11906_s12 + $0x14e8] sm:$0xf0]  ;;  %v10386_v15 = vld [vmem:[%s11906_s12 + $0x17f8] sm:$0xf] }
  0x79   : > { %v9087_v11 = vor.u32 %v11111_v8, %v9086_v7  ;;  %v11436_v17 = vld [vmem:[%s11906_s12 + $0x1828] sm:$0xf0]  ;;  %v9034_v19 = vld [vmem:[%s11906_s12 + $0xd68] sm:$0xf]  ;;  %v11202_v24 = vld [vmem:[%s11906_s12 + $0x10d8] sm:$0xf0] }
  0x7a   : > { %5710 = vmatpush.bf16.msra.mxu0 %v7319_v16  ;;  %5723 = vmatpush.bf16.msra.mxu1 %v7735_v20  ;;  %v9971_v16 = vor.u32 %v11332_v14, %v9970_v13  ;;  %v10387_v18 = vor.u32 %v11436_v17, %v10386_v15  ;;  %v11098_v20 = vld [vmem:[%s11906_s12 + $0xd98] sm:$0xf0]  ;;  %v9450_v22 = vld [vmem:[%s11906_s12 + $0x10a8] sm:$0xf]  ;;  %v9918_v26 = vld [vmem:[%s11906_s12 + $0x1450] sm:$0xf] }
  0x7b   : > { %v11319_v27 = vld [vmem:[%s11906_s12 + $0x1480] sm:$0xf0]  ;;  %v9398_v34 = vld [vmem:[%s11906_s12 + $0x1040] sm:$0xf]  ;;  %v9866_v38 = vld [vmem:[%s11906_s12 + $0x13e8] sm:$0xf] }
  0x7c   : > { %5736 = vmatpush.bf16.msra.mxu2 %v8151_v28  ;;  %5749 = vmatpush.bf16.msra.mxu3 %v8567_v31  ;;  %v10334_v28 = vld [vmem:[%s11906_s12 + $0x1790] sm:$0xf]  ;;  %v9919_v29 = vor.u32 %v11319_v27, %v9918_v26  ;;  %v11423_v30 = vld [vmem:[%s11906_s12 + $0x17c0] sm:$0xf0]  ;;  %v10282_v41 = vld [vmem:[%s11906_s12 + $0x1728] sm:$0xf] }
  0x7d   : > { %v10335_v31 = vor.u32 %v11423_v30, %v10334_v28  ;;  %v11410_v42 = vld [vmem:[%s11906_s12 + $0x1758] sm:$0xf0]  ;;  %v10230_v47 = vld [vmem:[%s11906_s12 + $0x16c0] sm:$0xf]  ;;  %v8048_v7 = vld [vmem:[%s11906_s12 + $0x5e4] sm:$0xf0] }
  0x7e   : > { %5755 = vmatpush.bf16.msrb.mxu0 %v9347_v21  ;;  %5768 = vmatpush.bf16.msrb.mxu1 %v9763_v25  ;;  %v9035_v21 = vor.u32 %v11098_v20, %v9034_v19  ;;  %v9451_v25 = vor.u32 %v11202_v24, %v9450_v22  ;;  %v10283_v43 = vor.u32 %v11410_v42, %v10282_v41  ;;  %v12061_v50 = vld [vmem:[#allocation4] sm:$0xff]  ;;  %v8516_v14 = vld [vmem:[%s11906_s12 + $0x98c] sm:$0xf0]  ;;  %v10728_v20 = vld [vmem:[%s11906_s12 + $0x20c] sm:$0xf]  ;;  %s12351_s27 = smul.u32 13, %s262_s3 }
  0x7f   : > { %v334_v51 = vperm.slane %v12061_v50, 1  ;;  %v10858_v58 = vld [vmem:[%s11906_s12 + $0x61c] sm:$0xf]  ;;  %v336_v1 = vperm.slane %v12061_v50, 3  ;;  %v8932_v19 = vld [vmem:[%s11906_s12 + $0xccc] sm:$0xf0] }
  0x80   : > { %5781 = vmatpush.bf16.msrb.mxu2 %v10179_v32  ;;  %5794 = vmatpush.bf16.msrb.mxu3 %v10595_v33  ;;  %v8982_v32 = vld [vmem:[%s11906_s12 + $0xd00] sm:$0xf]  ;;  %v11085_v33 = vld [vmem:[%s11906_s12 + $0xd30] sm:$0xf0]  ;;  %v10962_v13 = vld [vmem:[%s11906_s12 + $0x95c] sm:$0xf] }
  0x81   : > { %v8983_v35 = vor.u32 %v11085_v33, %v8982_v32  ;;  %v11066_v15 = vld [vmem:[%s11906_s12 + $0xc9c] sm:$0xf]  ;;  %v10832_v24 = vld [vmem:[%s11906_s12 + $0x54c] sm:$0xf]  ;;  %v8519_v27 = vor.u32 %v10962_v13, %v8516_v14  ;;  %v337_v28 = vperm.slane %v12061_v50, 4  ;;  %s12382_s7 = scalar_lea.vmem [#allocation7], %s12351_s27 }
  0x82   : > { %5756 = vmatpush.bf16.msrb.mxu0 %v9295_v36  ;;  %5769 = vmatpush.bf16.msrb.mxu1 %v9711_v39  ;;  %v11189_v36 = vld [vmem:[%s11906_s12 + $0x1070] sm:$0xf0]  ;;  %v11306_v39 = vld [vmem:[%s11906_s12 + $0x1418] sm:$0xf0]  ;;  %v8935_v30 = vor.u32 %v11066_v15, %v8932_v19  ;;  %v8464_v33 = vld [vmem:[%s11906_s12 + $0x924] sm:$0xf0] }
  0x83   : > { %v9399_v37 = vor.u32 %v11189_v36, %v9398_v34  ;;  %v9867_v40 = vor.u32 %v11306_v39, %v9866_v38  ;;  %v10949_v32 = vld [vmem:[%s11906_s12 + $0x8f4] sm:$0xf]  ;;  %v10715_v38 = vld [vmem:[%s11906_s12 + $0x1a4] sm:$0xf]  ;;  %v7528_v39 = vld [vmem:[%s11906_s12 + $0x1d4] sm:$0xf0] }
  0x84   : > { %5782 = vmatpush.bf16.msrb.mxu2 %v10127_v44  ;;  %5795 = vmatpush.bf16.msrb.mxu3 %v10543_v45  ;;  %v9814_v44 = vld [vmem:[%s11906_s12 + $0x1380] sm:$0xf]  ;;  %v11293_v45 = vld [vmem:[%s11906_s12 + $0x13b0] sm:$0xf0]  ;;  %v10819_v41 = vld [vmem:[%s11906_s12 + $0x4e4] sm:$0xf] }
  0x85   : > { %v9815_v46 = vor.u32 %v11293_v45, %v9814_v44  ;;  %v11053_v34 = vld [vmem:[%s11906_s12 + $0xc34] sm:$0xf]  ;;  %v7944_v42 = vld [vmem:[%s11906_s12 + $0x514] sm:$0xf0]  ;;  %v8467_v44 = vor.u32 %v10949_v32, %v8464_v33  ;;  %v7424_v14 = vld [vmem:[%s11906_s12 + $0x104] sm:$0xf0] }
  0x86   : > { %5757 = vmatpush.bf16.msrb.mxu0 %v9243_v48  ;;  %5770 = vmatpush.bf16.msrb.mxu1 %v9659_v23  ;;  %v11397_v48 = vld [vmem:[%s11906_s12 + $0x16f0] sm:$0xf0]  ;;  %v333_v23 = vperm.slane %v12061_v50, 0  ;;  %v7372_v32 = vld [vmem:[%s11906_s12 + $0x9c] sm:$0xf0]  ;;  %vm7094_vm1 = vcmask 1040384  }
  0x87   : > { %v10231_v49 = vor.u32 %v11397_v48, %v10230_v47  ;;  %v7531_v48 = vor.u32 %v10715_v38, %v7528_v39  ;;  %v10793_v15 = vld [vmem:[%s11906_s12 + $0x414] sm:$0xf]  ;;  %vm7098_vm2 = vcmask 1042434   ;;  %vm7102_vm3 = vcmask 1041408   ;;  %s308_s16 = smul.u32 13, %s11793_s22 }
  0x88   : > { %5783 = vmatpush.bf16.msrb.mxu2 %v10075_v55  ;;  %5796 = vmatpush.bf16.msrb.mxu3 %v10491_v56  ;;  %v10754_v55 = vld [vmem:[%s11906_s12 + $0x2dc] sm:$0xf]  ;;  %v7684_v56 = vld [vmem:[%s11906_s12 + $0x30c] sm:$0xf0]  ;;  %vm7104_vm4 = vcmask 1044484   ;;  %vm7108_vm5 = vcmask 1046534  }
  0x89   : > { %v7687_v63 = vor.u32 %v10754_v55, %v7684_v56  ;;  %v8828_v55 = vld [vmem:[%s11906_s12 + $0xbfc] sm:$0xf0]  ;;  %v10702_v56 = vld [vmem:[%s11906_s12 + $0x13c] sm:$0xf]  ;;  %p13471_p5 = scmp.lt.s32.totalorder %s308_s16, 25  ;;  %vm7112_vm6 = vcmask 1045508  }
  0x8a   : > { %5758 = vmatpush.bf16.msrb.mxu0 %v9191_v59  ;;  %5771 = vmatpush.bf16.msrb.mxu1 %v9607_v62  ;;  %v8100_v59 = vld [vmem:[%s11906_s12 + $0x64c] sm:$0xf0]  ;;  %v335_v62 = vperm.slane %v12061_v50, 2  ;;  %vm7114_vm7 = vcmask 1043456   ;;  %vm7121_vm8 = vcmask 1043459   ;;  %vm7125_vm9 = vcmask 1044483  }
  0x8b   : > { %v8103_v2 = vor.u32 %v10858_v58, %v8100_v59  ;;  %v7476_v58 = vld [vmem:[%s11906_s12 + $0x16c] sm:$0xf0]  ;;  %v10806_v59 = vld [vmem:[%s11906_s12 + $0x47c] sm:$0xf]  ;;  %s13900_s16 = smov (!%p13471_p5, %s308_s16), 25  ;;  %vm7128_vm10 = vcmask 1042432  }
  0x8c   : > { %5784 = vmatpush.bf16.msrb.mxu2 %v10023_v3  ;;  %5797 = vmatpush.bf16.msrb.mxu3 %v10439_v4  ;;  %v10741_v3 = vld [vmem:[%s11906_s12 + $0x274] sm:$0xf]  ;;  %v7632_v4 = vld [vmem:[%s11906_s12 + $0x2a4] sm:$0xf0]  ;;  %s13514_s17 = scalar_lea.vmem %s13882_s5, %s13900_s16 }
  0x8e   : > { %5759 = vmatpush.bf16.msrb.mxu0 %v9139_v5  ;;  %5772 = vmatpush.bf16.msrb.mxu1 %v9555_v6  ;;  %v10845_v6 = vld [vmem:[%s11906_s12 + $0x5b4] sm:$0xf] }
  0x90   : > { %5785 = vmatpush.bf16.msrb.mxu2 %v9971_v16  ;;  %5798 = vmatpush.bf16.msrb.mxu3 %v10387_v18  ;;  %v8051_v18 = vor.u32 %v10845_v6, %v8048_v7  ;;  %v8360_v6 = vld [vmem:[%s11906_s12 + $0x854] sm:$0xf0] }
  0x92   : > { %5760 = vmatpush.bf16.msrb.mxu0 %v9087_v11  ;;  %5773 = vmatpush.bf16.msrb.mxu1 %v9503_v12  ;;  %v7635_v12 = vor.u32 %v10741_v3, %v7632_v4  ;;  %v340_v3 = vperm.slane %v12061_v50, 7  ;;  %v10923_v4 = vld [vmem:[%s11906_s12 + $0x824] sm:$0xf] }
  0x94   : > { %5786 = vmatpush.bf16.msrb.mxu2 %v9919_v29  ;;  %5799 = vmatpush.bf16.msrb.mxu3 %v10335_v31 }
  0x96   : > { %5761 = vmatpush.bf16.msrb.mxu0 %v9035_v21  ;;  %5774 = vmatpush.bf16.msrb.mxu1 %v9451_v25  ;;  %v7580_v21 = vld [vmem:[%s11906_s12 + $0x23c] sm:$0xf0] }
  0x97   : > { %v7996_v25 = vld [vmem:[%s11906_s12 + $0x57c] sm:$0xf0]  ;;  %v7583_v31 = vor.u32 %v10728_v20, %v7580_v21  ;;  %v10910_v21 = vld [vmem:[%s11906_s12 + $0x7bc] sm:$0xf] }
  0x98   : > { %5787 = vmatpush.bf16.msrb.mxu2 %v9867_v40  ;;  %5800 = vmatpush.bf16.msrb.mxu3 %v10283_v43  ;;  %v7999_v36 = vor.u32 %v10832_v24, %v7996_v25  ;;  %v338_v40 = vperm.slane %v12061_v50, 5  ;;  %v11014_v24 = vld [vmem:[%s11906_s12 + $0xafc] sm:$0xf] }
  0x9a   : > { %5762 = vmatpush.bf16.msrb.mxu0 %v8983_v35  ;;  %5775 = vmatpush.bf16.msrb.mxu1 %v9399_v37  ;;  %v8880_v37 = vld [vmem:[%s11906_s12 + $0xc64] sm:$0xf0] }
  0x9b   : > { %v8883_v47 = vor.u32 %v11053_v34, %v8880_v37  ;;  %v7788_v37 = vld [vmem:[%s11906_s12 + $0x3dc] sm:$0xf0] }
  0x9c   : > { %5788 = vmatpush.bf16.msrb.mxu2 %v9815_v46  ;;  %5801 = vmatpush.bf16.msrb.mxu3 %v10231_v49  ;;  %v10936_v49 = vld [vmem:[%s11906_s12 + $0x88c] sm:$0xf] }
  0xd2   : > { %v442_v52 = vpop.f32.mrf.mxu0  ;;  %v455_v54 = vpop.f32.mrf.mxu1 }
  0xd3   : > { %v443_v53 = vadd.f32 %v442_v52, %v333_v23  ;;  %v456_v57 = vadd.f32 %v455_v54, %v334_v51  ;;  %v8412_v23 = vld [vmem:[%s11906_s12 + $0x8bc] sm:$0xf0]  ;;  %v11040_v54 = vld [vmem:[%s11906_s12 + $0xbcc] sm:$0xf] }
  0xd5   : > { %v537_v60 = vmax.f32 %v443_v53, 0.0  ;;  %v538_v61 = vmax.f32 %v456_v57, 0.0  ;;  %v7947_v53 = vor.u32 %v10819_v41, %v7944_v42  ;;  %v10897_v42 = vld [vmem:[%s11906_s12 + $0x754] sm:$0xf] }
  0xd7   : > { %v12070_v0 = vpack.c.bf16 %v537_v60, %v537_v60  ;;  %v12075_v5 = vpack.c.bf16 %v538_v61, %v538_v61  ;;  %v7892_v60 = vld [vmem:[%s11906_s12 + $0x4ac] sm:$0xf0] }
  0xd9   : > { %5711 = vmatmul.bf16.vlgmr.msra.gmra.mxu0 %v12070_v0  ;;  %5724 = vmatmul.bf16.vlgmr.msra.gmra.mxu1 %v12075_v5 }
  0xda   : > { %v468_v8 = vpop.f32.mrf.mxu2  ;;  %v481_v10 = vpop.f32.mrf.mxu3  ;;  %5807 = vmatpush.bf16.msra.mxu0 %v7687_v63  ;;  %5820 = vmatpush.bf16.msra.mxu1 %v8103_v2  ;;  %v339_v63 = vperm.slane %v12061_v50, 6  ;;  %v8831_v2 = vor.u32 %v11040_v54, %v8828_v55 }
  0xdb   : > { %v469_v9 = vadd.f32 %v468_v8, %v335_v62  ;;  %v444_v11 = vpop.f32.mrf.mxu0  ;;  %v482_v16 = vadd.f32 %v481_v10, %v336_v1  ;;  %v457_v17 = vpop.f32.mrf.mxu1  ;;  %v8415_v62 = vor.u32 %v10936_v49, %v8412_v23  ;;  %v7479_v8 = vor.u32 %v10702_v56, %v7476_v58  ;;  %v11027_v10 = vld [vmem:[%s11906_s12 + $0xb64] sm:$0xf]  ;;  %v7320_v23 = vld [vmem:[%s11906_s12 + $0x34] sm:$0xf0]  ;;  %v9348_v56 = vld [vmem:[%s11906_s12 + $0x100c] sm:$0xf0] }
  0xdc   : > { %v8776_v11 = vld [vmem:[%s11906_s12 + $0xb94] sm:$0xf0]  ;;  %v8363_v17 = vor.u32 %v10923_v4, %v8360_v6  ;;  %v10663_v49 = vld [vmem:[%s11906_s12 + $0x4] sm:$0xf]  ;;  %v9764_v58 = vld [vmem:[%s11906_s12 + $0x134c] sm:$0xf0] }
  0xdd   : > { %v539_v22 = vmax.f32 %v469_v9, 0.0  ;;  %v540_v26 = vmax.f32 %v482_v16, 0.0  ;;  %v7895_v9 = vor.u32 %v10806_v59, %v7892_v60  ;;  %v7840_v16 = vld [vmem:[%s11906_s12 + $0x444] sm:$0xf0]  ;;  %v8779_v20 = vor.u32 %v11027_v10, %v8776_v11  ;;  %v11261_v11 = vld [vmem:[%s11906_s12 + $0x12b4] sm:$0xf] }
  0xde   : > { %5808 = vmatpush.bf16.msra.mxu0 %v7635_v12  ;;  %5821 = vmatpush.bf16.msra.mxu1 %v8051_v18  ;;  %v10689_v12 = vld [vmem:[%s11906_s12 + $0xd4] sm:$0xf]  ;;  %v9296_v10 = vld [vmem:[%s11906_s12 + $0xfa4] sm:$0xf0] }
  0xdf   : > { %v12090_v29 = vpack.c.bf16 %v539_v22, %v539_v22  ;;  %v12095_v35 = vpack.c.bf16 %v540_v26, %v540_v26  ;;  %v8308_v22 = vld [vmem:[%s11906_s12 + $0x7ec] sm:$0xf0] }
  0xe0   : > { %v8311_v39 = vor.u32 %v10910_v21, %v8308_v22  ;;  %v11482_v22 = vld [vmem:[%s11906_s12 + $0x199c] sm:$0xf] }
  0xe1   : > { %5737 = vmatmul.bf16.vlgmr.msra.gmra.mxu2 %v12090_v29  ;;  %5750 = vmatmul.bf16.vlgmr.msra.gmra.mxu3 %v12095_v35 }
  0xe2   : > { %5833 = vmatpush.bf16.msra.mxu2 %v8519_v27  ;;  %v470_v43 = vpop.f32.mrf.mxu2  ;;  %5846 = vmatpush.bf16.msra.mxu3 %v8935_v30  ;;  %v483_v45 = vpop.f32.mrf.mxu3  ;;  %v7427_v27 = vor.u32 %v10689_v12, %v7424_v14  ;;  %v8724_v30 = vld [vmem:[%s11906_s12 + $0xb2c] sm:$0xf0]  ;;  %v9712_v12 = vld [vmem:[%s11906_s12 + $0x12e4] sm:$0xf0] }
  0xe3   : > { %5809 = vmatpush.bf16.msra.mxu0 %v7583_v31  ;;  %v494_v46 = vpop.f32.mrf.mxu0  ;;  %5822 = vmatpush.bf16.msra.mxu1 %v7999_v36  ;;  %v507_v52 = vpop.f32.mrf.mxu1  ;;  %v10676_v31 = vld [vmem:[%s11906_s12 + $0x6c] sm:$0xf]  ;;  %v8727_v41 = vor.u32 %v11014_v24, %v8724_v30  ;;  %v8256_v43 = vld [vmem:[%s11906_s12 + $0x784] sm:$0xf0]  ;;  %v9715_v21 = vor.u32 %v11261_v11, %v9712_v12  ;;  %v10596_v24 = vld [vmem:[%s11906_s12 + $0x19cc] sm:$0xf0] }
  0xe4   : > { %v495_v51 = vadd.f32 %v494_v46, %v337_v28  ;;  %v508_v57 = vadd.f32 %v507_v52, %v338_v40  ;;  %v7843_v28 = vor.u32 %v10793_v15, %v7840_v16  ;;  %v10780_v36 = vld [vmem:[%s11906_s12 + $0x3ac] sm:$0xf]  ;;  %v7375_v46 = vor.u32 %v10676_v31, %v7372_v32  ;;  %v7736_v52 = vld [vmem:[%s11906_s12 + $0x374] sm:$0xf0]  ;;  %v10871_v15 = vld [vmem:[%s11906_s12 + $0x684] sm:$0xf] }
  0xe5   : > { %v8259_v54 = vor.u32 %v10897_v42, %v8256_v43  ;;  %v8152_v16 = vld [vmem:[%s11906_s12 + $0x6b4] sm:$0xf0]  ;;  %v9660_v30 = vld [vmem:[%s11906_s12 + $0x127c] sm:$0xf0]  ;;  %v11131_v42 = vld [vmem:[%s11906_s12 + $0xea4] sm:$0xf] }
  0xe6   : > { %v541_v61 = vmax.f32 %v495_v51, 0.0  ;;  %5834 = vmatpush.bf16.msra.mxu2 %v8467_v44  ;;  %v542_v1 = vmax.f32 %v508_v57, 0.0  ;;  %5847 = vmatpush.bf16.msra.mxu3 %v8883_v47  ;;  %v11001_v44 = vld [vmem:[%s11906_s12 + $0xa94] sm:$0xf]  ;;  %v7791_v47 = vor.u32 %v10780_v36, %v7788_v37  ;;  %v10767_v51 = vld [vmem:[%s11906_s12 + $0x344] sm:$0xf] }
  0xe7   : > { %5810 = vmatpush.bf16.msra.mxu0 %v7531_v48  ;;  %5823 = vmatpush.bf16.msra.mxu1 %v7947_v53  ;;  %v8672_v48 = vld [vmem:[%s11906_s12 + $0xac4] sm:$0xf0]  ;;  %v11170_v53 = vld [vmem:[%s11906_s12 + $0xfdc] sm:$0xf]  ;;  %v9192_v43 = vld [vmem:[%s11906_s12 + $0xed4] sm:$0xf0] }
  0xe8   : > { %v12117_v7 = vpack.c.bf16 %v541_v61, %v541_v61  ;;  %v12122_v13 = vpack.c.bf16 %v542_v1, %v542_v1  ;;  %v11274_v57 = vld [vmem:[%s11906_s12 + $0x131c] sm:$0xf]  ;;  %v8675_v59 = vor.u32 %v11001_v44, %v8672_v48  ;;  %v10884_v61 = vld [vmem:[%s11906_s12 + $0x6ec] sm:$0xf]  ;;  %v7739_v1 = vor.u32 %v10767_v51, %v7736_v52  ;;  %v10128_v36 = vld [vmem:[%s11906_s12 + $0x1624] sm:$0xf0] }
  0xe9   : > { %v9351_v4 = vor.u32 %v11170_v53, %v9348_v56  ;;  %v9767_v6 = vor.u32 %v11274_v57, %v9764_v58  ;;  %v11235_v44 = vld [vmem:[%s11906_s12 + $0x11e4] sm:$0xf]  ;;  %v9195_v51 = vor.u32 %v11131_v42, %v9192_v43  ;;  %v11456_v53 = vld [vmem:[%s11906_s12 + $0x18cc] sm:$0xf]  ;;  %v9140_v56 = vld [vmem:[%s11906_s12 + $0xe6c] sm:$0xf0] }
  0xea   : > { %5835 = vmatpush.bf16.msra.mxu2 %v8415_v62  ;;  %v520_v50 = vpop.f32.mrf.mxu2  ;;  %5763 = vmatmul.bf16.vlgmr.msrb.gmra.mxu0 %v12117_v7  ;;  %v533_v19 = vpop.f32.mrf.mxu3  ;;  %v8204_v62 = vld [vmem:[%s11906_s12 + $0x71c] sm:$0xf0]  ;;  %v11222_v57 = vld [vmem:[%s11906_s12 + $0x117c] sm:$0xf]  ;;  %v9556_v58 = vld [vmem:[%s11906_s12 + $0x11ac] sm:$0xf0] }
  0xeb   : > { %5848 = vmatpush.bf16.msra.mxu3 %v8831_v2  ;;  %v521_v18 = vadd.f32 %v520_v50, %v339_v63  ;;  %5776 = vmatmul.bf16.vlgmr.msrb.gmra.mxu1 %v12122_v13  ;;  %v496_v25 = vpop.f32.mrf.mxu0  ;;  %v534_v26 = vadd.f32 %v533_v19, %v340_v3  ;;  %v509_v33 = vpop.f32.mrf.mxu1  ;;  %v7323_v63 = vor.u32 %v10663_v49, %v7320_v23  ;;  %v10988_v2 = vld [vmem:[%s11906_s12 + $0xa2c] sm:$0xf]  ;;  %v8620_v3 = vld [vmem:[%s11906_s12 + $0xa5c] sm:$0xf0]  ;;  %v10975_v50 = vld [vmem:[%s11906_s12 + $0x9c4] sm:$0xf] }
  0xec   : > { %5811 = vmatpush.bf16.msra.mxu0 %v7479_v8  ;;  %5824 = vmatpush.bf16.msra.mxu1 %v7895_v9  ;;  %v11157_v8 = vld [vmem:[%s11906_s12 + $0xf74] sm:$0xf]  ;;  %v8207_v9 = vor.u32 %v10884_v61, %v8204_v62  ;;  %v8623_v14 = vor.u32 %v10988_v2, %v8620_v3  ;;  %v10180_v19 = vld [vmem:[%s11906_s12 + $0x168c] sm:$0xf0]  ;;  %v11144_v25 = vld [vmem:[%s11906_s12 + $0xf0c] sm:$0xf]  ;;  %v10599_v33 = vor.u32 %v11482_v22, %v10596_v24 }
  0xed   : > { %v543_v34 = vmax.f32 %v521_v18, 0.0  ;;  %v544_v38 = vmax.f32 %v534_v26, 0.0  ;;  %v11378_v18 = vld [vmem:[%s11906_s12 + $0x165c] sm:$0xf]  ;;  %v8155_v26 = vor.u32 %v10871_v15, %v8152_v16  ;;  %v11352_v49 = vld [vmem:[%s11906_s12 + $0x158c] sm:$0xf] }
  0xee   : > { %5836 = vmatpush.bf16.msra.mxu2 %v8363_v17  ;;  %v8568_v17 = vld [vmem:[%s11906_s12 + $0x9f4] sm:$0xf0]  ;;  %v10183_v32 = vor.u32 %v11378_v18, %v10180_v19  ;;  %v10076_v23 = vld [vmem:[%s11906_s12 + $0x15bc] sm:$0xf0]  ;;  %v11339_v61 = vld [vmem:[%s11906_s12 + $0x1524] sm:$0xf] }
  0xef   : > { %v12137_v40 = vpack.c.bf16 %v543_v34, %v543_v34  ;;  %5849 = vmatpush.bf16.msra.mxu3 %v8779_v20  ;;  %v12142_v45 = vpack.c.bf16 %v544_v38, %v544_v38  ;;  %v9299_v20 = vor.u32 %v11157_v8, %v9296_v10  ;;  %v8571_v31 = vor.u32 %v10975_v50, %v8568_v17  ;;  %v11365_v34 = vld [vmem:[%s11906_s12 + $0x15f4] sm:$0xf]  ;;  %v10024_v62 = vld [vmem:[%s11906_s12 + $0x1554] sm:$0xf0]  ;;  %v11443_v2 = vld [vmem:[%s11906_s12 + $0x1864] sm:$0xf] }
  0xf0   : > { %5812 = vmatpush.bf16.msra.mxu0 %v7427_v27  ;;  %5825 = vmatpush.bf16.msra.mxu1 %v7843_v28  ;;  %v9244_v27 = vld [vmem:[%s11906_s12 + $0xf3c] sm:$0xf0]  ;;  %v11248_v28 = vld [vmem:[%s11906_s12 + $0x124c] sm:$0xf]  ;;  %v10440_v3 = vld [vmem:[%s11906_s12 + $0x1894] sm:$0xf0]  ;;  %v10027_v10 = vor.u32 %v11339_v61, %v10024_v62 }
  0xf1   : > { %5789 = vmatmul.bf16.vlgmr.msrb.gmra.mxu2 %v12137_v40  ;;  %5802 = vmatmul.bf16.vlgmr.msrb.gmra.mxu3 %v12142_v45  ;;  %v9247_v37 = vor.u32 %v11144_v25, %v9244_v27  ;;  %v9663_v38 = vor.u32 %v11248_v28, %v9660_v30  ;;  %v11209_v8 = vld [vmem:[%s11906_s12 + $0x1114] sm:$0xf]  ;;  %v10443_v11 = vor.u32 %v11443_v2, %v10440_v3  ;;  %v11326_v12 = vld [vmem:[%s11906_s12 + $0x14bc] sm:$0xf]  ;;  %v10388_v17 = vld [vmem:[%s11906_s12 + $0x182c] sm:$0xf0] }
  0xf2   : > { %5837 = vmatpush.bf16.msra.mxu2 %v8311_v39  ;;  %v522_v55 = vpop.f32.mrf.mxu2  ;;  %v535_v60 = vpop.f32.mrf.mxu3  ;;  %v11469_v39 = vld [vmem:[%s11906_s12 + $0x1934] sm:$0xf]  ;;  %v11430_v50 = vld [vmem:[%s11906_s12 + $0x17fc] sm:$0xf]  ;;  %v11092_v18 = vld [vmem:[%s11906_s12 + $0xd6c] sm:$0xf] }
  0xf3   : > { %5850 = vmatpush.bf16.msra.mxu3 %v8727_v41  ;;  %v10544_v41 = vld [vmem:[%s11906_s12 + $0x1964] sm:$0xf0]  ;;  %v11118_v55 = vld [vmem:[%s11906_s12 + $0xe3c] sm:$0xf]  ;;  %v9036_v19 = vld [vmem:[%s11906_s12 + $0xd9c] sm:$0xf0]  ;;  %v10391_v24 = vor.u32 %v11430_v50, %v10388_v17 }
  0xf4   : > { %5813 = vmatpush.bf16.msra.mxu0 %v7375_v46  ;;  %5826 = vmatpush.bf16.msra.mxu1 %v7791_v47  ;;  %v9608_v46 = vld [vmem:[%s11906_s12 + $0x1214] sm:$0xf0]  ;;  %v10131_v47 = vor.u32 %v11365_v34, %v10128_v36  ;;  %v10547_v48 = vor.u32 %v11469_v39, %v10544_v41  ;;  %v11313_v25 = vld [vmem:[%s11906_s12 + $0x1454] sm:$0xf]  ;;  %v9039_v28 = vor.u32 %v11092_v18, %v9036_v19  ;;  %v11183_v34 = vld [vmem:[%s11906_s12 + $0x1044] sm:$0xf] }
  0xf5   : > { %v9611_v52 = vor.u32 %v11235_v44, %v9608_v46  ;;  %v11417_v27 = vld [vmem:[%s11906_s12 + $0x1794] sm:$0xf]  ;;  %v9400_v36 = vld [vmem:[%s11906_s12 + $0x1074] sm:$0xf0]  ;;  %v8106_v41 = vld [vmem:[%s11906_s12 + $0x620] sm:$0xf] }
  0xf6   : > { %5838 = vmatpush.bf16.msra.mxu2 %v8259_v54  ;;  %v10492_v54 = vld [vmem:[%s11906_s12 + $0x18fc] sm:$0xf0]  ;;  %v10761_v39 = vld [vmem:[%s11906_s12 + $0x310] sm:$0xf0]  ;;  %v11300_v44 = vld [vmem:[%s11906_s12 + $0x13ec] sm:$0xf] }
  0xf7   : > { %5851 = vmatpush.bf16.msra.mxu3 %v8675_v59  ;;  %v10079_v59 = vor.u32 %v11352_v49, %v10076_v23  ;;  %v10495_v60 = vor.u32 %v11456_v53, %v10492_v54  ;;  %v10865_v42 = vld [vmem:[%s11906_s12 + $0x650] sm:$0xf0]  ;;  %v9868_v46 = vld [vmem:[%s11906_s12 + $0x141c] sm:$0xf0]  ;;  %v11404_v49 = vld [vmem:[%s11906_s12 + $0x172c] sm:$0xf] }
  0xf8   : > { %5814 = vmatpush.bf16.msra.mxu0 %v7323_v63  ;;  %5827 = vmatpush.bf16.msra.mxu1 %v7739_v1  ;;  %v9143_v63 = vor.u32 %v11118_v55, %v9140_v56  ;;  %v9559_v1 = vor.u32 %v11222_v57, %v9556_v58  ;;  %v10284_v23 = vld [vmem:[%s11906_s12 + $0x175c] sm:$0xf0]  ;;  %v7638_v53 = vld [vmem:[%s11906_s12 + $0x278] sm:$0xf]  ;;  %v9871_v54 = vor.u32 %v11300_v44, %v9868_v46  ;;  %v10748_v55 = vld [vmem:[%s11906_s12 + $0x2a8] sm:$0xf0] }
  0xf9   : > { %v8054_v56 = vld [vmem:[%s11906_s12 + $0x5b8] sm:$0xf]  ;;  %v10852_v57 = vld [vmem:[%s11906_s12 + $0x5e8] sm:$0xf0]  ;;  %v10287_v58 = vor.u32 %v11404_v49, %v10284_v23  ;;  %v11391_v61 = vld [vmem:[%s11906_s12 + $0x16c4] sm:$0xf]  ;;  %v7639_v2 = vor.u32 %v10748_v55, %v7638_v53 }
  0xfa   : > { %5839 = vmatpush.bf16.msra.mxu2 %v8207_v9  ;;  %v9504_v9 = vld [vmem:[%s11906_s12 + $0x1144] sm:$0xf0]  ;;  %v10232_v62 = vld [vmem:[%s11906_s12 + $0x16f4] sm:$0xf0]  ;;  %v8055_v3 = vor.u32 %v10852_v57, %v8054_v56  ;;  %v10956_v17 = vld [vmem:[%s11906_s12 + $0x928] sm:$0xf0] }
  0xfb   : > { %5852 = vmatpush.bf16.msra.mxu3 %v8623_v14  ;;  %5815 = vmatmul.bf16.vlgmr.msra.gmra.mxu0 %v12070_v0  ;;  %v9972_v14 = vld [vmem:[%s11906_s12 + $0x14ec] sm:$0xf0]  ;;  %v9507_v16 = vor.u32 %v11209_v8, %v9504_v9  ;;  %v8470_v50 = vld [vmem:[%s11906_s12 + $0x8f8] sm:$0xf]  ;;  %v8366_v44 = vld [vmem:[%s11906_s12 + $0x828] sm:$0xf] }
  0xfc   : > { %5859 = vmatpush.bf16.msrb.mxu0 %v9351_v4  ;;  %5872 = vmatpush.bf16.msrb.mxu1 %v9767_v6  ;;  %v11105_v4 = vld [vmem:[%s11906_s12 + $0xdd4] sm:$0xf]  ;;  %v9088_v6 = vld [vmem:[%s11906_s12 + $0xe04] sm:$0xf0]  ;;  %v9975_v22 = vor.u32 %v11326_v12, %v9972_v14  ;;  %v7586_v9 = vld [vmem:[%s11906_s12 + $0x210] sm:$0xf] }
  0xfd   : > { %5828 = vmatmul.bf16.vlgmr.msra.gmra.mxu1 %v12075_v5  ;;  %v9091_v15 = vor.u32 %v11105_v4, %v9088_v6  ;;  %v8938_v4 = vld [vmem:[%s11906_s12 + $0xca0] sm:$0xf]  ;;  %v11073_v6 = vld [vmem:[%s11906_s12 + $0xcd0] sm:$0xf0]  ;;  %v8002_v14 = vld [vmem:[%s11906_s12 + $0x550] sm:$0xf] }
  0xfe   : > { %5840 = vmatpush.bf16.msra.mxu2 %v8155_v26  ;;  %v9920_v26 = vld [vmem:[%s11906_s12 + $0x1484] sm:$0xf0]  ;;  %v8886_v19 = vld [vmem:[%s11906_s12 + $0xc38] sm:$0xf]  ;;  %v10930_v46 = vld [vmem:[%s11906_s12 + $0x858] sm:$0xf0] }
  0xff   : > { %5853 = vmatpush.bf16.msra.mxu3 %v8571_v31  ;;  %v10336_v31 = vld [vmem:[%s11906_s12 + $0x17c4] sm:$0xf0]  ;;  %v11034_v49 = vld [vmem:[%s11906_s12 + $0xb98] sm:$0xf0]  ;;  %v8367_v53 = vor.u32 %v10930_v46, %v8366_v44  ;;  %v10800_v55 = vld [vmem:[%s11906_s12 + $0x448] sm:$0xf0] }
 0x100   : > { %5860 = vmatpush.bf16.msrb.mxu0 %v9299_v20  ;;  %5873 = vmatpush.bf16.msrb.mxu1 %v9715_v21  ;;  %v11196_v20 = vld [vmem:[%s11906_s12 + $0x10ac] sm:$0xf]  ;;  %v9452_v21 = vld [vmem:[%s11906_s12 + $0x10dc] sm:$0xf0]  ;;  %v10339_v43 = vor.u32 %v11417_v27, %v10336_v31  ;;  %v10826_v27 = vld [vmem:[%s11906_s12 + $0x518] sm:$0xf0] }
 0x101   : > { %5841 = vmatmul.bf16.vlgmr.msra.gmra.mxu2 %v12090_v29  ;;  %v9455_v30 = vor.u32 %v11196_v20, %v9452_v21  ;;  %v11060_v20 = vld [vmem:[%s11906_s12 + $0xc68] sm:$0xf0]  ;;  %v10943_v31 = vld [vmem:[%s11906_s12 + $0x8c0] sm:$0xf0]  ;;  %v8314_v57 = vld [vmem:[%s11906_s12 + $0x7c0] sm:$0xf] }
 0x102   : > { %5885 = vmatpush.bf16.msrb.mxu2 %v10183_v32  ;;  %5854 = vmatmul.bf16.vlgmr.msra.gmra.mxu3 %v12095_v35  ;;  %v11079_v32 = vld [vmem:[%s11906_s12 + $0xd04] sm:$0xf]  ;;  %v8574_v44 = vld [vmem:[%s11906_s12 + $0x9c8] sm:$0xf]  ;;  %v10982_v46 = vld [vmem:[%s11906_s12 + $0x9f8] sm:$0xf0] }
 0x103   : > { %5898 = vmatpush.bf16.msrb.mxu3 %v10599_v33  ;;  %v8984_v33 = vld [vmem:[%s11906_s12 + $0xd34] sm:$0xf0] }
 0x104   : > { %5861 = vmatpush.bf16.msrb.mxu0 %v9247_v37  ;;  %5874 = vmatpush.bf16.msrb.mxu1 %v9663_v38  ;;  %v7690_v37 = vld [vmem:[%s11906_s12 + $0x2e0] sm:$0xf]  ;;  %v9923_v38 = vor.u32 %v11313_v25, %v9920_v26  ;;  %v8471_v25 = vor.u32 %v10956_v17, %v8470_v50  ;;  %v7950_v26 = vld [vmem:[%s11906_s12 + $0x4e8] sm:$0xf]  ;;  %v10774_v17 = vld [vmem:[%s11906_s12 + $0x378] sm:$0xf0] }
 0x105   : > { %v7742_v50 = vld [vmem:[%s11906_s12 + $0x348] sm:$0xf] }
 0x106   : > { %5886 = vmatpush.bf16.msrb.mxu2 %v10131_v47  ;;  %v8987_v47 = vor.u32 %v11079_v32, %v8984_v33  ;;  %v8834_v33 = vld [vmem:[%s11906_s12 + $0xbd0] sm:$0xf] }
 0x107   : > { %5899 = vmatpush.bf16.msrb.mxu3 %v10547_v48  ;;  %v9403_v48 = vor.u32 %v11183_v34, %v9400_v36  ;;  %v11047_v34 = vld [vmem:[%s11906_s12 + $0xc00] sm:$0xf0]  ;;  %v7951_v36 = vor.u32 %v10826_v27, %v7950_v26 }
 0x108   : > { %5862 = vmatpush.bf16.msrb.mxu0 %v9195_v51  ;;  %5875 = vmatpush.bf16.msrb.mxu1 %v9611_v52  ;;  %v7691_v51 = vor.u32 %v10761_v39, %v7690_v37  ;;  %v8107_v52 = vor.u32 %v10865_v42, %v8106_v41  ;;  %v7482_v37 = vld [vmem:[%s11906_s12 + $0x140] sm:$0xf]  ;;  %v10813_v42 = vld [vmem:[%s11906_s12 + $0x4b0] sm:$0xf0]  ;;  %v10891_v26 = vld [vmem:[%s11906_s12 + $0x720] sm:$0xf0] }
 0x109   : > { %v7898_v41 = vld [vmem:[%s11906_s12 + $0x480] sm:$0xf] }
 0x10a   : > { %5887 = vmatpush.bf16.msrb.mxu2 %v10079_v59  ;;  %v11287_v59 = vld [vmem:[%s11906_s12 + $0x1384] sm:$0xf]  ;;  %v7899_v23 = vor.u32 %v10813_v42, %v7898_v41  ;;  %v8158_v42 = vld [vmem:[%s11906_s12 + $0x688] sm:$0xf] }
 0x10b   : > { %5900 = vmatpush.bf16.msrb.mxu3 %v10495_v60  ;;  %v9816_v60 = vld [vmem:[%s11906_s12 + $0x13b4] sm:$0xf0] }
 0x10c   : > { %5863 = vmatpush.bf16.msrb.mxu0 %v9143_v63  ;;  %5876 = vmatpush.bf16.msrb.mxu1 %v9559_v1  ;;  %v8522_v63 = vld [vmem:[%s11906_s12 + $0x960] sm:$0xf]  ;;  %v10969_v1 = vld [vmem:[%s11906_s12 + $0x990] sm:$0xf0]  ;;  %v9819_v8 = vor.u32 %v11287_v59, %v9816_v60 }
 0x10d   : > { %v8523_v12 = vor.u32 %v10969_v1, %v8522_v63  ;;  %v8730_v60 = vld [vmem:[%s11906_s12 + $0xb00] sm:$0xf]  ;;  %v7378_v63 = vld [vmem:[%s11906_s12 + $0x70] sm:$0xf]  ;;  %v10683_v1 = vld [vmem:[%s11906_s12 + $0xa0] sm:$0xf0] }
 0x10e   : > { %5888 = vmatpush.bf16.msrb.mxu2 %v10027_v10  ;;  %v10735_v10 = vld [vmem:[%s11906_s12 + $0x240] sm:$0xf0] }
 0x10f   : > { %5901 = vmatpush.bf16.msrb.mxu3 %v10443_v11  ;;  %v10235_v11 = vor.u32 %v11391_v61, %v10232_v62  ;;  %v7587_v18 = vor.u32 %v10735_v10, %v7586_v9  ;;  %v11021_v61 = vld [vmem:[%s11906_s12 + $0xb30] sm:$0xf0]  ;;  %v10904_v9 = vld [vmem:[%s11906_s12 + $0x788] sm:$0xf0]  ;;  %v7379_v10 = vor.u32 %v10683_v1, %v7378_v63  ;;  %v10550_v1 = vld [vmem:[%s11906_s12 + $0x1938] sm:$0xf] }
 0x110   : > { %5864 = vmatpush.bf16.msrb.mxu0 %v9091_v15  ;;  %5877 = vmatpush.bf16.msrb.mxu1 %v9507_v16  ;;  %v10839_v15 = vld [vmem:[%s11906_s12 + $0x580] sm:$0xf0]  ;;  %v8939_v16 = vor.u32 %v11073_v6, %v8938_v4  ;;  %v8731_v6 = vor.u32 %v11021_v61, %v8730_v60  ;;  %v10134_v61 = vld [vmem:[%s11906_s12 + $0x15f8] sm:$0xf] }
 0x111   : > { %v8003_v21 = vor.u32 %v10839_v15, %v8002_v14  ;;  %v10787_v4 = vld [vmem:[%s11906_s12 + $0x3e0] sm:$0xf0]  ;;  %v7326_v14 = vld [vmem:[%s11906_s12 + $0x8] sm:$0xf] }
 0x112   : > { %5889 = vmatpush.bf16.msrb.mxu2 %v9975_v22  ;;  %v7534_v22 = vld [vmem:[%s11906_s12 + $0x1a8] sm:$0xf] }
 0x113   : > { %5902 = vmatpush.bf16.msrb.mxu3 %v10391_v24  ;;  %v10722_v24 = vld [vmem:[%s11906_s12 + $0x1d8] sm:$0xf0] }
 0x114   : > { %5865 = vmatpush.bf16.msrb.mxu0 %v9039_v28  ;;  %5878 = vmatpush.bf16.msrb.mxu1 %v9455_v30  ;;  %v8887_v28 = vor.u32 %v11060_v20, %v8886_v19  ;;  %v8418_v30 = vld [vmem:[%s11906_s12 + $0x890] sm:$0xf]  ;;  %v7535_v32 = vor.u32 %v10722_v24, %v7534_v22  ;;  %v9354_v19 = vld [vmem:[%s11906_s12 + $0xfe0] sm:$0xf]  ;;  %v11177_v20 = vld [vmem:[%s11906_s12 + $0x1010] sm:$0xf0] }
 0x115   : > { %v8419_v39 = vor.u32 %v10943_v31, %v8418_v30  ;;  %v11281_v24 = vld [vmem:[%s11906_s12 + $0x1350] sm:$0xf0]  ;;  %v10995_v30 = vld [vmem:[%s11906_s12 + $0xa60] sm:$0xf0]  ;;  %v7743_v31 = vor.u32 %v10774_v17, %v7742_v50 }
 0x116   : > { %5890 = vmatpush.bf16.msrb.mxu2 %v9923_v38  ;;  %v10709_v38 = vld [vmem:[%s11906_s12 + $0x170] sm:$0xf0]  ;;  %v11463_v50 = vld [vmem:[%s11906_s12 + $0x1900] sm:$0xf0] }
 0x117   : > { %5903 = vmatpush.bf16.msrb.mxu3 %v10339_v43  ;;  %v8835_v43 = vor.u32 %v11047_v34, %v8834_v33  ;;  %v9302_v33 = vld [vmem:[%s11906_s12 + $0xf78] sm:$0xf] }
 0x118   : > { %5866 = vmatpush.bf16.msrb.mxu0 %v8987_v47  ;;  %5879 = vmatpush.bf16.msrb.mxu1 %v9403_v48  ;;  %v7483_v47 = vor.u32 %v10709_v38, %v7482_v37  ;;  %v8782_v48 = vld [vmem:[%s11906_s12 + $0xb68] sm:$0xf]  ;;  %v11164_v37 = vld [vmem:[%s11906_s12 + $0xfa8] sm:$0xf0]  ;;  %v9718_v38 = vld [vmem:[%s11906_s12 + $0x12b8] sm:$0xf] }
 0x119   : > { %v8783_v56 = vor.u32 %v11034_v49, %v8782_v48  ;;  %v11385_v48 = vld [vmem:[%s11906_s12 + $0x1690] sm:$0xf0]  ;;  %v9303_v49 = vor.u32 %v11164_v37, %v9302_v33  ;;  %v11112_v33 = vld [vmem:[%s11906_s12 + $0xe08] sm:$0xf0] }
 0x11a   : > { %5891 = vmatpush.bf16.msrb.mxu2 %v9871_v54  ;;  %v7846_v54 = vld [vmem:[%s11906_s12 + $0x418] sm:$0xf]  ;;  %v11216_v37 = vld [vmem:[%s11906_s12 + $0x1148] sm:$0xf0] }
 0x11b   : > { %5904 = vmatpush.bf16.msrb.mxu3 %v10287_v58  ;;  %5867 = vmatmul.bf16.vlgmr.msrb.gmra.mxu0 %v12117_v7  ;;  %v10917_v58 = vld [vmem:[%s11906_s12 + $0x7f0] sm:$0xf0]  ;;  %v7847_v62 = vor.u32 %v10800_v55, %v7846_v54  ;;  %v9250_v54 = vld [vmem:[%s11906_s12 + $0xf10] sm:$0xf]  ;;  %v11151_v55 = vld [vmem:[%s11906_s12 + $0xf40] sm:$0xf0] }
 0x11c   : > { %5911 = vmatpush.bf16.msra.mxu0 %v7691_v51  ;;  %5924 = vmatpush.bf16.msra.mxu1 %v8107_v52  ;;  %v7430_v51 = vld [vmem:[%s11906_s12 + $0xd8] sm:$0xf]  ;;  %v10696_v52 = vld [vmem:[%s11906_s12 + $0x108] sm:$0xf0]  ;;  %v9251_v63 = vor.u32 %v11151_v55, %v9250_v54 }
 0x11d   : > { %5880 = vmatmul.bf16.vlgmr.msrb.gmra.mxu1 %v12122_v13  ;;  %v7431_v59 = vor.u32 %v10696_v52, %v7430_v51  ;;  %v11489_v51 = vld [vmem:[%s11906_s12 + $0x19d0] sm:$0xf0]  ;;  %v11320_v54 = vld [vmem:[%s11906_s12 + $0x1488] sm:$0xf0] }
 0x11e   : > { %5892 = vmatpush.bf16.msrb.mxu2 %v9819_v8  ;;  %v8262_v8 = vld [vmem:[%s11906_s12 + $0x758] sm:$0xf] }
 0x11f   : > { %5905 = vmatpush.bf16.msrb.mxu3 %v10235_v11  ;;  %v8678_v11 = vld [vmem:[%s11906_s12 + $0xa98] sm:$0xf] }
 0x120   : > { %5912 = vmatpush.bf16.msra.mxu0 %v7639_v2  ;;  %5925 = vmatpush.bf16.msra.mxu1 %v8055_v3  ;;  %v8315_v2 = vor.u32 %v10917_v58, %v8314_v57  ;;  %v7794_v3 = vld [vmem:[%s11906_s12 + $0x3b0] sm:$0xf] }
 0x121   : > { %5893 = vmatmul.bf16.vlgmr.msrb.gmra.mxu2 %v12137_v40  ;;  %v7795_v15 = vor.u32 %v10787_v4, %v7794_v3  ;;  %v9666_v58 = vld [vmem:[%s11906_s12 + $0x1250] sm:$0xf]  ;;  %v9198_v4 = vld [vmem:[%s11906_s12 + $0xea8] sm:$0xf] }
 0x122   : > { %5937 = vmatpush.bf16.msra.mxu2 %v8523_v12  ;;  %5906 = vmatmul.bf16.vlgmr.msrb.gmra.mxu3 %v12142_v45  ;;  %v11008_v12 = vld [vmem:[%s11906_s12 + $0xac8] sm:$0xf0] }
 0x123   : > { %5950 = vmatpush.bf16.msra.mxu3 %v8939_v16  ;;  %v10670_v16 = vld [vmem:[%s11906_s12 + $0x38] sm:$0xf0]  ;;  %v8679_v22 = vor.u32 %v11008_v12, %v8678_v11  ;;  %v10082_v12 = vld [vmem:[%s11906_s12 + $0x1590] sm:$0xf] }
 0x124   : > { %5913 = vmatpush.bf16.msra.mxu0 %v7587_v18  ;;  %5926 = vmatpush.bf16.msra.mxu1 %v8003_v21  ;;  %v8263_v18 = vor.u32 %v10904_v9, %v8262_v8  ;;  %v9770_v21 = vld [vmem:[%s11906_s12 + $0x1320] sm:$0xf]  ;;  %v7327_v27 = vor.u32 %v10670_v16, %v7326_v14  ;;  %v9614_v9 = vld [vmem:[%s11906_s12 + $0x11e8] sm:$0xf]  ;;  %v11359_v14 = vld [vmem:[%s11906_s12 + $0x15c0] sm:$0xf0] }
 0x125   : > { %v9771_v34 = vor.u32 %v11281_v24, %v9770_v21  ;;  %v10498_v16 = vld [vmem:[%s11906_s12 + $0x18d0] sm:$0xf]  ;;  %v9562_v21 = vld [vmem:[%s11906_s12 + $0x1180] sm:$0xf] }
 0x126   : > { %5938 = vmatpush.bf16.msra.mxu2 %v8471_v25  ;;  %v8210_v25 = vld [vmem:[%s11906_s12 + $0x6f0] sm:$0xf]  ;;  %v10499_v24 = vor.u32 %v11463_v50, %v10498_v16  ;;  %v10742_v16 = vld [vmem:[%s11906_s12 + $0x27c] sm:$0xf] }
 0x127   : > { %5951 = vmatpush.bf16.msra.mxu3 %v8887_v28  ;;  %v8626_v28 = vld [vmem:[%s11906_s12 + $0xa30] sm:$0xf] }
 0x128   : > { %5914 = vmatpush.bf16.msra.mxu0 %v7535_v32  ;;  %5927 = vmatpush.bf16.msra.mxu1 %v7951_v36  ;;  %v9355_v32 = vor.u32 %v11177_v20, %v9354_v19  ;;  %v8211_v36 = vor.u32 %v10891_v26, %v8210_v25  ;;  %v8627_v41 = vor.u32 %v10995_v30, %v8626_v28  ;;  %v11125_v19 = vld [vmem:[%s11906_s12 + $0xe70] sm:$0xf0]  ;;  %v10030_v25 = vld [vmem:[%s11906_s12 + $0x1528] sm:$0xf]  ;;  %v11346_v26 = vld [vmem:[%s11906_s12 + $0x1558] sm:$0xf0] }
 0x129   : > { %v10083_v20 = vor.u32 %v11359_v14, %v10082_v12  ;;  %v10446_v28 = vld [vmem:[%s11906_s12 + $0x1868] sm:$0xf]  ;;  %v11450_v30 = vld [vmem:[%s11906_s12 + $0x1898] sm:$0xf0]  ;;  %v11411_v12 = vld [vmem:[%s11906_s12 + $0x1760] sm:$0xf0] }
 0x12a   : > { %5939 = vmatpush.bf16.msra.mxu2 %v8419_v39  ;;  %v11268_v39 = vld [vmem:[%s11906_s12 + $0x12e8] sm:$0xf0] }
 0x12b   : > { %5952 = vmatpush.bf16.msra.mxu3 %v8835_v43  ;;  %v10878_v43 = vld [vmem:[%s11906_s12 + $0x6b8] sm:$0xf0]  ;;  %v9719_v52 = vor.u32 %v11268_v39, %v9718_v38  ;;  %v10447_v38 = vor.u32 %v11450_v30, %v10446_v28  ;;  %v9978_v39 = vld [vmem:[%s11906_s12 + $0x14c0] sm:$0xf]  ;;  %v8524_v28 = vld [vmem:[%s11906_s12 + $0x994] sm:$0xf0] }
 0x12c   : > { %5915 = vmatpush.bf16.msra.mxu0 %v7483_v47  ;;  %5928 = vmatpush.bf16.msra.mxu1 %v7899_v23  ;;  %v10186_v47 = vld [vmem:[%s11906_s12 + $0x1660] sm:$0xf] }
 0x12d   : > { %v10602_v23 = vld [vmem:[%s11906_s12 + $0x19a0] sm:$0xf]  ;;  %v10187_v57 = vor.u32 %v11385_v48, %v10186_v47  ;;  %v9042_v47 = vld [vmem:[%s11906_s12 + $0xd70] sm:$0xf]  ;;  %v11099_v48 = vld [vmem:[%s11906_s12 + $0xda0] sm:$0xf0] }
 0x12e   : > { %5940 = vmatpush.bf16.msra.mxu2 %v8367_v53  ;;  %v8159_v53 = vor.u32 %v10878_v43, %v8158_v42  ;;  %v10603_v60 = vor.u32 %v11489_v51, %v10602_v23  ;;  %v10394_v43 = vld [vmem:[%s11906_s12 + $0x1800] sm:$0xf]  ;;  %v9458_v23 = vld [vmem:[%s11906_s12 + $0x10b0] sm:$0xf]  ;;  %v11203_v51 = vld [vmem:[%s11906_s12 + $0x10e0] sm:$0xf0]  ;;  %v9043_v55 = vor.u32 %v11099_v48, %v9042_v47 }
 0x12f   : > { %5953 = vmatpush.bf16.msra.mxu3 %v8783_v56  ;;  %v8575_v56 = vor.u32 %v10982_v46, %v8574_v44  ;;  %v11437_v44 = vld [vmem:[%s11906_s12 + $0x1830] sm:$0xf0]  ;;  %v8472_v47 = vld [vmem:[%s11906_s12 + $0x92c] sm:$0xf0] }
 0x130   : > { %5916 = vmatpush.bf16.msra.mxu0 %v7431_v59  ;;  %5929 = vmatpush.bf16.msra.mxu1 %v7847_v62  ;;  %v11255_v59 = vld [vmem:[%s11906_s12 + $0x1280] sm:$0xf0]  ;;  %v11372_v62 = vld [vmem:[%s11906_s12 + $0x1628] sm:$0xf0] }
 0x131   : > { %v9667_v3 = vor.u32 %v11255_v59, %v9666_v58  ;;  %v10135_v8 = vor.u32 %v11372_v62, %v10134_v61  ;;  %v8990_v58 = vld [vmem:[%s11906_s12 + $0xd08] sm:$0xf]  ;;  %v9459_v59 = vor.u32 %v11203_v51, %v9458_v23  ;;  %v11190_v62 = vld [vmem:[%s11906_s12 + $0x1078] sm:$0xf0]  ;;  %v8888_v51 = vld [vmem:[%s11906_s12 + $0xc6c] sm:$0xf0] }
 0x132   : > { %5941 = vmatpush.bf16.msra.mxu2 %v8315_v2  ;;  %v11476_v2 = vld [vmem:[%s11906_s12 + $0x1968] sm:$0xf0]  ;;  %v9406_v61 = vld [vmem:[%s11906_s12 + $0x1048] sm:$0xf]  ;;  %v11054_v23 = vld [vmem:[%s11906_s12 + $0xc3c] sm:$0xf] }
 0x133   : > { %5954 = vmatpush.bf16.msra.mxu3 %v8731_v6  ;;  %v11138_v6 = vld [vmem:[%s11906_s12 + $0xed8] sm:$0xf0]  ;;  %v10551_v11 = vor.u32 %v11476_v2, %v10550_v1  ;;  %v10755_v1 = vld [vmem:[%s11906_s12 + $0x2e4] sm:$0xf]  ;;  %v7692_v2 = vld [vmem:[%s11906_s12 + $0x314] sm:$0xf0]  ;;  %v9407_v14 = vor.u32 %v11190_v62, %v9406_v61 }
 0x134   : > { %5917 = vmatpush.bf16.msra.mxu0 %v7379_v10  ;;  %5930 = vmatpush.bf16.msra.mxu1 %v7795_v15  ;;  %v11242_v10 = vld [vmem:[%s11906_s12 + $0x1218] sm:$0xf0]  ;;  %v9199_v15 = vor.u32 %v11138_v6, %v9198_v4  ;;  %v8108_v6 = vld [vmem:[%s11906_s12 + $0x654] sm:$0xf0]  ;;  %v8420_v61 = vld [vmem:[%s11906_s12 + $0x8c4] sm:$0xf0] }
 0x135   : > { %v9615_v17 = vor.u32 %v11242_v10, %v9614_v9  ;;  %v11307_v9 = vld [vmem:[%s11906_s12 + $0x1420] sm:$0xf0] }
 0x136   : > { %5942 = vmatpush.bf16.msra.mxu2 %v8263_v18  ;;  %v9146_v18 = vld [vmem:[%s11906_s12 + $0xe40] sm:$0xf] }
 0x137   : > { %5955 = vmatpush.bf16.msra.mxu3 %v8679_v22  ;;  %v11229_v22 = vld [vmem:[%s11906_s12 + $0x11b0] sm:$0xf0] }
 0x138   : > { %5918 = vmatpush.bf16.msra.mxu0 %v7327_v27  ;;  %5931 = vmatpush.bf16.msra.mxu1 %v7743_v31  ;;  %v9147_v27 = vor.u32 %v11125_v19, %v9146_v18  ;;  %v9563_v31 = vor.u32 %v11229_v22, %v9562_v21  ;;  %v7640_v18 = vld [vmem:[%s11906_s12 + $0x2ac] sm:$0xf0]  ;;  %v10846_v19 = vld [vmem:[%s11906_s12 + $0x5bc] sm:$0xf]  ;;  %v9822_v22 = vld [vmem:[%s11906_s12 + $0x1388] sm:$0xf] }
 0x139   : > { %v7643_v30 = vor.u32 %v10742_v16, %v7640_v18  ;;  %v8368_v16 = vld [vmem:[%s11906_s12 + $0x85c] sm:$0xf0] }
 0x13a   : > { %5943 = vmatpush.bf16.msra.mxu2 %v8211_v36  ;;  %v9510_v36 = vld [vmem:[%s11906_s12 + $0x1118] sm:$0xf]  ;;  %v8784_v18 = vld [vmem:[%s11906_s12 + $0xb9c] sm:$0xf0] }
 0x13b   : > { %5956 = vmatpush.bf16.msra.mxu3 %v8627_v41  ;;  %5919 = vmatmul.bf16.vlgmr.msra.gmra.mxu0 %v12070_v0  ;;  %v11333_v41 = vld [vmem:[%s11906_s12 + $0x14f0] sm:$0xf0]  ;;  %v9511_v46 = vor.u32 %v11216_v37, %v9510_v36  ;;  %v7588_v37 = vld [vmem:[%s11906_s12 + $0x244] sm:$0xf0] }
 0x13c   : > { %5963 = vmatpush.bf16.msrb.mxu0 %v9355_v32  ;;  %5976 = vmatpush.bf16.msrb.mxu1 %v9771_v34  ;;  %v9094_v32 = vld [vmem:[%s11906_s12 + $0xdd8] sm:$0xf]  ;;  %v10031_v34 = vor.u32 %v11346_v26, %v10030_v25  ;;  %v10238_v25 = vld [vmem:[%s11906_s12 + $0x16c8] sm:$0xf]  ;;  %v11398_v26 = vld [vmem:[%s11906_s12 + $0x16f8] sm:$0xf0] }
 0x13d   : > { %5932 = vmatmul.bf16.vlgmr.msra.gmra.mxu1 %v12075_v5  ;;  %v9095_v42 = vor.u32 %v11112_v33, %v9094_v32  ;;  %v8940_v32 = vld [vmem:[%s11906_s12 + $0xcd4] sm:$0xf0]  ;;  %v10729_v36 = vld [vmem:[%s11906_s12 + $0x214] sm:$0xf] }
 0x13e   : > { %5944 = vmatpush.bf16.msra.mxu2 %v8159_v53  ;;  %v9926_v53 = vld [vmem:[%s11906_s12 + $0x1458] sm:$0xf]  ;;  %v7591_v48 = vor.u32 %v10729_v36, %v7588_v37  ;;  %v10677_v37 = vld [vmem:[%s11906_s12 + $0x74] sm:$0xf] }
 0x13f   : > { %5957 = vmatpush.bf16.msra.mxu3 %v8575_v56  ;;  %v10342_v56 = vld [vmem:[%s11906_s12 + $0x1798] sm:$0xf] }
 0x140   : > { %5964 = vmatpush.bf16.msrb.mxu0 %v9303_v49  ;;  %5977 = vmatpush.bf16.msrb.mxu1 %v9719_v52  ;;  %v9979_v49 = vor.u32 %v11333_v41, %v9978_v39  ;;  %v10395_v52 = vor.u32 %v11437_v44, %v10394_v43  ;;  %v10239_v39 = vor.u32 %v11398_v26, %v10238_v25  ;;  %v8004_v43 = vld [vmem:[%s11906_s12 + $0x584] sm:$0xf0]  ;;  %v7848_v25 = vld [vmem:[%s11906_s12 + $0x44c] sm:$0xf0] }
 0x141   : > { %5945 = vmatmul.bf16.vlgmr.msra.gmra.mxu2 %v12090_v29 }
 0x142   : > { %5989 = vmatpush.bf16.msrb.mxu2 %v10187_v57  ;;  %5958 = vmatmul.bf16.vlgmr.msra.gmra.mxu3 %v12095_v35  ;;  %v11424_v57 = vld [vmem:[%s11906_s12 + $0x17c8] sm:$0xf0] }
 0x143   : > { %6002 = vmatpush.bf16.msrb.mxu3 %v10603_v60  ;;  %v11086_v60 = vld [vmem:[%s11906_s12 + $0xd38] sm:$0xf0]  ;;  %v10343_v4 = vor.u32 %v11424_v57, %v10342_v56  ;;  %v10820_v56 = vld [vmem:[%s11906_s12 + $0x4ec] sm:$0xf]  ;;  %v7952_v57 = vld [vmem:[%s11906_s12 + $0x51c] sm:$0xf0] }
 0x144   : > { %5965 = vmatpush.bf16.msrb.mxu0 %v9251_v63  ;;  %5978 = vmatpush.bf16.msrb.mxu1 %v9667_v3  ;;  %v9927_v63 = vor.u32 %v11320_v54, %v9926_v53  ;;  %v10859_v3 = vld [vmem:[%s11906_s12 + $0x624] sm:$0xf]  ;;  %v8991_v10 = vor.u32 %v11086_v60, %v8990_v58  ;;  %v10716_v53 = vld [vmem:[%s11906_s12 + $0x1ac] sm:$0xf]  ;;  %v7536_v54 = vld [vmem:[%s11906_s12 + $0x1dc] sm:$0xf0] }
 0x145   : > { %v8111_v50 = vor.u32 %v10859_v3, %v8108_v6  ;;  %v10937_v60 = vld [vmem:[%s11906_s12 + $0x894] sm:$0xf]  ;;  %v8836_v3 = vld [vmem:[%s11906_s12 + $0xc04] sm:$0xf0]  ;;  %v10703_v6 = vld [vmem:[%s11906_s12 + $0x144] sm:$0xf] }
 0x146   : > { %5990 = vmatpush.bf16.msrb.mxu2 %v10135_v8  ;;  %v9874_v8 = vld [vmem:[%s11906_s12 + $0x13f0] sm:$0xf] }
 0x147   : > { %6003 = vmatpush.bf16.msrb.mxu3 %v10551_v11  ;;  %v10290_v11 = vld [vmem:[%s11906_s12 + $0x1730] sm:$0xf] }
 0x148   : > { %5966 = vmatpush.bf16.msrb.mxu0 %v9199_v15  ;;  %5979 = vmatpush.bf16.msrb.mxu1 %v9615_v17  ;;  %v7695_v15 = vor.u32 %v10755_v1, %v7692_v2  ;;  %v9875_v17 = vor.u32 %v11307_v9, %v9874_v8  ;;  %v10291_v21 = vor.u32 %v11411_v12, %v10290_v11  ;;  %v11041_v2 = vld [vmem:[%s11906_s12 + $0xbd4] sm:$0xf]  ;;  %v7484_v8 = vld [vmem:[%s11906_s12 + $0x174] sm:$0xf0]  ;;  %v10807_v11 = vld [vmem:[%s11906_s12 + $0x484] sm:$0xf] }
 0x149   : > { %v7539_v1 = vor.u32 %v10716_v53, %v7536_v54  ;;  %v7900_v12 = vld [vmem:[%s11906_s12 + $0x4b4] sm:$0xf0] }
 0x14a   : > { %5991 = vmatpush.bf16.msrb.mxu2 %v10083_v20  ;;  %v8056_v20 = vld [vmem:[%s11906_s12 + $0x5ec] sm:$0xf0] }
 0x14b   : > { %6004 = vmatpush.bf16.msrb.mxu3 %v10499_v24  ;;  %v11294_v24 = vld [vmem:[%s11906_s12 + $0x13b8] sm:$0xf0]  ;;  %v8059_v33 = vor.u32 %v10846_v19, %v8056_v20  ;;  %v7903_v19 = vor.u32 %v10807_v11, %v7900_v12  ;;  %v8628_v11 = vld [vmem:[%s11906_s12 + $0xa64] sm:$0xf0] }
 0x14c   : > { %5967 = vmatpush.bf16.msrb.mxu0 %v9147_v27  ;;  %5980 = vmatpush.bf16.msrb.mxu1 %v9563_v31  ;;  %v10963_v27 = vld [vmem:[%s11906_s12 + $0x964] sm:$0xf]  ;;  %v10690_v20 = vld [vmem:[%s11906_s12 + $0xdc] sm:$0xf] }
 0x14d   : > { %v11067_v31 = vld [vmem:[%s11906_s12 + $0xca4] sm:$0xf]  ;;  %v8527_v41 = vor.u32 %v10963_v27, %v8524_v28 }
 0x14e   : > { %5992 = vmatpush.bf16.msrb.mxu2 %v10031_v34  ;;  %v9823_v34 = vor.u32 %v11294_v24, %v9822_v22  ;;  %v8943_v44 = vor.u32 %v11067_v31, %v8940_v32  ;;  %v10794_v24 = vld [vmem:[%s11906_s12 + $0x41c] sm:$0xf]  ;;  %v10911_v28 = vld [vmem:[%s11906_s12 + $0x7c4] sm:$0xf] }
 0x14f   : > { %6005 = vmatpush.bf16.msrb.mxu3 %v10447_v38  ;;  %v12385_v38 = vld [vmem:[%s12382_s7] sm:$0xff]  ;;  %v7851_v36 = vor.u32 %v10794_v24, %v7848_v25 }
 0x150   : > { %5968 = vmatpush.bf16.msrb.mxu0 %v9095_v42  ;;  %5981 = vmatpush.bf16.msrb.mxu1 %v9511_v46  ;;  %v10833_v42 = vld [vmem:[%s11906_s12 + $0x554] sm:$0xf]  ;;  %v10950_v46 = vld [vmem:[%s11906_s12 + $0x8fc] sm:$0xf]  ;;  %v10872_v24 = vld [vmem:[%s11906_s12 + $0x68c] sm:$0xf] }
 0x151   : > { %v8160_v25 = vld [vmem:[%s11906_s12 + $0x6bc] sm:$0xf0] }
 0x152   : > { %5993 = vmatpush.bf16.msrb.mxu2 %v9979_v49  ;;  %v1453_v49 = vperm.slane %v12385_v38, 0 }
 0x153   : > { %6006 = vmatpush.bf16.msrb.mxu3 %v10395_v52  ;;  %v8007_v52 = vor.u32 %v10833_v42, %v8004_v43  ;;  %v10781_v42 = vld [vmem:[%s11906_s12 + $0x3b4] sm:$0xf]  ;;  %v7796_v43 = vld [vmem:[%s11906_s12 + $0x3e4] sm:$0xf0] }
 0x154   : > { %5969 = vmatpush.bf16.msrb.mxu0 %v9043_v55  ;;  %5982 = vmatpush.bf16.msrb.mxu1 %v9459_v59  ;;  %v8475_v55 = vor.u32 %v10950_v46, %v8472_v47  ;;  %v8891_v59 = vor.u32 %v11054_v23, %v8888_v51  ;;  %v10898_v46 = vld [vmem:[%s11906_s12 + $0x75c] sm:$0xf]  ;;  %v8264_v47 = vld [vmem:[%s11906_s12 + $0x78c] sm:$0xf0] }
 0x155   : > { %v11002_v23 = vld [vmem:[%s11906_s12 + $0xa9c] sm:$0xf]  ;;  %v8680_v51 = vld [vmem:[%s11906_s12 + $0xacc] sm:$0xf0] }
 0x156   : > { %5994 = vmatpush.bf16.msrb.mxu2 %v9927_v63  ;;  %v5712_v58 = vpop.f32.mrf.mxu0  ;;  %v5725_v63 = vpop.f32.mrf.mxu1 }
 0x157   : > { %6007 = vmatpush.bf16.msrb.mxu3 %v10343_v4  ;;  %v5713_v62 = vadd.f32 %v5712_v58, %v1453_v49  ;;  %v7955_v4 = vor.u32 %v10820_v56, %v7952_v57  ;;  %v7328_v56 = vld [vmem:[%s11906_s12 + $0x3c] sm:$0xf0]  ;;  %v10768_v57 = vld [vmem:[%s11906_s12 + $0x34c] sm:$0xf] }
 0x158   : > { %5970 = vmatpush.bf16.msrb.mxu0 %v8991_v10  ;;  %5983 = vmatpush.bf16.msrb.mxu1 %v9407_v14  ;;  %v8423_v10 = vor.u32 %v10937_v60, %v8420_v61  ;;  %v8839_v14 = vor.u32 %v11041_v2, %v8836_v3  ;;  %v7744_v58 = vld [vmem:[%s11906_s12 + $0x37c] sm:$0xf0]  ;;  %v11171_v60 = vld [vmem:[%s11906_s12 + $0xfe4] sm:$0xf]  ;;  %v9356_v61 = vld [vmem:[%s11906_s12 + $0x1014] sm:$0xf0]  ;;  %v8683_v2 = vor.u32 %v11002_v23, %v8680_v51 }
 0x159   : > { %v5726_v9 = vadd.f32 %v5725_v63, %v5713_v62  ;;  %v11275_v62 = vld [vmem:[%s11906_s12 + $0x1324] sm:$0xf]  ;;  %v9772_v3 = vld [vmem:[%s11906_s12 + $0x1354] sm:$0xf0]  ;;  %v11366_v51 = vld [vmem:[%s11906_s12 + $0x15fc] sm:$0xf] }
 0x15a   : > { %5995 = vmatpush.bf16.msrb.mxu2 %v9875_v17  ;;  %v11028_v17 = vld [vmem:[%s11906_s12 + $0xb6c] sm:$0xf] }
 0x15b   : > { %6008 = vmatpush.bf16.msrb.mxu3 %v10291_v21  ;;  %5971 = vmatmul.bf16.vlgmr.msrb.gmra.mxu0 %v12117_v7  ;;  %v7432_v21 = vld [vmem:[%s11906_s12 + $0x10c] sm:$0xf0]  ;;  %v8787_v27 = vor.u32 %v11028_v17, %v8784_v18 }
 0x15c   : > { %6015 = vmatpush.bf16.msra.mxu0 %v7695_v15  ;;  %6028 = vmatpush.bf16.msra.mxu1 %v8111_v50  ;;  %v10924_v15 = vld [vmem:[%s11906_s12 + $0x82c] sm:$0xf]  ;;  %v7487_v50 = vor.u32 %v10703_v6, %v7484_v8  ;;  %v7435_v32 = vor.u32 %v10690_v20, %v7432_v21  ;;  %v8212_v6 = vld [vmem:[%s11906_s12 + $0x724] sm:$0xf0]  ;;  %v9304_v18 = vld [vmem:[%s11906_s12 + $0xfac] sm:$0xf0] }
 0x15d   : > { %5984 = vmatmul.bf16.vlgmr.msrb.gmra.mxu1 %v12122_v13  ;;  %v8371_v22 = vor.u32 %v10924_v15, %v8368_v16  ;;  %v9359_v15 = vor.u32 %v11171_v60, %v9356_v61  ;;  %v11158_v16 = vld [vmem:[%s11906_s12 + $0xf7c] sm:$0xf]  ;;  %v9720_v20 = vld [vmem:[%s11906_s12 + $0x12ec] sm:$0xf0]  ;;  %v11236_v60 = vld [vmem:[%s11906_s12 + $0x11ec] sm:$0xf] }
 0x15e   : > { %5996 = vmatpush.bf16.msrb.mxu2 %v9823_v34  ;;  %v5714_v26 = vpop.f32.mrf.mxu0  ;;  %v5727_v31 = vpop.f32.mrf.mxu1  ;;  %v8732_v34 = vld [vmem:[%s11906_s12 + $0xb34] sm:$0xf0]  ;;  %v9616_v61 = vld [vmem:[%s11906_s12 + $0x121c] sm:$0xf0] }
 0x15f   : > { %6009 = vmatpush.bf16.msrb.mxu3 %v10239_v39  ;;  %v7380_v39 = vld [vmem:[%s11906_s12 + $0xa4] sm:$0xf0]  ;;  %v10976_v26 = vld [vmem:[%s11906_s12 + $0x9cc] sm:$0xf]  ;;  %v10188_v31 = vld [vmem:[%s11906_s12 + $0x1694] sm:$0xf0] }
 0x160   : > { %6016 = vmatpush.bf16.msra.mxu0 %v7643_v30  ;;  %6029 = vmatpush.bf16.msra.mxu1 %v8059_v33  ;;  %v8316_v30 = vld [vmem:[%s11906_s12 + $0x7f4] sm:$0xf0]  ;;  %v11015_v33 = vld [vmem:[%s11906_s12 + $0xb04] sm:$0xf]  ;;  %v7383_v49 = vor.u32 %v10677_v37, %v7380_v39  ;;  %v8163_v39 = vor.u32 %v10872_v24, %v8160_v25 }
 0x161   : > { %5997 = vmatmul.bf16.vlgmr.msrb.gmra.mxu2 %v12137_v40 }
 0x162   : > { %6041 = vmatpush.bf16.msra.mxu2 %v8527_v41  ;;  %6010 = vmatmul.bf16.vlgmr.msrb.gmra.mxu3 %v12142_v45  ;;  %v8319_v41 = vor.u32 %v10911_v28, %v8316_v30  ;;  %v8576_v28 = vld [vmem:[%s11906_s12 + $0x9fc] sm:$0xf0]  ;;  %v11379_v30 = vld [vmem:[%s11906_s12 + $0x1664] sm:$0xf] }
 0x163   : > { %6054 = vmatpush.bf16.msra.mxu3 %v8943_v44  ;;  %v8735_v44 = vor.u32 %v11015_v33, %v8732_v34  ;;  %v9307_v33 = vor.u32 %v11158_v16, %v9304_v18  ;;  %v11483_v34 = vld [vmem:[%s11906_s12 + $0x19a4] sm:$0xf] }
 0x164   : > { %6017 = vmatpush.bf16.msra.mxu0 %v7591_v48  ;;  %6030 = vmatpush.bf16.msra.mxu1 %v8007_v52  ;;  %v5738_v48 = vpop.f32.mrf.mxu2  ;;  %v10664_v52 = vld [vmem:[%s11906_s12 + $0xc] sm:$0xf]  ;;  %v5751_v54 = vpop.f32.mrf.mxu3 }
 0x165   : > { %v5739_v53 = vadd.f32 %v5738_v48, %v5726_v9  ;;  %v7331_v9 = vor.u32 %v10664_v52, %v7328_v56  ;;  %v9668_v48 = vld [vmem:[%s11906_s12 + $0x1284] sm:$0xf0]  ;;  %v10136_v52 = vld [vmem:[%s11906_s12 + $0x162c] sm:$0xf0] }
 0x166   : > { %6042 = vmatpush.bf16.msra.mxu2 %v8475_v55  ;;  %v7799_v55 = vor.u32 %v10781_v42, %v7796_v43  ;;  %v9252_v42 = vld [vmem:[%s11906_s12 + $0xf44] sm:$0xf0] }
 0x167   : > { %6055 = vmatpush.bf16.msra.mxu3 %v8891_v59  ;;  %v8267_v59 = vor.u32 %v10898_v46, %v8264_v47  ;;  %v5752_v63 = vadd.f32 %v5751_v54, %v5739_v53  ;;  %v10191_v46 = vor.u32 %v11379_v30, %v10188_v31  ;;  %v11249_v47 = vld [vmem:[%s11906_s12 + $0x1254] sm:$0xf]  ;;  %v11470_v54 = vld [vmem:[%s11906_s12 + $0x193c] sm:$0xf]  ;;  %v9096_v31 = vld [vmem:[%s11906_s12 + $0xe0c] sm:$0xf0] }
 0x168   : > { %6018 = vmatpush.bf16.msra.mxu0 %v7539_v1  ;;  %6031 = vmatpush.bf16.msra.mxu1 %v7955_v4  ;;  %v5764_v1 = vpop.f32.mrf.mxu0  ;;  %v10885_v4 = vld [vmem:[%s11906_s12 + $0x6f4] sm:$0xf]  ;;  %v5777_v8 = vpop.f32.mrf.mxu1  ;;  %v9671_v56 = vor.u32 %v11249_v47, %v9668_v48  ;;  %v11106_v30 = vld [vmem:[%s11906_s12 + $0xddc] sm:$0xf]  ;;  %v10396_v47 = vld [vmem:[%s11906_s12 + $0x1834] sm:$0xf0] }
 0x169   : > { %v5765_v12 = vadd.f32 %v5764_v1, %v5752_v63  ;;  %v8215_v17 = vor.u32 %v10885_v4, %v8212_v6  ;;  %v11353_v1 = vld [vmem:[%s11906_s12 + $0x1594] sm:$0xf]  ;;  %v1454_v6 = vperm.slane %v12385_v38, 1 }
 0x16a   : > { %6043 = vmatpush.bf16.msra.mxu2 %v8423_v10  ;;  %v10989_v10 = vld [vmem:[%s11906_s12 + $0xa34] sm:$0xf] }
 0x16b   : > { %6056 = vmatpush.bf16.msra.mxu3 %v8839_v14  ;;  %v7747_v14 = vor.u32 %v10768_v57, %v7744_v58  ;;  %v5778_v21 = vadd.f32 %v5777_v8, %v5765_v12  ;;  %v11132_v57 = vld [vmem:[%s11906_s12 + $0xeac] sm:$0xf]  ;;  %v9200_v58 = vld [vmem:[%s11906_s12 + $0xedc] sm:$0xf0]  ;;  %v11119_v12 = vld [vmem:[%s11906_s12 + $0xe44] sm:$0xf] }
 0x16c   : > { %6019 = vmatpush.bf16.msra.mxu0 %v7487_v50  ;;  %6032 = vmatpush.bf16.msra.mxu1 %v7903_v19  ;;  %v9775_v50 = vor.u32 %v11275_v62, %v9772_v3  ;;  %v11262_v19 = vld [vmem:[%s11906_s12 + $0x12bc] sm:$0xf]  ;;  %v9203_v8 = vor.u32 %v11132_v57, %v9200_v58  ;;  %v9928_v57 = vld [vmem:[%s11906_s12 + $0x148c] sm:$0xf0] }
 0x16d   : > { %v9723_v37 = vor.u32 %v11262_v19, %v9720_v20  ;;  %v11340_v20 = vld [vmem:[%s11906_s12 + $0x152c] sm:$0xf] }
 0x16e   : > { %6044 = vmatpush.bf16.msra.mxu2 %v8371_v22  ;;  %v8631_v22 = vor.u32 %v10989_v10, %v8628_v11  ;;  %v10500_v10 = vld [vmem:[%s11906_s12 + $0x1904] sm:$0xf0]  ;;  %v9619_v11 = vor.u32 %v11236_v60, %v9616_v61  ;;  %v11418_v60 = vld [vmem:[%s11906_s12 + $0x179c] sm:$0xf]  ;;  %v10344_v61 = vld [vmem:[%s11906_s12 + $0x17cc] sm:$0xf0] }
 0x16f   : > { %6057 = vmatpush.bf16.msra.mxu3 %v8787_v27  ;;  %v5740_v27 = vpop.f32.mrf.mxu2 }
 0x170   : > { %6020 = vmatpush.bf16.msra.mxu0 %v7435_v32  ;;  %6033 = vmatpush.bf16.msra.mxu1 %v7851_v36  ;;  %v5753_v32 = vpop.f32.mrf.mxu3  ;;  %v10604_v36 = vld [vmem:[%s11906_s12 + $0x19d4] sm:$0xf0]  ;;  %v5766_v43 = vpop.f32.mrf.mxu0  ;;  %v10448_v27 = vld [vmem:[%s11906_s12 + $0x189c] sm:$0xf0] }
 0x171   : > { %v10607_v23 = vor.u32 %v11483_v34, %v10604_v36  ;;  %v11210_v34 = vld [vmem:[%s11906_s12 + $0x111c] sm:$0xf]  ;;  %v9512_v36 = vld [vmem:[%s11906_s12 + $0x114c] sm:$0xf0] }
 0x172   : > { %6045 = vmatpush.bf16.msra.mxu2 %v8319_v41  ;;  %v11145_v41 = vld [vmem:[%s11906_s12 + $0xf14] sm:$0xf]  ;;  %v9515_v48 = vor.u32 %v11210_v34, %v9512_v36  ;;  %v9824_v34 = vld [vmem:[%s11906_s12 + $0x13bc] sm:$0xf0]  ;;  %v11392_v36 = vld [vmem:[%s11906_s12 + $0x16cc] sm:$0xf] }
 0x173   : > { %6058 = vmatpush.bf16.msra.mxu3 %v8735_v44  ;;  %v8579_v44 = vor.u32 %v10976_v26, %v8576_v28  ;;  %v9255_v53 = vor.u32 %v11145_v41, %v9252_v42  ;;  %v11444_v26 = vld [vmem:[%s11906_s12 + $0x186c] sm:$0xf]  ;;  %v11327_v41 = vld [vmem:[%s11906_s12 + $0x14c4] sm:$0xf]  ;;  %v9980_v42 = vld [vmem:[%s11906_s12 + $0x14f4] sm:$0xf0] }
 0x174   : > { %6021 = vmatpush.bf16.msra.mxu0 %v7383_v49  ;;  %6034 = vmatpush.bf16.msra.mxu1 %v7799_v55  ;;  %v5779_v49 = vpop.f32.mrf.mxu1  ;;  %v10552_v55 = vld [vmem:[%s11906_s12 + $0x196c] sm:$0xf0] }
 0x175   : > { %v10555_v63 = vor.u32 %v11470_v54, %v10552_v55  ;;  %v11093_v49 = vld [vmem:[%s11906_s12 + $0xd74] sm:$0xf] }
 0x176   : > { %6046 = vmatpush.bf16.msra.mxu2 %v8267_v59  ;;  %v10139_v59 = vor.u32 %v11366_v51, %v10136_v52  ;;  %v9983_v51 = vor.u32 %v11327_v41, %v9980_v42  ;;  %v11197_v52 = vld [vmem:[%s11906_s12 + $0x10b4] sm:$0xf]  ;;  %v10970_v41 = vld [vmem:[%s11906_s12 + $0x998] sm:$0xf0] }
 0x177   : > { %6059 = vmatpush.bf16.msra.mxu3 %v8683_v2  ;;  %v5790_v62 = vpop.f32.mrf.mxu2  ;;  %v10084_v2 = vld [vmem:[%s11906_s12 + $0x15c4] sm:$0xf0] }
 0x178   : > { %6022 = vmatpush.bf16.msra.mxu0 %v7331_v9  ;;  %6035 = vmatpush.bf16.msra.mxu1 %v7747_v14  ;;  %v5791_v3 = vadd.f32 %v5790_v62, %v5778_v21  ;;  %v5803_v4 = vpop.f32.mrf.mxu3  ;;  %v11457_v9 = vld [vmem:[%s11906_s12 + $0x18d4] sm:$0xf]  ;;  %v9148_v14 = vld [vmem:[%s11906_s12 + $0xe74] sm:$0xf0]  ;;  %v10087_v16 = vor.u32 %v11353_v1, %v10084_v2  ;;  %v5816_v18 = vpop.f32.mrf.mxu0  ;;  %v10032_v21 = vld [vmem:[%s11906_s12 + $0x155c] sm:$0xf0] }
 0x179   : > { %v10503_v19 = vor.u32 %v11457_v9, %v10500_v10  ;;  %v9151_v25 = vor.u32 %v11119_v12, %v9148_v14  ;;  %v11080_v62 = vld [vmem:[%s11906_s12 + $0xd0c] sm:$0xf]  ;;  %v8992_v1 = vld [vmem:[%s11906_s12 + $0xd3c] sm:$0xf0]  ;;  %v8114_v9 = vld [vmem:[%s11906_s12 + $0x628] sm:$0xf]  ;;  %v10347_v10 = vor.u32 %v11418_v60, %v10344_v61 }
 0x17a   : > { %6047 = vmatpush.bf16.msra.mxu2 %v8215_v17  ;;  %v9564_v17 = vld [vmem:[%s11906_s12 + $0x11b4] sm:$0xf0]  ;;  %v11184_v2 = vld [vmem:[%s11906_s12 + $0x104c] sm:$0xf]  ;;  %v11301_v12 = vld [vmem:[%s11906_s12 + $0x13f4] sm:$0xf] }
 0x17b   : > { %6060 = vmatpush.bf16.msra.mxu3 %v8631_v22  ;;  %6023 = vmatmul.bf16.vlgmr.msra.gmra.mxu0 %v12070_v0  ;;  %v5817_v22 = vadd.f32 %v5816_v18, %v1454_v6  ;;  %v7698_v6 = vld [vmem:[%s11906_s12 + $0x2e8] sm:$0xf]  ;;  %v11405_v18 = vld [vmem:[%s11906_s12 + $0x1734] sm:$0xf]  ;;  %v8894_v60 = vld [vmem:[%s11906_s12 + $0xc40] sm:$0xf] }
 0x17c   : > { %6067 = vmatpush.bf16.msrb.mxu0 %v9359_v15  ;;  %6080 = vmatpush.bf16.msrb.mxu1 %v9775_v50  ;;  %v12477_v15 = vadd.f32 %v5803_v4, %v5791_v3  ;;  %v11223_v50 = vld [vmem:[%s11906_s12 + $0x1184] sm:$0xf]  ;;  %v5829_v24 = vpop.f32.mrf.mxu1  ;;  %v9408_v3 = vld [vmem:[%s11906_s12 + $0x107c] sm:$0xf0]  ;;  %v9876_v14 = vld [vmem:[%s11906_s12 + $0x1424] sm:$0xf0] }
 0x17d   : > { %6036 = vmatmul.bf16.vlgmr.msra.gmra.mxu1 %v12075_v5  ;;  %v9567_v28 = vor.u32 %v11223_v50, %v9564_v17  ;;  %v5830_v32 = vadd.f32 %v5829_v24, %v5817_v22  ;;  %v8995_v17 = vor.u32 %v11080_v62, %v8992_v1  ;;  %v7646_v24 = vld [vmem:[%s11906_s12 + $0x280] sm:$0xf]  ;;  %v11061_v61 = vld [vmem:[%s11906_s12 + $0xc70] sm:$0xf0]  ;;  %v10723_v1 = vld [vmem:[%s11906_s12 + $0x1e0] sm:$0xf0] }
 0x17e   : > { %6048 = vmatpush.bf16.msra.mxu2 %v8163_v39  ;;  %v10451_v39 = vor.u32 %v11444_v26, %v10448_v27  ;;  %v9879_v26 = vor.u32 %v11301_v12, %v9876_v14  ;;  %v10749_v27 = vld [vmem:[%s11906_s12 + $0x2b0] sm:$0xf0]  ;;  %v11048_v12 = vld [vmem:[%s11906_s12 + $0xc08] sm:$0xf0] }
 0x17f   : > { %6061 = vmatpush.bf16.msra.mxu3 %v8579_v44  ;;  %v9099_v44 = vor.u32 %v11106_v30, %v9096_v31  ;;  %v10853_v30 = vld [vmem:[%s11906_s12 + $0x5f0] sm:$0xf0]  ;;  %v7647_v42 = vor.u32 %v10749_v27, %v7646_v24  ;;  %v10931_v24 = vld [vmem:[%s11906_s12 + $0x860] sm:$0xf0] }
 0x180   : > { %6068 = vmatpush.bf16.msrb.mxu0 %v9307_v33  ;;  %6081 = vmatpush.bf16.msrb.mxu1 %v9723_v37  ;;  %v10035_v33 = vor.u32 %v11340_v20, %v10032_v21  ;;  %v5792_v37 = vpop.f32.mrf.mxu2  ;;  %v5805_v43 = vpop.f32.mrf.mxu3  ;;  %v9411_v21 = vor.u32 %v11184_v2, %v9408_v3  ;;  %v7958_v3 = vld [vmem:[%s11906_s12 + $0x4f0] sm:$0xf] }
 0x181   : > { %6049 = vmatmul.bf16.vlgmr.msra.gmra.mxu2 %v12090_v29  ;;  %v5818_v54 = vpop.f32.mrf.mxu0  ;;  %v10240_v37 = vld [vmem:[%s11906_s12 + $0x16fc] sm:$0xf0]  ;;  %v8946_v43 = vld [vmem:[%s11906_s12 + $0xca8] sm:$0xf] }
 0x182   : > { %6093 = vmatpush.bf16.msrb.mxu2 %v10191_v46  ;;  %6062 = vmatmul.bf16.vlgmr.msra.gmra.mxu3 %v12095_v35  ;;  %v11431_v46 = vld [vmem:[%s11906_s12 + $0x1804] sm:$0xf] }
 0x183   : > { %6106 = vmatpush.bf16.msrb.mxu3 %v10607_v23  ;;  %v9044_v23 = vld [vmem:[%s11906_s12 + $0xda4] sm:$0xf0]  ;;  %v10399_v55 = vor.u32 %v11431_v46, %v10396_v47 }
 0x184   : > { %6069 = vmatpush.bf16.msrb.mxu0 %v9255_v53  ;;  %6082 = vmatpush.bf16.msrb.mxu1 %v9671_v56  ;;  %v9460_v53 = vld [vmem:[%s11906_s12 + $0x10e4] sm:$0xf0]  ;;  %v11314_v56 = vld [vmem:[%s11906_s12 + $0x145c] sm:$0xf]  ;;  %v5831_v58 = vpop.f32.mrf.mxu1 }
 0x185   : > { %v9931_v4 = vor.u32 %v11314_v56, %v9928_v57  ;;  %v8478_v57 = vld [vmem:[%s11906_s12 + $0x900] sm:$0xf]  ;;  %v10957_v58 = vld [vmem:[%s11906_s12 + $0x930] sm:$0xf0] }
 0x186   : > { %6094 = vmatpush.bf16.msrb.mxu2 %v10139_v59  ;;  %v9047_v59 = vor.u32 %v11093_v49, %v9044_v23  ;;  %v10736_v49 = vld [vmem:[%s11906_s12 + $0x248] sm:$0xf0]  ;;  %v10243_v23 = vor.u32 %v11392_v36, %v10240_v37  ;;  %v8479_v2 = vor.u32 %v10957_v58, %v8478_v57  ;;  %v10905_v57 = vld [vmem:[%s11906_s12 + $0x790] sm:$0xf0] }
 0x187   : > { %6107 = vmatpush.bf16.msrb.mxu3 %v10555_v63  ;;  %v9463_v63 = vor.u32 %v11197_v52, %v9460_v53  ;;  %v8010_v52 = vld [vmem:[%s11906_s12 + $0x558] sm:$0xf]  ;;  %v10840_v53 = vld [vmem:[%s11906_s12 + $0x588] sm:$0xf0] }
 0x188   : > { %6070 = vmatpush.bf16.msrb.mxu0 %v9203_v8  ;;  %6083 = vmatpush.bf16.msrb.mxu1 %v9619_v11  ;;  %v10762_v8 = vld [vmem:[%s11906_s12 + $0x318] sm:$0xf0]  ;;  %v5855_v50 = vpop.f32.mrf.mxu3  ;;  %v8011_v62 = vor.u32 %v10840_v53, %v8010_v52  ;;  %v7802_v52 = vld [vmem:[%s11906_s12 + $0x3b8] sm:$0xf]  ;;  %v10788_v53 = vld [vmem:[%s11906_s12 + $0x3e8] sm:$0xf0] }
 0x189   : > { %v10866_v11 = vld [vmem:[%s11906_s12 + $0x658] sm:$0xf0]  ;;  %v7699_v22 = vor.u32 %v10762_v8, %v7698_v6  ;;  %v8895_v6 = vor.u32 %v11061_v61, %v8894_v60  ;;  %v8426_v8 = vld [vmem:[%s11906_s12 + $0x898] sm:$0xf]  ;;  %v8686_v60 = vld [vmem:[%s11906_s12 + $0xaa0] sm:$0xf] }
 0x18a   : > { %6095 = vmatpush.bf16.msrb.mxu2 %v10087_v16  ;;  %v5842_v16 = vpop.f32.mrf.mxu2  ;;  %v11009_v61 = vld [vmem:[%s11906_s12 + $0xad0] sm:$0xf0] }
 0x18b   : > { %6108 = vmatpush.bf16.msrb.mxu3 %v10503_v19  ;;  %v10292_v19 = vld [vmem:[%s11906_s12 + $0x1764] sm:$0xf0]  ;;  %v5843_v20 = vadd.f32 %v5842_v16, %v5830_v32 }
 0x18c   : > { %6071 = vmatpush.bf16.msrb.mxu0 %v9151_v25  ;;  %6084 = vmatpush.bf16.msrb.mxu1 %v9567_v28  ;;  %v8115_v25 = vor.u32 %v10866_v11, %v8114_v9  ;;  %v8062_v28 = vld [vmem:[%s11906_s12 + $0x5c0] sm:$0xf]  ;;  %v10295_v32 = vor.u32 %v11405_v18, %v10292_v19  ;;  %v10944_v9 = vld [vmem:[%s11906_s12 + $0x8c8] sm:$0xf0]  ;;  %v8842_v11 = vld [vmem:[%s11906_s12 + $0xbd8] sm:$0xf] }
 0x18d   : > { %v12517_v31 = vadd.f32 %v5855_v50, %v5843_v20  ;;  %v8063_v46 = vor.u32 %v10853_v30, %v8062_v28  ;;  %v7490_v16 = vld [vmem:[%s11906_s12 + $0x148] sm:$0xf]  ;;  %v10710_v50 = vld [vmem:[%s11906_s12 + $0x178] sm:$0xf0]  ;;  %v8790_v28 = vld [vmem:[%s11906_s12 + $0xb70] sm:$0xf] }
 0x18e   : > { %6096 = vmatpush.bf16.msrb.mxu2 %v10035_v33  ;;  %v11288_v33 = vld [vmem:[%s11906_s12 + $0x138c] sm:$0xf]  ;;  %v7906_v18 = vld [vmem:[%s11906_s12 + $0x488] sm:$0xf]  ;;  %v10814_v19 = vld [vmem:[%s11906_s12 + $0x4b8] sm:$0xf0]  ;;  %v7491_v27 = vor.u32 %v10710_v50, %v7490_v16 }
 0x18f   : > { %6109 = vmatpush.bf16.msrb.mxu3 %v10451_v39  ;;  %v8530_v39 = vld [vmem:[%s11906_s12 + $0x968] sm:$0xf]  ;;  %v9827_v47 = vor.u32 %v11288_v33, %v9824_v34  ;;  %v11035_v30 = vld [vmem:[%s11906_s12 + $0xba0] sm:$0xf0]  ;;  %v7438_v33 = vld [vmem:[%s11906_s12 + $0xe0] sm:$0xf] }
 0x190   : > { %6072 = vmatpush.bf16.msrb.mxu0 %v9099_v44  ;;  %6085 = vmatpush.bf16.msrb.mxu1 %v9515_v48  ;;  %v11074_v44 = vld [vmem:[%s11906_s12 + $0xcd8] sm:$0xf0]  ;;  %v7594_v48 = vld [vmem:[%s11906_s12 + $0x218] sm:$0xf]  ;;  %v10697_v34 = vld [vmem:[%s11906_s12 + $0x110] sm:$0xf0] }
 0x191   : > { %v8947_v56 = vor.u32 %v11074_v44, %v8946_v43  ;;  %v10918_v43 = vld [vmem:[%s11906_s12 + $0x7f8] sm:$0xf0]  ;;  %v7439_v44 = vor.u32 %v10697_v34, %v7438_v33  ;;  %v10892_v16 = vld [vmem:[%s11906_s12 + $0x728] sm:$0xf0]  ;;  %v8166_v33 = vld [vmem:[%s11906_s12 + $0x690] sm:$0xf] }
 0x192   : > { %6097 = vmatpush.bf16.msrb.mxu2 %v9983_v51  ;;  %v8531_v51 = vor.u32 %v10970_v41, %v8530_v39  ;;  %v5844_v54 = vpop.f32.mrf.mxu2  ;;  %v7854_v39 = vld [vmem:[%s11906_s12 + $0x420] sm:$0xf]  ;;  %v8791_v41 = vor.u32 %v11035_v30, %v8790_v28 }
 0x193   : > { %6110 = vmatpush.bf16.msrb.mxu3 %v10399_v55  ;;  %v5857_v55 = vpop.f32.mrf.mxu3  ;;  %v9726_v30 = vld [vmem:[%s11906_s12 + $0x12c0] sm:$0xf] }
 0x194   : > { %6073 = vmatpush.bf16.msrb.mxu0 %v9047_v59  ;;  %6086 = vmatpush.bf16.msrb.mxu1 %v9463_v63  ;;  %v7595_v59 = vor.u32 %v10736_v49, %v7594_v48  ;;  %v7542_v63 = vld [vmem:[%s11906_s12 + $0x1b0] sm:$0xf]  ;;  %v7386_v49 = vld [vmem:[%s11906_s12 + $0x78] sm:$0xf] }
 0x196   : > { %6098 = vmatpush.bf16.msrb.mxu2 %v9931_v4  ;;  %v10827_v4 = vld [vmem:[%s11906_s12 + $0x520] sm:$0xf0] }
 0x197   : > { %6111 = vmatpush.bf16.msrb.mxu3 %v10347_v10  ;;  %v7543_v10 = vor.u32 %v10723_v1, %v7542_v63  ;;  %v7959_v14 = vor.u32 %v10827_v4, %v7958_v3  ;;  %v7803_v63 = vor.u32 %v10788_v53, %v7802_v52  ;;  %v10671_v1 = vld [vmem:[%s11906_s12 + $0x40] sm:$0xf0] }
 0x198   : > { %6074 = vmatpush.bf16.msrb.mxu0 %v8995_v17  ;;  %6087 = vmatpush.bf16.msrb.mxu1 %v9411_v21  ;;  %v8427_v17 = vor.u32 %v10944_v9, %v8426_v8  ;;  %v5868_v20 = vpop.f32.mrf.mxu0  ;;  %v8843_v21 = vor.u32 %v11048_v12, %v8842_v11  ;;  %v10775_v3 = vld [vmem:[%s11906_s12 + $0x380] sm:$0xf0]  ;;  %v11178_v8 = vld [vmem:[%s11906_s12 + $0x1018] sm:$0xf0]  ;;  %v9778_v9 = vld [vmem:[%s11906_s12 + $0x1328] sm:$0xf]  ;;  %v8687_v11 = vor.u32 %v11009_v61, %v8686_v60 }
 0x199   : > { %v11282_v12 = vld [vmem:[%s11906_s12 + $0x1358] sm:$0xf0]  ;;  %v11373_v60 = vld [vmem:[%s11906_s12 + $0x1630] sm:$0xf0] }
 0x19a   : > { %6099 = vmatpush.bf16.msrb.mxu2 %v9879_v26  ;;  %v5881_v26 = vpop.f32.mrf.mxu1 }
 0x19b   : > { %6112 = vmatpush.bf16.msrb.mxu3 %v10295_v32  ;;  %6075 = vmatmul.bf16.vlgmr.msrb.gmra.mxu0 %v12117_v7  ;;  %v7907_v32 = vor.u32 %v10814_v19, %v7906_v18  ;;  %v8634_v19 = vld [vmem:[%s11906_s12 + $0xa38] sm:$0xf] }
 0x19c   : > { %6119 = vmatpush.bf16.msra.mxu0 %v7699_v22  ;;  %6132 = vmatpush.bf16.msra.mxu1 %v8115_v25  ;;  %v8374_v22 = vld [vmem:[%s11906_s12 + $0x830] sm:$0xf]  ;;  %v5869_v25 = vadd.f32 %v5868_v20, %v12517_v31  ;;  %v10801_v31 = vld [vmem:[%s11906_s12 + $0x450] sm:$0xf0]  ;;  %v10996_v20 = vld [vmem:[%s11906_s12 + $0xa68] sm:$0xf0] }
 0x19d   : > { %6088 = vmatmul.bf16.vlgmr.msrb.gmra.mxu1 %v12122_v13  ;;  %v8375_v37 = vor.u32 %v10931_v24, %v8374_v22  ;;  %v7855_v48 = vor.u32 %v10801_v31, %v7854_v39  ;;  %v9310_v24 = vld [vmem:[%s11906_s12 + $0xf80] sm:$0xf]  ;;  %v8635_v34 = vor.u32 %v10996_v20, %v8634_v19  ;;  %v10983_v39 = vld [vmem:[%s11906_s12 + $0xa00] sm:$0xf0]  ;;  %v7055_v31 = vmax.f32 %v12477_v15, 0.0 }
 0x19e   : > { %6100 = vmatpush.bf16.msrb.mxu2 %v9827_v47  ;;  %v5882_v36 = vadd.f32 %v5881_v26, %v5869_v25  ;;  %v11022_v47 = vld [vmem:[%s11906_s12 + $0xb38] sm:$0xf0]  ;;  %v11165_v25 = vld [vmem:[%s11906_s12 + $0xfb0] sm:$0xf0] }
 0x19f   : > { %6113 = vmatpush.bf16.msrb.mxu3 %v10243_v23  ;;  %v10684_v23 = vld [vmem:[%s11906_s12 + $0xa8] sm:$0xf0]  ;;  %v11126_v19 = vld [vmem:[%s11906_s12 + $0xe78] sm:$0xf0] }
 0x1a0   : > { %6120 = vmatpush.bf16.msra.mxu0 %v7647_v42  ;;  %6133 = vmatpush.bf16.msra.mxu1 %v8063_v46  ;;  %v8322_v42 = vld [vmem:[%s11906_s12 + $0x7c8] sm:$0xf]  ;;  %v5870_v54 = vpop.f32.mrf.mxu0 }
 0x1a1   : > { %6101 = vmatmul.bf16.vlgmr.msrb.gmra.mxu2 %v12137_v40  ;;  %v8738_v46 = vld [vmem:[%s11906_s12 + $0xb08] sm:$0xf] }
 0x1a2   : > { %6145 = vmatpush.bf16.msra.mxu2 %v8531_v51  ;;  %6114 = vmatmul.bf16.vlgmr.msrb.gmra.mxu3 %v12142_v45  ;;  %v8323_v51 = vor.u32 %v10918_v43, %v8322_v42  ;;  %v8739_v55 = vor.u32 %v11022_v47, %v8738_v46  ;;  %v5883_v58 = vpop.f32.mrf.mxu1  ;;  %v10194_v42 = vld [vmem:[%s11906_s12 + $0x1668] sm:$0xf]  ;;  %v11386_v43 = vld [vmem:[%s11906_s12 + $0x1698] sm:$0xf0] }
 0x1a3   : > { %6158 = vmatpush.bf16.msra.mxu3 %v8947_v56  ;;  %v8270_v56 = vld [vmem:[%s11906_s12 + $0x760] sm:$0xf]  ;;  %v10610_v46 = vld [vmem:[%s11906_s12 + $0x19a8] sm:$0xf]  ;;  %v11490_v47 = vld [vmem:[%s11906_s12 + $0x19d8] sm:$0xf0]  ;;  %v10195_v54 = vor.u32 %v11386_v43, %v10194_v42 }
 0x1a4   : > { %6121 = vmatpush.bf16.msra.mxu0 %v7595_v59  ;;  %6134 = vmatpush.bf16.msra.mxu1 %v8011_v62  ;;  %v7387_v59 = vor.u32 %v10684_v23, %v7386_v49  ;;  %v7334_v62 = vld [vmem:[%s11906_s12 + $0x10] sm:$0xf]  ;;  %v8271_v4 = vor.u32 %v10905_v57, %v8270_v56  ;;  %v9258_v23 = vld [vmem:[%s11906_s12 + $0xf18] sm:$0xf]  ;;  %v11256_v56 = vld [vmem:[%s11906_s12 + $0x1288] sm:$0xf0]  ;;  %v10611_v58 = vor.u32 %v11490_v47, %v10610_v46 }
 0x1a5   : > { %v7335_v18 = vor.u32 %v10671_v1, %v7334_v62  ;;  %v10558_v62 = vld [vmem:[%s11906_s12 + $0x1940] sm:$0xf]  ;;  %v11217_v42 = vld [vmem:[%s11906_s12 + $0x1150] sm:$0xf0]  ;;  %v11334_v46 = vld [vmem:[%s11906_s12 + $0x14f8] sm:$0xf0] }
 0x1a6   : > { %6146 = vmatpush.bf16.msra.mxu2 %v8479_v2  ;;  %v7750_v2 = vld [vmem:[%s11906_s12 + $0x350] sm:$0xf] }
 0x1a7   : > { %6159 = vmatpush.bf16.msra.mxu3 %v8895_v6  ;;  %v9362_v6 = vld [vmem:[%s11906_s12 + $0xfe8] sm:$0xf] }
 0x1a8   : > { %6122 = vmatpush.bf16.msra.mxu0 %v7543_v10  ;;  %6135 = vmatpush.bf16.msra.mxu1 %v7959_v14  ;;  %v5894_v10 = vpop.f32.mrf.mxu2  ;;  %v8218_v14 = vld [vmem:[%s11906_s12 + $0x6f8] sm:$0xf]  ;;  %v9363_v22 = vor.u32 %v11178_v8, %v9362_v6  ;;  %v9622_v6 = vld [vmem:[%s11906_s12 + $0x11f0] sm:$0xf]  ;;  %v11243_v8 = vld [vmem:[%s11906_s12 + $0x1220] sm:$0xf0] }
 0x1a9   : > { %v5895_v50 = vadd.f32 %v5894_v10, %v5882_v36  ;;  %v8219_v28 = vor.u32 %v10892_v16, %v8218_v14  ;;  %v10879_v36 = vld [vmem:[%s11906_s12 + $0x6c0] sm:$0xf0]  ;;  %v10090_v10 = vld [vmem:[%s11906_s12 + $0x1598] sm:$0xf] }
 0x1aa   : > { %6147 = vmatpush.bf16.msra.mxu2 %v8427_v17  ;;  %v5907_v17 = vpop.f32.mrf.mxu3  ;;  %v8167_v15 = vor.u32 %v10879_v36, %v8166_v33  ;;  %v10506_v16 = vld [vmem:[%s11906_s12 + $0x18d8] sm:$0xf]  ;;  %v11451_v33 = vld [vmem:[%s11906_s12 + $0x18a0] sm:$0xf0]  ;;  %v9102_v36 = vld [vmem:[%s11906_s12 + $0xde0] sm:$0xf] }
 0x1ab   : > { %6160 = vmatpush.bf16.msra.mxu3 %v8843_v21  ;;  %v7751_v21 = vor.u32 %v10775_v3, %v7750_v2  ;;  %v5908_v26 = vadd.f32 %v5907_v17, %v5895_v50  ;;  %v9206_v2 = vld [vmem:[%s11906_s12 + $0xeb0] sm:$0xf]  ;;  %v11139_v3 = vld [vmem:[%s11906_s12 + $0xee0] sm:$0xf0]  ;;  %v11464_v50 = vld [vmem:[%s11906_s12 + $0x1908] sm:$0xf0]  ;;  %v9623_v17 = vor.u32 %v11243_v8, %v9622_v6 }
 0x1ac   : > { %6123 = vmatpush.bf16.msra.mxu0 %v7491_v27  ;;  %6136 = vmatpush.bf16.msra.mxu1 %v7907_v32  ;;  %v9779_v27 = vor.u32 %v11282_v12, %v9778_v9  ;;  %v11269_v32 = vld [vmem:[%s11906_s12 + $0x12f0] sm:$0xf0]  ;;  %v1455_v12 = vperm.slane %v12385_v38, 2  ;;  %v9207_v14 = vor.u32 %v11139_v3, %v9206_v2  ;;  %v11087_v3 = vld [vmem:[%s11906_s12 + $0xd40] sm:$0xf0] }
 0x1ad   : > { %v9727_v49 = vor.u32 %v11269_v32, %v9726_v30  ;;  %v10454_v32 = vld [vmem:[%s11906_s12 + $0x1870] sm:$0xf]  ;;  %v11191_v6 = vld [vmem:[%s11906_s12 + $0x1080] sm:$0xf0] }
 0x1ae   : > { %6148 = vmatpush.bf16.msra.mxu2 %v8375_v37  ;;  %v8582_v37 = vld [vmem:[%s11906_s12 + $0x9d0] sm:$0xf]  ;;  %v10455_v43 = vor.u32 %v11451_v33, %v10454_v32  ;;  %v10847_v32 = vld [vmem:[%s11906_s12 + $0x5c4] sm:$0xf]  ;;  %v8064_v33 = vld [vmem:[%s11906_s12 + $0x5f4] sm:$0xf0] }
 0x1af   : > { %6161 = vmatpush.bf16.msra.mxu3 %v8791_v41  ;;  %v7056_v41 = vmax.f32 %v5908_v26, 0.0  ;;  %v8583_v53 = vor.u32 %v10983_v39, %v8582_v37  ;;  %v11347_v26 = vld [vmem:[%s11906_s12 + $0x1560] sm:$0xf0]  ;;  %v11113_v37 = vld [vmem:[%s11906_s12 + $0xe10] sm:$0xf0] }
 0x1b0   : > { %6124 = vmatpush.bf16.msra.mxu0 %v7439_v44  ;;  %6137 = vmatpush.bf16.msra.mxu1 %v7855_v48  ;;  %v9311_v44 = vor.u32 %v11165_v25, %v9310_v24  ;;  %v5896_v52 = vpop.f32.mrf.mxu2  ;;  %v10507_v24 = vor.u32 %v11464_v50, %v10506_v16  ;;  %v10038_v25 = vld [vmem:[%s11906_s12 + $0x1530] sm:$0xf]  ;;  %v9103_v47 = vor.u32 %v11113_v37, %v9102_v36  ;;  %v8116_v16 = vld [vmem:[%s11906_s12 + $0x65c] sm:$0xf0]  ;;  %v9882_v50 = vld [vmem:[%s11906_s12 + $0x13f8] sm:$0xf] }
 0x1b1   : > { %v12597_v48 = vpack.c.bf16 %v7056_v41, %v7055_v31  ;;  %v10039_v31 = vor.u32 %v11347_v26, %v10038_v25  ;;  %v9518_v41 = vld [vmem:[%s11906_s12 + $0x1120] sm:$0xf]  ;;  %v11100_v52 = vld [vmem:[%s11906_s12 + $0xda8] sm:$0xf0]  ;;  %v10743_v25 = vld [vmem:[%s11906_s12 + $0x284] sm:$0xf] }
 0x1b2   : > { %6149 = vmatpush.bf16.msra.mxu2 %v8323_v51  ;;  %v11152_v51 = vld [vmem:[%s11906_s12 + $0xf48] sm:$0xf0]  ;;  %v5909_v57 = vpop.f32.mrf.mxu3  ;;  %v9830_v36 = vld [vmem:[%s11906_s12 + $0x1390] sm:$0xf]  ;;  %v11295_v37 = vld [vmem:[%s11906_s12 + $0x13c0] sm:$0xf0] }
 0x1b3   : > { %6162 = vmatpush.bf16.msra.mxu3 %v8739_v55  ;;  %v9674_v55 = vld [vmem:[%s11906_s12 + $0x1258] sm:$0xf]  ;;  %v9259_v61 = vor.u32 %v11152_v51, %v9258_v23  ;;  %v9519_v23 = vor.u32 %v11217_v42, %v9518_v41  ;;  %v10964_v41 = vld [vmem:[%s11906_s12 + $0x96c] sm:$0xf]  ;;  %v8532_v42 = vld [vmem:[%s11906_s12 + $0x99c] sm:$0xf0] }
 0x1b4   : > { %6125 = vmatpush.bf16.msra.mxu0 %v7387_v59  ;;  %6138 = vmatpush.bf16.msra.mxu1 %v7803_v63  ;;  %v10142_v59 = vld [vmem:[%s11906_s12 + $0x1600] sm:$0xf]  ;;  %v11477_v63 = vld [vmem:[%s11906_s12 + $0x1970] sm:$0xf0]  ;;  %v9675_v1 = vor.u32 %v11256_v56, %v9674_v55  ;;  %v9050_v51 = vld [vmem:[%s11906_s12 + $0xd78] sm:$0xf] }
 0x1b5   : > { %v10559_v9 = vor.u32 %v11477_v63, %v10558_v62  ;;  %v11204_v55 = vld [vmem:[%s11906_s12 + $0x10e8] sm:$0xf0]  ;;  %v10350_v62 = vld [vmem:[%s11906_s12 + $0x17a0] sm:$0xf]  ;;  %v11425_v63 = vld [vmem:[%s11906_s12 + $0x17d0] sm:$0xf0] }
 0x1b6   : > { %6150 = vmatpush.bf16.msra.mxu2 %v8271_v4  ;;  %v10143_v4 = vor.u32 %v11373_v60, %v10142_v59  ;;  %v11321_v59 = vld [vmem:[%s11906_s12 + $0x1490] sm:$0xf0] }
 0x1b7   : > { %6163 = vmatpush.bf16.msra.mxu3 %v8687_v11  ;;  %v11360_v11 = vld [vmem:[%s11906_s12 + $0x15c8] sm:$0xf0] }
 0x1b8   : > { %6126 = vmatpush.bf16.msra.mxu0 %v7335_v18  ;;  %6139 = vmatpush.bf16.msra.mxu1 %v7751_v21  ;;  %v9154_v18 = vld [vmem:[%s11906_s12 + $0xe48] sm:$0xf]  ;;  %v10091_v20 = vor.u32 %v11360_v11, %v10090_v10  ;;  %v5920_v38 = vpop.f32.mrf.mxu0  ;;  %v7700_v10 = vld [vmem:[%s11906_s12 + $0x31c] sm:$0xf0]  ;;  %v10860_v11 = vld [vmem:[%s11906_s12 + $0x62c] sm:$0xf] }
 0x1b9   : > { %v9570_v21 = vld [vmem:[%s11906_s12 + $0x1188] sm:$0xf]  ;;  %v9155_v30 = vor.u32 %v11126_v19, %v9154_v18 }
 0x1ba   : > { %6151 = vmatpush.bf16.msra.mxu2 %v8219_v28  ;;  %v5933_v28 = vpop.f32.mrf.mxu1 }
 0x1bb   : > { %6164 = vmatpush.bf16.msra.mxu3 %v8635_v34  ;;  %6127 = vmatmul.bf16.vlgmr.msra.gmra.mxu0 %v12070_v0 }
 0x1bc   : > { %6171 = vmatpush.bf16.msrb.mxu0 %v9363_v22  ;;  %6184 = vmatpush.bf16.msrb.mxu1 %v9779_v27  ;;  %v11230_v22 = vld [vmem:[%s11906_s12 + $0x11b8] sm:$0xf0]  ;;  %v5921_v27 = vadd.f32 %v5920_v38, %v1455_v12 }
 0x1bd   : > { %6140 = vmatmul.bf16.vlgmr.msra.gmra.mxu1 %v12075_v5  ;;  %v9571_v34 = vor.u32 %v11230_v22, %v9570_v21  ;;  %v10298_v21 = vld [vmem:[%s11906_s12 + $0x1738] sm:$0xf]  ;;  %v11412_v22 = vld [vmem:[%s11906_s12 + $0x1768] sm:$0xf0] }
 0x1be   : > { %6152 = vmatpush.bf16.msra.mxu2 %v8167_v15  ;;  %v5934_v39 = vadd.f32 %v5933_v28, %v5921_v27  ;;  %v11438_v15 = vld [vmem:[%s11906_s12 + $0x1838] sm:$0xf0]  ;;  %v8119_v27 = vor.u32 %v10860_v11, %v8116_v16 }
 0x1bf   : > { %6165 = vmatpush.bf16.msra.mxu3 %v8583_v53 }
 0x1c0   : > { %6172 = vmatpush.bf16.msrb.mxu0 %v9311_v44  ;;  %6185 = vmatpush.bf16.msrb.mxu1 %v9727_v49  ;;  %v9986_v44 = vld [vmem:[%s11906_s12 + $0x14c8] sm:$0xf]  ;;  %v5922_v56 = vpop.f32.mrf.mxu0 }
 0x1c1   : > { %6153 = vmatmul.bf16.vlgmr.msra.gmra.mxu2 %v12090_v29  ;;  %v10402_v49 = vld [vmem:[%s11906_s12 + $0x1808] sm:$0xf]  ;;  %v9987_v53 = vor.u32 %v11334_v46, %v9986_v44  ;;  %v11068_v44 = vld [vmem:[%s11906_s12 + $0xcac] sm:$0xf]  ;;  %v8948_v46 = vld [vmem:[%s11906_s12 + $0xcdc] sm:$0xf0] }
 0x1c2   : > { %6197 = vmatpush.bf16.msrb.mxu2 %v10195_v54  ;;  %6166 = vmatmul.bf16.vlgmr.msra.gmra.mxu3 %v12095_v35  ;;  %v9466_v54 = vld [vmem:[%s11906_s12 + $0x10b8] sm:$0xf]  ;;  %v10403_v57 = vor.u32 %v11438_v15, %v10402_v49  ;;  %v5935_v60 = vpop.f32.mrf.mxu1  ;;  %v9831_v49 = vor.u32 %v11295_v37, %v9830_v36  ;;  %v10730_v15 = vld [vmem:[%s11906_s12 + $0x21c] sm:$0xf] }
 0x1c3   : > { %6210 = vmatpush.bf16.msrb.mxu3 %v10611_v58  ;;  %v9934_v58 = vld [vmem:[%s11906_s12 + $0x1460] sm:$0xf]  ;;  %v9467_v2 = vor.u32 %v11204_v55, %v9466_v54  ;;  %v10834_v54 = vld [vmem:[%s11906_s12 + $0x55c] sm:$0xf]  ;;  %v8012_v55 = vld [vmem:[%s11906_s12 + $0x58c] sm:$0xf0] }
 0x1c4   : > { %6173 = vmatpush.bf16.msrb.mxu0 %v9259_v61  ;;  %6186 = vmatpush.bf16.msrb.mxu1 %v9675_v1  ;;  %v9051_v61 = vor.u32 %v11100_v52, %v9050_v51  ;;  %v8998_v1 = vld [vmem:[%s11906_s12 + $0xd10] sm:$0xf]  ;;  %v9935_v8 = vor.u32 %v11321_v59, %v9934_v58  ;;  %v5946_v12 = vpop.f32.mrf.mxu2  ;;  %v10951_v58 = vld [vmem:[%s11906_s12 + $0x904] sm:$0xf]  ;;  %v8480_v59 = vld [vmem:[%s11906_s12 + $0x934] sm:$0xf0] }
 0x1c5   : > { %v5947_v18 = vadd.f32 %v5946_v12, %v5934_v39  ;;  %v5959_v19 = vpop.f32.mrf.mxu3  ;;  %v10246_v39 = vld [vmem:[%s11906_s12 + $0x16d0] sm:$0xf]  ;;  %v11042_v12 = vld [vmem:[%s11906_s12 + $0xbdc] sm:$0xf]  ;;  %v7440_v36 = vld [vmem:[%s11906_s12 + $0x114] sm:$0xf0] }
 0x1c6   : > { %6198 = vmatpush.bf16.msrb.mxu2 %v10143_v4  ;;  %v9414_v4 = vld [vmem:[%s11906_s12 + $0x1050] sm:$0xf] }
 0x1c7   : > { %6211 = vmatpush.bf16.msrb.mxu3 %v10559_v9  ;;  %v10756_v9 = vld [vmem:[%s11906_s12 + $0x2ec] sm:$0xf]  ;;  %v9415_v38 = vor.u32 %v11191_v6, %v9414_v4  ;;  %v12657_v26 = vadd.f32 %v5959_v19, %v5947_v18  ;;  %v10821_v4 = vld [vmem:[%s11906_s12 + $0x4f4] sm:$0xf]  ;;  %v7960_v6 = vld [vmem:[%s11906_s12 + $0x524] sm:$0xf0] }
 0x1c8   : > { %6174 = vmatpush.bf16.msrb.mxu0 %v9207_v14  ;;  %6187 = vmatpush.bf16.msrb.mxu1 %v9623_v17  ;;  %v10351_v14 = vor.u32 %v11425_v63, %v10350_v62  ;;  %v11308_v17 = vld [vmem:[%s11906_s12 + $0x1428] sm:$0xf0]  ;;  %v8896_v62 = vld [vmem:[%s11906_s12 + $0xc74] sm:$0xf0]  ;;  %v8015_v63 = vor.u32 %v10834_v54, %v8012_v55  ;;  %v7963_v16 = vor.u32 %v10821_v4, %v7960_v6 }
 0x1c9   : > { %v9883_v28 = vor.u32 %v11308_v17, %v9882_v50  ;;  %v10704_v50 = vld [vmem:[%s11906_s12 + $0x14c] sm:$0xf]  ;;  %v7492_v17 = vld [vmem:[%s11906_s12 + $0x17c] sm:$0xf0] }
 0x1ca   : > { %6199 = vmatpush.bf16.msrb.mxu2 %v10091_v20  ;;  %v8999_v20 = vor.u32 %v11087_v3, %v8998_v1  ;;  %v10717_v1 = vld [vmem:[%s11906_s12 + $0x1b4] sm:$0xf]  ;;  %v8483_v3 = vor.u32 %v10951_v58, %v8480_v59  ;;  %v10808_v19 = vld [vmem:[%s11906_s12 + $0x48c] sm:$0xf] }
 0x1cb   : > { %6212 = vmatpush.bf16.msrb.mxu3 %v10507_v24  ;;  %v7703_v24 = vor.u32 %v10756_v9, %v7700_v10  ;;  %v10938_v9 = vld [vmem:[%s11906_s12 + $0x89c] sm:$0xf]  ;;  %v8428_v10 = vld [vmem:[%s11906_s12 + $0x8cc] sm:$0xf0]  ;;  %v11172_v6 = vld [vmem:[%s11906_s12 + $0xfec] sm:$0xf] }
 0x1cc   : > { %6175 = vmatpush.bf16.msrb.mxu0 %v9155_v30  ;;  %6188 = vmatpush.bf16.msrb.mxu1 %v9571_v34  ;;  %v7648_v30 = vld [vmem:[%s11906_s12 + $0x2b4] sm:$0xf0]  ;;  %v10299_v34 = vor.u32 %v11412_v22, %v10298_v21  ;;  %v5948_v51 = vpop.f32.mrf.mxu2  ;;  %v8431_v18 = vor.u32 %v10938_v9, %v8428_v10  ;;  %v11276_v9 = vld [vmem:[%s11906_s12 + $0x132c] sm:$0xf] }
 0x1cd   : > { %v5961_v56 = vpop.f32.mrf.mxu3 }
 0x1ce   : > { %6200 = vmatpush.bf16.msrb.mxu2 %v10039_v31  ;;  %v11399_v31 = vld [vmem:[%s11906_s12 + $0x1700] sm:$0xf0] }
 0x1cf   : > { %6213 = vmatpush.bf16.msrb.mxu3 %v10455_v43  ;;  %v7651_v43 = vor.u32 %v10743_v25, %v7648_v30  ;;  %v10247_v52 = vor.u32 %v11399_v31, %v10246_v39  ;;  %v11029_v30 = vld [vmem:[%s11906_s12 + $0xb74] sm:$0xf]  ;;  %v10795_v31 = vld [vmem:[%s11906_s12 + $0x424] sm:$0xf] }
 0x1d0   : > { %6176 = vmatpush.bf16.msrb.mxu0 %v9103_v47  ;;  %6189 = vmatpush.bf16.msrb.mxu1 %v9519_v23  ;;  %v8067_v47 = vor.u32 %v10847_v32, %v8064_v33  ;;  %v7596_v23 = vld [vmem:[%s11906_s12 + $0x24c] sm:$0xf0]  ;;  %v8792_v32 = vld [vmem:[%s11906_s12 + $0xba4] sm:$0xf0]  ;;  %v10899_v56 = vld [vmem:[%s11906_s12 + $0x764] sm:$0xf] }
 0x1d1   : > { %v7599_v60 = vor.u32 %v10730_v15, %v7596_v23  ;;  %v10678_v15 = vld [vmem:[%s11906_s12 + $0x7c] sm:$0xf]  ;;  %v7388_v23 = vld [vmem:[%s11906_s12 + $0xac] sm:$0xf0] }
 0x1d2   : > { %6201 = vmatpush.bf16.msrb.mxu2 %v9987_v53  ;;  %v8535_v53 = vor.u32 %v10964_v41, %v8532_v42  ;;  %v8795_v41 = vor.u32 %v11029_v30, %v8792_v32  ;;  %v10912_v42 = vld [vmem:[%s11906_s12 + $0x7cc] sm:$0xf]  ;;  %v7391_v59 = vor.u32 %v10678_v15, %v7388_v23  ;;  %v11263_v30 = vld [vmem:[%s11906_s12 + $0x12c4] sm:$0xf]  ;;  %v9728_v32 = vld [vmem:[%s11906_s12 + $0x12f4] sm:$0xf0] }
 0x1d3   : > { %6214 = vmatpush.bf16.msrb.mxu3 %v10403_v57  ;;  %v8951_v57 = vor.u32 %v11068_v44, %v8948_v46  ;;  %v11016_v46 = vld [vmem:[%s11906_s12 + $0xb0c] sm:$0xf] }
 0x1d4   : > { %6177 = vmatpush.bf16.msrb.mxu0 %v9051_v61  ;;  %6190 = vmatpush.bf16.msrb.mxu1 %v9467_v2  ;;  %v11055_v61 = vld [vmem:[%s11906_s12 + $0xc44] sm:$0xf]  ;;  %v7544_v2 = vld [vmem:[%s11906_s12 + $0x1e4] sm:$0xf0] }
 0x1d5   : > { %v7547_v11 = vor.u32 %v10717_v1, %v7544_v2  ;;  %v7336_v1 = vld [vmem:[%s11906_s12 + $0x44] sm:$0xf0]  ;;  %v10769_v2 = vld [vmem:[%s11906_s12 + $0x354] sm:$0xf] }
 0x1d6   : > { %6202 = vmatpush.bf16.msrb.mxu2 %v9935_v8  ;;  %v8899_v8 = vor.u32 %v11055_v61, %v8896_v62  ;;  %v8688_v61 = vld [vmem:[%s11906_s12 + $0xad4] sm:$0xf0]  ;;  %v10665_v62 = vld [vmem:[%s11906_s12 + $0x14] sm:$0xf] }
 0x1d7   : > { %6215 = vmatpush.bf16.msrb.mxu3 %v10351_v14  ;;  %v8844_v14 = vld [vmem:[%s11906_s12 + $0xc0c] sm:$0xf0] }
 0x1d8   : > { %6178 = vmatpush.bf16.msrb.mxu0 %v8999_v20  ;;  %6191 = vmatpush.bf16.msrb.mxu1 %v9415_v38  ;;  %v7908_v20 = vld [vmem:[%s11906_s12 + $0x4bc] sm:$0xf0]  ;;  %v5972_v21 = vpop.f32.mrf.mxu0  ;;  %v8847_v22 = vor.u32 %v11042_v12, %v8844_v14  ;;  %v10925_v38 = vld [vmem:[%s11906_s12 + $0x834] sm:$0xf]  ;;  %v10886_v14 = vld [vmem:[%s11906_s12 + $0x6fc] sm:$0xf] }
 0x1d9   : > { %v5973_v25 = vadd.f32 %v5972_v21, %v12657_v26  ;;  %v7911_v33 = vor.u32 %v10808_v19, %v7908_v20  ;;  %v7856_v26 = vld [vmem:[%s11906_s12 + $0x454] sm:$0xf0]  ;;  %v9780_v12 = vld [vmem:[%s11906_s12 + $0x135c] sm:$0xf0]  ;;  %v10990_v19 = vld [vmem:[%s11906_s12 + $0xa3c] sm:$0xf] }
 0x1da   : > { %6203 = vmatpush.bf16.msrb.mxu2 %v9883_v28  ;;  %v7495_v28 = vor.u32 %v10704_v50, %v7492_v17  ;;  %v8636_v20 = vld [vmem:[%s11906_s12 + $0xa6c] sm:$0xf0] }
 0x1db   : > { %6216 = vmatpush.bf16.msrb.mxu3 %v10299_v34  ;;  %6179 = vmatmul.bf16.vlgmr.msrb.gmra.mxu0 %v12117_v7  ;;  %v10691_v34 = vld [vmem:[%s11906_s12 + $0xe4] sm:$0xf] }
 0x1dc   : > { %6223 = vmatpush.bf16.msra.mxu0 %v7703_v24  ;;  %6236 = vmatpush.bf16.msra.mxu1 %v8119_v27  ;;  %v8376_v24 = vld [vmem:[%s11906_s12 + $0x864] sm:$0xf0]  ;;  %v5985_v27 = vpop.f32.mrf.mxu1  ;;  %v7443_v44 = vor.u32 %v10691_v34, %v7440_v36  ;;  %v10873_v34 = vld [vmem:[%s11906_s12 + $0x694] sm:$0xf] }
 0x1dd   : > { %6192 = vmatmul.bf16.vlgmr.msrb.gmra.mxu1 %v12122_v13  ;;  %v5986_v37 = vadd.f32 %v5985_v27, %v5973_v25  ;;  %v8379_v39 = vor.u32 %v10925_v38, %v8376_v24  ;;  %v11159_v38 = vld [vmem:[%s11906_s12 + $0xf84] sm:$0xf]  ;;  %v9783_v25 = vor.u32 %v11276_v9, %v9780_v12  ;;  %v8168_v36 = vld [vmem:[%s11906_s12 + $0x6c4] sm:$0xf0]  ;;  %v11458_v12 = vld [vmem:[%s11906_s12 + $0x18dc] sm:$0xf] }
 0x1de   : > { %6204 = vmatpush.bf16.msrb.mxu2 %v9831_v49  ;;  %v7859_v49 = vor.u32 %v10795_v31, %v7856_v26  ;;  %v11380_v31 = vld [vmem:[%s11906_s12 + $0x166c] sm:$0xf]  ;;  %v10196_v26 = vld [vmem:[%s11906_s12 + $0x169c] sm:$0xf0] }
 0x1df   : > { %6217 = vmatpush.bf16.msrb.mxu3 %v10247_v52  ;;  %v10782_v52 = vld [vmem:[%s11906_s12 + $0x3bc] sm:$0xf]  ;;  %v12759_v9 = vld [vmem:[%s12382_s7] sm:$0xff] }
 0x1e0   : > { %6224 = vmatpush.bf16.msra.mxu0 %v7651_v43  ;;  %6237 = vmatpush.bf16.msra.mxu1 %v8067_v47  ;;  %v8324_v43 = vld [vmem:[%s11906_s12 + $0x7fc] sm:$0xf0]  ;;  %v5974_v54 = vpop.f32.mrf.mxu0 }
 0x1e1   : > { %6205 = vmatmul.bf16.vlgmr.msrb.gmra.mxu2 %v12137_v40  ;;  %v8740_v47 = vld [vmem:[%s11906_s12 + $0xb3c] sm:$0xf0]  ;;  %v8327_v51 = vor.u32 %v10912_v42, %v8324_v43  ;;  %v11484_v42 = vld [vmem:[%s11906_s12 + $0x19ac] sm:$0xf] }
 0x1e2   : > { %6249 = vmatpush.bf16.msra.mxu2 %v8535_v53  ;;  %6218 = vmatmul.bf16.vlgmr.msrb.gmra.mxu3 %v12142_v45  ;;  %v7804_v53 = vld [vmem:[%s11906_s12 + $0x3ec] sm:$0xf0]  ;;  %v8743_v55 = vor.u32 %v11016_v46, %v8740_v47  ;;  %v10612_v43 = vld [vmem:[%s11906_s12 + $0x19dc] sm:$0xf0]  ;;  %v8171_v46 = vor.u32 %v10873_v34, %v8168_v36  ;;  %v11146_v47 = vld [vmem:[%s11906_s12 + $0xf1c] sm:$0xf] }
 0x1e3   : > { %6262 = vmatpush.bf16.msra.mxu3 %v8951_v57  ;;  %v8272_v57 = vld [vmem:[%s11906_s12 + $0x794] sm:$0xf0]  ;;  %v11107_v36 = vld [vmem:[%s11906_s12 + $0xde4] sm:$0xf] }
 0x1e4   : > { %6225 = vmatpush.bf16.msra.mxu0 %v7599_v60  ;;  %6238 = vmatpush.bf16.msra.mxu1 %v8015_v63  ;;  %v5987_v58 = vpop.f32.mrf.mxu1  ;;  %v11003_v60 = vld [vmem:[%s11906_s12 + $0xaa4] sm:$0xf]  ;;  %v7807_v63 = vor.u32 %v10782_v52, %v7804_v53  ;;  %v8275_v4 = vor.u32 %v10899_v56, %v8272_v57  ;;  %v5998_v10 = vpop.f32.mrf.mxu2  ;;  %v11250_v52 = vld [vmem:[%s11906_s12 + $0x125c] sm:$0xf]  ;;  %v9676_v53 = vld [vmem:[%s11906_s12 + $0x128c] sm:$0xf0] }
 0x1e5   : > { %v5999_v50 = vadd.f32 %v5998_v10, %v5986_v37  ;;  %v6011_v17 = vpop.f32.mrf.mxu3  ;;  %v10977_v37 = vld [vmem:[%s11906_s12 + $0x9d4] sm:$0xf]  ;;  %v11367_v56 = vld [vmem:[%s11906_s12 + $0x1604] sm:$0xf]  ;;  %v10144_v57 = vld [vmem:[%s11906_s12 + $0x1634] sm:$0xf0] }
 0x1e6   : > { %6250 = vmatpush.bf16.msra.mxu2 %v8483_v3  ;;  %v7752_v3 = vld [vmem:[%s11906_s12 + $0x384] sm:$0xf0]  ;;  %v1456_v10 = vperm.slane %v12759_v9, 3 }
 0x1e7   : > { %6263 = vmatpush.bf16.msra.mxu3 %v8899_v8  ;;  %v9364_v8 = vld [vmem:[%s11906_s12 + $0x101c] sm:$0xf0]  ;;  %v7755_v21 = vor.u32 %v10769_v2, %v7752_v3  ;;  %v12728_v24 = vadd.f32 %v6011_v17, %v5999_v50  ;;  %v11237_v2 = vld [vmem:[%s11906_s12 + $0x11f4] sm:$0xf]  ;;  %v9624_v3 = vld [vmem:[%s11906_s12 + $0x1224] sm:$0xf0] }
 0x1e8   : > { %6226 = vmatpush.bf16.msra.mxu0 %v7547_v11  ;;  %6239 = vmatpush.bf16.msra.mxu1 %v7963_v16  ;;  %v8691_v11 = vor.u32 %v11003_v60, %v8688_v61  ;;  %v8220_v16 = vld [vmem:[%s11906_s12 + $0x72c] sm:$0xf0]  ;;  %v10560_v60 = vld [vmem:[%s11906_s12 + $0x1974] sm:$0xf0]  ;;  %v9679_v61 = vor.u32 %v11250_v52, %v9676_v53  ;;  %v11120_v50 = vld [vmem:[%s11906_s12 + $0xe4c] sm:$0xf] }
 0x1e9   : > { %v8223_v27 = vor.u32 %v10886_v14, %v8220_v16  ;;  %v10508_v14 = vld [vmem:[%s11906_s12 + $0x190c] sm:$0xf0]  ;;  %v9627_v16 = vor.u32 %v11237_v2, %v9624_v3  ;;  %v9156_v17 = vld [vmem:[%s11906_s12 + $0xe7c] sm:$0xf0]  ;;  %v11198_v53 = vld [vmem:[%s11906_s12 + $0x10bc] sm:$0xf] }
 0x1ea   : > { %6251 = vmatpush.bf16.msra.mxu2 %v8431_v18  ;;  %v7339_v18 = vor.u32 %v10665_v62, %v7336_v1  ;;  %v11133_v62 = vld [vmem:[%s11906_s12 + $0xeb4] sm:$0xf]  ;;  %v10147_v1 = vor.u32 %v11367_v56, %v10144_v57  ;;  %v11315_v57 = vld [vmem:[%s11906_s12 + $0x1464] sm:$0xf]  ;;  %v9000_v2 = vld [vmem:[%s11906_s12 + $0xd44] sm:$0xf0] }
 0x1eb   : > { %6264 = vmatpush.bf16.msra.mxu3 %v8847_v22  ;;  %v9367_v22 = vor.u32 %v11172_v6, %v9364_v8  ;;  %v11354_v6 = vld [vmem:[%s11906_s12 + $0x159c] sm:$0xf]  ;;  %v10092_v8 = vld [vmem:[%s11906_s12 + $0x15cc] sm:$0xf0]  ;;  %v11185_v3 = vld [vmem:[%s11906_s12 + $0x1054] sm:$0xf] }
 0x1ec   : > { %6227 = vmatpush.bf16.msra.mxu0 %v7495_v28  ;;  %6240 = vmatpush.bf16.msra.mxu1 %v7911_v33  ;;  %v9312_v28 = vld [vmem:[%s11906_s12 + $0xfb4] sm:$0xf0]  ;;  %v8639_v33 = vor.u32 %v10990_v19, %v8636_v20  ;;  %v6000_v15 = vpop.f32.mrf.mxu2  ;;  %v11224_v19 = vld [vmem:[%s11906_s12 + $0x118c] sm:$0xf]  ;;  %v9572_v20 = vld [vmem:[%s11906_s12 + $0x11bc] sm:$0xf0] }
 0x1ed   : > { %v6013_v54 = vpop.f32.mrf.mxu3  ;;  %v9575_v34 = vor.u32 %v11224_v19, %v9572_v20 }
 0x1ee   : > { %6252 = vmatpush.bf16.msra.mxu2 %v8379_v39  ;;  %v8584_v39 = vld [vmem:[%s11906_s12 + $0xa04] sm:$0xf0]  ;;  %v9468_v54 = vld [vmem:[%s11906_s12 + $0x10ec] sm:$0xf0] }
 0x1ef   : > { %6265 = vmatpush.bf16.msra.mxu3 %v8795_v41  ;;  %v9315_v41 = vor.u32 %v11159_v38, %v9312_v28  ;;  %v8587_v23 = vor.u32 %v10977_v37, %v8584_v39  ;;  %v11341_v38 = vld [vmem:[%s11906_s12 + $0x1534] sm:$0xf]  ;;  %v9104_v37 = vld [vmem:[%s11906_s12 + $0xe14] sm:$0xf0] }
 0x1f0   : > { %6228 = vmatpush.bf16.msra.mxu0 %v7443_v44  ;;  %6241 = vmatpush.bf16.msra.mxu1 %v7859_v49  ;;  %v9731_v44 = vor.u32 %v11263_v30, %v9728_v32  ;;  %v9260_v49 = vld [vmem:[%s11906_s12 + $0xf4c] sm:$0xf0]  ;;  %v9159_v30 = vor.u32 %v11120_v50, %v9156_v17  ;;  %v11445_v32 = vld [vmem:[%s11906_s12 + $0x1874] sm:$0xf]  ;;  %v11302_v50 = vld [vmem:[%s11906_s12 + $0x13fc] sm:$0xf] }
 0x1f1   : > { %v9263_v58 = vor.u32 %v11146_v47, %v9260_v49  ;;  %v11432_v47 = vld [vmem:[%s11906_s12 + $0x180c] sm:$0xf]  ;;  %v10404_v49 = vld [vmem:[%s11906_s12 + $0x183c] sm:$0xf0]  ;;  %v9884_v17 = vld [vmem:[%s11906_s12 + $0x142c] sm:$0xf0] }
 0x1f2   : > { %6253 = vmatpush.bf16.msra.mxu2 %v8327_v51  ;;  %v10199_v51 = vor.u32 %v11380_v31, %v10196_v26  ;;  %v11211_v26 = vld [vmem:[%s11906_s12 + $0x1124] sm:$0xf]  ;;  %v10407_v56 = vor.u32 %v11432_v47, %v10404_v49 }
 0x1f3   : > { %6266 = vmatpush.bf16.msra.mxu3 %v8743_v55  ;;  %v10615_v55 = vor.u32 %v11484_v42, %v10612_v43  ;;  %v11328_v43 = vld [vmem:[%s11906_s12 + $0x14cc] sm:$0xf]  ;;  %v11075_v47 = vld [vmem:[%s11906_s12 + $0xce0] sm:$0xf0] }
 0x1f4   : > { %6229 = vmatpush.bf16.msra.mxu0 %v7391_v59  ;;  %6242 = vmatpush.bf16.msra.mxu1 %v7807_v63  ;;  %v11471_v59 = vld [vmem:[%s11906_s12 + $0x1944] sm:$0xf]  ;;  %v9208_v63 = vld [vmem:[%s11906_s12 + $0xee4] sm:$0xf0] }
 0x1f6   : > { %6254 = vmatpush.bf16.msra.mxu2 %v8275_v4  ;;  %v10563_v4 = vor.u32 %v11471_v59, %v10560_v60 }
 0x1f7   : > { %6267 = vmatpush.bf16.msra.mxu3 %v8691_v11  ;;  %v9211_v11 = vor.u32 %v11133_v62, %v9208_v63  ;;  %v10352_v62 = vld [vmem:[%s11906_s12 + $0x17d4] sm:$0xf0]  ;;  %v11081_v63 = vld [vmem:[%s11906_s12 + $0xd14] sm:$0xf] }
 0x1f8   : > { %6230 = vmatpush.bf16.msra.mxu0 %v7339_v18  ;;  %6243 = vmatpush.bf16.msra.mxu1 %v7755_v21  ;;  %v10095_v18 = vor.u32 %v11354_v6, %v10092_v8  ;;  %v6024_v21 = vpop.f32.mrf.mxu0  ;;  %v7706_v8 = vld [vmem:[%s11906_s12 + $0x2f0] sm:$0xf]  ;;  %v9003_v20 = vor.u32 %v11081_v63, %v9000_v2  ;;  %v11062_v63 = vld [vmem:[%s11906_s12 + $0xc78] sm:$0xf0]  ;;  %v7550_v2 = vld [vmem:[%s11906_s12 + $0x1b8] sm:$0xf] }
 0x1fa   : > { %6255 = vmatpush.bf16.msra.mxu2 %v8223_v27  ;;  %v6025_v27 = vadd.f32 %v6024_v21, %v1456_v10  ;;  %v6037_v28 = vpop.f32.mrf.mxu1  ;;  %v10763_v10 = vld [vmem:[%s11906_s12 + $0x320] sm:$0xf0]  ;;  %v11406_v21 = vld [vmem:[%s11906_s12 + $0x173c] sm:$0xf] }
 0x1fb   : > { %6268 = vmatpush.bf16.msra.mxu3 %v8639_v33  ;;  %6231 = vmatmul.bf16.vlgmr.msra.gmra.mxu0 %v12070_v0  ;;  %v10456_v33 = vld [vmem:[%s11906_s12 + $0x18a4] sm:$0xf0] }
 0x1fc   : > { %6275 = vmatpush.bf16.msrb.mxu0 %v9367_v22  ;;  %6288 = vmatpush.bf16.msrb.mxu1 %v9783_v25  ;;  %v10511_v22 = vor.u32 %v11458_v12, %v10508_v14  ;;  %v10040_v25 = vld [vmem:[%s11906_s12 + $0x1564] sm:$0xf0]  ;;  %v6038_v39 = vadd.f32 %v6037_v28, %v6025_v27  ;;  %v10459_v42 = vor.u32 %v11445_v32, %v10456_v33  ;;  %v10750_v33 = vld [vmem:[%s11906_s12 + $0x2b8] sm:$0xf0] }
 0x1fd   : > { %6244 = vmatmul.bf16.vlgmr.msra.gmra.mxu1 %v12075_v5  ;;  %v10043_v31 = vor.u32 %v11341_v38, %v10040_v25  ;;  %v7707_v25 = vor.u32 %v10763_v10, %v7706_v8  ;;  %v7654_v27 = vld [vmem:[%s11906_s12 + $0x288] sm:$0xf]  ;;  %v9887_v32 = vor.u32 %v11302_v50, %v9884_v17  ;;  %v10828_v8 = vld [vmem:[%s11906_s12 + $0x528] sm:$0xf0]  ;;  %v11049_v50 = vld [vmem:[%s11906_s12 + $0xc10] sm:$0xf0] }
 0x1fe   : > { %6256 = vmatpush.bf16.msra.mxu2 %v8171_v46  ;;  %v9107_v46 = vor.u32 %v11107_v36, %v9104_v37  ;;  %v10854_v36 = vld [vmem:[%s11906_s12 + $0x5f8] sm:$0xf0] }
 0x1ff   : > { %6269 = vmatpush.bf16.msra.mxu3 %v8587_v23  ;;  %v11094_v23 = vld [vmem:[%s11906_s12 + $0xd7c] sm:$0xf] }
 0x200   : > { %6276 = vmatpush.bf16.msrb.mxu0 %v9315_v41  ;;  %6289 = vmatpush.bf16.msrb.mxu1 %v9731_v44  ;;  %v9520_v41 = vld [vmem:[%s11906_s12 + $0x1154] sm:$0xf0]  ;;  %v9988_v44 = vld [vmem:[%s11906_s12 + $0x14fc] sm:$0xf0] }
 0x201   : > { %6257 = vmatmul.bf16.vlgmr.msra.gmra.mxu2 %v12090_v29  ;;  %v9523_v15 = vor.u32 %v11211_v26, %v9520_v41  ;;  %v9991_v52 = vor.u32 %v11328_v43, %v9988_v44  ;;  %v11393_v26 = vld [vmem:[%s11906_s12 + $0x16d4] sm:$0xf]  ;;  %v10248_v41 = vld [vmem:[%s11906_s12 + $0x1704] sm:$0xf0]  ;;  %v10971_v43 = vld [vmem:[%s11906_s12 + $0x9a0] sm:$0xf0]  ;;  %v7655_v44 = vor.u32 %v10750_v33, %v7654_v27 }
 0x202   : > { %6301 = vmatpush.bf16.msrb.mxu2 %v10199_v51  ;;  %6270 = vmatmul.bf16.vlgmr.msra.gmra.mxu3 %v12095_v35  ;;  %v9052_v51 = vld [vmem:[%s11906_s12 + $0xdac] sm:$0xf0]  ;;  %v6039_v59 = vpop.f32.mrf.mxu1  ;;  %v8382_v27 = vld [vmem:[%s11906_s12 + $0x838] sm:$0xf] }
 0x203   : > { %6314 = vmatpush.bf16.msrb.mxu3 %v10615_v55  ;;  %v6026_v55 = vpop.f32.mrf.mxu0  ;;  %v9055_v60 = vor.u32 %v11094_v23, %v9052_v51  ;;  %v7602_v23 = vld [vmem:[%s11906_s12 + $0x220] sm:$0xf]  ;;  %v10737_v51 = vld [vmem:[%s11906_s12 + $0x250] sm:$0xf0]  ;;  %v8486_v59 = vld [vmem:[%s11906_s12 + $0x908] sm:$0xf] }
 0x204   : > { %6277 = vmatpush.bf16.msrb.mxu0 %v9263_v58  ;;  %6290 = vmatpush.bf16.msrb.mxu1 %v9679_v61  ;;  %v9936_v58 = vld [vmem:[%s11906_s12 + $0x1494] sm:$0xf0]  ;;  %v11419_v61 = vld [vmem:[%s11906_s12 + $0x17a4] sm:$0xf]  ;;  %v6050_v12 = vpop.f32.mrf.mxu2  ;;  %v8018_v55 = vld [vmem:[%s11906_s12 + $0x560] sm:$0xf] }
 0x205   : > { %v9939_v6 = vor.u32 %v11315_v57, %v9936_v58  ;;  %v10355_v14 = vor.u32 %v11419_v61, %v10352_v62  ;;  %v6063_v19 = vpop.f32.mrf.mxu3  ;;  %v7603_v61 = vor.u32 %v10737_v51, %v7602_v23  ;;  %v8902_v62 = vld [vmem:[%s11906_s12 + $0xc48] sm:$0xf]  ;;  %v11023_v23 = vld [vmem:[%s11906_s12 + $0xb40] sm:$0xf0] }
 0x206   : > { %6302 = vmatpush.bf16.msrb.mxu2 %v10147_v1  ;;  %v9471_v1 = vor.u32 %v11198_v53, %v9468_v54  ;;  %v10251_v53 = vor.u32 %v11393_v26, %v10248_v41  ;;  %v8903_v10 = vor.u32 %v11062_v63, %v8902_v62  ;;  %v10698_v26 = vld [vmem:[%s11906_s12 + $0x118] sm:$0xf0]  ;;  %v8694_v63 = vld [vmem:[%s11906_s12 + $0xaa8] sm:$0xf] }
 0x207   : > { %6315 = vmatpush.bf16.msrb.mxu3 %v10563_v4  ;;  %v9416_v4 = vld [vmem:[%s11906_s12 + $0x1084] sm:$0xf0] }
 0x208   : > { %6278 = vmatpush.bf16.msrb.mxu0 %v9211_v11  ;;  %6291 = vmatpush.bf16.msrb.mxu1 %v9627_v16  ;;  %v8122_v11 = vld [vmem:[%s11906_s12 + $0x630] sm:$0xf]  ;;  %v10867_v16 = vld [vmem:[%s11906_s12 + $0x660] sm:$0xf0]  ;;  %v9419_v38 = vor.u32 %v11185_v3, %v9416_v4  ;;  %v10724_v3 = vld [vmem:[%s11906_s12 + $0x1e8] sm:$0xf0] }
 0x20a   : > { %6303 = vmatpush.bf16.msrb.mxu2 %v10095_v18  ;;  %v6051_v18 = vadd.f32 %v6050_v12, %v6038_v39  ;;  %v11289_v39 = vld [vmem:[%s11906_s12 + $0x1394] sm:$0xf] }
 0x20b   : > { %6316 = vmatpush.bf16.msrb.mxu3 %v10511_v22  ;;  %v10300_v22 = vld [vmem:[%s11906_s12 + $0x176c] sm:$0xf0]  ;;  %v10945_v12 = vld [vmem:[%s11906_s12 + $0x8d0] sm:$0xf0] }
 0x20c   : > { %6279 = vmatpush.bf16.msrb.mxu0 %v9159_v30  ;;  %6292 = vmatpush.bf16.msrb.mxu1 %v9575_v34  ;;  %v12802_v28 = vadd.f32 %v6063_v19, %v6051_v18  ;;  %v8123_v30 = vor.u32 %v10867_v16, %v8122_v11  ;;  %v8070_v34 = vld [vmem:[%s11906_s12 + $0x5c8] sm:$0xf]  ;;  %v10303_v37 = vor.u32 %v11406_v21, %v10300_v22  ;;  %v8434_v11 = vld [vmem:[%s11906_s12 + $0x8a0] sm:$0xf]  ;;  %v7498_v18 = vld [vmem:[%s11906_s12 + $0x150] sm:$0xf] }
 0x20d   : > { %v8071_v49 = vor.u32 %v10854_v36, %v8070_v34  ;;  %v6065_v57 = vpop.f32.mrf.mxu3  ;;  %v8850_v16 = vld [vmem:[%s11906_s12 + $0xbe0] sm:$0xf]  ;;  %v10711_v19 = vld [vmem:[%s11906_s12 + $0x180] sm:$0xf0]  ;;  %v7914_v21 = vld [vmem:[%s11906_s12 + $0x490] sm:$0xf] }
 0x20e   : > { %6304 = vmatpush.bf16.msrb.mxu2 %v10043_v31  ;;  %v9832_v31 = vld [vmem:[%s11906_s12 + $0x13c4] sm:$0xf0]  ;;  %v10815_v22 = vld [vmem:[%s11906_s12 + $0x4c0] sm:$0xf0]  ;;  %v7499_v34 = vor.u32 %v10711_v19, %v7498_v18  ;;  %v8798_v36 = vld [vmem:[%s11906_s12 + $0xb78] sm:$0xf] }
 0x20f   : > { %6317 = vmatpush.bf16.msrb.mxu3 %v10459_v42  ;;  %v8538_v42 = vld [vmem:[%s11906_s12 + $0x970] sm:$0xf]  ;;  %v8226_v18 = vld [vmem:[%s11906_s12 + $0x700] sm:$0xf]  ;;  %v10893_v19 = vld [vmem:[%s11906_s12 + $0x730] sm:$0xf0] }
 0x210   : > { %6280 = vmatpush.bf16.msrb.mxu0 %v9107_v46  ;;  %6293 = vmatpush.bf16.msrb.mxu1 %v9523_v15  ;;  %v8954_v46 = vld [vmem:[%s11906_s12 + $0xcb0] sm:$0xf]  ;;  %v9835_v15 = vor.u32 %v11289_v39, %v9832_v31  ;;  %v8539_v54 = vor.u32 %v10971_v43, %v8538_v42  ;;  %v7915_v39 = vor.u32 %v10815_v22, %v7914_v21  ;;  %v7446_v31 = vld [vmem:[%s11906_s12 + $0xe8] sm:$0xf] }
 0x211   : > { %v8955_v58 = vor.u32 %v11075_v47, %v8954_v46  ;;  %v7862_v43 = vld [vmem:[%s11906_s12 + $0x428] sm:$0xf]  ;;  %v8330_v46 = vld [vmem:[%s11906_s12 + $0x7d0] sm:$0xf]  ;;  %v10919_v47 = vld [vmem:[%s11906_s12 + $0x800] sm:$0xf0] }
 0x212   : > { %6305 = vmatpush.bf16.msrb.mxu2 %v9991_v52  ;;  %v6052_v52 = vpop.f32.mrf.mxu2 }
 0x213   : > { %6318 = vmatpush.bf16.msrb.mxu3 %v10407_v56  ;;  %v10841_v56 = vld [vmem:[%s11906_s12 + $0x590] sm:$0xf0]  ;;  %v7394_v52 = vld [vmem:[%s11906_s12 + $0x80] sm:$0xf] }
 0x214   : > { %6281 = vmatpush.bf16.msrb.mxu0 %v9055_v60  ;;  %6294 = vmatpush.bf16.msrb.mxu1 %v9471_v1  ;;  %v10958_v60 = vld [vmem:[%s11906_s12 + $0x938] sm:$0xf0]  ;;  %v8019_v1 = vor.u32 %v10841_v56, %v8018_v55  ;;  %v7810_v55 = vld [vmem:[%s11906_s12 + $0x3c0] sm:$0xf]  ;;  %v10789_v56 = vld [vmem:[%s11906_s12 + $0x3f0] sm:$0xf0] }
 0x215   : > { %v8487_v4 = vor.u32 %v10958_v60, %v8486_v59  ;;  %v8278_v59 = vld [vmem:[%s11906_s12 + $0x768] sm:$0xf]  ;;  %v10906_v60 = vld [vmem:[%s11906_s12 + $0x798] sm:$0xf0] }
 0x216   : > { %6306 = vmatpush.bf16.msrb.mxu2 %v9939_v6  ;;  %v7966_v6 = vld [vmem:[%s11906_s12 + $0x4f8] sm:$0xf] }
 0x217   : > { %6319 = vmatpush.bf16.msrb.mxu3 %v10355_v14  ;;  %v7551_v14 = vor.u32 %v10724_v3, %v7550_v2  ;;  %v7967_v17 = vor.u32 %v10828_v8, %v7966_v6  ;;  %v7342_v2 = vld [vmem:[%s11906_s12 + $0x18] sm:$0xf]  ;;  %v7811_v3 = vor.u32 %v10789_v56, %v7810_v55  ;;  %v10776_v8 = vld [vmem:[%s11906_s12 + $0x388] sm:$0xf0]  ;;  %v9266_v55 = vld [vmem:[%s11906_s12 + $0xf20] sm:$0xf] }
 0x218   : > { %6282 = vmatpush.bf16.msrb.mxu0 %v9003_v20  ;;  %6295 = vmatpush.bf16.msrb.mxu1 %v9419_v38  ;;  %v8435_v20 = vor.u32 %v10945_v12, %v8434_v11  ;;  %v6076_v38 = vpop.f32.mrf.mxu0  ;;  %v7758_v6 = vld [vmem:[%s11906_s12 + $0x358] sm:$0xf]  ;;  %v9370_v11 = vld [vmem:[%s11906_s12 + $0xff0] sm:$0xf]  ;;  %v11179_v12 = vld [vmem:[%s11906_s12 + $0x1020] sm:$0xf0] }
 0x219   : > { %v11153_v56 = vld [vmem:[%s11906_s12 + $0xf50] sm:$0xf0] }
 0x21a   : > { %6307 = vmatpush.bf16.msrb.mxu2 %v9887_v32  ;;  %v6077_v32 = vadd.f32 %v6076_v38, %v12802_v28  ;;  %v6089_v33 = vpop.f32.mrf.mxu1  ;;  %v10802_v28 = vld [vmem:[%s11906_s12 + $0x458] sm:$0xf0]  ;;  %v8642_v38 = vld [vmem:[%s11906_s12 + $0xa40] sm:$0xf] }
 0x21b   : > { %6320 = vmatpush.bf16.msrb.mxu3 %v10303_v37  ;;  %6283 = vmatmul.bf16.vlgmr.msrb.gmra.mxu0 %v12117_v7  ;;  %v11036_v37 = vld [vmem:[%s11906_s12 + $0xba8] sm:$0xf0]  ;;  %v7863_v51 = vor.u32 %v10802_v28, %v7862_v43  ;;  %v8590_v43 = vld [vmem:[%s11906_s12 + $0x9d8] sm:$0xf] }
 0x21c   : > { %6327 = vmatpush.bf16.msra.mxu0 %v7707_v25  ;;  %6340 = vmatpush.bf16.msra.mxu1 %v8123_v30  ;;  %v8851_v25 = vor.u32 %v11049_v50, %v8850_v16  ;;  %v10932_v30 = vld [vmem:[%s11906_s12 + $0x868] sm:$0xf0]  ;;  %v6090_v41 = vadd.f32 %v6089_v33, %v6077_v32  ;;  %v9318_v32 = vld [vmem:[%s11906_s12 + $0xf88] sm:$0xf]  ;;  %v11166_v33 = vld [vmem:[%s11906_s12 + $0xfb8] sm:$0xf0] }
 0x21d   : > { %6296 = vmatmul.bf16.vlgmr.msrb.gmra.mxu1 %v12122_v13  ;;  %v8383_v42 = vor.u32 %v10932_v30, %v8382_v27  ;;  %v7759_v27 = vor.u32 %v10776_v8, %v7758_v6  ;;  %v9371_v30 = vor.u32 %v11179_v12, %v9370_v11  ;;  %v10984_v28 = vld [vmem:[%s11906_s12 + $0xa08] sm:$0xf0]  ;;  %v9267_v6 = vor.u32 %v11153_v56, %v9266_v55  ;;  %v10566_v8 = vld [vmem:[%s11906_s12 + $0x1948] sm:$0xf]  ;;  %v11335_v55 = vld [vmem:[%s11906_s12 + $0x1500] sm:$0xf0] }
 0x21e   : > { %6308 = vmatpush.bf16.msrb.mxu2 %v9835_v15  ;;  %v8746_v15 = vld [vmem:[%s11906_s12 + $0xb10] sm:$0xf] }
 0x21f   : > { %6321 = vmatpush.bf16.msrb.mxu3 %v10251_v53  ;;  %v10685_v53 = vld [vmem:[%s11906_s12 + $0xb0] sm:$0xf0] }
 0x220   : > { %6328 = vmatpush.bf16.msra.mxu0 %v7655_v44  ;;  %6341 = vmatpush.bf16.msra.mxu1 %v8071_v49  ;;  %v8799_v44 = vor.u32 %v11036_v37, %v8798_v36  ;;  %v7447_v49 = vor.u32 %v10698_v26, %v7446_v31  ;;  %v6078_v57 = vpop.f32.mrf.mxu0  ;;  %v7395_v62 = vor.u32 %v10685_v53, %v7394_v52  ;;  %v11270_v31 = vld [vmem:[%s11906_s12 + $0x12f8] sm:$0xf0]  ;;  %v8174_v26 = vld [vmem:[%s11906_s12 + $0x698] sm:$0xf]  ;;  %v7082_v52 = vrot.slane %v12597_v48, 3 }
 0x221   : > { %6309 = vmatmul.bf16.vlgmr.msrb.gmra.mxu2 %v12137_v40  ;;  %v8227_v37 = vor.u32 %v10893_v19, %v8226_v18  ;;  %v9630_v19 = vld [vmem:[%s11906_s12 + $0x11f8] sm:$0xf] }
 0x222   : > { %6353 = vmatpush.bf16.msra.mxu2 %v8539_v54  ;;  %6322 = vmatmul.bf16.vlgmr.msrb.gmra.mxu3 %v12142_v45  ;;  %v8331_v54 = vor.u32 %v10919_v47, %v8330_v46  ;;  %v10202_v47 = vld [vmem:[%s11906_s12 + $0x1670] sm:$0xf]  ;;  %v7097_v11 = vsel %vm7094_vm1, %v12597_v48, %v7082_v52  ;;  %v11244_v48 = vld [vmem:[%s11906_s12 + $0x1228] sm:$0xf0]  ;;  %v9526_v52 = vld [vmem:[%s11906_s12 + $0x1128] sm:$0xf] }
 0x223   : > { %6366 = vmatpush.bf16.msra.mxu3 %v8955_v58  ;;  %v8747_v58 = vor.u32 %v11023_v23, %v8746_v15  ;;  %v9319_v15 = vor.u32 %v11166_v33, %v9318_v32  ;;  %v10618_v23 = vld [vmem:[%s11906_s12 + $0x19b0] sm:$0xf]  ;;  %v9631_v32 = vor.u32 %v11244_v48, %v9630_v19  ;;  %v11192_v19 = vld [vmem:[%s11906_s12 + $0x1088] sm:$0xf0] }
 0x224   : > { %6329 = vmatpush.bf16.msra.mxu0 %v7603_v61  ;;  %6342 = vmatpush.bf16.msra.mxu1 %v8019_v1  ;;  %v6091_v61 = vpop.f32.mrf.mxu1  ;;  %v11010_v1 = vld [vmem:[%s11906_s12 + $0xad8] sm:$0xf0]  ;;  %v6102_v16 = vpop.f32.mrf.mxu2  ;;  %v9162_v33 = vld [vmem:[%s11906_s12 + $0xe50] sm:$0xf] }
 0x225   : > { %v8695_v50 = vor.u32 %v11010_v1, %v8694_v63  ;;  %v6115_v21 = vpop.f32.mrf.mxu3  ;;  %v11257_v61 = vld [vmem:[%s11906_s12 + $0x1290] sm:$0xf0] }
 0x226   : > { %6354 = vmatpush.bf16.msra.mxu2 %v8487_v4  ;;  %v10672_v4 = vld [vmem:[%s11906_s12 + $0x48] sm:$0xf0] }
 0x227   : > { %6367 = vmatpush.bf16.msra.mxu3 %v8903_v10  ;;  %v8279_v10 = vor.u32 %v10906_v60, %v8278_v59  ;;  %v7343_v22 = vor.u32 %v10672_v4, %v7342_v2  ;;  %v9682_v60 = vld [vmem:[%s11906_s12 + $0x1260] sm:$0xf]  ;;  %v11374_v4 = vld [vmem:[%s11906_s12 + $0x1638] sm:$0xf0] }
 0x228   : > { %6330 = vmatpush.bf16.msra.mxu0 %v7551_v14  ;;  %6343 = vmatpush.bf16.msra.mxu1 %v7967_v17  ;;  %v9786_v14 = vld [vmem:[%s11906_s12 + $0x1330] sm:$0xf]  ;;  %v11283_v17 = vld [vmem:[%s11906_s12 + $0x1360] sm:$0xf0] }
 0x229   : > { %v9787_v36 = vor.u32 %v11283_v17, %v9786_v14  ;;  %v9683_v14 = vor.u32 %v11257_v61, %v9682_v60  ;;  %v9058_v60 = vld [vmem:[%s11906_s12 + $0xd80] sm:$0xf]  ;;  %v11101_v61 = vld [vmem:[%s11906_s12 + $0xdb0] sm:$0xf0] }
 0x22a   : > { %6355 = vmatpush.bf16.msra.mxu2 %v8435_v20  ;;  %v6103_v20 = vadd.f32 %v6102_v16, %v6090_v41  ;;  %v9214_v16 = vld [vmem:[%s11906_s12 + $0xeb8] sm:$0xf] }
 0x22b   : > { %6368 = vmatpush.bf16.msra.mxu3 %v8851_v25  ;;  %v10997_v25 = vld [vmem:[%s11906_s12 + $0xa70] sm:$0xf0] }
 0x22c   : > { %6331 = vmatpush.bf16.msra.mxu0 %v7499_v34  ;;  %6344 = vmatpush.bf16.msra.mxu1 %v7915_v39  ;;  %v6116_v34 = vadd.f32 %v6115_v21, %v6103_v20  ;;  %v9734_v39 = vld [vmem:[%s11906_s12 + $0x12c8] sm:$0xf]  ;;  %v8643_v41 = vor.u32 %v10997_v25, %v8642_v38  ;;  %v6104_v57 = vpop.f32.mrf.mxu2  ;;  %v10098_v21 = vld [vmem:[%s11906_s12 + $0x15a0] sm:$0xf]  ;;  %v1457_v38 = vperm.slane %v12759_v9, 4 }
 0x22d   : > { %v6117_v1 = vpop.f32.mrf.mxu3  ;;  %v10410_v57 = vld [vmem:[%s11906_s12 + $0x1810] sm:$0xf] }
 0x22e   : > { %6356 = vmatpush.bf16.msra.mxu2 %v8383_v42  ;;  %v10880_v42 = vld [vmem:[%s11906_s12 + $0x6c8] sm:$0xf0]  ;;  %v7058_v46 = vmax.f32 %v6116_v34, 0.0  ;;  %v11127_v34 = vld [vmem:[%s11906_s12 + $0xe80] sm:$0xf0] }
 0x22f   : > { %6369 = vmatpush.bf16.msra.mxu3 %v8799_v44  ;;  %v7057_v44 = vmax.f32 %v12728_v24, 0.0  ;;  %v9735_v24 = vor.u32 %v11270_v31, %v9734_v39  ;;  %v11231_v39 = vld [vmem:[%s11906_s12 + $0x11c0] sm:$0xf0]  ;;  %v11205_v1 = vld [vmem:[%s11906_s12 + $0x10f0] sm:$0xf0] }
 0x230   : > { %6332 = vmatpush.bf16.msra.mxu0 %v7447_v49  ;;  %6345 = vmatpush.bf16.msra.mxu1 %v7863_v51  ;;  %v11387_v49 = vld [vmem:[%s11906_s12 + $0x16a0] sm:$0xf0] }
 0x231   : > { %v11491_v51 = vld [vmem:[%s11906_s12 + $0x19e0] sm:$0xf0]  ;;  %v7069_v53 = vpack.c.bf16 %v7058_v46, %v7057_v44  ;;  %v10203_v59 = vor.u32 %v11387_v49, %v10202_v47  ;;  %v10462_v44 = vld [vmem:[%s11906_s12 + $0x1878] sm:$0xf]  ;;  %v11452_v46 = vld [vmem:[%s11906_s12 + $0x18a8] sm:$0xf0] }
 0x232   : > { %6357 = vmatpush.bf16.msra.mxu2 %v8331_v54  ;;  %v8175_v54 = vor.u32 %v10880_v42, %v8174_v26  ;;  %v10619_v2 = vor.u32 %v11491_v51, %v10618_v23  ;;  %v10046_v26 = vld [vmem:[%s11906_s12 + $0x1538] sm:$0xf]  ;;  %v9110_v49 = vld [vmem:[%s11906_s12 + $0xde8] sm:$0xf] }
 0x233   : > { %6370 = vmatpush.bf16.msra.mxu3 %v8747_v58  ;;  %v8591_v58 = vor.u32 %v10984_v28, %v8590_v43  ;;  %v7084_v63 = vrot.slane %v7069_v53, 1  ;;  %v9163_v28 = vor.u32 %v11127_v34, %v9162_v33 }
 0x234   : > { %6333 = vmatpush.bf16.msra.mxu0 %v7395_v62  ;;  %6346 = vmatpush.bf16.msra.mxu1 %v7811_v3  ;;  %v7083_v62 = vrot.slane %v7069_v53, 6  ;;  %v10150_v3 = vld [vmem:[%s11906_s12 + $0x1608] sm:$0xf]  ;;  %v11218_v53 = vld [vmem:[%s11906_s12 + $0x1158] sm:$0xf0] }
 0x235   : > { %v10151_v18 = vor.u32 %v11374_v4, %v10150_v3  ;;  %v9942_v4 = vld [vmem:[%s11906_s12 + $0x1468] sm:$0xf] }
 0x236   : > { %6358 = vmatpush.bf16.msra.mxu2 %v8279_v10  ;;  %v11478_v10 = vld [vmem:[%s11906_s12 + $0x1978] sm:$0xf0]  ;;  %v7101_v12 = vsel %vm7098_vm2, %v7083_v62, %v7084_v63  ;;  %v9474_v63 = vld [vmem:[%s11906_s12 + $0x10c0] sm:$0xf] }
 0x237   : > { %6371 = vmatpush.bf16.msra.mxu3 %v8695_v50  ;;  %v11140_v50 = vld [vmem:[%s11906_s12 + $0xee8] sm:$0xf0]  ;;  %v12902_v17 = vsel %vm7102_vm3, %v7097_v11, %v7101_v12  ;;  %v10567_v20 = vor.u32 %v11478_v10, %v10566_v8  ;;  %v9059_v10 = vor.u32 %v11101_v61, %v9058_v60  ;;  %v10358_v11 = vld [vmem:[%s11906_s12 + $0x17a8] sm:$0xf]  ;;  %v11426_v12 = vld [vmem:[%s11906_s12 + $0x17d8] sm:$0xf0] }
 0x238   : > { %6334 = vmatpush.bf16.msra.mxu0 %v7343_v22  ;;  %6347 = vmatpush.bf16.msra.mxu1 %v7759_v27  ;;  %v11361_v22 = vld [vmem:[%s11906_s12 + $0x15d0] sm:$0xf0]  ;;  %v9215_v25 = vor.u32 %v11140_v50, %v9214_v16  ;;  %v10514_v27 = vld [vmem:[%s11906_s12 + $0x18e0] sm:$0xf]  ;;  %v6128_v9 = vpop.f32.mrf.mxu0  ;;  %v9475_v16 = vor.u32 %v11205_v1, %v9474_v63  ;;  %v11088_v50 = vld [vmem:[%s11906_s12 + $0xd48] sm:$0xf0] }
 0x239   : > { %v6129_v42 = vadd.f32 %v6128_v9, %v1457_v38  ;;  %v10835_v63 = vld [vmem:[%s11906_s12 + $0x564] sm:$0xf]  ;;  %v8020_v1 = vld [vmem:[%s11906_s12 + $0x594] sm:$0xf0] }
 0x23a   : > { %6359 = vmatpush.bf16.msra.mxu2 %v8227_v37  ;;  %v9578_v37 = vld [vmem:[%s11906_s12 + $0x1190] sm:$0xf]  ;;  %v6141_v43 = vpop.f32.mrf.mxu1 }
 0x23b   : > { %6372 = vmatpush.bf16.msra.mxu3 %v8643_v41  ;;  %6335 = vmatmul.bf16.vlgmr.msra.gmra.mxu0 %v12070_v0  ;;  %v11348_v41 = vld [vmem:[%s11906_s12 + $0x1568] sm:$0xf0]  ;;  %v9579_v47 = vor.u32 %v11231_v39, %v9578_v37  ;;  %v6142_v23 = vadd.f32 %v6141_v43, %v6129_v42  ;;  %v10306_v37 = vld [vmem:[%s11906_s12 + $0x1740] sm:$0xf]  ;;  %v11413_v39 = vld [vmem:[%s11906_s12 + $0x1770] sm:$0xf0] }
 0x23c   : > { %6379 = vmatpush.bf16.msrb.mxu0 %v9371_v30  ;;  %6392 = vmatpush.bf16.msrb.mxu1 %v9787_v36  ;;  %v11465_v30 = vld [vmem:[%s11906_s12 + $0x1910] sm:$0xf0]  ;;  %v10099_v36 = vor.u32 %v11361_v22, %v10098_v21  ;;  %v10047_v51 = vor.u32 %v11348_v41, %v10046_v26  ;;  %v7708_v21 = vld [vmem:[%s11906_s12 + $0x324] sm:$0xf0]  ;;  %v10744_v26 = vld [vmem:[%s11906_s12 + $0x28c] sm:$0xf] }
 0x23d   : > { %6348 = vmatmul.bf16.vlgmr.msra.gmra.mxu1 %v12075_v5  ;;  %v10515_v31 = vor.u32 %v11465_v30, %v10514_v27  ;;  %v10861_v22 = vld [vmem:[%s11906_s12 + $0x634] sm:$0xf]  ;;  %v8124_v27 = vld [vmem:[%s11906_s12 + $0x664] sm:$0xf0]  ;;  %v9890_v30 = vld [vmem:[%s11906_s12 + $0x1400] sm:$0xf] }
 0x23e   : > { %6360 = vmatpush.bf16.msra.mxu2 %v8175_v54  ;;  %v9994_v54 = vld [vmem:[%s11906_s12 + $0x14d0] sm:$0xf]  ;;  %v8127_v42 = vor.u32 %v10861_v22, %v8124_v27 }
 0x23f   : > { %6373 = vmatpush.bf16.msra.mxu3 %v8591_v58  ;;  %v11439_v58 = vld [vmem:[%s11906_s12 + $0x1840] sm:$0xf0]  ;;  %v9995_v62 = vor.u32 %v11335_v55, %v9994_v54  ;;  %v11069_v54 = vld [vmem:[%s11906_s12 + $0xcb4] sm:$0xf]  ;;  %v8956_v55 = vld [vmem:[%s11906_s12 + $0xce4] sm:$0xf0] }
 0x240   : > { %6380 = vmatpush.bf16.msrb.mxu0 %v9319_v15  ;;  %6393 = vmatpush.bf16.msrb.mxu1 %v9735_v24  ;;  %v11114_v15 = vld [vmem:[%s11906_s12 + $0xe18] sm:$0xf0]  ;;  %v10463_v24 = vor.u32 %v11452_v46, %v10462_v44  ;;  %v10411_v3 = vor.u32 %v11439_v58, %v10410_v57  ;;  %v10848_v44 = vld [vmem:[%s11906_s12 + $0x5cc] sm:$0xf]  ;;  %v8072_v46 = vld [vmem:[%s11906_s12 + $0x5fc] sm:$0xf0] }
 0x241   : > { %6361 = vmatmul.bf16.vlgmr.msra.gmra.mxu2 %v12090_v29  ;;  %v9111_v56 = vor.u32 %v11114_v15, %v9110_v49  ;;  %v9838_v49 = vld [vmem:[%s11906_s12 + $0x1398] sm:$0xf]  ;;  %v11296_v15 = vld [vmem:[%s11906_s12 + $0x13c8] sm:$0xf0]  ;;  %v10731_v58 = vld [vmem:[%s11906_s12 + $0x224] sm:$0xf] }
 0x242   : > { %6405 = vmatpush.bf16.msrb.mxu2 %v10203_v59  ;;  %6374 = vmatmul.bf16.vlgmr.msra.gmra.mxu3 %v12095_v35  ;;  %v9527_v59 = vor.u32 %v11218_v53, %v9526_v52  ;;  %v6143_v8 = vpop.f32.mrf.mxu1  ;;  %v10965_v52 = vld [vmem:[%s11906_s12 + $0x974] sm:$0xf]  ;;  %v8540_v53 = vld [vmem:[%s11906_s12 + $0x9a4] sm:$0xf0]  ;;  %v9839_v57 = vor.u32 %v11296_v15, %v9838_v49  ;;  %v7448_v49 = vld [vmem:[%s11906_s12 + $0x11c] sm:$0xf0] }
 0x243   : > { %6418 = vmatpush.bf16.msrb.mxu3 %v10619_v2  ;;  %v6130_v2 = vpop.f32.mrf.mxu0 }
 0x244   : > { %6381 = vmatpush.bf16.msrb.mxu0 %v9267_v6  ;;  %6394 = vmatpush.bf16.msrb.mxu1 %v9683_v14  ;;  %v11322_v6 = vld [vmem:[%s11906_s12 + $0x1498] sm:$0xf0]  ;;  %v9006_v14 = vld [vmem:[%s11906_s12 + $0xd18] sm:$0xf]  ;;  %v6154_v38 = vpop.f32.mrf.mxu2 }
 0x245   : > { %v9943_v48 = vor.u32 %v11322_v6, %v9942_v4  ;;  %v6155_v33 = vadd.f32 %v6154_v38, %v6142_v23  ;;  %v6167_v34 = vpop.f32.mrf.mxu3  ;;  %v10254_v23 = vld [vmem:[%s11906_s12 + $0x16d8] sm:$0xf]  ;;  %v10952_v4 = vld [vmem:[%s11906_s12 + $0x90c] sm:$0xf]  ;;  %v8488_v6 = vld [vmem:[%s11906_s12 + $0x93c] sm:$0xf0] }
 0x246   : > { %6406 = vmatpush.bf16.msrb.mxu2 %v10151_v18  ;;  %v9422_v18 = vld [vmem:[%s11906_s12 + $0x1058] sm:$0xf]  ;;  %v11043_v38 = vld [vmem:[%s11906_s12 + $0xbe4] sm:$0xf] }
 0x247   : > { %6419 = vmatpush.bf16.msrb.mxu3 %v10567_v20  ;;  %v10757_v20 = vld [vmem:[%s11906_s12 + $0x2f4] sm:$0xf]  ;;  %v9423_v9 = vor.u32 %v11192_v19, %v9422_v18  ;;  %v12950_v41 = vadd.f32 %v6167_v34, %v6155_v33  ;;  %v10822_v18 = vld [vmem:[%s11906_s12 + $0x4fc] sm:$0xf]  ;;  %v7968_v19 = vld [vmem:[%s11906_s12 + $0x52c] sm:$0xf0] }
 0x248   : > { %6382 = vmatpush.bf16.msrb.mxu0 %v9215_v25  ;;  %6395 = vmatpush.bf16.msrb.mxu1 %v9631_v32  ;;  %v10359_v25 = vor.u32 %v11426_v12, %v10358_v11  ;;  %v11309_v32 = vld [vmem:[%s11906_s12 + $0x1430] sm:$0xf0]  ;;  %v8904_v11 = vld [vmem:[%s11906_s12 + $0xc7c] sm:$0xf0]  ;;  %v8023_v12 = vor.u32 %v10835_v63, %v8020_v1  ;;  %v7971_v27 = vor.u32 %v10822_v18, %v7968_v19 }
 0x249   : > { %v9891_v43 = vor.u32 %v11309_v32, %v9890_v30  ;;  %v10705_v30 = vld [vmem:[%s11906_s12 + $0x154] sm:$0xf]  ;;  %v7500_v32 = vld [vmem:[%s11906_s12 + $0x184] sm:$0xf0] }
 0x24a   : > { %6407 = vmatpush.bf16.msrb.mxu2 %v10099_v36  ;;  %v9007_v36 = vor.u32 %v11088_v50, %v9006_v14  ;;  %v10718_v14 = vld [vmem:[%s11906_s12 + $0x1bc] sm:$0xf]  ;;  %v8491_v50 = vor.u32 %v10952_v4, %v8488_v6  ;;  %v10809_v34 = vld [vmem:[%s11906_s12 + $0x494] sm:$0xf] }
 0x24b   : > { %6420 = vmatpush.bf16.msrb.mxu3 %v10515_v31  ;;  %v7711_v31 = vor.u32 %v10757_v20, %v7708_v21  ;;  %v10939_v20 = vld [vmem:[%s11906_s12 + $0x8a4] sm:$0xf]  ;;  %v8436_v21 = vld [vmem:[%s11906_s12 + $0x8d4] sm:$0xf0]  ;;  %v11173_v19 = vld [vmem:[%s11906_s12 + $0xff4] sm:$0xf] }
 0x24c   : > { %6383 = vmatpush.bf16.msrb.mxu0 %v9163_v28  ;;  %6396 = vmatpush.bf16.msrb.mxu1 %v9579_v47  ;;  %v7656_v28 = vld [vmem:[%s11906_s12 + $0x2bc] sm:$0xf0]  ;;  %v10307_v47 = vor.u32 %v11413_v39, %v10306_v37  ;;  %v6156_v60 = vpop.f32.mrf.mxu2  ;;  %v8439_v33 = vor.u32 %v10939_v20, %v8436_v21  ;;  %v11277_v20 = vld [vmem:[%s11906_s12 + $0x1334] sm:$0xf] }
 0x24d   : > { %v6169_v2 = vpop.f32.mrf.mxu3 }
 0x24e   : > { %6408 = vmatpush.bf16.msrb.mxu2 %v10047_v51  ;;  %v11400_v51 = vld [vmem:[%s11906_s12 + $0x1708] sm:$0xf0] }
 0x24f   : > { %6421 = vmatpush.bf16.msrb.mxu3 %v10463_v24  ;;  %v7659_v24 = vor.u32 %v10744_v26, %v7656_v28  ;;  %v10255_v61 = vor.u32 %v11400_v51, %v10254_v23  ;;  %v11030_v28 = vld [vmem:[%s11906_s12 + $0xb7c] sm:$0xf]  ;;  %v10796_v51 = vld [vmem:[%s11906_s12 + $0x42c] sm:$0xf] }
 0x250   : > { %6384 = vmatpush.bf16.msrb.mxu0 %v9111_v56  ;;  %6397 = vmatpush.bf16.msrb.mxu1 %v9527_v59  ;;  %v8075_v56 = vor.u32 %v10848_v44, %v8072_v46  ;;  %v7604_v59 = vld [vmem:[%s11906_s12 + $0x254] sm:$0xf0]  ;;  %v8800_v44 = vld [vmem:[%s11906_s12 + $0xbac] sm:$0xf0]  ;;  %v10900_v2 = vld [vmem:[%s11906_s12 + $0x76c] sm:$0xf] }
 0x251   : > { %v7607_v8 = vor.u32 %v10731_v58, %v7604_v59  ;;  %v10679_v58 = vld [vmem:[%s11906_s12 + $0x84] sm:$0xf]  ;;  %v7396_v59 = vld [vmem:[%s11906_s12 + $0xb4] sm:$0xf0] }
 0x252   : > { %6409 = vmatpush.bf16.msrb.mxu2 %v9995_v62  ;;  %v8543_v62 = vor.u32 %v10965_v52, %v8540_v53  ;;  %v8803_v52 = vor.u32 %v11030_v28, %v8800_v44  ;;  %v10913_v53 = vld [vmem:[%s11906_s12 + $0x7d4] sm:$0xf]  ;;  %v7399_v6 = vor.u32 %v10679_v58, %v7396_v59  ;;  %v11264_v28 = vld [vmem:[%s11906_s12 + $0x12cc] sm:$0xf]  ;;  %v9736_v44 = vld [vmem:[%s11906_s12 + $0x12fc] sm:$0xf0] }
 0x253   : > { %6422 = vmatpush.bf16.msrb.mxu3 %v10411_v3  ;;  %v8959_v3 = vor.u32 %v11069_v54, %v8956_v55  ;;  %v11017_v55 = vld [vmem:[%s11906_s12 + $0xb14] sm:$0xf] }
 0x254   : > { %6385 = vmatpush.bf16.msrb.mxu0 %v9059_v10  ;;  %6398 = vmatpush.bf16.msrb.mxu1 %v9475_v16  ;;  %v11056_v10 = vld [vmem:[%s11906_s12 + $0xc4c] sm:$0xf]  ;;  %v7552_v16 = vld [vmem:[%s11906_s12 + $0x1ec] sm:$0xf0] }
 0x255   : > { %v7555_v22 = vor.u32 %v10718_v14, %v7552_v16  ;;  %v7344_v14 = vld [vmem:[%s11906_s12 + $0x4c] sm:$0xf0]  ;;  %v10770_v16 = vld [vmem:[%s11906_s12 + $0x35c] sm:$0xf] }
 0x256   : > { %6410 = vmatpush.bf16.msrb.mxu2 %v9943_v48  ;;  %v8907_v48 = vor.u32 %v11056_v10, %v8904_v11  ;;  %v8696_v10 = vld [vmem:[%s11906_s12 + $0xadc] sm:$0xf0]  ;;  %v10666_v11 = vld [vmem:[%s11906_s12 + $0x1c] sm:$0xf] }
 0x257   : > { %6423 = vmatpush.bf16.msrb.mxu3 %v10359_v25  ;;  %v8852_v25 = vld [vmem:[%s11906_s12 + $0xc14] sm:$0xf0] }
 0x258   : > { %6386 = vmatpush.bf16.msrb.mxu0 %v9007_v36  ;;  %6399 = vmatpush.bf16.msrb.mxu1 %v9423_v9  ;;  %v7916_v36 = vld [vmem:[%s11906_s12 + $0x4c4] sm:$0xf0]  ;;  %v6180_v37 = vpop.f32.mrf.mxu0  ;;  %v8855_v39 = vor.u32 %v11043_v38, %v8852_v25  ;;  %v10926_v9 = vld [vmem:[%s11906_s12 + $0x83c] sm:$0xf]  ;;  %v10887_v25 = vld [vmem:[%s11906_s12 + $0x704] sm:$0xf] }
 0x259   : > { %v6181_v26 = vadd.f32 %v6180_v37, %v12950_v41  ;;  %v7919_v46 = vor.u32 %v10809_v34, %v7916_v36  ;;  %v7864_v41 = vld [vmem:[%s11906_s12 + $0x45c] sm:$0xf0]  ;;  %v9788_v38 = vld [vmem:[%s11906_s12 + $0x1364] sm:$0xf0]  ;;  %v10991_v34 = vld [vmem:[%s11906_s12 + $0xa44] sm:$0xf] }
 0x25a   : > { %6411 = vmatpush.bf16.msrb.mxu2 %v9891_v43  ;;  %v7503_v43 = vor.u32 %v10705_v30, %v7500_v32  ;;  %v8644_v36 = vld [vmem:[%s11906_s12 + $0xa74] sm:$0xf0] }
 0x25b   : > { %6424 = vmatpush.bf16.msrb.mxu3 %v10307_v47  ;;  %6387 = vmatmul.bf16.vlgmr.msrb.gmra.mxu0 %v12117_v7  ;;  %v10692_v47 = vld [vmem:[%s11906_s12 + $0xec] sm:$0xf] }
 0x25c   : > { %6431 = vmatpush.bf16.msra.mxu0 %v7711_v31  ;;  %6444 = vmatpush.bf16.msra.mxu1 %v8127_v42  ;;  %v8384_v31 = vld [vmem:[%s11906_s12 + $0x86c] sm:$0xf0]  ;;  %v6193_v42 = vpop.f32.mrf.mxu1  ;;  %v7451_v54 = vor.u32 %v10692_v47, %v7448_v49  ;;  %v10874_v47 = vld [vmem:[%s11906_s12 + $0x69c] sm:$0xf] }
 0x25d   : > { %6400 = vmatmul.bf16.vlgmr.msrb.gmra.mxu1 %v12122_v13  ;;  %v6194_v15 = vadd.f32 %v6193_v42, %v6181_v26  ;;  %v8387_v23 = vor.u32 %v10926_v9, %v8384_v31  ;;  %v11160_v9 = vld [vmem:[%s11906_s12 + $0xf8c] sm:$0xf]  ;;  %v9791_v26 = vor.u32 %v11277_v20, %v9788_v38  ;;  %v8176_v49 = vld [vmem:[%s11906_s12 + $0x6cc] sm:$0xf0]  ;;  %v11459_v38 = vld [vmem:[%s11906_s12 + $0x18e4] sm:$0xf] }
 0x25e   : > { %6412 = vmatpush.bf16.msrb.mxu2 %v9839_v57  ;;  %v7867_v57 = vor.u32 %v10796_v51, %v7864_v41  ;;  %v11381_v51 = vld [vmem:[%s11906_s12 + $0x1674] sm:$0xf]  ;;  %v10204_v41 = vld [vmem:[%s11906_s12 + $0x16a4] sm:$0xf0] }
 0x25f   : > { %6425 = vmatpush.bf16.msrb.mxu3 %v10255_v61  ;;  %v10783_v61 = vld [vmem:[%s11906_s12 + $0x3c4] sm:$0xf] }
 0x260   : > { %6432 = vmatpush.bf16.msra.mxu0 %v7659_v24  ;;  %6445 = vmatpush.bf16.msra.mxu1 %v8075_v56  ;;  %v8332_v24 = vld [vmem:[%s11906_s12 + $0x804] sm:$0xf0]  ;;  %v6182_v63 = vpop.f32.mrf.mxu0  ;;  %v13052_v20 = vld [vmem:[%s12382_s7] sm:$0xff] }
 0x261   : > { %6413 = vmatmul.bf16.vlgmr.msrb.gmra.mxu2 %v12137_v40  ;;  %v8748_v56 = vld [vmem:[%s11906_s12 + $0xb44] sm:$0xf0]  ;;  %v8335_v60 = vor.u32 %v10913_v53, %v8332_v24  ;;  %v11485_v53 = vld [vmem:[%s11906_s12 + $0x19b4] sm:$0xf] }
 0x262   : > { %6457 = vmatpush.bf16.msra.mxu2 %v8543_v62  ;;  %6426 = vmatmul.bf16.vlgmr.msrb.gmra.mxu3 %v12142_v45  ;;  %v7812_v62 = vld [vmem:[%s11906_s12 + $0x3f4] sm:$0xf0]  ;;  %v8751_v1 = vor.u32 %v11017_v55, %v8748_v56  ;;  %v10620_v24 = vld [vmem:[%s11906_s12 + $0x19e4] sm:$0xf0]  ;;  %v8179_v55 = vor.u32 %v10874_v47, %v8176_v49  ;;  %v11147_v56 = vld [vmem:[%s11906_s12 + $0xf24] sm:$0xf] }
 0x263   : > { %6470 = vmatpush.bf16.msra.mxu3 %v8959_v3  ;;  %v8280_v3 = vld [vmem:[%s11906_s12 + $0x79c] sm:$0xf0]  ;;  %v11108_v49 = vld [vmem:[%s11906_s12 + $0xdec] sm:$0xf] }
 0x264   : > { %6433 = vmatpush.bf16.msra.mxu0 %v7607_v8  ;;  %6446 = vmatpush.bf16.msra.mxu1 %v8023_v12  ;;  %v6195_v4 = vpop.f32.mrf.mxu1  ;;  %v11004_v8 = vld [vmem:[%s11906_s12 + $0xaac] sm:$0xf]  ;;  %v7815_v12 = vor.u32 %v10783_v61, %v7812_v62  ;;  %v8283_v18 = vor.u32 %v10900_v2, %v8280_v3  ;;  %v6206_v21 = vpop.f32.mrf.mxu2  ;;  %v11251_v61 = vld [vmem:[%s11906_s12 + $0x1264] sm:$0xf]  ;;  %v9684_v62 = vld [vmem:[%s11906_s12 + $0x1294] sm:$0xf0] }
 0x265   : > { %v6207_v30 = vadd.f32 %v6206_v21, %v6194_v15  ;;  %v6219_v32 = vpop.f32.mrf.mxu3  ;;  %v10978_v15 = vld [vmem:[%s11906_s12 + $0x9dc] sm:$0xf]  ;;  %v11368_v2 = vld [vmem:[%s11906_s12 + $0x160c] sm:$0xf]  ;;  %v10152_v3 = vld [vmem:[%s11906_s12 + $0x163c] sm:$0xf0] }
 0x266   : > { %6458 = vmatpush.bf16.msra.mxu2 %v8491_v50  ;;  %v7760_v50 = vld [vmem:[%s11906_s12 + $0x38c] sm:$0xf0]  ;;  %v1458_v21 = vperm.slane %v13052_v20, 5 }
 0x267   : > { %6471 = vmatpush.bf16.msra.mxu3 %v8907_v48  ;;  %v9372_v48 = vld [vmem:[%s11906_s12 + $0x1024] sm:$0xf0]  ;;  %v7763_v37 = vor.u32 %v10770_v16, %v7760_v50  ;;  %v13021_v31 = vadd.f32 %v6219_v32, %v6207_v30  ;;  %v11238_v16 = vld [vmem:[%s11906_s12 + $0x11fc] sm:$0xf]  ;;  %v9632_v50 = vld [vmem:[%s11906_s12 + $0x122c] sm:$0xf0] }
 0x268   : > { %6434 = vmatpush.bf16.msra.mxu0 %v7555_v22  ;;  %6447 = vmatpush.bf16.msra.mxu1 %v7971_v27  ;;  %v8699_v22 = vor.u32 %v11004_v8, %v8696_v10  ;;  %v8228_v27 = vld [vmem:[%s11906_s12 + $0x734] sm:$0xf0]  ;;  %v10568_v8 = vld [vmem:[%s11906_s12 + $0x197c] sm:$0xf0]  ;;  %v9687_v10 = vor.u32 %v11251_v61, %v9684_v62  ;;  %v11121_v30 = vld [vmem:[%s11906_s12 + $0xe54] sm:$0xf] }
 0x269   : > { %v8231_v42 = vor.u32 %v10887_v25, %v8228_v27  ;;  %v10516_v25 = vld [vmem:[%s11906_s12 + $0x1914] sm:$0xf0]  ;;  %v9635_v27 = vor.u32 %v11238_v16, %v9632_v50  ;;  %v9164_v32 = vld [vmem:[%s11906_s12 + $0xe84] sm:$0xf0]  ;;  %v11199_v62 = vld [vmem:[%s11906_s12 + $0x10c4] sm:$0xf] }
 0x26a   : > { %6459 = vmatpush.bf16.msra.mxu2 %v8439_v33  ;;  %v7347_v33 = vor.u32 %v10666_v11, %v7344_v14  ;;  %v11134_v11 = vld [vmem:[%s11906_s12 + $0xebc] sm:$0xf]  ;;  %v10155_v14 = vor.u32 %v11368_v2, %v10152_v3  ;;  %v11316_v3 = vld [vmem:[%s11906_s12 + $0x146c] sm:$0xf]  ;;  %v9008_v16 = vld [vmem:[%s11906_s12 + $0xd4c] sm:$0xf0] }
 0x26b   : > { %6472 = vmatpush.bf16.msra.mxu3 %v8855_v39  ;;  %v9375_v39 = vor.u32 %v11173_v19, %v9372_v48  ;;  %v11355_v19 = vld [vmem:[%s11906_s12 + $0x15a4] sm:$0xf]  ;;  %v10100_v48 = vld [vmem:[%s11906_s12 + $0x15d4] sm:$0xf0]  ;;  %v11186_v50 = vld [vmem:[%s11906_s12 + $0x105c] sm:$0xf] }
 0x26c   : > { %6435 = vmatpush.bf16.msra.mxu0 %v7503_v43  ;;  %6448 = vmatpush.bf16.msra.mxu1 %v7919_v46  ;;  %v9320_v43 = vld [vmem:[%s11906_s12 + $0xfbc] sm:$0xf0]  ;;  %v8647_v46 = vor.u32 %v10991_v34, %v8644_v36  ;;  %v6208_v58 = vpop.f32.mrf.mxu2  ;;  %v11225_v34 = vld [vmem:[%s11906_s12 + $0x1194] sm:$0xf]  ;;  %v9580_v36 = vld [vmem:[%s11906_s12 + $0x11c4] sm:$0xf0] }
 0x26d   : > { %v6221_v63 = vpop.f32.mrf.mxu3  ;;  %v9583_v47 = vor.u32 %v11225_v34, %v9580_v36 }
 0x26e   : > { %6460 = vmatpush.bf16.msra.mxu2 %v8387_v23  ;;  %v8592_v23 = vld [vmem:[%s11906_s12 + $0xa0c] sm:$0xf0]  ;;  %v9476_v63 = vld [vmem:[%s11906_s12 + $0x10f4] sm:$0xf0] }
 0x26f   : > { %6473 = vmatpush.bf16.msra.mxu3 %v8803_v52  ;;  %v9323_v52 = vor.u32 %v11160_v9, %v9320_v43  ;;  %v8595_v59 = vor.u32 %v10978_v15, %v8592_v23  ;;  %v11342_v9 = vld [vmem:[%s11906_s12 + $0x153c] sm:$0xf]  ;;  %v9112_v15 = vld [vmem:[%s11906_s12 + $0xe1c] sm:$0xf0] }
 0x270   : > { %6436 = vmatpush.bf16.msra.mxu0 %v7451_v54  ;;  %6449 = vmatpush.bf16.msra.mxu1 %v7867_v57  ;;  %v9739_v54 = vor.u32 %v11264_v28, %v9736_v44  ;;  %v9268_v57 = vld [vmem:[%s11906_s12 + $0xf54] sm:$0xf0]  ;;  %v9167_v28 = vor.u32 %v11121_v30, %v9164_v32  ;;  %v11446_v44 = vld [vmem:[%s11906_s12 + $0x187c] sm:$0xf]  ;;  %v11303_v30 = vld [vmem:[%s11906_s12 + $0x1404] sm:$0xf] }
 0x271   : > { %v9271_v4 = vor.u32 %v11147_v56, %v9268_v57  ;;  %v11433_v56 = vld [vmem:[%s11906_s12 + $0x1814] sm:$0xf]  ;;  %v10412_v57 = vld [vmem:[%s11906_s12 + $0x1844] sm:$0xf0]  ;;  %v9892_v32 = vld [vmem:[%s11906_s12 + $0x1434] sm:$0xf0] }
 0x272   : > { %6461 = vmatpush.bf16.msra.mxu2 %v8335_v60  ;;  %v10207_v60 = vor.u32 %v11381_v51, %v10204_v41  ;;  %v11212_v41 = vld [vmem:[%s11906_s12 + $0x112c] sm:$0xf]  ;;  %v10415_v2 = vor.u32 %v11433_v56, %v10412_v57 }
 0x273   : > { %6474 = vmatpush.bf16.msra.mxu3 %v8751_v1  ;;  %v10623_v1 = vor.u32 %v11485_v53, %v10620_v24  ;;  %v11329_v24 = vld [vmem:[%s11906_s12 + $0x14d4] sm:$0xf]  ;;  %v11076_v56 = vld [vmem:[%s11906_s12 + $0xce8] sm:$0xf0] }
 0x274   : > { %6437 = vmatpush.bf16.msra.mxu0 %v7399_v6  ;;  %6450 = vmatpush.bf16.msra.mxu1 %v7815_v12  ;;  %v11472_v6 = vld [vmem:[%s11906_s12 + $0x194c] sm:$0xf]  ;;  %v9216_v12 = vld [vmem:[%s11906_s12 + $0xeec] sm:$0xf0] }
 0x276   : > { %6462 = vmatpush.bf16.msra.mxu2 %v8283_v18  ;;  %v10571_v18 = vor.u32 %v11472_v6, %v10568_v8 }
 0x277   : > { %6475 = vmatpush.bf16.msra.mxu3 %v8699_v22  ;;  %v9219_v22 = vor.u32 %v11134_v11, %v9216_v12  ;;  %v10360_v11 = vld [vmem:[%s11906_s12 + $0x17dc] sm:$0xf0]  ;;  %v11082_v12 = vld [vmem:[%s11906_s12 + $0xd1c] sm:$0xf] }
 0x278   : > { %6438 = vmatpush.bf16.msra.mxu0 %v7347_v33  ;;  %6451 = vmatpush.bf16.msra.mxu1 %v7763_v37  ;;  %v10103_v33 = vor.u32 %v11355_v19, %v10100_v48  ;;  %v6232_v37 = vpop.f32.mrf.mxu0  ;;  %v7714_v48 = vld [vmem:[%s11906_s12 + $0x2f8] sm:$0xf]  ;;  %v9011_v36 = vor.u32 %v11082_v12, %v9008_v16  ;;  %v11063_v12 = vld [vmem:[%s11906_s12 + $0xc80] sm:$0xf0]  ;;  %v7558_v16 = vld [vmem:[%s11906_s12 + $0x1c0] sm:$0xf] }
 0x27a   : > { %6463 = vmatpush.bf16.msra.mxu2 %v8231_v42  ;;  %v6233_v42 = vadd.f32 %v6232_v37, %v1458_v21  ;;  %v6245_v43 = vpop.f32.mrf.mxu1  ;;  %v10764_v21 = vld [vmem:[%s11906_s12 + $0x328] sm:$0xf0]  ;;  %v11407_v37 = vld [vmem:[%s11906_s12 + $0x1744] sm:$0xf] }
 0x27b   : > { %6476 = vmatpush.bf16.msra.mxu3 %v8647_v46  ;;  %6439 = vmatmul.bf16.vlgmr.msra.gmra.mxu0 %v12070_v0  ;;  %v10464_v46 = vld [vmem:[%s11906_s12 + $0x18ac] sm:$0xf0] }
 0x27c   : > { %6483 = vmatpush.bf16.msrb.mxu0 %v9375_v39  ;;  %6496 = vmatpush.bf16.msrb.mxu1 %v9791_v26  ;;  %v10519_v39 = vor.u32 %v11459_v38, %v10516_v25  ;;  %v10048_v26 = vld [vmem:[%s11906_s12 + $0x156c] sm:$0xf0]  ;;  %v6246_v23 = vadd.f32 %v6245_v43, %v6233_v42  ;;  %v10467_v53 = vor.u32 %v11446_v44, %v10464_v46  ;;  %v10751_v46 = vld [vmem:[%s11906_s12 + $0x2c0] sm:$0xf0] }
 0x27d   : > { %6452 = vmatmul.bf16.vlgmr.msra.gmra.mxu1 %v12075_v5  ;;  %v10051_v51 = vor.u32 %v11342_v9, %v10048_v26  ;;  %v7715_v26 = vor.u32 %v10764_v21, %v7714_v48  ;;  %v7662_v42 = vld [vmem:[%s11906_s12 + $0x290] sm:$0xf]  ;;  %v9895_v44 = vor.u32 %v11303_v30, %v9892_v32  ;;  %v10829_v48 = vld [vmem:[%s11906_s12 + $0x530] sm:$0xf0]  ;;  %v11050_v30 = vld [vmem:[%s11906_s12 + $0xc18] sm:$0xf0] }
 0x27e   : > { %6464 = vmatpush.bf16.msra.mxu2 %v8179_v55  ;;  %v9115_v55 = vor.u32 %v11108_v49, %v9112_v15  ;;  %v10855_v49 = vld [vmem:[%s11906_s12 + $0x600] sm:$0xf0] }
 0x27f   : > { %6477 = vmatpush.bf16.msra.mxu3 %v8595_v59  ;;  %v11095_v59 = vld [vmem:[%s11906_s12 + $0xd84] sm:$0xf] }
 0x280   : > { %6484 = vmatpush.bf16.msrb.mxu0 %v9323_v52  ;;  %6497 = vmatpush.bf16.msrb.mxu1 %v9739_v54  ;;  %v9528_v52 = vld [vmem:[%s11906_s12 + $0x115c] sm:$0xf0]  ;;  %v9996_v54 = vld [vmem:[%s11906_s12 + $0x1504] sm:$0xf0] }
 0x281   : > { %6465 = vmatmul.bf16.vlgmr.msra.gmra.mxu2 %v12090_v29  ;;  %v9531_v58 = vor.u32 %v11212_v41, %v9528_v52  ;;  %v9999_v61 = vor.u32 %v11329_v24, %v9996_v54  ;;  %v11394_v41 = vld [vmem:[%s11906_s12 + $0x16dc] sm:$0xf]  ;;  %v10256_v52 = vld [vmem:[%s11906_s12 + $0x170c] sm:$0xf0]  ;;  %v10972_v24 = vld [vmem:[%s11906_s12 + $0x9a8] sm:$0xf0]  ;;  %v7663_v54 = vor.u32 %v10751_v46, %v7662_v42 }
 0x282   : > { %6509 = vmatpush.bf16.msrb.mxu2 %v10207_v60  ;;  %6478 = vmatmul.bf16.vlgmr.msra.gmra.mxu3 %v12095_v35  ;;  %v9060_v60 = vld [vmem:[%s11906_s12 + $0xdb4] sm:$0xf0]  ;;  %v6247_v6 = vpop.f32.mrf.mxu1  ;;  %v8390_v42 = vld [vmem:[%s11906_s12 + $0x840] sm:$0xf] }
 0x283   : > { %6522 = vmatpush.bf16.msrb.mxu3 %v10623_v1  ;;  %v6234_v1 = vpop.f32.mrf.mxu0  ;;  %v9063_v8 = vor.u32 %v11095_v59, %v9060_v60  ;;  %v7610_v59 = vld [vmem:[%s11906_s12 + $0x228] sm:$0xf]  ;;  %v10738_v60 = vld [vmem:[%s11906_s12 + $0x258] sm:$0xf0]  ;;  %v8494_v6 = vld [vmem:[%s11906_s12 + $0x910] sm:$0xf] }
 0x284   : > { %6485 = vmatpush.bf16.msrb.mxu0 %v9271_v4  ;;  %6498 = vmatpush.bf16.msrb.mxu1 %v9687_v10  ;;  %v9944_v4 = vld [vmem:[%s11906_s12 + $0x149c] sm:$0xf0]  ;;  %v11420_v10 = vld [vmem:[%s11906_s12 + $0x17ac] sm:$0xf]  ;;  %v6258_v38 = vpop.f32.mrf.mxu2  ;;  %v8026_v1 = vld [vmem:[%s11906_s12 + $0x568] sm:$0xf] }
 0x285   : > { %v9947_v19 = vor.u32 %v11316_v3, %v9944_v4  ;;  %v10363_v25 = vor.u32 %v11420_v10, %v10360_v11  ;;  %v6271_v34 = vpop.f32.mrf.mxu3  ;;  %v7611_v10 = vor.u32 %v10738_v60, %v7610_v59  ;;  %v8910_v11 = vld [vmem:[%s11906_s12 + $0xc50] sm:$0xf]  ;;  %v11024_v59 = vld [vmem:[%s11906_s12 + $0xb48] sm:$0xf0] }
 0x286   : > { %6510 = vmatpush.bf16.msrb.mxu2 %v10155_v14  ;;  %v9479_v14 = vor.u32 %v11199_v62, %v9476_v63  ;;  %v10259_v62 = vor.u32 %v11394_v41, %v10256_v52  ;;  %v8911_v21 = vor.u32 %v11063_v12, %v8910_v11  ;;  %v10699_v41 = vld [vmem:[%s11906_s12 + $0x120] sm:$0xf0]  ;;  %v8702_v12 = vld [vmem:[%s11906_s12 + $0xab0] sm:$0xf] }
 0x287   : > { %6523 = vmatpush.bf16.msrb.mxu3 %v10571_v18  ;;  %v9424_v18 = vld [vmem:[%s11906_s12 + $0x108c] sm:$0xf0] }
 0x288   : > { %6486 = vmatpush.bf16.msrb.mxu0 %v9219_v22  ;;  %6499 = vmatpush.bf16.msrb.mxu1 %v9635_v27  ;;  %v8130_v22 = vld [vmem:[%s11906_s12 + $0x638] sm:$0xf]  ;;  %v10868_v27 = vld [vmem:[%s11906_s12 + $0x668] sm:$0xf0]  ;;  %v9427_v9 = vor.u32 %v11186_v50, %v9424_v18  ;;  %v10725_v50 = vld [vmem:[%s11906_s12 + $0x1f0] sm:$0xf0] }
 0x28a   : > { %6511 = vmatpush.bf16.msrb.mxu2 %v10103_v33  ;;  %v6259_v33 = vadd.f32 %v6258_v38, %v6246_v23  ;;  %v11290_v23 = vld [vmem:[%s11906_s12 + $0x139c] sm:$0xf] }
 0x28b   : > { %6524 = vmatpush.bf16.msrb.mxu3 %v10519_v39  ;;  %v10308_v39 = vld [vmem:[%s11906_s12 + $0x1774] sm:$0xf0]  ;;  %v10946_v38 = vld [vmem:[%s11906_s12 + $0x8d8] sm:$0xf0] }
 0x28c   : > { %6487 = vmatpush.bf16.msrb.mxu0 %v9167_v28  ;;  %6500 = vmatpush.bf16.msrb.mxu1 %v9583_v47  ;;  %v13095_v43 = vadd.f32 %v6271_v34, %v6259_v33  ;;  %v8131_v28 = vor.u32 %v10868_v27, %v8130_v22  ;;  %v8078_v47 = vld [vmem:[%s11906_s12 + $0x5d0] sm:$0xf]  ;;  %v10311_v15 = vor.u32 %v11407_v37, %v10308_v39  ;;  %v8442_v22 = vld [vmem:[%s11906_s12 + $0x8a8] sm:$0xf]  ;;  %v7506_v33 = vld [vmem:[%s11906_s12 + $0x158] sm:$0xf] }
 0x28d   : > { %v8079_v57 = vor.u32 %v10855_v49, %v8078_v47  ;;  %v6273_v3 = vpop.f32.mrf.mxu3  ;;  %v8858_v27 = vld [vmem:[%s11906_s12 + $0xbe8] sm:$0xf]  ;;  %v10712_v34 = vld [vmem:[%s11906_s12 + $0x188] sm:$0xf0]  ;;  %v7922_v37 = vld [vmem:[%s11906_s12 + $0x498] sm:$0xf] }
 0x28e   : > { %6512 = vmatpush.bf16.msrb.mxu2 %v10051_v51  ;;  %v9840_v51 = vld [vmem:[%s11906_s12 + $0x13cc] sm:$0xf0]  ;;  %v10816_v39 = vld [vmem:[%s11906_s12 + $0x4c8] sm:$0xf0]  ;;  %v7507_v47 = vor.u32 %v10712_v34, %v7506_v33  ;;  %v8806_v49 = vld [vmem:[%s11906_s12 + $0xb80] sm:$0xf] }
 0x28f   : > { %6525 = vmatpush.bf16.msrb.mxu3 %v10467_v53  ;;  %v8546_v53 = vld [vmem:[%s11906_s12 + $0x978] sm:$0xf]  ;;  %v8234_v33 = vld [vmem:[%s11906_s12 + $0x708] sm:$0xf]  ;;  %v10894_v34 = vld [vmem:[%s11906_s12 + $0x738] sm:$0xf0] }
 0x290   : > { %6488 = vmatpush.bf16.msrb.mxu0 %v9115_v55  ;;  %6501 = vmatpush.bf16.msrb.mxu1 %v9531_v58  ;;  %v8962_v55 = vld [vmem:[%s11906_s12 + $0xcb8] sm:$0xf]  ;;  %v9843_v58 = vor.u32 %v11290_v23, %v9840_v51  ;;  %v8547_v63 = vor.u32 %v10972_v24, %v8546_v53  ;;  %v7923_v23 = vor.u32 %v10816_v39, %v7922_v37  ;;  %v7454_v51 = vld [vmem:[%s11906_s12 + $0xf0] sm:$0xf] }
 0x291   : > { %v8963_v4 = vor.u32 %v11076_v56, %v8962_v55  ;;  %v7870_v24 = vld [vmem:[%s11906_s12 + $0x430] sm:$0xf]  ;;  %v8338_v55 = vld [vmem:[%s11906_s12 + $0x7d8] sm:$0xf]  ;;  %v10920_v56 = vld [vmem:[%s11906_s12 + $0x808] sm:$0xf0] }
 0x292   : > { %6513 = vmatpush.bf16.msrb.mxu2 %v9999_v61  ;;  %v6260_v61 = vpop.f32.mrf.mxu2 }
 0x293   : > { %6526 = vmatpush.bf16.msrb.mxu3 %v10415_v2  ;;  %v10842_v2 = vld [vmem:[%s11906_s12 + $0x598] sm:$0xf0]  ;;  %v7402_v61 = vld [vmem:[%s11906_s12 + $0x88] sm:$0xf] }
 0x294   : > { %6489 = vmatpush.bf16.msrb.mxu0 %v9063_v8  ;;  %6502 = vmatpush.bf16.msrb.mxu1 %v9479_v14  ;;  %v10959_v8 = vld [vmem:[%s11906_s12 + $0x940] sm:$0xf0]  ;;  %v8027_v14 = vor.u32 %v10842_v2, %v8026_v1  ;;  %v7818_v1 = vld [vmem:[%s11906_s12 + $0x3c8] sm:$0xf]  ;;  %v10790_v2 = vld [vmem:[%s11906_s12 + $0x3f8] sm:$0xf0] }
 0x295   : > { %v8495_v18 = vor.u32 %v10959_v8, %v8494_v6  ;;  %v8286_v6 = vld [vmem:[%s11906_s12 + $0x770] sm:$0xf]  ;;  %v10907_v8 = vld [vmem:[%s11906_s12 + $0x7a0] sm:$0xf0] }
 0x296   : > { %6514 = vmatpush.bf16.msrb.mxu2 %v9947_v19  ;;  %v7974_v19 = vld [vmem:[%s11906_s12 + $0x500] sm:$0xf] }
 0x297   : > { %6527 = vmatpush.bf16.msrb.mxu3 %v10363_v25  ;;  %v7559_v25 = vor.u32 %v10725_v50, %v7558_v16  ;;  %v7975_v32 = vor.u32 %v10829_v48, %v7974_v19  ;;  %v7350_v16 = vld [vmem:[%s11906_s12 + $0x20] sm:$0xf]  ;;  %v7819_v50 = vor.u32 %v10790_v2, %v7818_v1  ;;  %v10777_v48 = vld [vmem:[%s11906_s12 + $0x390] sm:$0xf0]  ;;  %v11154_v1 = vld [vmem:[%s11906_s12 + $0xf58] sm:$0xf0] }
 0x298   : > { %6490 = vmatpush.bf16.msrb.mxu0 %v9011_v36  ;;  %6503 = vmatpush.bf16.msrb.mxu1 %v9427_v9  ;;  %v8443_v36 = vor.u32 %v10946_v38, %v8442_v22  ;;  %v6284_v9 = vpop.f32.mrf.mxu0  ;;  %v7766_v19 = vld [vmem:[%s11906_s12 + $0x360] sm:$0xf]  ;;  %v9378_v22 = vld [vmem:[%s11906_s12 + $0xff8] sm:$0xf]  ;;  %v11180_v38 = vld [vmem:[%s11906_s12 + $0x1028] sm:$0xf0] }
 0x29a   : > { %6515 = vmatpush.bf16.msrb.mxu2 %v9895_v44  ;;  %v6285_v44 = vadd.f32 %v6284_v9, %v13095_v43  ;;  %v6297_v46 = vpop.f32.mrf.mxu1  ;;  %v10803_v43 = vld [vmem:[%s11906_s12 + $0x460] sm:$0xf0]  ;;  %v8650_v9 = vld [vmem:[%s11906_s12 + $0xa48] sm:$0xf] }
 0x29b   : > { %6528 = vmatpush.bf16.msrb.mxu3 %v10311_v15  ;;  %6491 = vmatmul.bf16.vlgmr.msrb.gmra.mxu0 %v12117_v7  ;;  %v11037_v15 = vld [vmem:[%s11906_s12 + $0xbb0] sm:$0xf0]  ;;  %v7871_v60 = vor.u32 %v10803_v43, %v7870_v24  ;;  %v8598_v24 = vld [vmem:[%s11906_s12 + $0x9e0] sm:$0xf] }
 0x29c   : > { %6535 = vmatpush.bf16.msra.mxu0 %v7715_v26  ;;  %6548 = vmatpush.bf16.msra.mxu1 %v8131_v28  ;;  %v8859_v26 = vor.u32 %v11050_v30, %v8858_v27  ;;  %v10933_v28 = vld [vmem:[%s11906_s12 + $0x870] sm:$0xf0]  ;;  %v6298_v52 = vadd.f32 %v6297_v46, %v6285_v44  ;;  %v9326_v44 = vld [vmem:[%s11906_s12 + $0xf90] sm:$0xf]  ;;  %v11167_v46 = vld [vmem:[%s11906_s12 + $0xfc0] sm:$0xf0] }
 0x29d   : > { %6504 = vmatmul.bf16.vlgmr.msrb.gmra.mxu1 %v12122_v13  ;;  %v8391_v53 = vor.u32 %v10933_v28, %v8390_v42  ;;  %v7767_v42 = vor.u32 %v10777_v48, %v7766_v19  ;;  %v9379_v28 = vor.u32 %v11180_v38, %v9378_v22  ;;  %v10985_v43 = vld [vmem:[%s11906_s12 + $0xa10] sm:$0xf0]  ;;  %v9222_v48 = vld [vmem:[%s11906_s12 + $0xec0] sm:$0xf] }
 0x29e   : > { %6516 = vmatpush.bf16.msrb.mxu2 %v9843_v58  ;;  %v8754_v58 = vld [vmem:[%s11906_s12 + $0xb18] sm:$0xf]  ;;  %v9638_v38 = vld [vmem:[%s11906_s12 + $0x1200] sm:$0xf] }
 0x29f   : > { %6529 = vmatpush.bf16.msrb.mxu3 %v10259_v62  ;;  %v10686_v62 = vld [vmem:[%s11906_s12 + $0xb8] sm:$0xf0] }
 0x2a0   : > { %6536 = vmatpush.bf16.msra.mxu0 %v7663_v54  ;;  %6549 = vmatpush.bf16.msra.mxu1 %v8079_v57  ;;  %v8807_v54 = vor.u32 %v11037_v15, %v8806_v49  ;;  %v7455_v57 = vor.u32 %v10699_v41, %v7454_v51  ;;  %v6286_v3 = vpop.f32.mrf.mxu0  ;;  %v7403_v11 = vor.u32 %v10686_v62, %v7402_v61  ;;  %v11271_v51 = vld [vmem:[%s11906_s12 + $0x1300] sm:$0xf0]  ;;  %v8182_v41 = vld [vmem:[%s11906_s12 + $0x6a0] sm:$0xf] }
 0x2a1   : > { %6517 = vmatmul.bf16.vlgmr.msrb.gmra.mxu2 %v12137_v40  ;;  %v8235_v15 = vor.u32 %v10894_v34, %v8234_v33  ;;  %v8599_v3 = vor.u32 %v10985_v43, %v8598_v24  ;;  %v1459_v33 = vperm.slane %v13052_v20, 6  ;;  %v9118_v24 = vld [vmem:[%s11906_s12 + $0xdf0] sm:$0xf]  ;;  %v11115_v43 = vld [vmem:[%s11906_s12 + $0xe20] sm:$0xf0] }
 0x2a2   : > { %6561 = vmatpush.bf16.msra.mxu2 %v8547_v63  ;;  %6530 = vmatmul.bf16.vlgmr.msrb.gmra.mxu3 %v12142_v45  ;;  %v8339_v63 = vor.u32 %v10920_v56, %v8338_v55  ;;  %v10210_v56 = vld [vmem:[%s11906_s12 + $0x1678] sm:$0xf] }
 0x2a3   : > { %6574 = vmatpush.bf16.msra.mxu3 %v8963_v4  ;;  %v8755_v4 = vor.u32 %v11024_v59, %v8754_v58  ;;  %v9327_v58 = vor.u32 %v11167_v46, %v9326_v44  ;;  %v10626_v59 = vld [vmem:[%s11906_s12 + $0x19b8] sm:$0xf]  ;;  %v11232_v44 = vld [vmem:[%s11906_s12 + $0x11c8] sm:$0xf0] }
 0x2a4   : > { %6537 = vmatpush.bf16.msra.mxu0 %v7611_v10  ;;  %6550 = vmatpush.bf16.msra.mxu1 %v8027_v14  ;;  %v6299_v10 = vpop.f32.mrf.mxu1  ;;  %v11011_v14 = vld [vmem:[%s11906_s12 + $0xae0] sm:$0xf0]  ;;  %v6310_v27 = vpop.f32.mrf.mxu2 }
 0x2a5   : > { %v8703_v30 = vor.u32 %v11011_v14, %v8702_v12  ;;  %v6323_v37 = vpop.f32.mrf.mxu3  ;;  %v10158_v12 = vld [vmem:[%s11906_s12 + $0x1610] sm:$0xf]  ;;  %v11375_v14 = vld [vmem:[%s11906_s12 + $0x1640] sm:$0xf0] }
 0x2a6   : > { %6562 = vmatpush.bf16.msra.mxu2 %v8495_v18  ;;  %v10673_v18 = vld [vmem:[%s11906_s12 + $0x50] sm:$0xf0]  ;;  %v10159_v22 = vor.u32 %v11375_v14, %v10158_v12  ;;  %v9950_v12 = vld [vmem:[%s11906_s12 + $0x1470] sm:$0xf]  ;;  %v11323_v14 = vld [vmem:[%s11906_s12 + $0x14a0] sm:$0xf0] }
 0x2a7   : > { %6575 = vmatpush.bf16.msra.mxu3 %v8911_v21  ;;  %v8287_v21 = vor.u32 %v10907_v8, %v8286_v6  ;;  %v7351_v39 = vor.u32 %v10673_v18, %v7350_v16  ;;  %v9690_v6 = vld [vmem:[%s11906_s12 + $0x1268] sm:$0xf]  ;;  %v11258_v8 = vld [vmem:[%s11906_s12 + $0x1298] sm:$0xf0]  ;;  %v11479_v18 = vld [vmem:[%s11906_s12 + $0x1980] sm:$0xf0] }
 0x2a8   : > { %6538 = vmatpush.bf16.msra.mxu0 %v7559_v25  ;;  %6551 = vmatpush.bf16.msra.mxu1 %v7975_v32  ;;  %v9794_v25 = vld [vmem:[%s11906_s12 + $0x1338] sm:$0xf]  ;;  %v11284_v32 = vld [vmem:[%s11906_s12 + $0x1368] sm:$0xf0]  ;;  %v9691_v19 = vor.u32 %v11258_v8, %v9690_v6  ;;  %v9482_v6 = vld [vmem:[%s11906_s12 + $0x10c8] sm:$0xf] }
 0x2a9   : > { %v9795_v49 = vor.u32 %v11284_v32, %v9794_v25  ;;  %v11245_v25 = vld [vmem:[%s11906_s12 + $0x1230] sm:$0xf0]  ;;  %v11362_v32 = vld [vmem:[%s11906_s12 + $0x15d8] sm:$0xf0] }
 0x2aa   : > { %6563 = vmatpush.bf16.msra.mxu2 %v8443_v36  ;;  %v6311_v36 = vadd.f32 %v6310_v27, %v6298_v52  ;;  %v11206_v8 = vld [vmem:[%s11906_s12 + $0x10f8] sm:$0xf0] }
 0x2ab   : > { %6576 = vmatpush.bf16.msra.mxu3 %v8859_v26  ;;  %v10998_v26 = vld [vmem:[%s11906_s12 + $0xa78] sm:$0xf0] }
 0x2ac   : > { %6539 = vmatpush.bf16.msra.mxu0 %v7507_v47  ;;  %6552 = vmatpush.bf16.msra.mxu1 %v7923_v23  ;;  %v6324_v47 = vadd.f32 %v6323_v37, %v6311_v36  ;;  %v9742_v23 = vld [vmem:[%s11906_s12 + $0x12d0] sm:$0xf]  ;;  %v8651_v52 = vor.u32 %v10998_v26, %v8650_v9  ;;  %v6312_v2 = vpop.f32.mrf.mxu2  ;;  %v10522_v36 = vld [vmem:[%s11906_s12 + $0x18e8] sm:$0xf]  ;;  %v11466_v37 = vld [vmem:[%s11906_s12 + $0x1918] sm:$0xf0] }
 0x2ad   : > { %v9743_v62 = vor.u32 %v11271_v51, %v9742_v23  ;;  %v6325_v10 = vpop.f32.mrf.mxu3  ;;  %v9170_v9 = vld [vmem:[%s11906_s12 + $0xe58] sm:$0xf]  ;;  %v11128_v26 = vld [vmem:[%s11906_s12 + $0xe88] sm:$0xf0]  ;;  %v10523_v46 = vor.u32 %v11466_v37, %v10522_v36  ;;  %v9066_v2 = vld [vmem:[%s11906_s12 + $0xd88] sm:$0xf] }
 0x2ae   : > { %6564 = vmatpush.bf16.msra.mxu2 %v8391_v53  ;;  %v10881_v53 = vld [vmem:[%s11906_s12 + $0x6d0] sm:$0xf0]  ;;  %v7060_v55 = vmax.f32 %v6324_v47, 0.0  ;;  %v10054_v47 = vld [vmem:[%s11906_s12 + $0x1540] sm:$0xf]  ;;  %v9171_v51 = vor.u32 %v11128_v26, %v9170_v9 }
 0x2af   : > { %6577 = vmatpush.bf16.msra.mxu3 %v8807_v54  ;;  %v7059_v54 = vmax.f32 %v13021_v31, 0.0  ;;  %v8183_v31 = vor.u32 %v10881_v53, %v8182_v41  ;;  %v10470_v41 = vld [vmem:[%s11906_s12 + $0x1880] sm:$0xf]  ;;  %v8132_v37 = vld [vmem:[%s11906_s12 + $0x66c] sm:$0xf0] }
 0x2b0   : > { %6540 = vmatpush.bf16.msra.mxu0 %v7455_v57  ;;  %6553 = vmatpush.bf16.msra.mxu1 %v7871_v60  ;;  %v11388_v57 = vld [vmem:[%s11906_s12 + $0x16a8] sm:$0xf0]  ;;  %v11310_v9 = vld [vmem:[%s11906_s12 + $0x1438] sm:$0xf0] }
 0x2b1   : > { %v11492_v60 = vld [vmem:[%s11906_s12 + $0x19e8] sm:$0xf0]  ;;  %v13178_v61 = vpack.c.bf16 %v7060_v55, %v7059_v54 }
 0x2b2   : > { %6565 = vmatpush.bf16.msra.mxu2 %v8339_v63  ;;  %v9274_v63 = vld [vmem:[%s11906_s12 + $0xf28] sm:$0xf] }
 0x2b3   : > { %6578 = vmatpush.bf16.msra.mxu3 %v8755_v4  ;;  %v10211_v4 = vor.u32 %v11388_v57, %v10210_v56  ;;  %v9275_v16 = vor.u32 %v11154_v1, %v9274_v63  ;;  %v9534_v56 = vld [vmem:[%s11906_s12 + $0x1130] sm:$0xf]  ;;  %v11219_v57 = vld [vmem:[%s11906_s12 + $0x1160] sm:$0xf0]  ;;  %v11440_v63 = vld [vmem:[%s11906_s12 + $0x1848] sm:$0xf0] }
 0x2b4   : > { %6541 = vmatpush.bf16.msra.mxu0 %v7403_v11  ;;  %6554 = vmatpush.bf16.msra.mxu1 %v7819_v50  ;;  %v10627_v11 = vor.u32 %v11492_v60, %v10626_v59  ;;  %v10574_v50 = vld [vmem:[%s11906_s12 + $0x1950] sm:$0xf]  ;;  %v10002_v59 = vld [vmem:[%s11906_s12 + $0x14d8] sm:$0xf]  ;;  %v11336_v60 = vld [vmem:[%s11906_s12 + $0x1508] sm:$0xf0]  ;;  %v9535_v1 = vor.u32 %v11219_v57, %v9534_v56 }
 0x2b5   : > { %v10575_v27 = vor.u32 %v11479_v18, %v10574_v50  ;;  %v10366_v18 = vld [vmem:[%s11906_s12 + $0x17b0] sm:$0xf]  ;;  %v11401_v56 = vld [vmem:[%s11906_s12 + $0x1710] sm:$0xf0]  ;;  %v10966_v57 = vld [vmem:[%s11906_s12 + $0x97c] sm:$0xf] }
 0x2b6   : > { %6566 = vmatpush.bf16.msra.mxu2 %v8287_v21  ;;  %v11141_v21 = vld [vmem:[%s11906_s12 + $0xef0] sm:$0xf0] }
 0x2b7   : > { %6579 = vmatpush.bf16.msra.mxu3 %v8703_v30  ;;  %v10106_v30 = vld [vmem:[%s11906_s12 + $0x15a8] sm:$0xf]  ;;  %v9223_v34 = vor.u32 %v11141_v21, %v9222_v48  ;;  %v9014_v48 = vld [vmem:[%s11906_s12 + $0xd20] sm:$0xf]  ;;  %v9483_v21 = vor.u32 %v11206_v8, %v9482_v6  ;;  %v10836_v8 = vld [vmem:[%s11906_s12 + $0x56c] sm:$0xf] }
 0x2b8   : > { %6542 = vmatpush.bf16.msra.mxu0 %v7351_v39  ;;  %6555 = vmatpush.bf16.msra.mxu1 %v7767_v42  ;;  %v9639_v39 = vor.u32 %v11245_v25, %v9638_v38  ;;  %v10107_v42 = vor.u32 %v11362_v32, %v10106_v30  ;;  %v6336_v20 = vpop.f32.mrf.mxu0  ;;  %v9430_v38 = vld [vmem:[%s11906_s12 + $0x1060] sm:$0xf]  ;;  %v11193_v25 = vld [vmem:[%s11906_s12 + $0x1090] sm:$0xf0]  ;;  %v10758_v30 = vld [vmem:[%s11906_s12 + $0x2fc] sm:$0xf] }
 0x2b9   : > { %v7716_v32 = vld [vmem:[%s11906_s12 + $0x32c] sm:$0xf0] }
 0x2ba   : > { %6567 = vmatpush.bf16.msra.mxu2 %v8235_v15  ;;  %v6337_v15 = vadd.f32 %v6336_v20, %v1459_v33  ;;  %v6349_v23 = vpop.f32.mrf.mxu1  ;;  %v10862_v33 = vld [vmem:[%s11906_s12 + $0x63c] sm:$0xf] }
 0x2bb   : > { %6580 = vmatpush.bf16.msra.mxu3 %v8651_v52  ;;  %6543 = vmatmul.bf16.vlgmr.msra.gmra.mxu0 %v12070_v0  ;;  %v11453_v52 = vld [vmem:[%s11906_s12 + $0x18b0] sm:$0xf0]  ;;  %v11414_v20 = vld [vmem:[%s11906_s12 + $0x1778] sm:$0xf0] }
 0x2bc   : > { %6587 = vmatpush.bf16.msrb.mxu0 %v9379_v28  ;;  %6600 = vmatpush.bf16.msrb.mxu1 %v9795_v49  ;;  %v9586_v28 = vld [vmem:[%s11906_s12 + $0x1198] sm:$0xf]  ;;  %v11349_v49 = vld [vmem:[%s11906_s12 + $0x1570] sm:$0xf0]  ;;  %v6350_v54 = vadd.f32 %v6349_v23, %v6337_v15  ;;  %v8135_v23 = vor.u32 %v10862_v33, %v8132_v37  ;;  %v8444_v33 = vld [vmem:[%s11906_s12 + $0x8dc] sm:$0xf0] }
 0x2bd   : > { %6556 = vmatmul.bf16.vlgmr.msra.gmra.mxu1 %v12075_v5  ;;  %v9587_v53 = vor.u32 %v11232_v44, %v9586_v28  ;;  %v10055_v55 = vor.u32 %v11349_v49, %v10054_v47  ;;  %v10314_v44 = vld [vmem:[%s11906_s12 + $0x1748] sm:$0xf]  ;;  %v7719_v47 = vor.u32 %v10758_v30, %v7716_v32  ;;  %v10745_v49 = vld [vmem:[%s11906_s12 + $0x294] sm:$0xf]  ;;  %v10940_v32 = vld [vmem:[%s11906_s12 + $0x8ac] sm:$0xf] }
 0x2be   : > { %6568 = vmatpush.bf16.msra.mxu2 %v8183_v31  ;;  %v10418_v31 = vld [vmem:[%s11906_s12 + $0x1818] sm:$0xf]  ;;  %v8860_v37 = vld [vmem:[%s11906_s12 + $0xc1c] sm:$0xf0] }
 0x2bf   : > { %6581 = vmatpush.bf16.msra.mxu3 %v8599_v3  ;;  %v11102_v3 = vld [vmem:[%s11906_s12 + $0xdb8] sm:$0xf0] }
 0x2c0   : > { %6588 = vmatpush.bf16.msrb.mxu0 %v9327_v58  ;;  %6601 = vmatpush.bf16.msrb.mxu1 %v9743_v62  ;;  %v10471_v58 = vor.u32 %v11453_v52, %v10470_v41  ;;  %v9119_v62 = vor.u32 %v11115_v43, %v9118_v24  ;;  %v6338_v10 = vpop.f32.mrf.mxu0  ;;  %v9067_v50 = vor.u32 %v11102_v3, %v9066_v2  ;;  %v7664_v41 = vld [vmem:[%s11906_s12 + $0x2c4] sm:$0xf0]  ;;  %v10849_v52 = vld [vmem:[%s11906_s12 + $0x5d4] sm:$0xf]  ;;  %v9846_v43 = vld [vmem:[%s11906_s12 + $0x13a0] sm:$0xf] }
 0x2c1   : > { %6569 = vmatmul.bf16.vlgmr.msra.gmra.mxu2 %v12090_v29  ;;  %v10315_v24 = vor.u32 %v11414_v20, %v10314_v44  ;;  %v7612_v2 = vld [vmem:[%s11906_s12 + $0x25c] sm:$0xf0]  ;;  %v7924_v44 = vld [vmem:[%s11906_s12 + $0x4cc] sm:$0xf0] }
 0x2c2   : > { %6613 = vmatpush.bf16.msrb.mxu2 %v10211_v4  ;;  %6582 = vmatmul.bf16.vlgmr.msra.gmra.mxu3 %v12095_v35  ;;  %v10003_v4 = vor.u32 %v11336_v60, %v10002_v59  ;;  %v7667_v59 = vor.u32 %v10745_v49, %v7664_v41  ;;  %v11070_v60 = vld [vmem:[%s11906_s12 + $0xcbc] sm:$0xf]  ;;  %v8028_v10 = vld [vmem:[%s11906_s12 + $0x59c] sm:$0xf0]  ;;  %v8392_v49 = vld [vmem:[%s11906_s12 + $0x874] sm:$0xf0] }
 0x2c3   : > { %6626 = vmatpush.bf16.msrb.mxu3 %v10627_v11  ;;  %v10419_v11 = vor.u32 %v11440_v63, %v10418_v31 }
 0x2c4   : > { %6589 = vmatpush.bf16.msrb.mxu0 %v9275_v16  ;;  %6602 = vmatpush.bf16.msrb.mxu1 %v9691_v19  ;;  %v6351_v16 = vpop.f32.mrf.mxu1  ;;  %v11427_v19 = vld [vmem:[%s11906_s12 + $0x17e0] sm:$0xf0] }
 0x2c5   : > { %v10367_v36 = vor.u32 %v11427_v19, %v10366_v18  ;;  %v8496_v16 = vld [vmem:[%s11906_s12 + $0x944] sm:$0xf0]  ;;  %v11057_v18 = vld [vmem:[%s11906_s12 + $0xc54] sm:$0xf] }
 0x2c6   : > { %6614 = vmatpush.bf16.msrb.mxu2 %v10159_v22  ;;  %v11089_v22 = vld [vmem:[%s11906_s12 + $0xd50] sm:$0xf0]  ;;  %v8912_v19 = vld [vmem:[%s11906_s12 + $0xc84] sm:$0xf0] }
 0x2c7   : > { %6627 = vmatpush.bf16.msrb.mxu3 %v10575_v27  ;;  %v9951_v27 = vor.u32 %v11323_v14, %v9950_v12  ;;  %v9015_v28 = vor.u32 %v11089_v22, %v9014_v48  ;;  %v10953_v14 = vld [vmem:[%s11906_s12 + $0x914] sm:$0xf]  ;;  %v8031_v48 = vor.u32 %v10836_v8, %v8028_v10  ;;  %v7560_v22 = vld [vmem:[%s11906_s12 + $0x1f4] sm:$0xf0]  ;;  %v8915_v30 = vor.u32 %v11057_v18, %v8912_v19  ;;  %v7820_v8 = vld [vmem:[%s11906_s12 + $0x3fc] sm:$0xf0] }
 0x2c8   : > { %6590 = vmatpush.bf16.msrb.mxu0 %v9223_v34  ;;  %6603 = vmatpush.bf16.msrb.mxu1 %v9639_v39  ;;  %v6362_v34 = vpop.f32.mrf.mxu2  ;;  %v9898_v39 = vld [vmem:[%s11906_s12 + $0x1408] sm:$0xf]  ;;  %v11005_v18 = vld [vmem:[%s11906_s12 + $0xab4] sm:$0xf] }
 0x2c9   : > { %v6363_v26 = vadd.f32 %v6362_v34, %v6350_v54  ;;  %v11297_v54 = vld [vmem:[%s11906_s12 + $0x13d0] sm:$0xf0]  ;;  %v8704_v19 = vld [vmem:[%s11906_s12 + $0xae4] sm:$0xf0] }
 0x2ca   : > { %6615 = vmatpush.bf16.msrb.mxu2 %v10107_v42  ;;  %v6375_v42 = vpop.f32.mrf.mxu3  ;;  %v9847_v63 = vor.u32 %v11297_v54, %v9846_v43  ;;  %v10693_v43 = vld [vmem:[%s11906_s12 + $0xf4] sm:$0xf]  ;;  %v7456_v54 = vld [vmem:[%s11906_s12 + $0x124] sm:$0xf0] }
 0x2cb   : > { %6628 = vmatpush.bf16.msrb.mxu3 %v10523_v46  ;;  %v9431_v46 = vor.u32 %v11193_v25, %v9430_v38  ;;  %v13238_v15 = vadd.f32 %v6375_v42, %v6363_v26  ;;  %v8499_v38 = vor.u32 %v10953_v14, %v8496_v16  ;;  %v10823_v25 = vld [vmem:[%s11906_s12 + $0x504] sm:$0xf]  ;;  %v7508_v26 = vld [vmem:[%s11906_s12 + $0x18c] sm:$0xf0]  ;;  %v8447_v42 = vor.u32 %v10940_v32, %v8444_v33  ;;  %v8288_v14 = vld [vmem:[%s11906_s12 + $0x7a4] sm:$0xf0] }
 0x2cc   : > { %6591 = vmatpush.bf16.msrb.mxu0 %v9171_v51  ;;  %6604 = vmatpush.bf16.msrb.mxu1 %v9587_v53  ;;  %v9899_v51 = vor.u32 %v11310_v9, %v9898_v39  ;;  %v8080_v53 = vld [vmem:[%s11906_s12 + $0x604] sm:$0xf0]  ;;  %v10706_v9 = vld [vmem:[%s11906_s12 + $0x15c] sm:$0xf]  ;;  %v9380_v32 = vld [vmem:[%s11906_s12 + $0x102c] sm:$0xf0] }
 0x2cd   : > { %v8083_v31 = vor.u32 %v10849_v52, %v8080_v53  ;;  %v7511_v41 = vor.u32 %v10706_v9, %v7508_v26  ;;  %v11031_v52 = vld [vmem:[%s11906_s12 + $0xb84] sm:$0xf]  ;;  %v8808_v53 = vld [vmem:[%s11906_s12 + $0xbb4] sm:$0xf0]  ;;  %v11278_v33 = vld [vmem:[%s11906_s12 + $0x133c] sm:$0xf] }
 0x2ce   : > { %6616 = vmatpush.bf16.msrb.mxu2 %v10055_v55  ;;  %v10262_v55 = vld [vmem:[%s11906_s12 + $0x16e0] sm:$0xf] }
 0x2cf   : > { %6629 = vmatpush.bf16.msrb.mxu3 %v10471_v58  ;;  %v8548_v58 = vld [vmem:[%s11906_s12 + $0x9ac] sm:$0xf0]  ;;  %v8236_v9 = vld [vmem:[%s11906_s12 + $0x73c] sm:$0xf0] }
 0x2d0   : > { %6592 = vmatpush.bf16.msrb.mxu0 %v9119_v62  ;;  %6605 = vmatpush.bf16.msrb.mxu1 %v9535_v1  ;;  %v8964_v62 = vld [vmem:[%s11906_s12 + $0xcec] sm:$0xf0]  ;;  %v10732_v1 = vld [vmem:[%s11906_s12 + $0x22c] sm:$0xf]  ;;  %v6364_v3 = vpop.f32.mrf.mxu2  ;;  %v8551_v6 = vor.u32 %v10966_v57, %v8548_v58  ;;  %v7872_v57 = vld [vmem:[%s11906_s12 + $0x464] sm:$0xf0]  ;;  %v8811_v58 = vor.u32 %v11031_v52, %v8808_v53 }
 0x2d1   : > { %v8967_v12 = vor.u32 %v11070_v60, %v8964_v62  ;;  %v8340_v60 = vld [vmem:[%s11906_s12 + $0x80c] sm:$0xf0]  ;;  %v7459_v62 = vor.u32 %v10693_v43, %v7456_v54  ;;  %v7404_v3 = vld [vmem:[%s11906_s12 + $0xbc] sm:$0xf0]  ;;  %v9744_v52 = vld [vmem:[%s11906_s12 + $0x1304] sm:$0xf0] }
 0x2d2   : > { %6617 = vmatpush.bf16.msrb.mxu2 %v10003_v4  ;;  %v10263_v4 = vor.u32 %v11401_v56, %v10262_v55  ;;  %v8184_v43 = vld [vmem:[%s11906_s12 + $0x6d4] sm:$0xf0]  ;;  %v10979_v54 = vld [vmem:[%s11906_s12 + $0x9e4] sm:$0xf] }
 0x2d3   : > { %6630 = vmatpush.bf16.msrb.mxu3 %v10419_v11  ;;  %v6377_v11 = vpop.f32.mrf.mxu3 }
 0x2d4   : > { %6593 = vmatpush.bf16.msrb.mxu0 %v9067_v50  ;;  %6606 = vmatpush.bf16.msrb.mxu1 %v9483_v21  ;;  %v7615_v50 = vor.u32 %v10732_v1, %v7612_v2  ;;  %v10719_v21 = vld [vmem:[%s11906_s12 + $0x1c4] sm:$0xf]  ;;  %v10680_v2 = vld [vmem:[%s11906_s12 + $0x8c] sm:$0xf] }
 0x2d5   : > { %v7563_v34 = vor.u32 %v10719_v21, %v7560_v22  ;;  %v7352_v22 = vld [vmem:[%s11906_s12 + $0x54] sm:$0xf0] }
 0x2d6   : > { %6618 = vmatpush.bf16.msrb.mxu2 %v9951_v27  ;;  %v7976_v27 = vld [vmem:[%s11906_s12 + $0x534] sm:$0xf0] }
 0x2d7   : > { %6631 = vmatpush.bf16.msrb.mxu3 %v10367_v36  ;;  %v11044_v36 = vld [vmem:[%s11906_s12 + $0xbec] sm:$0xf]  ;;  %v7979_v39 = vor.u32 %v10823_v25, %v7976_v27  ;;  %v7768_v25 = vld [vmem:[%s11906_s12 + $0x394] sm:$0xf0] }
 0x2d8   : > { %6594 = vmatpush.bf16.msrb.mxu0 %v9015_v28  ;;  %6607 = vmatpush.bf16.msrb.mxu1 %v9431_v46  ;;  %v10810_v28 = vld [vmem:[%s11906_s12 + $0x49c] sm:$0xf]  ;;  %v6388_v20 = vpop.f32.mrf.mxu0  ;;  %v8863_v46 = vor.u32 %v11044_v36, %v8860_v37  ;;  %v8707_v36 = vor.u32 %v11005_v18, %v8704_v19  ;;  %v9796_v37 = vld [vmem:[%s11906_s12 + $0x136c] sm:$0xf0]  ;;  %v10576_v18 = vld [vmem:[%s11906_s12 + $0x1984] sm:$0xf0] }
 0x2da   : > { %6619 = vmatpush.bf16.msrb.mxu2 %v9899_v51  ;;  %v6401_v51 = vpop.f32.mrf.mxu1 }
 0x2db   : > { %6632 = vmatpush.bf16.msrb.mxu3 %v10315_v24  ;;  %6595 = vmatmul.bf16.vlgmr.msrb.gmra.mxu0 %v12117_v7  ;;  %v7927_v24 = vor.u32 %v10810_v28, %v7924_v44  ;;  %v10992_v28 = vld [vmem:[%s11906_s12 + $0xa4c] sm:$0xf]  ;;  %v8652_v44 = vld [vmem:[%s11906_s12 + $0xa7c] sm:$0xf0] }
 0x2dc   : > { %6639 = vmatpush.bf16.msra.mxu0 %v7719_v47  ;;  %6652 = vmatpush.bf16.msra.mxu1 %v8135_v23  ;;  %v10927_v47 = vld [vmem:[%s11906_s12 + $0x844] sm:$0xf]  ;;  %v6389_v23 = vadd.f32 %v6388_v20, %v13238_v15  ;;  %v10797_v15 = vld [vmem:[%s11906_s12 + $0x434] sm:$0xf]  ;;  %v8655_v53 = vor.u32 %v10992_v28, %v8652_v44  ;;  %v11226_v44 = vld [vmem:[%s11906_s12 + $0x119c] sm:$0xf] }
 0x2dd   : > { %6608 = vmatmul.bf16.vlgmr.msrb.gmra.mxu1 %v12122_v13  ;;  %v8395_v56 = vor.u32 %v10927_v47, %v8392_v49  ;;  %v7875_v1 = vor.u32 %v10797_v15, %v7872_v57  ;;  %v11161_v47 = vld [vmem:[%s11906_s12 + $0xf94] sm:$0xf]  ;;  %v9799_v49 = vor.u32 %v11278_v33, %v9796_v37  ;;  %v11382_v15 = vld [vmem:[%s11906_s12 + $0x167c] sm:$0xf]  ;;  %v10212_v57 = vld [vmem:[%s11906_s12 + $0x16ac] sm:$0xf0] }
 0x2de   : > { %6620 = vmatpush.bf16.msrb.mxu2 %v9847_v63  ;;  %v13282_v55 = vadd.f32 %v6401_v51, %v6389_v23  ;;  %v8756_v63 = vld [vmem:[%s11906_s12 + $0xb4c] sm:$0xf0]  ;;  %v9328_v51 = vld [vmem:[%s11906_s12 + $0xfc4] sm:$0xf0]  ;;  %v10524_v37 = vld [vmem:[%s11906_s12 + $0x191c] sm:$0xf0] }
 0x2df   : > { %6633 = vmatpush.bf16.msrb.mxu3 %v10263_v4 }
 0x2e0   : > { %6640 = vmatpush.bf16.msra.mxu0 %v7667_v59  ;;  %6653 = vmatpush.bf16.msra.mxu1 %v8083_v31  ;;  %v10914_v59 = vld [vmem:[%s11906_s12 + $0x7dc] sm:$0xf]  ;;  %v6390_v10 = vpop.f32.mrf.mxu0 }
 0x2e1   : > { %6621 = vmatmul.bf16.vlgmr.msrb.gmra.mxu2 %v12137_v40  ;;  %v11018_v31 = vld [vmem:[%s11906_s12 + $0xb1c] sm:$0xf]  ;;  %v8343_v4 = vor.u32 %v10914_v59, %v8340_v60  ;;  %v10628_v60 = vld [vmem:[%s11906_s12 + $0x19ec] sm:$0xf0] }
 0x2e2   : > { %6665 = vmatpush.bf16.msra.mxu2 %v8551_v6  ;;  %6634 = vmatmul.bf16.vlgmr.msrb.gmra.mxu3 %v12142_v45  ;;  %v10784_v6 = vld [vmem:[%s11906_s12 + $0x3cc] sm:$0xf]  ;;  %v8759_v11 = vor.u32 %v11018_v31, %v8756_v63  ;;  %v6403_v16 = vpop.f32.mrf.mxu1  ;;  %v11486_v59 = vld [vmem:[%s11906_s12 + $0x19bc] sm:$0xf] }
 0x2e3   : > { %6678 = vmatpush.bf16.msra.mxu3 %v8967_v12  ;;  %v10901_v12 = vld [vmem:[%s11906_s12 + $0x774] sm:$0xf]  ;;  %v7823_v21 = vor.u32 %v10784_v6, %v7820_v8  ;;  %v11148_v63 = vld [vmem:[%s11906_s12 + $0xf2c] sm:$0xf]  ;;  %v9692_v8 = vld [vmem:[%s11906_s12 + $0x129c] sm:$0xf0] }
 0x2e4   : > { %6641 = vmatpush.bf16.msra.mxu0 %v7615_v50  ;;  %6654 = vmatpush.bf16.msra.mxu1 %v8031_v48  ;;  %v7407_v50 = vor.u32 %v10680_v2, %v7404_v3  ;;  %v10667_v48 = vld [vmem:[%s11906_s12 + $0x24] sm:$0xf]  ;;  %v8291_v27 = vor.u32 %v10901_v12, %v8288_v14  ;;  %v11252_v6 = vld [vmem:[%s11906_s12 + $0x126c] sm:$0xf]  ;;  %v11369_v12 = vld [vmem:[%s11906_s12 + $0x1614] sm:$0xf] }
 0x2e5   : > { %v13310_v26 = vpop.f32.mrf.mxu3  ;;  %v10160_v14 = vld [vmem:[%s11906_s12 + $0x1644] sm:$0xf0]  ;;  %v9695_v19 = vor.u32 %v11252_v6, %v9692_v8  ;;  %v11200_v6 = vld [vmem:[%s11906_s12 + $0x10cc] sm:$0xf]  ;;  %v9484_v8 = vld [vmem:[%s11906_s12 + $0x10fc] sm:$0xf0] }
 0x2e6   : > { %6666 = vmatpush.bf16.msra.mxu2 %v8499_v38  ;;  %v10771_v38 = vld [vmem:[%s11906_s12 + $0x364] sm:$0xf] }
 0x2e7   : > { %6679 = vmatpush.bf16.msra.mxu3 %v8915_v30  ;;  %v11174_v30 = vld [vmem:[%s11906_s12 + $0xffc] sm:$0xf]  ;;  %v7771_v20 = vor.u32 %v10771_v38, %v7768_v25  ;;  %v11239_v38 = vld [vmem:[%s11906_s12 + $0x1204] sm:$0xf]  ;;  %v9640_v25 = vld [vmem:[%s11906_s12 + $0x1234] sm:$0xf0] }
 0x2e8   : > { %6642 = vmatpush.bf16.msra.mxu0 %v7563_v34  ;;  %6655 = vmatpush.bf16.msra.mxu1 %v7979_v39  ;;  %v13305_v34 = vpop.f32.mrf.mxu2  ;;  %v10888_v39 = vld [vmem:[%s11906_s12 + $0x70c] sm:$0xf] }
 0x2e9   : > { %v8239_v23 = vor.u32 %v10888_v39, %v8236_v9  ;;  %v9643_v39 = vor.u32 %v11239_v38, %v9640_v25  ;;  %v11122_v9 = vld [vmem:[%s11906_s12 + $0xe5c] sm:$0xf]  ;;  %v11187_v38 = vld [vmem:[%s11906_s12 + $0x1064] sm:$0xf]  ;;  %v9432_v25 = vld [vmem:[%s11906_s12 + $0x1094] sm:$0xf0] }
 0x2ea   : > { %6667 = vmatpush.bf16.msra.mxu2 %v8447_v42  ;;  %v7355_v42 = vor.u32 %v10667_v48, %v7352_v22  ;;  %v11135_v48 = vld [vmem:[%s11906_s12 + $0xec4] sm:$0xf]  ;;  %v10163_v22 = vor.u32 %v11369_v12, %v10160_v14  ;;  %v11317_v12 = vld [vmem:[%s11906_s12 + $0x1474] sm:$0xf]  ;;  %v9952_v14 = vld [vmem:[%s11906_s12 + $0x14a4] sm:$0xf0] }
 0x2eb   : > { %6680 = vmatpush.bf16.msra.mxu3 %v8863_v46  ;;  %v9383_v46 = vor.u32 %v11174_v30, %v9380_v32  ;;  %v11356_v30 = vld [vmem:[%s11906_s12 + $0x15ac] sm:$0xf]  ;;  %v10108_v32 = vld [vmem:[%s11906_s12 + $0x15dc] sm:$0xf0] }
 0x2ec   : > { %6643 = vmatpush.bf16.msra.mxu0 %v7511_v41  ;;  %6656 = vmatpush.bf16.msra.mxu1 %v7927_v24  ;;  %v11265_v41 = vld [vmem:[%s11906_s12 + $0x12d4] sm:$0xf]  ;;  %v10875_v24 = vld [vmem:[%s11906_s12 + $0x6a4] sm:$0xf]  ;;  %v10111_v28 = vor.u32 %v11356_v30, %v10108_v32  ;;  %v7722_v30 = vld [vmem:[%s11906_s12 + $0x300] sm:$0xf] }
 0x2ed   : > { %v8187_v31 = vor.u32 %v10875_v24, %v8184_v43  ;;  %v6429_v10 = vpop.f32.mrf.mxu3  ;;  %v11109_v43 = vld [vmem:[%s11906_s12 + $0xdf4] sm:$0xf] }
 0x2ee   : > { %6668 = vmatpush.bf16.msra.mxu2 %v8395_v56  ;;  %v8600_v56 = vld [vmem:[%s11906_s12 + $0xa14] sm:$0xf0]  ;;  %v10765_v32 = vld [vmem:[%s11906_s12 + $0x330] sm:$0xf0] }
 0x2ef   : > { %6681 = vmatpush.bf16.msra.mxu3 %v8811_v58  ;;  %v9331_v58 = vor.u32 %v11161_v47, %v9328_v51  ;;  %v8603_v3 = vor.u32 %v10979_v54, %v8600_v56  ;;  %v9120_v54 = vld [vmem:[%s11906_s12 + $0xe24] sm:$0xf0] }
 0x2f0   : > { %6644 = vmatpush.bf16.msra.mxu0 %v7459_v62  ;;  %6657 = vmatpush.bf16.msra.mxu1 %v7875_v1  ;;  %v9747_v62 = vor.u32 %v11265_v41, %v9744_v52  ;;  %v9276_v1 = vld [vmem:[%s11906_s12 + $0xf5c] sm:$0xf0]  ;;  %v6416_v2 = vpop.f32.mrf.mxu2  ;;  %v11447_v52 = vld [vmem:[%s11906_s12 + $0x1884] sm:$0xf] }
 0x2f1   : > { %v9279_v16 = vor.u32 %v11148_v63, %v9276_v1  ;;  %v10420_v63 = vld [vmem:[%s11906_s12 + $0x184c] sm:$0xf0]  ;;  %v11096_v2 = vld [vmem:[%s11906_s12 + $0xd8c] sm:$0xf] }
 0x2f2   : > { %6669 = vmatpush.bf16.msra.mxu2 %v8343_v4  ;;  %v10215_v4 = vor.u32 %v11382_v15, %v10212_v57  ;;  %v11213_v15 = vld [vmem:[%s11906_s12 + $0x1134] sm:$0xf]  ;;  %v9536_v57 = vld [vmem:[%s11906_s12 + $0x1164] sm:$0xf0] }
 0x2f3   : > { %6682 = vmatpush.bf16.msra.mxu3 %v8759_v11  ;;  %v10631_v11 = vor.u32 %v11486_v59, %v10628_v60  ;;  %v11330_v59 = vld [vmem:[%s11906_s12 + $0x14dc] sm:$0xf]  ;;  %v10004_v60 = vld [vmem:[%s11906_s12 + $0x150c] sm:$0xf0]  ;;  %v9539_v1 = vor.u32 %v11213_v15, %v9536_v57  ;;  %v11291_v15 = vld [vmem:[%s11906_s12 + $0x13a4] sm:$0xf] }
 0x2f4   : > { %6645 = vmatpush.bf16.msra.mxu0 %v7407_v50  ;;  %6658 = vmatpush.bf16.msra.mxu1 %v7823_v21  ;;  %v11473_v50 = vld [vmem:[%s11906_s12 + $0x1954] sm:$0xf]  ;;  %v9224_v21 = vld [vmem:[%s11906_s12 + $0xef4] sm:$0xf0] }
 0x2f5   : > { %v9227_v33 = vor.u32 %v11135_v48, %v9224_v21  ;;  %v11083_v48 = vld [vmem:[%s11906_s12 + $0xd24] sm:$0xf]  ;;  %v9487_v21 = vor.u32 %v11200_v6, %v9484_v8  ;;  %v9848_v57 = vld [vmem:[%s11906_s12 + $0x13d4] sm:$0xf0] }
 0x2f6   : > { %6670 = vmatpush.bf16.msra.mxu2 %v8291_v27  ;;  %v10579_v27 = vor.u32 %v11473_v50, %v10576_v18  ;;  %v11421_v18 = vld [vmem:[%s11906_s12 + $0x17b4] sm:$0xf]  ;;  %v10739_v6 = vld [vmem:[%s11906_s12 + $0x260] sm:$0xf0] }
 0x2f7   : > { %6683 = vmatpush.bf16.msra.mxu3 %v8707_v36  ;;  %v11460_v36 = vld [vmem:[%s11906_s12 + $0x18ec] sm:$0xf] }
 0x2f8   : > { %6646 = vmatpush.bf16.msra.mxu0 %v7355_v42  ;;  %6659 = vmatpush.bf16.msra.mxu1 %v7771_v20  ;;  %v9172_v42 = vld [vmem:[%s11906_s12 + $0xe8c] sm:$0xf0]  ;;  %v10527_v47 = vor.u32 %v11460_v36, %v10524_v37 }
 0x2f9   : > { %v9588_v20 = vld [vmem:[%s11906_s12 + $0x11cc] sm:$0xf0]  ;;  %v9175_v41 = vor.u32 %v11122_v9, %v9172_v42  ;;  %v11304_v9 = vld [vmem:[%s11906_s12 + $0x140c] sm:$0xf]  ;;  %v9900_v42 = vld [vmem:[%s11906_s12 + $0x143c] sm:$0xf0] }
 0x2fa   : > { %6671 = vmatpush.bf16.msra.mxu2 %v8239_v23  ;;  %v10056_v23 = vld [vmem:[%s11906_s12 + $0x1574] sm:$0xf0]  ;;  %v13354_v51 = vpop.f32.mrf.mxu1  ;;  %v9591_v24 = vor.u32 %v11226_v44, %v9588_v20  ;;  %v11408_v20 = vld [vmem:[%s11906_s12 + $0x174c] sm:$0xf] }
 0x2fb   : > { %6684 = vmatpush.bf16.msra.mxu3 %v8655_v53  ;;  %6647 = vmatmul.bf16.vlgmr.msra.gmra.mxu0 %v12070_v0  ;;  %v10472_v53 = vld [vmem:[%s11906_s12 + $0x18b4] sm:$0xf0]  ;;  %v11571_v8 = vld [vmem:[%s12382_s7] sm:$0xff] }
 0x2fc   : > { %6691 = vmatpush.bf16.msrb.mxu0 %v9383_v46  ;;  %6704 = vmatpush.bf16.msrb.mxu1 %v9799_v49  ;;  %v13350_v46 = vpop.f32.mrf.mxu0  ;;  %v11343_v49 = vld [vmem:[%s11906_s12 + $0x1544] sm:$0xf] }
 0x2fd   : > { %6660 = vmatmul.bf16.vlgmr.msra.gmra.mxu1 %v12075_v5  ;;  %v10059_v56 = vor.u32 %v11343_v49, %v10056_v23  ;;  %v9435_v49 = vor.u32 %v11187_v38, %v9432_v25  ;;  %v7723_v23 = vor.u32 %v10765_v32, %v7722_v30  ;;  %v8918_v38 = vld [vmem:[%s11906_s12 + $0xc58] sm:$0xf]  ;;  %v11064_v25 = vld [vmem:[%s11906_s12 + $0xc88] sm:$0xf0]  ;;  %v7566_v30 = vld [vmem:[%s11906_s12 + $0x1c8] sm:$0xf] }
 0x2fe   : > { %6672 = vmatpush.bf16.msra.mxu2 %v8187_v31  ;;  %v11434_v31 = vld [vmem:[%s11906_s12 + $0x181c] sm:$0xf] }
 0x2ff   : > { %6685 = vmatpush.bf16.msra.mxu3 %v8603_v3  ;;  %v9068_v3 = vld [vmem:[%s11906_s12 + $0xdbc] sm:$0xf0]  ;;  %v10726_v32 = vld [vmem:[%s11906_s12 + $0x1f8] sm:$0xf0] }
 0x300   : > { %6692 = vmatpush.bf16.msrb.mxu0 %v9331_v58  ;;  %6705 = vmatpush.bf16.msrb.mxu1 %v9747_v62  ;;  %v10475_v58 = vor.u32 %v11447_v52, %v10472_v53  ;;  %v9123_v62 = vor.u32 %v11109_v43, %v9120_v54  ;;  %v9071_v50 = vor.u32 %v11096_v2, %v9068_v3  ;;  %v8086_v43 = vld [vmem:[%s11906_s12 + $0x5d8] sm:$0xf]  ;;  %v10856_v54 = vld [vmem:[%s11906_s12 + $0x608] sm:$0xf0] }
 0x301   : > { %6673 = vmatmul.bf16.vlgmr.msra.gmra.mxu2 %v12090_v29  ;;  %v9903_v53 = vor.u32 %v11304_v9, %v9900_v42  ;;  %v8087_v2 = vor.u32 %v10856_v54, %v8086_v43  ;;  %v9851_v3 = vor.u32 %v11291_v15, %v9848_v57  ;;  %v10830_v9 = vld [vmem:[%s11906_s12 + $0x538] sm:$0xf0]  ;;  %v8919_v42 = vor.u32 %v11064_v25, %v8918_v38  ;;  %v7930_v43 = vld [vmem:[%s11906_s12 + $0x4a0] sm:$0xf]  ;;  %v10817_v54 = vld [vmem:[%s11906_s12 + $0x4d0] sm:$0xf0] }
 0x302   : > { %6717 = vmatpush.bf16.msrb.mxu2 %v10215_v4  ;;  %6686 = vmatmul.bf16.vlgmr.msra.gmra.mxu3 %v12095_v35  ;;  %v10007_v4 = vor.u32 %v11330_v59, %v10004_v60  ;;  %v10264_v59 = vld [vmem:[%s11906_s12 + $0x1714] sm:$0xf0]  ;;  %v8554_v60 = vld [vmem:[%s11906_s12 + $0x980] sm:$0xf]  ;;  %v8398_v57 = vld [vmem:[%s11906_s12 + $0x848] sm:$0xf] }
 0x303   : > { %6730 = vmatpush.bf16.msrb.mxu3 %v10631_v11  ;;  %v10423_v11 = vor.u32 %v11434_v31, %v10420_v63  ;;  %v8970_v63 = vld [vmem:[%s11906_s12 + $0xcc0] sm:$0xf]  ;;  %v10791_v38 = vld [vmem:[%s11906_s12 + $0x400] sm:$0xf0] }
 0x304   : > { %6693 = vmatpush.bf16.msrb.mxu0 %v9279_v16  ;;  %6706 = vmatpush.bf16.msrb.mxu1 %v9695_v19  ;;  %v6442_v10 = vpop.f32.mrf.mxu0  ;;  %v6455_v16 = vpop.f32.mrf.mxu1  ;;  %v10368_v19 = vld [vmem:[%s11906_s12 + $0x17e4] sm:$0xf0] }
 0x305   : > { %v13381_v36 = vpop.f32.mrf.mxu2  ;;  %v10371_v37 = vor.u32 %v11421_v18, %v10368_v19  ;;  %v1460_v10 = vperm.slane %v11571_v8, 7  ;;  %v8034_v16 = vld [vmem:[%s11906_s12 + $0x570] sm:$0xf]  ;;  %v8346_v8 = vld [vmem:[%s11906_s12 + $0x7e0] sm:$0xf] }
 0x306   : > { %6718 = vmatpush.bf16.msrb.mxu2 %v10163_v22  ;;  %v9016_v22 = vld [vmem:[%s11906_s12 + $0xd54] sm:$0xf0] }
 0x307   : > { %6731 = vmatpush.bf16.msrb.mxu3 %v10579_v27  ;;  %v9955_v27 = vor.u32 %v11317_v12, %v9952_v14  ;;  %v9019_v44 = vor.u32 %v11083_v48, %v9016_v22  ;;  %v8502_v48 = vld [vmem:[%s11906_s12 + $0x918] sm:$0xf] }
 0x308   : > { %6694 = vmatpush.bf16.msrb.mxu0 %v9227_v33  ;;  %6707 = vmatpush.bf16.msrb.mxu1 %v9643_v39  ;;  %v8138_v33 = vld [vmem:[%s11906_s12 + $0x640] sm:$0xf]  ;;  %v10869_v39 = vld [vmem:[%s11906_s12 + $0x670] sm:$0xf0] }
 0x309   : > { %v8139_v52 = vor.u32 %v10869_v39, %v8138_v33  ;;  %v6441_v33 = vadd.f32 %v13350_v46, %v1460_v10  ;;  %v7982_v39 = vld [vmem:[%s11906_s12 + $0x508] sm:$0xf]  ;;  %v11051_v46 = vld [vmem:[%s11906_s12 + $0xc20] sm:$0xf0]  ;;  %v10921_v10 = vld [vmem:[%s11906_s12 + $0x810] sm:$0xf0] }
 0x30a   : > { %6719 = vmatpush.bf16.msrb.mxu2 %v10111_v28  ;;  %v13386_v28 = vpop.f32.mrf.mxu3 }
 0x30b   : > { %6732 = vmatpush.bf16.msrb.mxu3 %v10527_v47  ;;  %v10316_v47 = vld [vmem:[%s11906_s12 + $0x177c] sm:$0xf0] }
 0x30c   : > { %6695 = vmatpush.bf16.msrb.mxu0 %v9175_v41  ;;  %6708 = vmatpush.bf16.msrb.mxu1 %v9591_v24  ;;  %v7670_v41 = vld [vmem:[%s11906_s12 + $0x298] sm:$0xf]  ;;  %v10752_v24 = vld [vmem:[%s11906_s12 + $0x2c8] sm:$0xf0] }
 0x30d   : > { %v7671_v31 = vor.u32 %v10752_v24, %v7670_v41  ;;  %v7514_v41 = vld [vmem:[%s11906_s12 + $0x160] sm:$0xf] }
 0x30e   : > { %6720 = vmatpush.bf16.msrb.mxu2 %v10059_v56  ;;  %v10319_v56 = vor.u32 %v11408_v20, %v10316_v47  ;;  %v10947_v20 = vld [vmem:[%s11906_s12 + $0x8e0] sm:$0xf0]  ;;  %v7567_v47 = vor.u32 %v10726_v32, %v7566_v30  ;;  %v10908_v30 = vld [vmem:[%s11906_s12 + $0x7a8] sm:$0xf0]  ;;  %v6415_v32 = vadd.f32 %v13305_v34, %v13282_v55  ;;  %v9386_v34 = vld [vmem:[%s11906_s12 + $0x1000] sm:$0xf] }
 0x30f   : > { %6733 = vmatpush.bf16.msrb.mxu3 %v10475_v58  ;;  %v11395_v58 = vld [vmem:[%s11906_s12 + $0x16e4] sm:$0xf] }
 0x310   : > { %6696 = vmatpush.bf16.msrb.mxu0 %v9123_v62  ;;  %6709 = vmatpush.bf16.msrb.mxu1 %v9539_v1  ;;  %v10973_v62 = vld [vmem:[%s11906_s12 + $0x9b0] sm:$0xf0]  ;;  %v10267_v12 = vor.u32 %v11395_v58, %v10264_v59  ;;  %v10934_v58 = vld [vmem:[%s11906_s12 + $0x878] sm:$0xf0] }
 0x311   : > { %v11077_v1 = vld [vmem:[%s11906_s12 + $0xcf0] sm:$0xf0]  ;;  %v8555_v14 = vor.u32 %v10973_v62, %v8554_v60  ;;  %v8814_v62 = vld [vmem:[%s11906_s12 + $0xb88] sm:$0xf] }
 0x312   : > { %6721 = vmatpush.bf16.msrb.mxu2 %v10007_v4  ;;  %v7618_v4 = vld [vmem:[%s11906_s12 + $0x230] sm:$0xf]  ;;  %v6481_v18 = vpop.f32.mrf.mxu3  ;;  %v8971_v19 = vor.u32 %v11077_v1, %v8970_v63  ;;  %v7931_v63 = vor.u32 %v10817_v54, %v7930_v43  ;;  %v7462_v1 = vld [vmem:[%s11906_s12 + $0xf8] sm:$0xf]  ;;  %v10895_v54 = vld [vmem:[%s11906_s12 + $0x740] sm:$0xf0] }
 0x313   : > { %6734 = vmatpush.bf16.msrb.mxu3 %v10423_v11  ;;  %v6468_v11 = vpop.f32.mrf.mxu2  ;;  %v7619_v22 = vor.u32 %v10739_v6, %v7618_v4  ;;  %v7878_v4 = vld [vmem:[%s11906_s12 + $0x438] sm:$0xf]  ;;  %v10804_v6 = vld [vmem:[%s11906_s12 + $0x468] sm:$0xf0]  ;;  %v7410_v18 = vld [vmem:[%s11906_s12 + $0x90] sm:$0xf] }
 0x314   : > { %6697 = vmatpush.bf16.msrb.mxu0 %v9071_v50  ;;  %6710 = vmatpush.bf16.msrb.mxu1 %v9487_v21  ;;  %v10843_v50 = vld [vmem:[%s11906_s12 + $0x5a0] sm:$0xf0]  ;;  %v10960_v21 = vld [vmem:[%s11906_s12 + $0x948] sm:$0xf0]  ;;  %v8242_v43 = vld [vmem:[%s11906_s12 + $0x710] sm:$0xf] }
 0x316   : > { %6722 = vmatpush.bf16.msrb.mxu2 %v9955_v27  ;;  %v8035_v27 = vor.u32 %v10843_v50, %v8034_v16  ;;  %v11025_v16 = vld [vmem:[%s11906_s12 + $0xb50] sm:$0xf0]  ;;  %v7879_v50 = vor.u32 %v10804_v6, %v7878_v4  ;;  %v11272_v4 = vld [vmem:[%s11906_s12 + $0x1308] sm:$0xf0]  ;;  %v8190_v6 = vld [vmem:[%s11906_s12 + $0x6a8] sm:$0xf] }
 0x317   : > { %6735 = vmatpush.bf16.msrb.mxu3 %v10371_v37  ;;  %v8503_v37 = vor.u32 %v10960_v21, %v8502_v48  ;;  %v8347_v21 = vor.u32 %v10921_v10, %v8346_v8  ;;  %v10882_v8 = vld [vmem:[%s11906_s12 + $0x6d8] sm:$0xf0]  ;;  %v8606_v10 = vld [vmem:[%s11906_s12 + $0x9e8] sm:$0xf] }
 0x318   : > { %6698 = vmatpush.bf16.msrb.mxu0 %v9019_v44  ;;  %6711 = vmatpush.bf16.msrb.mxu1 %v9435_v49  ;;  %v8450_v44 = vld [vmem:[%s11906_s12 + $0x8b0] sm:$0xf] }
 0x319   : > { %v8866_v49 = vld [vmem:[%s11906_s12 + $0xbf0] sm:$0xf]  ;;  %v8451_v24 = vor.u32 %v10947_v20, %v8450_v44  ;;  %v10674_v20 = vld [vmem:[%s11906_s12 + $0x58] sm:$0xf0] }
 0x31a   : > { %6723 = vmatpush.bf16.msrb.mxu2 %v9903_v53  ;;  %v6454_v53 = vadd.f32 %v13354_v51, %v6441_v33  ;;  %v8867_v15 = vor.u32 %v11051_v46, %v8866_v49  ;;  %v6505_v60 = vpop.f32.mrf.mxu1  ;;  %v10778_v49 = vld [vmem:[%s11906_s12 + $0x398] sm:$0xf0] }
 0x31b   : > { %6736 = vmatpush.bf16.msrb.mxu3 %v10319_v56  ;;  %6699 = vmatmul.bf16.vlgmr.msrb.gmra.mxu0 %v12117_v7  ;;  %v6492_v56 = vpop.f32.mrf.mxu0 }
 0x31c   : > { %6743 = vmatpush.bf16.msra.mxu0 %v7723_v23  ;;  %6756 = vmatpush.bf16.msra.mxu1 %v8139_v52  ;;  %v7983_v23 = vor.u32 %v10830_v9, %v7982_v39  ;;  %v10713_v52 = vld [vmem:[%s11906_s12 + $0x190] sm:$0xf0]  ;;  %v6467_v59 = vadd.f32 %v13381_v36, %v6454_v53  ;;  %v8710_v39 = vld [vmem:[%s11906_s12 + $0xab8] sm:$0xf]  ;;  %v11012_v9 = vld [vmem:[%s11906_s12 + $0xae8] sm:$0xf0] }
 0x31d   : > { %6712 = vmatmul.bf16.vlgmr.msrb.gmra.mxu1 %v12122_v13  ;;  %v7515_v51 = vor.u32 %v10713_v52, %v7514_v41  ;;  %v9802_v41 = vld [vmem:[%s11906_s12 + $0x1340] sm:$0xf]  ;;  %v8711_v53 = vor.u32 %v11012_v9, %v8710_v39  ;;  %v11259_v39 = vld [vmem:[%s11906_s12 + $0x12a0] sm:$0xf0] }
 0x31e   : > { %6724 = vmatpush.bf16.msrb.mxu2 %v9851_v3  ;;  %v8399_v3 = vor.u32 %v10934_v58, %v8398_v57  ;;  %v6480_v11 = vadd.f32 %v13386_v28, %v6467_v59  ;;  %v8658_v59 = vld [vmem:[%s11906_s12 + $0xa50] sm:$0xf] }
 0x31f   : > { %6737 = vmatpush.bf16.msrb.mxu3 %v10267_v12 }
 0x320   : > { %6744 = vmatpush.bf16.msra.mxu0 %v7671_v31  ;;  %6757 = vmatpush.bf16.msra.mxu1 %v8087_v2  ;;  %v11038_v31 = vld [vmem:[%s11906_s12 + $0xbb8] sm:$0xf0]  ;;  %v10700_v2 = vld [vmem:[%s11906_s12 + $0x128] sm:$0xf0]  ;;  %v6493_v48 = vadd.f32 %v6492_v56, %v6480_v11  ;;  %v6428_v56 = vadd.f32 %v13310_v26, %v6415_v32 }
 0x321   : > { %6725 = vmatmul.bf16.vlgmr.msrb.gmra.mxu2 %v12137_v40  ;;  %v8815_v36 = vor.u32 %v11038_v31, %v8814_v62  ;;  %v7463_v12 = vor.u32 %v10700_v2, %v7462_v1  ;;  %v9334_v31 = vld [vmem:[%s11906_s12 + $0xf98] sm:$0xf]  ;;  %v8243_v2 = vor.u32 %v10895_v54, %v8242_v43  ;;  %v10986_v11 = vld [vmem:[%s11906_s12 + $0xa18] sm:$0xf0] }
 0x322   : > { %6769 = vmatpush.bf16.msra.mxu2 %v8555_v14  ;;  %6738 = vmatmul.bf16.vlgmr.msrb.gmra.mxu3 %v12142_v45  ;;  %v8762_v14 = vld [vmem:[%s11906_s12 + $0xb20] sm:$0xf]  ;;  %v6507_v33 = vpop.f32.mrf.mxu1  ;;  %v6506_v46 = vadd.f32 %v6505_v60, %v6493_v48  ;;  %v10999_v60 = vld [vmem:[%s11906_s12 + $0xa80] sm:$0xf0]  ;;  %v11142_v43 = vld [vmem:[%s11906_s12 + $0xef8] sm:$0xf0] }
 0x323   : > { %6782 = vmatpush.bf16.msra.mxu3 %v8971_v19  ;;  %v10687_v19 = vld [vmem:[%s11906_s12 + $0xc0] sm:$0xf0]  ;;  %v6494_v28 = vpop.f32.mrf.mxu0  ;;  %v8763_v25 = vor.u32 %v11025_v16, %v8762_v14  ;;  %v10218_v16 = vld [vmem:[%s11906_s12 + $0x1680] sm:$0xf] }
 0x324   : > { %6745 = vmatpush.bf16.msra.mxu0 %v7619_v22  ;;  %6758 = vmatpush.bf16.msra.mxu1 %v8035_v27  ;;  %v7826_v22 = vld [vmem:[%s11906_s12 + $0x3d0] sm:$0xf]  ;;  %v8294_v27 = vld [vmem:[%s11906_s12 + $0x778] sm:$0xf]  ;;  %v6518_v52 = vpop.f32.mrf.mxu2  ;;  %v10634_v48 = vld [vmem:[%s11906_s12 + $0x19c0] sm:$0xf] }
 0x325   : > { %v7827_v44 = vor.u32 %v10791_v38, %v7826_v22  ;;  %v8295_v55 = vor.u32 %v10908_v30, %v8294_v27  ;;  %v6531_v57 = vpop.f32.mrf.mxu3  ;;  %v7086_v22 = vrot.slane %v13178_v61, 7  ;;  %v9282_v27 = vld [vmem:[%s11906_s12 + $0xf30] sm:$0xf]  ;;  %v11155_v30 = vld [vmem:[%s11906_s12 + $0xf60] sm:$0xf0] }
 0x326   : > { %6770 = vmatpush.bf16.msra.mxu2 %v8503_v37  ;;  %v7411_v37 = vor.u32 %v10687_v19, %v7410_v18  ;;  %v7085_v18 = vrot.slane %v13178_v61, 4  ;;  %v8607_v61 = vor.u32 %v10986_v11, %v8606_v10  ;;  %v10062_v10 = vld [vmem:[%s11906_s12 + $0x1548] sm:$0xf]  ;;  %v11350_v11 = vld [vmem:[%s11906_s12 + $0x1578] sm:$0xf0] }
 0x327   : > { %6783 = vmatpush.bf16.msra.mxu3 %v8919_v42  ;;  %v7358_v42 = vld [vmem:[%s11906_s12 + $0x28] sm:$0xf] }
 0x328   : > { %6746 = vmatpush.bf16.msra.mxu0 %v7567_v47  ;;  %6759 = vmatpush.bf16.msra.mxu1 %v7983_v23  ;;  %v7774_v47 = vld [vmem:[%s11906_s12 + $0x368] sm:$0xf]  ;;  %v11181_v23 = vld [vmem:[%s11906_s12 + $0x1030] sm:$0xf0]  ;;  %v7359_v58 = vor.u32 %v10674_v20, %v7358_v42 }
 0x329   : > { %v9387_v62 = vor.u32 %v11181_v23, %v9386_v34  ;;  %v11480_v34 = vld [vmem:[%s11906_s12 + $0x1988] sm:$0xf0]  ;;  %v7107_v23 = vsel %vm7104_vm4, %v7085_v18, %v7086_v22  ;;  %v11454_v18 = vld [vmem:[%s11906_s12 + $0x18b8] sm:$0xf0] }
 0x32a   : > { %6771 = vmatpush.bf16.msra.mxu2 %v8451_v24  ;;  %v11285_v24 = vld [vmem:[%s11906_s12 + $0x1370] sm:$0xf0] }
 0x32b   : > { %6784 = vmatpush.bf16.msra.mxu3 %v8867_v15  ;;  %v6519_v15 = vadd.f32 %v6518_v52, %v6506_v46  ;;  %v9803_v1 = vor.u32 %v11285_v24, %v9802_v41  ;;  %v9283_v46 = vor.u32 %v11155_v30, %v9282_v27  ;;  %v9230_v24 = vld [vmem:[%s11906_s12 + $0xec8] sm:$0xf]  ;;  %v10010_v30 = vld [vmem:[%s11906_s12 + $0x14e0] sm:$0xf] }
 0x32c   : > { %6747 = vmatpush.bf16.msra.mxu0 %v7515_v51  ;;  %6760 = vmatpush.bf16.msra.mxu1 %v7931_v63  ;;  %v7775_v51 = vor.u32 %v10778_v49, %v7774_v47  ;;  %v11168_v63 = vld [vmem:[%s11906_s12 + $0xfc8] sm:$0xf0]  ;;  %v6520_v32 = vpop.f32.mrf.mxu2  ;;  %v10166_v47 = vld [vmem:[%s11906_s12 + $0x1618] sm:$0xf] }
 0x32d   : > { %v6532_v26 = vadd.f32 %v6531_v57, %v6519_v15  ;;  %v9335_v19 = vor.u32 %v11168_v63, %v9334_v31  ;;  %v11376_v49 = vld [vmem:[%s11906_s12 + $0x1648] sm:$0xf0]  ;;  %v9646_v15 = vld [vmem:[%s11906_s12 + $0x1208] sm:$0xf]  ;;  %v11246_v57 = vld [vmem:[%s11906_s12 + $0x1238] sm:$0xf0]  ;;  %v9231_v31 = vor.u32 %v11142_v43, %v9230_v24 }
 0x32e   : > { %6772 = vmatpush.bf16.msra.mxu2 %v8399_v3  ;;  %v9750_v3 = vld [vmem:[%s11906_s12 + $0x12d8] sm:$0xf]  ;;  %v10530_v63 = vld [vmem:[%s11906_s12 + $0x18f0] sm:$0xf]  ;;  %v11337_v32 = vld [vmem:[%s11906_s12 + $0x1510] sm:$0xf0] }
 0x32f   : > { %6785 = vmatpush.bf16.msra.mxu3 %v8815_v36  ;;  %v8659_v36 = vor.u32 %v10999_v60, %v8658_v59  ;;  %v7062_v14 = vmax.f32 %v6532_v26, 0.0  ;;  %v9751_v28 = vor.u32 %v11272_v4, %v9750_v3  ;;  %v10114_v60 = vld [vmem:[%s11906_s12 + $0x15b0] sm:$0xf]  ;;  %v11467_v26 = vld [vmem:[%s11906_s12 + $0x1920] sm:$0xf0] }
 0x330   : > { %6748 = vmatpush.bf16.msra.mxu0 %v7463_v12  ;;  %6761 = vmatpush.bf16.msra.mxu1 %v7879_v50  ;;  %v7061_v12 = vmax.f32 %v6428_v56, 0.0  ;;  %v11389_v50 = vld [vmem:[%s11906_s12 + $0x16b0] sm:$0xf0]  ;;  %v10167_v56 = vor.u32 %v11376_v49, %v10166_v47  ;;  %v9594_v4 = vld [vmem:[%s11906_s12 + $0x11a0] sm:$0xf] }
 0x331   : > { %v10219_v33 = vor.u32 %v11389_v50, %v10218_v16  ;;  %v10478_v50 = vld [vmem:[%s11906_s12 + $0x1888] sm:$0xf]  ;;  %v11207_v47 = vld [vmem:[%s11906_s12 + $0x1100] sm:$0xf0]  ;;  %v11428_v24 = vld [vmem:[%s11906_s12 + $0x17e8] sm:$0xf0] }
 0x332   : > { %6773 = vmatpush.bf16.msra.mxu2 %v8347_v21  ;;  %v11493_v21 = vld [vmem:[%s11906_s12 + $0x19f0] sm:$0xf0]  ;;  %v7071_v38 = vpack.c.bf16 %v7062_v14, %v7061_v12  ;;  %v10479_v27 = vor.u32 %v11454_v18, %v10478_v50  ;;  %v9022_v43 = vld [vmem:[%s11906_s12 + $0xd28] sm:$0xf]  ;;  %v10850_v50 = vld [vmem:[%s11906_s12 + $0x5dc] sm:$0xf] }
 0x333   : > { %6786 = vmatpush.bf16.msra.mxu3 %v8763_v25  ;;  %v8191_v25 = vor.u32 %v10882_v8, %v8190_v6  ;;  %v10635_v20 = vor.u32 %v11493_v21, %v10634_v48  ;;  %v11233_v6 = vld [vmem:[%s11906_s12 + $0x11d0] sm:$0xf0]  ;;  %v10531_v8 = vor.u32 %v11467_v26, %v10530_v63  ;;  %v9126_v48 = vld [vmem:[%s11906_s12 + $0xdf8] sm:$0xf]  ;;  %v11116_v21 = vld [vmem:[%s11906_s12 + $0xe28] sm:$0xf0] }
 0x334   : > { %6749 = vmatpush.bf16.msra.mxu0 %v7411_v37  ;;  %6762 = vmatpush.bf16.msra.mxu1 %v7827_v44  ;;  %v9698_v37 = vld [vmem:[%s11906_s12 + $0x1270] sm:$0xf]  ;;  %v7087_v9 = vrot.slane %v7071_v38, 2  ;;  %v7088_v42 = vrot.slane %v7071_v38, 5  ;;  %v6533_v44 = vpop.f32.mrf.mxu3  ;;  %v10063_v38 = vor.u32 %v11350_v11, %v10062_v10  ;;  %v8140_v63 = vld [vmem:[%s11906_s12 + $0x674] sm:$0xf0] }
 0x335   : > { %v9699_v52 = vor.u32 %v11259_v39, %v9698_v37  ;;  %v11441_v37 = vld [vmem:[%s11906_s12 + $0x1850] sm:$0xf0]  ;;  %v10011_v44 = vor.u32 %v11337_v32, %v10010_v30  ;;  %v9906_v26 = vld [vmem:[%s11906_s12 + $0x1410] sm:$0xf]  ;;  %v10746_v10 = vld [vmem:[%s11906_s12 + $0x29c] sm:$0xf] }
 0x336   : > { %6774 = vmatpush.bf16.msra.mxu2 %v8295_v55  ;;  %v10582_v55 = vld [vmem:[%s11906_s12 + $0x1958] sm:$0xf]  ;;  %v7111_v41 = vsel %vm7108_vm5, %v7087_v9, %v7088_v42  ;;  %v9074_v9 = vld [vmem:[%s11906_s12 + $0xd90] sm:$0xf]  ;;  %v11103_v42 = vld [vmem:[%s11906_s12 + $0xdc0] sm:$0xf0] }
 0x337   : > { %6787 = vmatpush.bf16.msra.mxu3 %v8711_v53  ;;  %v13506_v53 = vld [vmem:[%s12382_s7 + $0x8] sm:$0x1f]  ;;  %v7113_v54 = vsel %vm7112_vm6, %v7107_v23, %v7111_v41  ;;  %v10583_v59 = vor.u32 %v11480_v34, %v10582_v55  ;;  %v9075_v41 = vor.u32 %v11103_v42, %v9074_v9  ;;  %v8088_v18 = vld [vmem:[%s11906_s12 + $0x60c] sm:$0xf0]  ;;  %v11071_v30 = vld [vmem:[%s11906_s12 + $0xcc4] sm:$0xf] }
 0x338   : > { %6750 = vmatpush.bf16.msra.mxu0 %v7359_v58  ;;  %6763 = vmatpush.bf16.msra.mxu1 %v7775_v51  ;;  %v7115_v58 = vsel %vm7114_vm7, %v12902_v17, %v7113_v54  ;;  %v11363_v51 = vld [vmem:[%s11906_s12 + $0x15e0] sm:$0xf0]  ;;  %v9647_v17 = vor.u32 %v11246_v57, %v9646_v15  ;;  %v9958_v55 = vld [vmem:[%s11906_s12 + $0x1478] sm:$0xf]  ;;  %v11324_v34 = vld [vmem:[%s11906_s12 + $0x14a8] sm:$0xf0] }
 0x339   : > { %7132 = vst [vmem:[%s13514_s17] sm:$0xff] %v7115_v58  ;;  %v10115_v3 = vor.u32 %v11363_v51, %v10114_v60  ;;  %v9438_v15 = vld [vmem:[%s11906_s12 + $0x1068] sm:$0xf]  ;;  %v11194_v57 = vld [vmem:[%s11906_s12 + $0x1098] sm:$0xf0]  ;;  %v9959_v58 = vor.u32 %v11324_v34, %v9958_v55  ;;  %v7724_v60 = vld [vmem:[%s11906_s12 + $0x334] sm:$0xf0] }
 0x33a   : > { %6775 = vmatpush.bf16.msra.mxu2 %v8243_v2  ;;  %v11129_v2 = vld [vmem:[%s11906_s12 + $0xe90] sm:$0xf0]  ;;  %v6557_v14 = vpop.f32.mrf.mxu1  ;;  %v10863_v51 = vld [vmem:[%s11906_s12 + $0x644] sm:$0xf]  ;;  %v8972_v32 = vld [vmem:[%s11906_s12 + $0xcf4] sm:$0xf0] }
 0x33b   : > { %6788 = vmatpush.bf16.msra.mxu3 %v8659_v36  ;;  %6751 = vmatmul.bf16.vlgmr.msra.gmra.mxu0 %v12070_v0  ;;  %v6544_v36 = vpop.f32.mrf.mxu0  ;;  %v10954_v55 = vld [vmem:[%s11906_s12 + $0x91c] sm:$0xf]  ;;  %v8504_v34 = vld [vmem:[%s11906_s12 + $0x94c] sm:$0xf0] }
 0x33c   : > { %6795 = vmatpush.bf16.msrb.mxu0 %v9387_v62  ;;  %6808 = vmatpush.bf16.msrb.mxu1 %v9803_v1  ;;  %v1461_v62 = vperm.slane %v13506_v53, 0  ;;  %v9178_v1 = vld [vmem:[%s11906_s12 + $0xe60] sm:$0xf] }
 0x33d   : > { %6764 = vmatmul.bf16.vlgmr.msra.gmra.mxu1 %v12075_v5  ;;  %v9179_v16 = vor.u32 %v11129_v2, %v9178_v1 }
 0x33e   : > { %6776 = vmatpush.bf16.msra.mxu2 %v8191_v25  ;;  %v6545_v12 = vadd.f32 %v6544_v36, %v1461_v62  ;;  %v11220_v25 = vld [vmem:[%s11906_s12 + $0x1168] sm:$0xf0]  ;;  %v9439_v36 = vor.u32 %v11194_v57, %v9438_v15  ;;  %v7984_v57 = vld [vmem:[%s11906_s12 + $0x53c] sm:$0xf0] }
 0x33f   : > { %6789 = vmatpush.bf16.msra.mxu3 %v8607_v61  ;;  %v9127_v61 = vor.u32 %v11116_v21, %v9126_v48  ;;  %v9854_v48 = vld [vmem:[%s11906_s12 + $0x13a8] sm:$0xf]  ;;  %v11298_v21 = vld [vmem:[%s11906_s12 + $0x13d8] sm:$0xf0]  ;;  %v10824_v15 = vld [vmem:[%s11906_s12 + $0x50c] sm:$0xf] }
 0x340   : > { %6796 = vmatpush.bf16.msrb.mxu0 %v9335_v19  ;;  %6809 = vmatpush.bf16.msrb.mxu1 %v9751_v28  ;;  %v9595_v19 = vor.u32 %v11233_v6, %v9594_v4  ;;  %v6558_v22 = vadd.f32 %v6557_v14, %v6545_v12  ;;  %v9542_v28 = vld [vmem:[%s11906_s12 + $0x1138] sm:$0xf]  ;;  %v10322_v4 = vld [vmem:[%s11906_s12 + $0x1750] sm:$0xf]  ;;  %v11415_v6 = vld [vmem:[%s11906_s12 + $0x1780] sm:$0xf0]  ;;  %v8143_v12 = vor.u32 %v10863_v51, %v8140_v63 }
 0x341   : > { %6777 = vmatmul.bf16.vlgmr.msra.gmra.mxu2 %v12090_v29  ;;  %v9543_v39 = vor.u32 %v11220_v25, %v9542_v28  ;;  %v10967_v28 = vld [vmem:[%s11906_s12 + $0x984] sm:$0xf]  ;;  %v8556_v25 = vld [vmem:[%s11906_s12 + $0x9b4] sm:$0xf0]  ;;  %v7987_v63 = vor.u32 %v10824_v15, %v7984_v57 }
 0x342   : > { %6821 = vmatpush.bf16.msrb.mxu2 %v10219_v33  ;;  %6790 = vmatmul.bf16.vlgmr.msra.gmra.mxu3 %v12095_v35  ;;  %v10426_v33 = vld [vmem:[%s11906_s12 + $0x1820] sm:$0xf]  ;;  %v6559_v23 = vpop.f32.mrf.mxu1  ;;  %v11175_v57 = vld [vmem:[%s11906_s12 + $0x1004] sm:$0xf] }
 0x343   : > { %6834 = vmatpush.bf16.msrb.mxu3 %v10635_v20  ;;  %v9490_v20 = vld [vmem:[%s11906_s12 + $0x10d0] sm:$0xf]  ;;  %v6546_v49 = vpop.f32.mrf.mxu0 }
 0x344   : > { %6797 = vmatpush.bf16.msrb.mxu0 %v9283_v46  ;;  %6810 = vmatpush.bf16.msrb.mxu1 %v9699_v52  ;;  %v10427_v46 = vor.u32 %v11441_v37, %v10426_v33  ;;  %v10374_v52 = vld [vmem:[%s11906_s12 + $0x17b8] sm:$0xf]  ;;  %v9491_v54 = vor.u32 %v11207_v47, %v9490_v20  ;;  %v6570_v62 = vpop.f32.mrf.mxu2  ;;  %v9855_v33 = vor.u32 %v11298_v21, %v9854_v48  ;;  %v10733_v37 = vld [vmem:[%s11906_s12 + $0x234] sm:$0xf]  ;;  %v8036_v47 = vld [vmem:[%s11906_s12 + $0x5a4] sm:$0xf0] }
 0x345   : > { %v6571_v1 = vadd.f32 %v6570_v62, %v6558_v22  ;;  %v6583_v2 = vpop.f32.mrf.mxu3  ;;  %v10270_v22 = vld [vmem:[%s11906_s12 + $0x16e8] sm:$0xf]  ;;  %v10837_v20 = vld [vmem:[%s11906_s12 + $0x574] sm:$0xf]  ;;  %v7464_v48 = vld [vmem:[%s11906_s12 + $0x12c] sm:$0xf0] }
 0x346   : > { %6822 = vmatpush.bf16.msrb.mxu2 %v10167_v56  ;;  %v11090_v56 = vld [vmem:[%s11906_s12 + $0xd58] sm:$0xf0]  ;;  %v11045_v62 = vld [vmem:[%s11906_s12 + $0xbf4] sm:$0xf] }
 0x347   : > { %6835 = vmatpush.bf16.msrb.mxu3 %v10583_v59  ;;  %v10759_v59 = vld [vmem:[%s11906_s12 + $0x304] sm:$0xf]  ;;  %v13566_v11 = vadd.f32 %v6583_v2, %v6571_v1 }
 0x348   : > { %6798 = vmatpush.bf16.msrb.mxu0 %v9231_v31  ;;  %6811 = vmatpush.bf16.msrb.mxu1 %v9647_v17  ;;  %v10375_v31 = vor.u32 %v11428_v24, %v10374_v52  ;;  %v11311_v17 = vld [vmem:[%s11906_s12 + $0x1440] sm:$0xf0]  ;;  %v8920_v52 = vld [vmem:[%s11906_s12 + $0xc8c] sm:$0xf0]  ;;  %v8039_v24 = vor.u32 %v10837_v20, %v8036_v47 }
 0x349   : > { %v9907_v14 = vor.u32 %v11311_v17, %v9906_v26  ;;  %v10707_v26 = vld [vmem:[%s11906_s12 + $0x164] sm:$0xf]  ;;  %v7516_v17 = vld [vmem:[%s11906_s12 + $0x194] sm:$0xf0] }
 0x34a   : > { %6823 = vmatpush.bf16.msrb.mxu2 %v10115_v3  ;;  %v9023_v3 = vor.u32 %v11090_v56, %v9022_v43  ;;  %v10720_v43 = vld [vmem:[%s11906_s12 + $0x1cc] sm:$0xf]  ;;  %v8507_v56 = vor.u32 %v10954_v55, %v8504_v34  ;;  %v10811_v2 = vld [vmem:[%s11906_s12 + $0x4a4] sm:$0xf] }
 0x34b   : > { %6836 = vmatpush.bf16.msrb.mxu3 %v10531_v8  ;;  %v7727_v8 = vor.u32 %v10759_v59, %v7724_v60  ;;  %v10941_v59 = vld [vmem:[%s11906_s12 + $0x8b4] sm:$0xf]  ;;  %v8452_v60 = vld [vmem:[%s11906_s12 + $0x8e4] sm:$0xf0] }
 0x34c   : > { %6799 = vmatpush.bf16.msrb.mxu0 %v9179_v16  ;;  %6812 = vmatpush.bf16.msrb.mxu1 %v9595_v19  ;;  %v7672_v16 = vld [vmem:[%s11906_s12 + $0x2cc] sm:$0xf0]  ;;  %v10323_v19 = vor.u32 %v11415_v6, %v10322_v4  ;;  %v6572_v9 = vpop.f32.mrf.mxu2  ;;  %v8455_v1 = vor.u32 %v10941_v59, %v8452_v60  ;;  %v11279_v59 = vld [vmem:[%s11906_s12 + $0x1344] sm:$0xf] }
 0x34d   : > { %v6585_v49 = vpop.f32.mrf.mxu3 }
 0x34e   : > { %6824 = vmatpush.bf16.msrb.mxu2 %v10063_v38  ;;  %v11402_v38 = vld [vmem:[%s11906_s12 + $0x1718] sm:$0xf0] }
 0x34f   : > { %6837 = vmatpush.bf16.msrb.mxu3 %v10479_v27  ;;  %v7675_v27 = vor.u32 %v10746_v10, %v7672_v16  ;;  %v10271_v42 = vor.u32 %v11402_v38, %v10270_v22  ;;  %v11032_v16 = vld [vmem:[%s11906_s12 + $0xb8c] sm:$0xf]  ;;  %v10798_v38 = vld [vmem:[%s11906_s12 + $0x43c] sm:$0xf] }
 0x350   : > { %6800 = vmatpush.bf16.msrb.mxu0 %v9127_v61  ;;  %6813 = vmatpush.bf16.msrb.mxu1 %v9543_v39  ;;  %v8091_v61 = vor.u32 %v10850_v50, %v8088_v18  ;;  %v7620_v39 = vld [vmem:[%s11906_s12 + $0x264] sm:$0xf0]  ;;  %v8816_v50 = vld [vmem:[%s11906_s12 + $0xbbc] sm:$0xf0]  ;;  %v10902_v49 = vld [vmem:[%s11906_s12 + $0x77c] sm:$0xf] }
 0x351   : > { %v7623_v23 = vor.u32 %v10733_v37, %v7620_v39  ;;  %v10681_v37 = vld [vmem:[%s11906_s12 + $0x94] sm:$0xf]  ;;  %v7412_v39 = vld [vmem:[%s11906_s12 + $0xc4] sm:$0xf0] }
 0x352   : > { %6825 = vmatpush.bf16.msrb.mxu2 %v10011_v44  ;;  %v8559_v44 = vor.u32 %v10967_v28, %v8556_v25  ;;  %v8819_v28 = vor.u32 %v11032_v16, %v8816_v50  ;;  %v10915_v25 = vld [vmem:[%s11906_s12 + $0x7e4] sm:$0xf]  ;;  %v7415_v34 = vor.u32 %v10681_v37, %v7412_v39  ;;  %v11266_v16 = vld [vmem:[%s11906_s12 + $0x12dc] sm:$0xf]  ;;  %v9752_v50 = vld [vmem:[%s11906_s12 + $0x130c] sm:$0xf0] }
 0x353   : > { %6838 = vmatpush.bf16.msrb.mxu3 %v10427_v46  ;;  %v8975_v46 = vor.u32 %v11071_v30, %v8972_v32  ;;  %v11019_v32 = vld [vmem:[%s11906_s12 + $0xb24] sm:$0xf] }
 0x354   : > { %6801 = vmatpush.bf16.msrb.mxu0 %v9075_v41  ;;  %6814 = vmatpush.bf16.msrb.mxu1 %v9491_v54  ;;  %v11058_v41 = vld [vmem:[%s11906_s12 + $0xc5c] sm:$0xf]  ;;  %v7568_v54 = vld [vmem:[%s11906_s12 + $0x1fc] sm:$0xf0] }
 0x355   : > { %v7571_v51 = vor.u32 %v10720_v43, %v7568_v54  ;;  %v7360_v43 = vld [vmem:[%s11906_s12 + $0x5c] sm:$0xf0]  ;;  %v10772_v54 = vld [vmem:[%s11906_s12 + $0x36c] sm:$0xf] }
 0x356   : > { %6826 = vmatpush.bf16.msrb.mxu2 %v9959_v58  ;;  %v8923_v58 = vor.u32 %v11058_v41, %v8920_v52  ;;  %v8712_v41 = vld [vmem:[%s11906_s12 + $0xaec] sm:$0xf0]  ;;  %v10668_v52 = vld [vmem:[%s11906_s12 + $0x2c] sm:$0xf] }
 0x357   : > { %6839 = vmatpush.bf16.msrb.mxu3 %v10375_v31  ;;  %v8868_v31 = vld [vmem:[%s11906_s12 + $0xc24] sm:$0xf0] }
 0x358   : > { %6802 = vmatpush.bf16.msrb.mxu0 %v9023_v3  ;;  %6815 = vmatpush.bf16.msrb.mxu1 %v9439_v36  ;;  %v7932_v3 = vld [vmem:[%s11906_s12 + $0x4d4] sm:$0xf0]  ;;  %v6596_v4 = vpop.f32.mrf.mxu0  ;;  %v8871_v6 = vor.u32 %v11045_v62, %v8868_v31  ;;  %v10928_v36 = vld [vmem:[%s11906_s12 + $0x84c] sm:$0xf]  ;;  %v10889_v31 = vld [vmem:[%s11906_s12 + $0x714] sm:$0xf] }
 0x359   : > { %v6597_v10 = vadd.f32 %v6596_v4, %v13566_v11  ;;  %v7935_v18 = vor.u32 %v10811_v2, %v7932_v3  ;;  %v7880_v11 = vld [vmem:[%s11906_s12 + $0x46c] sm:$0xf0]  ;;  %v9804_v62 = vld [vmem:[%s11906_s12 + $0x1374] sm:$0xf0]  ;;  %v10993_v2 = vld [vmem:[%s11906_s12 + $0xa54] sm:$0xf] }
 0x35a   : > { %6827 = vmatpush.bf16.msrb.mxu2 %v9907_v14  ;;  %v7519_v14 = vor.u32 %v10707_v26, %v7516_v17  ;;  %v8660_v3 = vld [vmem:[%s11906_s12 + $0xa84] sm:$0xf0] }
 0x35b   : > { %6840 = vmatpush.bf16.msrb.mxu3 %v10323_v19  ;;  %6803 = vmatmul.bf16.vlgmr.msrb.gmra.mxu0 %v12117_v7  ;;  %v10694_v19 = vld [vmem:[%s11906_s12 + $0xfc] sm:$0xf] }
 0x35c   : > { %6847 = vmatpush.bf16.msra.mxu0 %v7727_v8  ;;  %6860 = vmatpush.bf16.msra.mxu1 %v8143_v12  ;;  %v8400_v8 = vld [vmem:[%s11906_s12 + $0x87c] sm:$0xf0]  ;;  %v6609_v12 = vpop.f32.mrf.mxu1  ;;  %v7467_v30 = vor.u32 %v10694_v19, %v7464_v48  ;;  %v10876_v19 = vld [vmem:[%s11906_s12 + $0x6ac] sm:$0xf] }
 0x35d   : > { %6816 = vmatmul.bf16.vlgmr.msrb.gmra.mxu1 %v12122_v13  ;;  %v6610_v21 = vadd.f32 %v6609_v12, %v6597_v10  ;;  %v8403_v22 = vor.u32 %v10928_v36, %v8400_v8  ;;  %v11162_v36 = vld [vmem:[%s11906_s12 + $0xf9c] sm:$0xf]  ;;  %v9807_v10 = vor.u32 %v11279_v59, %v9804_v62  ;;  %v8192_v48 = vld [vmem:[%s11906_s12 + $0x6dc] sm:$0xf0]  ;;  %v1462_v59 = vperm.slane %v13506_v53, 1 }
 0x35e   : > { %6828 = vmatpush.bf16.msrb.mxu2 %v9855_v33  ;;  %v7883_v33 = vor.u32 %v10798_v38, %v7880_v11  ;;  %v11383_v38 = vld [vmem:[%s11906_s12 + $0x1684] sm:$0xf]  ;;  %v10220_v11 = vld [vmem:[%s11906_s12 + $0x16b4] sm:$0xf0]  ;;  %v10532_v62 = vld [vmem:[%s11906_s12 + $0x1924] sm:$0xf0] }
 0x35f   : > { %6841 = vmatpush.bf16.msrb.mxu3 %v10271_v42  ;;  %v10785_v42 = vld [vmem:[%s11906_s12 + $0x3d4] sm:$0xf] }
 0x360   : > { %6848 = vmatpush.bf16.msra.mxu0 %v7675_v27  ;;  %6861 = vmatpush.bf16.msra.mxu1 %v8091_v61  ;;  %v8348_v27 = vld [vmem:[%s11906_s12 + $0x814] sm:$0xf0]  ;;  %v6598_v20 = vpop.f32.mrf.mxu0 }
 0x361   : > { %6829 = vmatmul.bf16.vlgmr.msrb.gmra.mxu2 %v12137_v40  ;;  %v8764_v61 = vld [vmem:[%s11906_s12 + $0xb54] sm:$0xf0]  ;;  %v8351_v9 = vor.u32 %v10915_v25, %v8348_v27  ;;  %v11487_v25 = vld [vmem:[%s11906_s12 + $0x19c4] sm:$0xf] }
 0x362   : > { %6873 = vmatpush.bf16.msra.mxu2 %v8559_v44  ;;  %6842 = vmatmul.bf16.vlgmr.msrb.gmra.mxu3 %v12142_v45  ;;  %v7828_v44 = vld [vmem:[%s11906_s12 + $0x404] sm:$0xf0]  ;;  %v8767_v47 = vor.u32 %v11019_v32, %v8764_v61  ;;  %v10636_v27 = vld [vmem:[%s11906_s12 + $0x19f4] sm:$0xf0]  ;;  %v8195_v32 = vor.u32 %v10876_v19, %v8192_v48  ;;  %v11149_v61 = vld [vmem:[%s11906_s12 + $0xf34] sm:$0xf] }
 0x363   : > { %6886 = vmatpush.bf16.msra.mxu3 %v8975_v46  ;;  %v8296_v46 = vld [vmem:[%s11906_s12 + $0x7ac] sm:$0xf0] }
 0x364   : > { %6849 = vmatpush.bf16.msra.mxu0 %v7623_v23  ;;  %6862 = vmatpush.bf16.msra.mxu1 %v8039_v24  ;;  %v6611_v55 = vpop.f32.mrf.mxu1  ;;  %v11006_v23 = vld [vmem:[%s11906_s12 + $0xabc] sm:$0xf]  ;;  %v7831_v24 = vor.u32 %v10785_v42, %v7828_v44  ;;  %v8299_v15 = vor.u32 %v10902_v49, %v8296_v46  ;;  %v6622_v60 = vpop.f32.mrf.mxu2  ;;  %v11253_v42 = vld [vmem:[%s11906_s12 + $0x1274] sm:$0xf]  ;;  %v9700_v44 = vld [vmem:[%s11906_s12 + $0x12a4] sm:$0xf0] }
 0x365   : > { %v6623_v26 = vadd.f32 %v6622_v60, %v6610_v21  ;;  %v6635_v17 = vpop.f32.mrf.mxu3  ;;  %v10980_v21 = vld [vmem:[%s11906_s12 + $0x9ec] sm:$0xf]  ;;  %v11370_v49 = vld [vmem:[%s11906_s12 + $0x161c] sm:$0xf]  ;;  %v10168_v46 = vld [vmem:[%s11906_s12 + $0x164c] sm:$0xf0] }
 0x366   : > { %6874 = vmatpush.bf16.msra.mxu2 %v8507_v56  ;;  %v7776_v56 = vld [vmem:[%s11906_s12 + $0x39c] sm:$0xf0]  ;;  %v9128_v19 = vld [vmem:[%s11906_s12 + $0xe2c] sm:$0xf0] }
 0x367   : > { %6887 = vmatpush.bf16.msra.mxu3 %v8923_v58  ;;  %v9388_v58 = vld [vmem:[%s11906_s12 + $0x1034] sm:$0xf0]  ;;  %v7779_v4 = vor.u32 %v10772_v54, %v7776_v56  ;;  %v13637_v8 = vadd.f32 %v6635_v17, %v6623_v26  ;;  %v11240_v54 = vld [vmem:[%s11906_s12 + $0x120c] sm:$0xf]  ;;  %v9648_v56 = vld [vmem:[%s11906_s12 + $0x123c] sm:$0xf0] }
 0x368   : > { %6850 = vmatpush.bf16.msra.mxu0 %v7571_v51  ;;  %6863 = vmatpush.bf16.msra.mxu1 %v7987_v63  ;;  %v8715_v51 = vor.u32 %v11006_v23, %v8712_v41  ;;  %v8244_v63 = vld [vmem:[%s11906_s12 + $0x744] sm:$0xf0]  ;;  %v10584_v23 = vld [vmem:[%s11906_s12 + $0x198c] sm:$0xf0]  ;;  %v9703_v41 = vor.u32 %v11253_v42, %v9700_v44  ;;  %v9180_v26 = vld [vmem:[%s11906_s12 + $0xe94] sm:$0xf0] }
 0x369   : > { %v8247_v12 = vor.u32 %v10889_v31, %v8244_v63  ;;  %v9651_v31 = vor.u32 %v11240_v54, %v9648_v56  ;;  %v11123_v63 = vld [vmem:[%s11906_s12 + $0xe64] sm:$0xf]  ;;  %v9492_v42 = vld [vmem:[%s11906_s12 + $0x1104] sm:$0xf0]  ;;  %v9440_v54 = vld [vmem:[%s11906_s12 + $0x109c] sm:$0xf0] }
 0x36a   : > { %6875 = vmatpush.bf16.msra.mxu2 %v8455_v1  ;;  %v7363_v1 = vor.u32 %v10668_v52, %v7360_v43  ;;  %v11136_v52 = vld [vmem:[%s11906_s12 + $0xecc] sm:$0xf]  ;;  %v10171_v43 = vor.u32 %v11370_v49, %v10168_v46  ;;  %v9960_v49 = vld [vmem:[%s11906_s12 + $0x14ac] sm:$0xf0] }
 0x36b   : > { %6888 = vmatpush.bf16.msra.mxu3 %v8871_v6  ;;  %v9391_v6 = vor.u32 %v11175_v57, %v9388_v58  ;;  %v11357_v57 = vld [vmem:[%s11906_s12 + $0x15b4] sm:$0xf]  ;;  %v10116_v58 = vld [vmem:[%s11906_s12 + $0x15e4] sm:$0xf0] }
 0x36c   : > { %6851 = vmatpush.bf16.msra.mxu0 %v7519_v14  ;;  %6864 = vmatpush.bf16.msra.mxu1 %v7935_v18  ;;  %v9336_v14 = vld [vmem:[%s11906_s12 + $0xfcc] sm:$0xf0]  ;;  %v8663_v18 = vor.u32 %v10993_v2, %v8660_v3  ;;  %v6624_v37 = vpop.f32.mrf.mxu2  ;;  %v10119_v17 = vor.u32 %v11357_v57, %v10116_v58  ;;  %v9596_v2 = vld [vmem:[%s11906_s12 + $0x11d4] sm:$0xf0]  ;;  %v10766_v57 = vld [vmem:[%s11906_s12 + $0x338] sm:$0xf0] }
 0x36d   : > { %v6637_v20 = vpop.f32.mrf.mxu3  ;;  %v9076_v37 = vld [vmem:[%s11906_s12 + $0xdc4] sm:$0xf0] }
 0x36e   : > { %6876 = vmatpush.bf16.msra.mxu2 %v8403_v22  ;;  %v8608_v22 = vld [vmem:[%s11906_s12 + $0xa1c] sm:$0xf0]  ;;  %v8146_v58 = vld [vmem:[%s11906_s12 + $0x648] sm:$0xf] }
 0x36f   : > { %6889 = vmatpush.bf16.msra.mxu3 %v8819_v28  ;;  %v9339_v28 = vor.u32 %v11162_v36, %v9336_v14  ;;  %v8611_v39 = vor.u32 %v10980_v21, %v8608_v22  ;;  %v11448_v14 = vld [vmem:[%s11906_s12 + $0x188c] sm:$0xf]  ;;  %v11214_v22 = vld [vmem:[%s11906_s12 + $0x113c] sm:$0xf] }
 0x370   : > { %6852 = vmatpush.bf16.msra.mxu0 %v7467_v30  ;;  %6865 = vmatpush.bf16.msra.mxu1 %v7883_v33  ;;  %v9755_v30 = vor.u32 %v11266_v16, %v9752_v50  ;;  %v9284_v33 = vld [vmem:[%s11906_s12 + $0xf64] sm:$0xf0]  ;;  %v10480_v16 = vld [vmem:[%s11906_s12 + $0x18bc] sm:$0xf0] }
 0x371   : > { %v9287_v55 = vor.u32 %v11149_v61, %v9284_v33  ;;  %v11097_v33 = vld [vmem:[%s11906_s12 + $0xd94] sm:$0xf] }
 0x372   : > { %6877 = vmatpush.bf16.msra.mxu2 %v8351_v9  ;;  %v10223_v9 = vor.u32 %v11383_v38, %v10220_v11  ;;  %v9544_v38 = vld [vmem:[%s11906_s12 + $0x116c] sm:$0xf0]  ;;  %v10483_v11 = vor.u32 %v11448_v14, %v10480_v16  ;;  %v8094_v14 = vld [vmem:[%s11906_s12 + $0x5e0] sm:$0xf]  ;;  %v10857_v16 = vld [vmem:[%s11906_s12 + $0x610] sm:$0xf0] }
 0x373   : > { %6890 = vmatpush.bf16.msra.mxu3 %v8767_v47  ;;  %v10639_v47 = vor.u32 %v11487_v25, %v10636_v27  ;;  %v10012_v25 = vld [vmem:[%s11906_s12 + $0x1514] sm:$0xf0]  ;;  %v9547_v61 = vor.u32 %v11214_v22, %v9544_v38  ;;  %v8562_v22 = vld [vmem:[%s11906_s12 + $0x988] sm:$0xf]  ;;  %v10974_v38 = vld [vmem:[%s11906_s12 + $0x9b8] sm:$0xf0] }
 0x374   : > { %6853 = vmatpush.bf16.msra.mxu0 %v7415_v34  ;;  %6866 = vmatpush.bf16.msra.mxu1 %v7831_v24  ;;  %v11474_v34 = vld [vmem:[%s11906_s12 + $0x195c] sm:$0xf]  ;;  %v9232_v24 = vld [vmem:[%s11906_s12 + $0xefc] sm:$0xf0] }
 0x375   : > { %v9235_v60 = vor.u32 %v11136_v52, %v9232_v24  ;;  %v9024_v24 = vld [vmem:[%s11906_s12 + $0xd5c] sm:$0xf0] }
 0x376   : > { %6878 = vmatpush.bf16.msra.mxu2 %v8299_v15  ;;  %v10587_v15 = vor.u32 %v11474_v34, %v10584_v23  ;;  %v11422_v34 = vld [vmem:[%s11906_s12 + $0x17bc] sm:$0xf]  ;;  %v10376_v23 = vld [vmem:[%s11906_s12 + $0x17ec] sm:$0xf0] }
 0x377   : > { %6891 = vmatpush.bf16.msra.mxu3 %v8715_v51  ;;  %v11461_v51 = vld [vmem:[%s11906_s12 + $0x18f4] sm:$0xf] }
 0x378   : > { %6854 = vmatpush.bf16.msra.mxu0 %v7363_v1  ;;  %6867 = vmatpush.bf16.msra.mxu1 %v7779_v4  ;;  %v11227_v1 = vld [vmem:[%s11906_s12 + $0x11a4] sm:$0xf]  ;;  %v6648_v53 = vpop.f32.mrf.mxu0  ;;  %v10535_v3 = vor.u32 %v11461_v51, %v10532_v62  ;;  %v11344_v4 = vld [vmem:[%s11906_s12 + $0x154c] sm:$0xf]  ;;  %v10870_v51 = vld [vmem:[%s11906_s12 + $0x678] sm:$0xf0] }
 0x379   : > { %v6649_v36 = vadd.f32 %v6648_v53, %v1462_v59  ;;  %v9599_v50 = vor.u32 %v11227_v1, %v9596_v2  ;;  %v11305_v62 = vld [vmem:[%s11906_s12 + $0x1414] sm:$0xf]  ;;  %v10324_v2 = vld [vmem:[%s11906_s12 + $0x1784] sm:$0xf0] }
 0x37a   : > { %6879 = vmatpush.bf16.msra.mxu2 %v8247_v12  ;;  %v9183_v12 = vor.u32 %v11123_v63, %v9180_v26  ;;  %v11409_v1 = vld [vmem:[%s11906_s12 + $0x1754] sm:$0xf] }
 0x37b   : > { %6892 = vmatpush.bf16.msra.mxu3 %v8663_v18  ;;  %6855 = vmatmul.bf16.vlgmr.msra.gmra.mxu0 %v12070_v0  ;;  %v11110_v18 = vld [vmem:[%s11906_s12 + $0xdfc] sm:$0xf] }
 0x37c   : > { %6899 = vmatpush.bf16.msrb.mxu0 %v9391_v6  ;;  %6912 = vmatpush.bf16.msrb.mxu1 %v9807_v10  ;;  %v10064_v6 = vld [vmem:[%s11906_s12 + $0x157c] sm:$0xf0]  ;;  %v6661_v10 = vpop.f32.mrf.mxu1  ;;  %v9131_v27 = vor.u32 %v11110_v18, %v9128_v19  ;;  %v11292_v18 = vld [vmem:[%s11906_s12 + $0x13ac] sm:$0xf] }
 0x37d   : > { %6868 = vmatmul.bf16.vlgmr.msra.gmra.mxu1 %v12075_v5  ;;  %v6662_v48 = vadd.f32 %v6661_v10, %v6649_v36  ;;  %v10067_v21 = vor.u32 %v11344_v4, %v10064_v6  ;;  %v7678_v4 = vld [vmem:[%s11906_s12 + $0x2a0] sm:$0xf]  ;;  %v8147_v36 = vor.u32 %v10870_v51, %v8146_v58 }
 0x37e   : > { %6880 = vmatpush.bf16.msra.mxu2 %v8195_v32  ;;  %v10428_v32 = vld [vmem:[%s11906_s12 + $0x1854] sm:$0xf0]  ;;  %v9856_v19 = vld [vmem:[%s11906_s12 + $0x13dc] sm:$0xf0] }
 0x37f   : > { %6893 = vmatpush.bf16.msra.mxu3 %v8611_v39 }
 0x380   : > { %6900 = vmatpush.bf16.msrb.mxu0 %v9339_v28  ;;  %6913 = vmatpush.bf16.msrb.mxu1 %v9755_v30  ;;  %v11331_v28 = vld [vmem:[%s11906_s12 + $0x14e4] sm:$0xf]  ;;  %v6650_v44 = vpop.f32.mrf.mxu0 }
 0x381   : > { %6881 = vmatmul.bf16.vlgmr.msra.gmra.mxu2 %v12090_v29  ;;  %v11435_v30 = vld [vmem:[%s11906_s12 + $0x1824] sm:$0xf]  ;;  %v10015_v39 = vor.u32 %v11331_v28, %v10012_v25  ;;  %v8978_v28 = vld [vmem:[%s11906_s12 + $0xcc8] sm:$0xf]  ;;  %v11078_v25 = vld [vmem:[%s11906_s12 + $0xcf8] sm:$0xf0] }
 0x382   : > { %6925 = vmatpush.bf16.msrb.mxu2 %v10223_v9  ;;  %6894 = vmatmul.bf16.vlgmr.msra.gmra.mxu3 %v12095_v35  ;;  %v11201_v9 = vld [vmem:[%s11906_s12 + $0x10d4] sm:$0xf]  ;;  %v10431_v20 = vor.u32 %v11435_v30, %v10428_v32  ;;  %v9859_v30 = vor.u32 %v11292_v18, %v9856_v19  ;;  %v7626_v32 = vld [vmem:[%s11906_s12 + $0x238] sm:$0xf] }
 0x383   : > { %6938 = vmatpush.bf16.msrb.mxu3 %v10639_v47  ;;  %v11318_v47 = vld [vmem:[%s11906_s12 + $0x147c] sm:$0xf]  ;;  %v9495_v52 = vor.u32 %v11201_v9, %v9492_v42  ;;  %v8042_v9 = vld [vmem:[%s11906_s12 + $0x578] sm:$0xf]  ;;  %v10844_v42 = vld [vmem:[%s11906_s12 + $0x5a8] sm:$0xf0] }
 0x384   : > { %6901 = vmatpush.bf16.msrb.mxu0 %v9287_v55  ;;  %6914 = vmatpush.bf16.msrb.mxu1 %v9703_v41  ;;  %v6663_v46 = vpop.f32.mrf.mxu1  ;;  %v9079_v55 = vor.u32 %v11097_v33, %v9076_v37  ;;  %v11084_v41 = vld [vmem:[%s11906_s12 + $0xd2c] sm:$0xf]  ;;  %v9963_v56 = vor.u32 %v11318_v47, %v9960_v49  ;;  %v6674_v59 = vpop.f32.mrf.mxu2  ;;  %v8510_v47 = vld [vmem:[%s11906_s12 + $0x920] sm:$0xf]  ;;  %v10961_v49 = vld [vmem:[%s11906_s12 + $0x950] sm:$0xf0] }
 0x385   : > { %v6675_v63 = vadd.f32 %v6674_v59, %v6662_v48  ;;  %v6687_v26 = vpop.f32.mrf.mxu3  ;;  %v11396_v48 = vld [vmem:[%s11906_s12 + $0x16ec] sm:$0xf]  ;;  %v8874_v59 = vld [vmem:[%s11906_s12 + $0xbf8] sm:$0xf]  ;;  %v10701_v18 = vld [vmem:[%s11906_s12 + $0x130] sm:$0xf0] }
 0x386   : > { %6926 = vmatpush.bf16.msrb.mxu2 %v10171_v43  ;;  %v11188_v43 = vld [vmem:[%s11906_s12 + $0x106c] sm:$0xf] }
 0x387   : > { %6939 = vmatpush.bf16.msrb.mxu3 %v10587_v15  ;;  %v7730_v15 = vld [vmem:[%s11906_s12 + $0x308] sm:$0xf]  ;;  %v9443_v53 = vor.u32 %v11188_v43, %v9440_v54  ;;  %v13708_v6 = vadd.f32 %v6687_v26, %v6675_v63  ;;  %v7990_v43 = vld [vmem:[%s11906_s12 + $0x510] sm:$0xf]  ;;  %v10831_v54 = vld [vmem:[%s11906_s12 + $0x540] sm:$0xf0] }
 0x388   : > { %6902 = vmatpush.bf16.msrb.mxu0 %v9235_v60  ;;  %6915 = vmatpush.bf16.msrb.mxu1 %v9651_v31  ;;  %v10379_v60 = vor.u32 %v11422_v34, %v10376_v23  ;;  %v9908_v31 = vld [vmem:[%s11906_s12 + $0x1444] sm:$0xf0]  ;;  %v11065_v34 = vld [vmem:[%s11906_s12 + $0xc90] sm:$0xf0]  ;;  %v8043_v23 = vor.u32 %v10844_v42, %v8042_v9  ;;  %v7991_v51 = vor.u32 %v10831_v54, %v7990_v43 }
 0x389   : > { %v9911_v10 = vor.u32 %v11305_v62, %v9908_v31  ;;  %v7522_v62 = vld [vmem:[%s11906_s12 + $0x168] sm:$0xf]  ;;  %v10714_v31 = vld [vmem:[%s11906_s12 + $0x198] sm:$0xf0] }
 0x38a   : > { %6927 = vmatpush.bf16.msrb.mxu2 %v10119_v17  ;;  %v9027_v17 = vor.u32 %v11084_v41, %v9024_v24  ;;  %v7574_v41 = vld [vmem:[%s11906_s12 + $0x1d0] sm:$0xf]  ;;  %v8511_v24 = vor.u32 %v10961_v49, %v8510_v47  ;;  %v7938_v26 = vld [vmem:[%s11906_s12 + $0x4a8] sm:$0xf] }
 0x38b   : > { %6940 = vmatpush.bf16.msrb.mxu3 %v10535_v3  ;;  %v7731_v3 = vor.u32 %v10766_v57, %v7730_v15  ;;  %v8458_v15 = vld [vmem:[%s11906_s12 + $0x8b8] sm:$0xf]  ;;  %v10948_v57 = vld [vmem:[%s11906_s12 + $0x8e8] sm:$0xf0]  ;;  %v9394_v54 = vld [vmem:[%s11906_s12 + $0x1008] sm:$0xf] }
 0x38c   : > { %6903 = vmatpush.bf16.msrb.mxu0 %v9183_v12  ;;  %6916 = vmatpush.bf16.msrb.mxu1 %v9599_v50  ;;  %v10753_v12 = vld [vmem:[%s11906_s12 + $0x2d0] sm:$0xf0]  ;;  %v10327_v50 = vor.u32 %v11409_v1, %v10324_v2  ;;  %v6676_v33 = vpop.f32.mrf.mxu2  ;;  %v8459_v63 = vor.u32 %v10948_v57, %v8458_v15  ;;  %v9810_v15 = vld [vmem:[%s11906_s12 + $0x1348] sm:$0xf] }
 0x38d   : > { %v6689_v44 = vpop.f32.mrf.mxu3 }
 0x38e   : > { %6928 = vmatpush.bf16.msrb.mxu2 %v10067_v21  ;;  %v10272_v21 = vld [vmem:[%s11906_s12 + $0x171c] sm:$0xf0] }
 0x38f   : > { %6941 = vmatpush.bf16.msrb.mxu3 %v10483_v11  ;;  %v7679_v11 = vor.u32 %v10753_v12, %v7678_v4  ;;  %v10275_v37 = vor.u32 %v11396_v48, %v10272_v21  ;;  %v8822_v12 = vld [vmem:[%s11906_s12 + $0xb90] sm:$0xf]  ;;  %v7886_v21 = vld [vmem:[%s11906_s12 + $0x440] sm:$0xf] }
 0x390   : > { %6904 = vmatpush.bf16.msrb.mxu0 %v9131_v27  ;;  %6917 = vmatpush.bf16.msrb.mxu1 %v9547_v61  ;;  %v8095_v27 = vor.u32 %v10857_v16, %v8094_v14  ;;  %v10740_v61 = vld [vmem:[%s11906_s12 + $0x268] sm:$0xf0]  ;;  %v11039_v14 = vld [vmem:[%s11906_s12 + $0xbc0] sm:$0xf0]  ;;  %v8302_v44 = vld [vmem:[%s11906_s12 + $0x780] sm:$0xf] }
 0x391   : > { %v7627_v46 = vor.u32 %v10740_v61, %v7626_v32  ;;  %v7418_v32 = vld [vmem:[%s11906_s12 + $0x98] sm:$0xf]  ;;  %v10688_v61 = vld [vmem:[%s11906_s12 + $0xc8] sm:$0xf0] }
 0x392   : > { %6929 = vmatpush.bf16.msrb.mxu2 %v10015_v39  ;;  %v8563_v39 = vor.u32 %v10974_v38, %v8562_v22  ;;  %v8823_v22 = vor.u32 %v11039_v14, %v8822_v12  ;;  %v8354_v38 = vld [vmem:[%s11906_s12 + $0x7e8] sm:$0xf]  ;;  %v7419_v49 = vor.u32 %v10688_v61, %v7418_v32  ;;  %v9758_v12 = vld [vmem:[%s11906_s12 + $0x12e0] sm:$0xf]  ;;  %v11273_v14 = vld [vmem:[%s11906_s12 + $0x1310] sm:$0xf0] }
 0x393   : > { %6942 = vmatpush.bf16.msrb.mxu3 %v10431_v20  ;;  %v8979_v20 = vor.u32 %v11078_v25, %v8978_v28  ;;  %v8770_v25 = vld [vmem:[%s11906_s12 + $0xb28] sm:$0xf]  ;;  %v9290_v32 = vld [vmem:[%s11906_s12 + $0xf38] sm:$0xf]  ;;  %v11156_v61 = vld [vmem:[%s11906_s12 + $0xf68] sm:$0xf0] }
 0x394   : > { %6905 = vmatpush.bf16.msrb.mxu0 %v9079_v55  ;;  %6918 = vmatpush.bf16.msrb.mxu1 %v9495_v52  ;;  %v8926_v55 = vld [vmem:[%s11906_s12 + $0xc60] sm:$0xf]  ;;  %v10727_v52 = vld [vmem:[%s11906_s12 + $0x200] sm:$0xf0] }
 0x395   : > { %v7575_v58 = vor.u32 %v10727_v52, %v7574_v41  ;;  %v10675_v41 = vld [vmem:[%s11906_s12 + $0x60] sm:$0xf0]  ;;  %v7782_v52 = vld [vmem:[%s11906_s12 + $0x370] sm:$0xf] }
 0x396   : > { %6930 = vmatpush.bf16.msrb.mxu2 %v9963_v56  ;;  %v8927_v56 = vor.u32 %v11065_v34, %v8926_v55  ;;  %v11013_v55 = vld [vmem:[%s11906_s12 + $0xaf0] sm:$0xf0]  ;;  %v7366_v34 = vld [vmem:[%s11906_s12 + $0x30] sm:$0xf] }
 0x397   : > { %6943 = vmatpush.bf16.msrb.mxu3 %v10379_v60  ;;  %v11052_v60 = vld [vmem:[%s11906_s12 + $0xc28] sm:$0xf0] }
 0x398   : > { %6906 = vmatpush.bf16.msrb.mxu0 %v9027_v17  ;;  %6919 = vmatpush.bf16.msrb.mxu1 %v9443_v53  ;;  %v10818_v17 = vld [vmem:[%s11906_s12 + $0x4d8] sm:$0xf0]  ;;  %v6700_v1 = vpop.f32.mrf.mxu0  ;;  %v8875_v2 = vor.u32 %v11052_v60, %v8874_v59  ;;  %v8406_v53 = vld [vmem:[%s11906_s12 + $0x850] sm:$0xf]  ;;  %v8250_v60 = vld [vmem:[%s11906_s12 + $0x718] sm:$0xf] }
 0x399   : > { %v6701_v4 = vadd.f32 %v6700_v1, %v13708_v6  ;;  %v7939_v16 = vor.u32 %v10818_v17, %v7938_v26  ;;  %v10805_v6 = vld [vmem:[%s11906_s12 + $0x470] sm:$0xf0]  ;;  %v11286_v59 = vld [vmem:[%s11906_s12 + $0x1378] sm:$0xf0]  ;;  %v8666_v26 = vld [vmem:[%s11906_s12 + $0xa58] sm:$0xf] }
 0x39a   : > { %6931 = vmatpush.bf16.msrb.mxu2 %v9911_v10  ;;  %v7523_v10 = vor.u32 %v10714_v31, %v7522_v62  ;;  %v11000_v17 = vld [vmem:[%s11906_s12 + $0xa88] sm:$0xf0] }
 0x39b   : > { %6944 = vmatpush.bf16.msrb.mxu3 %v10327_v50  ;;  %6907 = vmatmul.bf16.vlgmr.msrb.gmra.mxu0 %v12117_v7  ;;  %v7470_v50 = vld [vmem:[%s11906_s12 + $0x100] sm:$0xf] }
 0x39c   : > { %6951 = vmatpush.bf16.msra.mxu0 %v7731_v3  ;;  %6964 = vmatpush.bf16.msra.mxu1 %v8147_v36  ;;  %v10935_v3 = vld [vmem:[%s11906_s12 + $0x880] sm:$0xf0]  ;;  %v6713_v36 = vpop.f32.mrf.mxu1  ;;  %v7471_v28 = vor.u32 %v10701_v18, %v7470_v50  ;;  %v8667_v50 = vor.u32 %v11000_v17, %v8666_v26  ;;  %v11234_v26 = vld [vmem:[%s11906_s12 + $0x11d8] sm:$0xf0] }
 0x39d   : > { %6920 = vmatmul.bf16.vlgmr.msrb.gmra.mxu1 %v12122_v13  ;;  %v6714_v19 = vadd.f32 %v6713_v36, %v6701_v4  ;;  %v8407_v48 = vor.u32 %v10935_v3, %v8406_v53  ;;  %v9342_v53 = vld [vmem:[%s11906_s12 + $0xfa0] sm:$0xf]  ;;  %v11169_v3 = vld [vmem:[%s11906_s12 + $0xfd0] sm:$0xf0]  ;;  %v9811_v36 = vor.u32 %v11286_v59, %v9810_v15  ;;  %v10883_v18 = vld [vmem:[%s11906_s12 + $0x6e0] sm:$0xf0] }
 0x39e   : > { %6932 = vmatpush.bf16.msrb.mxu2 %v9859_v30  ;;  %v7887_v30 = vor.u32 %v10805_v6, %v7886_v21  ;;  %v7063_v21 = vmax.f32 %v13637_v8, 0.0  ;;  %v13811_v15 = vld [vmem:[%s12382_s7 + $0x8] sm:$0x1f] }
 0x39f   : > { %6945 = vmatpush.bf16.msrb.mxu3 %v10275_v37  ;;  %v7834_v37 = vld [vmem:[%s11906_s12 + $0x3d8] sm:$0xf] }
 0x3a0   : > { %6952 = vmatpush.bf16.msra.mxu0 %v7679_v11  ;;  %6965 = vmatpush.bf16.msra.mxu1 %v8095_v27  ;;  %v10922_v11 = vld [vmem:[%s11906_s12 + $0x818] sm:$0xf0]  ;;  %v6702_v9 = vpop.f32.mrf.mxu0  ;;  %v10538_v59 = vld [vmem:[%s11906_s12 + $0x18f8] sm:$0xf] }
 0x3a1   : > { %6933 = vmatmul.bf16.vlgmr.msrb.gmra.mxu2 %v12137_v40  ;;  %v11026_v27 = vld [vmem:[%s11906_s12 + $0xb58] sm:$0xf0]  ;;  %v8355_v33 = vor.u32 %v10922_v11, %v8354_v38  ;;  %v9343_v11 = vor.u32 %v11169_v3, %v9342_v53  ;;  %v9706_v9 = vld [vmem:[%s11906_s12 + $0x1278] sm:$0xf]  ;;  %v11351_v53 = vld [vmem:[%s11906_s12 + $0x1580] sm:$0xf0] }
 0x3a2   : > { %6977 = vmatpush.bf16.msra.mxu2 %v8563_v39  ;;  %6946 = vmatmul.bf16.vlgmr.msrb.gmra.mxu3 %v12142_v45  ;;  %v10792_v39 = vld [vmem:[%s11906_s12 + $0x408] sm:$0xf0]  ;;  %v8771_v42 = vor.u32 %v11026_v27, %v8770_v25  ;;  %v11390_v38 = vld [vmem:[%s11906_s12 + $0x16b8] sm:$0xf0] }
 0x3a3   : > { %6990 = vmatpush.bf16.msra.mxu3 %v8979_v20  ;;  %v10909_v20 = vld [vmem:[%s11906_s12 + $0x7b0] sm:$0xf0]  ;;  %v11494_v25 = vld [vmem:[%s11906_s12 + $0x19f8] sm:$0xf0] }
 0x3a4   : > { %6953 = vmatpush.bf16.msra.mxu0 %v7627_v46  ;;  %6966 = vmatpush.bf16.msra.mxu1 %v8043_v23  ;;  %v6715_v47 = vpop.f32.mrf.mxu1  ;;  %v8718_v46 = vld [vmem:[%s11906_s12 + $0xac0] sm:$0xf]  ;;  %v7835_v23 = vor.u32 %v10792_v39, %v7834_v37  ;;  %v8303_v43 = vor.u32 %v10909_v20, %v8302_v44  ;;  %v6726_v57 = vpop.f32.mrf.mxu2 }
 0x3a5   : > { %v6727_v62 = vadd.f32 %v6726_v57, %v6714_v19  ;;  %v6739_v31 = vpop.f32.mrf.mxu3  ;;  %v8614_v19 = vld [vmem:[%s11906_s12 + $0x9f0] sm:$0xf]  ;;  %v10174_v47 = vld [vmem:[%s11906_s12 + $0x1620] sm:$0xf]  ;;  %v1463_v57 = vperm.slane %v13811_v15, 2 }
 0x3a6   : > { %6978 = vmatpush.bf16.msra.mxu2 %v8511_v24  ;;  %v10779_v24 = vld [vmem:[%s11906_s12 + $0x3a0] sm:$0xf0] }
 0x3a7   : > { %6991 = vmatpush.bf16.msra.mxu3 %v8927_v56  ;;  %v11182_v56 = vld [vmem:[%s11906_s12 + $0x1038] sm:$0xf0]  ;;  %v7783_v1 = vor.u32 %v10779_v24, %v7782_v52  ;;  %v6740_v4 = vadd.f32 %v6739_v31, %v6727_v62  ;;  %v9654_v52 = vld [vmem:[%s11906_s12 + $0x1210] sm:$0xf]  ;;  %v11247_v24 = vld [vmem:[%s11906_s12 + $0x1240] sm:$0xf0] }
 0x3a8   : > { %6954 = vmatpush.bf16.msra.mxu0 %v7575_v58  ;;  %6967 = vmatpush.bf16.msra.mxu1 %v7991_v51  ;;  %v8719_v58 = vor.u32 %v11013_v55, %v8718_v46  ;;  %v10896_v51 = vld [vmem:[%s11906_s12 + $0x748] sm:$0xf0]  ;;  %v9291_v46 = vor.u32 %v11156_v61, %v9290_v32  ;;  %v10590_v55 = vld [vmem:[%s11906_s12 + $0x1960] sm:$0xf]  ;;  %v9186_v62 = vld [vmem:[%s11906_s12 + $0xe68] sm:$0xf] }
 0x3a9   : > { %v7064_v6 = vmax.f32 %v6740_v4, 0.0  ;;  %v11130_v31 = vld [vmem:[%s11906_s12 + $0xe98] sm:$0xf0]  ;;  %v9498_v61 = vld [vmem:[%s11906_s12 + $0x10d8] sm:$0xf] }
 0x3aa   : > { %6979 = vmatpush.bf16.msra.mxu2 %v8459_v63  ;;  %v7367_v63 = vor.u32 %v10675_v41, %v7366_v34  ;;  %v11143_v41 = vld [vmem:[%s11906_s12 + $0xf00] sm:$0xf0]  ;;  %v9187_v4 = vor.u32 %v11130_v31, %v9186_v62 }
 0x3ab   : > { %6992 = vmatpush.bf16.msra.mxu3 %v8875_v2  ;;  %v9395_v2 = vor.u32 %v11182_v56, %v9394_v54  ;;  %v13791_v27 = vpack.c.bf16 %v7064_v6, %v7063_v21  ;;  %v10122_v54 = vld [vmem:[%s11906_s12 + $0x15b8] sm:$0xf]  ;;  %v11364_v56 = vld [vmem:[%s11906_s12 + $0x15e8] sm:$0xf0]  ;;  %v10018_v6 = vld [vmem:[%s11906_s12 + $0x14e8] sm:$0xf] }
 0x3ac   : > { %6955 = vmatpush.bf16.msra.mxu0 %v7523_v10  ;;  %6968 = vmatpush.bf16.msra.mxu1 %v7939_v16  ;;  %v8251_v10 = vor.u32 %v10896_v51, %v8250_v60  ;;  %v8198_v16 = vld [vmem:[%s11906_s12 + $0x6b0] sm:$0xf]  ;;  %v11468_v60 = vld [vmem:[%s11906_s12 + $0x1928] sm:$0xf0]  ;;  %v9655_v51 = vor.u32 %v11247_v24, %v9654_v52  ;;  %v9914_v24 = vld [vmem:[%s11906_s12 + $0x1418] sm:$0xf] }
 0x3ad   : > { %v8199_v8 = vor.u32 %v10883_v18, %v8198_v16  ;;  %v6741_v44 = vpop.f32.mrf.mxu3  ;;  %v11117_v16 = vld [vmem:[%s11906_s12 + $0xe30] sm:$0xf0] }
 0x3ae   : > { %6980 = vmatpush.bf16.msra.mxu2 %v8407_v48  ;;  %v10987_v48 = vld [vmem:[%s11906_s12 + $0xa20] sm:$0xf0] }
 0x3af   : > { %6993 = vmatpush.bf16.msra.mxu3 %v8823_v22  ;;  %v10226_v22 = vld [vmem:[%s11906_s12 + $0x1688] sm:$0xf]  ;;  %v8615_v37 = vor.u32 %v10987_v48, %v8614_v19  ;;  %v9550_v19 = vld [vmem:[%s11906_s12 + $0x1140] sm:$0xf]  ;;  %v11221_v48 = vld [vmem:[%s11906_s12 + $0x1170] sm:$0xf0] }
 0x3b0   : > { %6956 = vmatpush.bf16.msra.mxu0 %v7471_v28  ;;  %6969 = vmatpush.bf16.msra.mxu1 %v7887_v30  ;;  %v10642_v28 = vld [vmem:[%s11906_s12 + $0x19c8] sm:$0xf]  ;;  %v9759_v30 = vor.u32 %v11273_v14, %v9758_v12  ;;  %v10227_v39 = vor.u32 %v11390_v38, %v10226_v22  ;;  %v9134_v14 = vld [vmem:[%s11906_s12 + $0xe00] sm:$0xf]  ;;  %v11338_v22 = vld [vmem:[%s11906_s12 + $0x1518] sm:$0xf0] }
 0x3b1   : > { %v10643_v20 = vor.u32 %v11494_v25, %v10642_v28  ;;  %v9135_v38 = vor.u32 %v11117_v16, %v9134_v14  ;;  %v11442_v28 = vld [vmem:[%s11906_s12 + $0x1858] sm:$0xf0]  ;;  %v9551_v25 = vor.u32 %v11221_v48, %v9550_v19  ;;  %v10019_v32 = vor.u32 %v11338_v22, %v10018_v6 }
 0x3b2   : > { %6981 = vmatpush.bf16.msra.mxu2 %v8355_v33  ;;  %v6728_v33 = vpop.f32.mrf.mxu2 }
 0x3b3   : > { %6994 = vmatpush.bf16.msra.mxu3 %v8771_v42  ;;  %v11260_v42 = vld [vmem:[%s11906_s12 + $0x12a8] sm:$0xf0] }
 0x3b4   : > { %6957 = vmatpush.bf16.msra.mxu0 %v7419_v49  ;;  %6970 = vmatpush.bf16.msra.mxu1 %v7835_v23  ;;  %v11377_v49 = vld [vmem:[%s11906_s12 + $0x1650] sm:$0xf0]  ;;  %v9707_v34 = vor.u32 %v11260_v42, %v9706_v9  ;;  %v9238_v23 = vld [vmem:[%s11906_s12 + $0xed0] sm:$0xf]  ;;  %v11208_v33 = vld [vmem:[%s11906_s12 + $0x1108] sm:$0xf0] }
 0x3b5   : > { %v9966_v9 = vld [vmem:[%s11906_s12 + $0x1480] sm:$0xf]  ;;  %v11325_v42 = vld [vmem:[%s11906_s12 + $0x14b0] sm:$0xf0] }
 0x3b6   : > { %6982 = vmatpush.bf16.msra.mxu2 %v8303_v43 }
 0x3b7   : > { %6995 = vmatpush.bf16.msra.mxu3 %v8719_v58  ;;  %v9239_v58 = vor.u32 %v11143_v41, %v9238_v23  ;;  %v9446_v23 = vld [vmem:[%s11906_s12 + $0x1070] sm:$0xf]  ;;  %v11195_v41 = vld [vmem:[%s11906_s12 + $0x10a0] sm:$0xf0] }
 0x3b8   : > { %6958 = vmatpush.bf16.msra.mxu0 %v7367_v63  ;;  %6971 = vmatpush.bf16.msra.mxu1 %v7783_v1  ;;  %v9602_v63 = vld [vmem:[%s11906_s12 + $0x11a8] sm:$0xf]  ;;  %v6752_v17 = vpop.f32.mrf.mxu0  ;;  %v10539_v1 = vor.u32 %v11468_v60, %v10538_v59  ;;  %v11416_v59 = vld [vmem:[%s11906_s12 + $0x1788] sm:$0xf0]  ;;  %v9447_v60 = vor.u32 %v11195_v41, %v9446_v23 }
 0x3b9   : > { %v9603_v12 = vor.u32 %v11234_v26, %v9602_v63  ;;  %v11299_v63 = vld [vmem:[%s11906_s12 + $0x13e0] sm:$0xf0]  ;;  %v10278_v26 = vld [vmem:[%s11906_s12 + $0x16f0] sm:$0xf] }
 0x3ba   : > { %6983 = vmatpush.bf16.msra.mxu2 %v8251_v10  ;;  %v6765_v3 = vpop.f32.mrf.mxu1  ;;  %v11455_v10 = vld [vmem:[%s11906_s12 + $0x18c0] sm:$0xf0] }
 0x3bb   : > { %6996 = vmatpush.bf16.msra.mxu3 %v8667_v50  ;;  %6959 = vmatmul.bf16.vlgmr.msra.gmra.mxu0 %v12070_v0  ;;  %v11481_v0 = vld [vmem:[%s11906_s12 + $0x1990] sm:$0xf0] }
 0x3bc   : > { %7003 = vmatpush.bf16.msrb.mxu0 %v9395_v2  ;;  %7016 = vmatpush.bf16.msrb.mxu1 %v9811_v36  ;;  %v10591_v43 = vor.u32 %v11481_v0, %v10590_v55  ;;  %v10070_v2 = vld [vmem:[%s11906_s12 + $0x1550] sm:$0xf]  ;;  %v11091_v0 = vld [vmem:[%s11906_s12 + $0xd60] sm:$0xf0] }
 0x3bd   : > { %6972 = vmatmul.bf16.vlgmr.msra.gmra.mxu1 %v12075_v5  ;;  %v10175_v5 = vor.u32 %v11377_v49, %v10174_v47  ;;  %v10486_v36 = vld [vmem:[%s11906_s12 + $0x1890] sm:$0xf]  ;;  %v10071_v18 = vor.u32 %v11351_v53, %v10070_v2  ;;  %v10382_v47 = vld [vmem:[%s11906_s12 + $0x17c0] sm:$0xf]  ;;  %v11429_v49 = vld [vmem:[%s11906_s12 + $0x17f0] sm:$0xf0] }
 0x3be   : > { %6984 = vmatpush.bf16.msra.mxu2 %v8199_v8  ;;  %v10487_v21 = vor.u32 %v11455_v10, %v10486_v36  ;;  %v11104_v8 = vld [vmem:[%s11906_s12 + $0xdc8] sm:$0xf0]  ;;  %v9030_v55 = vld [vmem:[%s11906_s12 + $0xd30] sm:$0xf]  ;;  %v10383_v52 = vor.u32 %v11429_v49, %v10382_v47 }
 0x3bf   : > { %6997 = vmatpush.bf16.msra.mxu3 %v8615_v37 }
 0x3c0   : > { %7004 = vmatpush.bf16.msrb.mxu0 %v9343_v11  ;;  %7017 = vmatpush.bf16.msrb.mxu1 %v9759_v30  ;;  %v10434_v11 = vld [vmem:[%s11906_s12 + $0x1828] sm:$0xf]  ;;  %v9082_v30 = vld [vmem:[%s11906_s12 + $0xd98] sm:$0xf]  ;;  %v6754_v37 = vpop.f32.mrf.mxu0 }
 0x3c1   : > { %6985 = vmatmul.bf16.vlgmr.msra.gmra.mxu2 %v12090_v29  ;;  %v10123_v29 = vor.u32 %v11364_v56, %v10122_v54 }
 0x3c2   : > { %7029 = vmatpush.bf16.msrb.mxu2 %v10227_v39  ;;  %6998 = vmatmul.bf16.vlgmr.msra.gmra.mxu3 %v12095_v35  ;;  %v6753_v35 = vadd.f32 %v6752_v17, %v1463_v57  ;;  %v10435_v39 = vor.u32 %v11442_v28, %v10434_v11  ;;  %v6767_v44 = vpop.f32.mrf.mxu1  ;;  %v9031_v57 = vor.u32 %v11091_v0, %v9030_v55  ;;  %v11403_v17 = vld [vmem:[%s11906_s12 + $0x1720] sm:$0xf0]  ;;  %v7089_v0 = vrot.slane %v13791_v27, 3 }
 0x3c3   : > { %7042 = vmatpush.bf16.msrb.mxu3 %v10643_v20  ;;  %v9083_v20 = vor.u32 %v11104_v8, %v9082_v30  ;;  %v10279_v53 = vor.u32 %v11403_v17, %v10278_v26 }
 0x3c4   : > { %7005 = vmatpush.bf16.msrb.mxu0 %v9291_v46  ;;  %7018 = vmatpush.bf16.msrb.mxu1 %v9707_v34  ;;  %v6766_v50 = vadd.f32 %v6765_v3, %v6753_v35  ;;  %v9499_v46 = vor.u32 %v11208_v33, %v9498_v61  ;;  %v9967_v34 = vor.u32 %v11325_v42, %v9966_v9 }
 0x3c5   : > { %v6791_v56 = vpop.f32.mrf.mxu3 }
 0x3c6   : > { %7030 = vmatpush.bf16.msrb.mxu2 %v10175_v5  ;;  %v6778_v5 = vpop.f32.mrf.mxu2 }
 0x3c7   : > { %7043 = vmatpush.bf16.msrb.mxu3 %v10591_v43  ;;  %v11312_v43 = vld [vmem:[%s11906_s12 + $0x1448] sm:$0xf0]  ;;  %v6779_v54 = vadd.f32 %v6778_v5, %v6766_v50 }
 0x3c8   : > { %7006 = vmatpush.bf16.msrb.mxu0 %v9239_v58  ;;  %7019 = vmatpush.bf16.msrb.mxu1 %v9655_v51  ;;  %v10330_v58 = vld [vmem:[%s11906_s12 + $0x1758] sm:$0xf]  ;;  %v9915_v62 = vor.u32 %v11312_v43, %v9914_v24 }
 0x3c9   : > { %v6792_v51 = vadd.f32 %v6791_v56, %v6779_v54  ;;  %v10331_v31 = vor.u32 %v11416_v59, %v10330_v58 }
 0x3ca   : > { %7031 = vmatpush.bf16.msrb.mxu2 %v10123_v29  ;;  %v9862_v29 = vld [vmem:[%s11906_s12 + $0x13b0] sm:$0xf] }
 0x3cb   : > { %7044 = vmatpush.bf16.msrb.mxu3 %v10539_v1  ;;  %v9863_v1 = vor.u32 %v11299_v63, %v9862_v29 }
 0x3cc   : > { %7007 = vmatpush.bf16.msrb.mxu0 %v9187_v4  ;;  %7020 = vmatpush.bf16.msrb.mxu1 %v9603_v12 }
 0x3cd   : > { %v6793_v35 = vpop.f32.mrf.mxu3 }
 0x3ce   : > { %7032 = vmatpush.bf16.msrb.mxu2 %v10071_v18  ;;  %v6780_v2 = vpop.f32.mrf.mxu2 }
 0x3cf   : > { %7045 = vmatpush.bf16.msrb.mxu3 %v10487_v21 }
 0x3d0   : > { %7008 = vmatpush.bf16.msrb.mxu0 %v9135_v38  ;;  %7021 = vmatpush.bf16.msrb.mxu1 %v9551_v25 }
 0x3d2   : > { %7033 = vmatpush.bf16.msrb.mxu2 %v10019_v32 }
 0x3d3   : > { %7046 = vmatpush.bf16.msrb.mxu3 %v10435_v39 }
 0x3d4   : > { %7009 = vmatpush.bf16.msrb.mxu0 %v9083_v20  ;;  %7022 = vmatpush.bf16.msrb.mxu1 %v9499_v46 }
 0x3d6   : > { %7034 = vmatpush.bf16.msrb.mxu2 %v9967_v34 }
 0x3d7   : > { %7047 = vmatpush.bf16.msrb.mxu3 %v10383_v52  ;;  %v7118_v52 = vsel %vm7094_vm1, %v13791_v27, %v7089_v0 }
 0x3d8   : > { %7010 = vmatpush.bf16.msrb.mxu0 %v9031_v57  ;;  %7023 = vmatpush.bf16.msrb.mxu1 %v9447_v60  ;;  %v6804_v3 = vpop.f32.mrf.mxu0  ;;  %v1465_v60 = vperm.slane %v13811_v15, 4 }
 0x3d9   : > { %v6805_v4 = vadd.f32 %v6804_v3, %v6792_v51 }
 0x3da   : > { %7035 = vmatpush.bf16.msrb.mxu2 %v9915_v62  ;;  %v6817_v36 = vpop.f32.mrf.mxu1 }
 0x3db   : > { %7048 = vmatpush.bf16.msrb.mxu3 %v10331_v31  ;;  %7011 = vmatmul.bf16.vlgmr.msrb.gmra.mxu0 %v12117_v7  ;;  %v6818_v10 = vadd.f32 %v6817_v36, %v6805_v4 }
 0x3dc   : > { %7024 = vmatmul.bf16.vlgmr.msrb.gmra.mxu1 %v12122_v13  ;;  %v1464_v13 = vperm.slane %v13811_v15, 3 }
 0x3de   : > { %7036 = vmatpush.bf16.msrb.mxu2 %v9863_v1 }
 0x3df   : > { %7049 = vmatpush.bf16.msrb.mxu3 %v10279_v53 }
 0x3e0   : > { %v6806_v12 = vpop.f32.mrf.mxu0 }
 0x3e1   : > { %7037 = vmatmul.bf16.vlgmr.msrb.gmra.mxu2 %v12137_v40 }
 0x3e2   : > { %7050 = vmatmul.bf16.vlgmr.msrb.gmra.mxu3 %v12142_v45  ;;  %v6819_v14 = vpop.f32.mrf.mxu1 }
 0x3e4   : > { %v6830_v16 = vpop.f32.mrf.mxu2 }
 0x3e5   : > { %v6831_v50 = vadd.f32 %v6830_v16, %v6818_v10  ;;  %v6843_v18 = vpop.f32.mrf.mxu3 }
 0x3e7   : > { %v6844_v7 = vadd.f32 %v6843_v18, %v6831_v50 }
 0x3e9   : > { %v7065_v46 = vmax.f32 %v6844_v7, 0.0 }
 0x3ec   : > { %v6832_v19 = vpop.f32.mrf.mxu2 }
 0x3ed   : > { %v6845_v48 = vpop.f32.mrf.mxu3 }
 0x3f8   : > { %v6856_v21 = vpop.f32.mrf.mxu0 }
 0x3f9   : > { %v6857_v6 = vadd.f32 %v6856_v21, %v1464_v13 }
 0x3fa   : > { %v6869_v22 = vpop.f32.mrf.mxu1 }
 0x3fb   : > { %v6870_v40 = vadd.f32 %v6869_v22, %v6857_v6 }
 0x400   : > { %v6858_v38 = vpop.f32.mrf.mxu0 }
 0x402   : > { %v6871_v45 = vpop.f32.mrf.mxu1 }
 0x404   : > { %v6882_v11 = vpop.f32.mrf.mxu2 }
 0x405   : > { %v6883_v28 = vadd.f32 %v6882_v11, %v6870_v40  ;;  %v6895_v25 = vpop.f32.mrf.mxu3 }
 0x407   : > { %v6896_v30 = vadd.f32 %v6895_v25, %v6883_v28 }
 0x40c   : > { %v6884_v8 = vpop.f32.mrf.mxu2 }
 0x40d   : > { %v6897_v32 = vpop.f32.mrf.mxu3 }
 0x418   : > { %v6908_v61 = vpop.f32.mrf.mxu0 }
 0x419   : > { %v6909_v33 = vadd.f32 %v6908_v61, %v6896_v30 }
 0x41a   : > { %v6921_v37 = vpop.f32.mrf.mxu1 }
 0x41b   : > { %v6922_v39 = vadd.f32 %v6921_v37, %v6909_v33 }
 0x420   : > { %v6910_v9 = vpop.f32.mrf.mxu0 }
 0x422   : > { %v6923_v42 = vpop.f32.mrf.mxu1 }
 0x424   : > { %v6934_v44 = vpop.f32.mrf.mxu2 }
 0x425   : > { %v6935_v20 = vadd.f32 %v6934_v44, %v6922_v39  ;;  %v6947_v47 = vpop.f32.mrf.mxu3 }
 0x427   : > { %v6948_v49 = vadd.f32 %v6947_v47, %v6935_v20 }
 0x429   : > { %v7066_v55 = vmax.f32 %v6948_v49, 0.0 }
 0x42b   : > { %v7073_v34 = vpack.c.bf16 %v7066_v55, %v7065_v46 }
 0x42c   : > { %v6936_v23 = vpop.f32.mrf.mxu2 }
 0x42d   : > { %v7090_v41 = vrot.slane %v7073_v34, 6  ;;  %v6949_v5 = vpop.f32.mrf.mxu3  ;;  %v7091_v16 = vrot.slane %v7073_v34, 1 }
 0x42f   : > { %v7120_v24 = vsel %vm7102_vm3, %v7118_v52, %v7090_v41 }
 0x438   : > { %v6960_v43 = vpop.f32.mrf.mxu0 }
 0x439   : > { %v6961_v31 = vadd.f32 %v6960_v43, %v1465_v60 }
 0x43a   : > { %v6973_v54 = vpop.f32.mrf.mxu1 }
 0x43b   : > { %v6974_v29 = vadd.f32 %v6973_v54, %v6961_v31 }
 0x440   : > { %v6962_v56 = vpop.f32.mrf.mxu0 }
 0x442   : > { %v6975_v57 = vpop.f32.mrf.mxu1 }
 0x444   : > { %v6986_v58 = vpop.f32.mrf.mxu2 }
 0x445   : > { %v6999_v59 = vpop.f32.mrf.mxu3  ;;  %v6987_v26 = vadd.f32 %v6986_v58, %v6974_v29 }
 0x447   : > { %v7000_v1 = vadd.f32 %v6999_v59, %v6987_v26 }
 0x44c   : > { %v6988_v51 = vpop.f32.mrf.mxu2 }
 0x44d   : > { %v7001_v62 = vpop.f32.mrf.mxu3 }
 0x458   : > { %v7012_v63 = vpop.f32.mrf.mxu0 }
 0x459   : > { %v7025_v17 = vpop.f32.mrf.mxu1  ;;  %v7013_v2 = vadd.f32 %v7012_v63, %v7000_v1 }
 0x45b   : > { %v7026_v35 = vadd.f32 %v7025_v17, %v7013_v2 }
 0x460   : > { %v7014_v27 = vpop.f32.mrf.mxu0 }
 0x461   : > { %v7027_v53 = vpop.f32.mrf.mxu1 }
 0x464   : > { %v7038_v3 = vpop.f32.mrf.mxu2 }
 0x465   : > { %v7039_v4 = vadd.f32 %v7038_v3, %v7026_v35  ;;  %v7051_v36 = vpop.f32.mrf.mxu3 }
 0x467   : > { %v7052_v10 = vadd.f32 %v7051_v36, %v7039_v4 }
 0x469   : > { %v7067_v12 = vmax.f32 %v7052_v10, 0.0 }
 0x46b   : > { %v7074_v14 = vpack.c.bf16 %v7067_v12, %v7067_v12 }
 0x46c   : > { %v7040_v15 = vpop.f32.mrf.mxu2 }
 0x46d   : > { %v7092_v50 = vrot.slane %v7074_v14, 4  ;;  %v7093_v18 = vrot.slane %v7074_v14, 7  ;;  %v7053_v7 = vpop.f32.mrf.mxu3 }
 0x46f   : > { %v7124_v19 = vsel %vm7121_vm8, %v7091_v16, %v7092_v50 }
 0x470   : > { %v7127_v48 = vsel %vm7125_vm9, %v7124_v19, %v7093_v18 }
 0x471   : > { %v7129_v13 = vsel %vm7128_vm10, %v7120_v24, %v7127_v48 }
 0x472   : > { %7133 = vst [vmem:[%s13514_s17 + $0x8] sm:$0x1f] %v7129_v13 }
 0x473 PF: > { %p14_p8 = scmp.ge.s32.totalorder %s11796_s23, 4   ;;  %s13895_s18 = smov %s11727_s19 }
 0x474   : > { %s13896_s19 = smov %s11731_s20  ;;  %s13897_s20 = smov %s11806_s26 }
 0x475   : > { %s13898_s21 = smov %s11796_s23  ;;  %16 = sbr.rel (!%p14_p8) target bundleno = 7 (0x7), region = 98 }
 0x47a   :  { %7154 = vsyncpa [#allocation3], 1 }
 0x47b   :  { %7156 = vsyncpa [#allocation3 + $0x1], 1 }
 0x47c   :  { %7157 = vsyncpa [#allocation5], 1 }

// kernel: decoder_forward.6
= control target key start
LH: loop header
LB: loop body
LE: loop exit
PB: predicated region body
PF: predicated region fallthrough
CT: control target
= control target key end

     0   :  { %s2277_s12 = smov 0   ;;  %s2715_s0 = inlined_call_operand.vmem [shape: bf16[480,576], index: 0, kind: input, shape index: {}]   ;;  %s2716_s1 = inlined_call_operand.vmem [shape: bf16[576,128], index: 1, kind: input, shape index: {}]   ;;  %s2717_s2 = inlined_call_operand.vmem [shape: f32[1,128], index: 2, kind: input, shape index: {}]   ;;  %s2718_s3 = inlined_call_operand.vmem [shape: bf16[480,128], index: 3, kind: output, shape index: {}]  }
   0x1 LB: > { %s1547_s13 = sadd.s32 4294967295, %s2255_s12   ;;  %p1551_p0 = scmp.ge.s32.totalorder %s2255_s12, 1  ;;  %s2255_s12 = sphi %s2277_s12, %s13_s12  }
   0x2   : > { %p139_p1 = scmp.lt.s32.totalorder %s2255_s12, 3 }
   0x4   : > { %p140_p2 = pnand %p1551_p0, %p139_p1 }
   0x5   : > { %s164_s20 = smul.u32 (!%p140_p2), 30, %s1547_s13 }
   0x6   : > { %143 = sbr.rel (%p140_p2) target bundleno = 482 (0x1e2), region = 32 }
   0x7   : > { %p165_p3 = scmp.lt.s32.totalorder (!%p140_p2), %s164_s20, 59 }
   0xb   : > { %v2097_v0 = vld [vmem:[%s2716_s1 + $0x38] sm:$0xff]  ;;  %v2096_v1 = vld [vmem:[%s2716_s1 + $0x30] sm:$0xff]  ;;  %v2095_v2 = vld [vmem:[%s2716_s1 + $0x28] sm:$0xff]  ;;  %s2720_s20 = smov (!%p165_p3, %s164_s20), 59  ;;  %vm935_vm0 = vcmask 523264  }
   0xc   : > { %2215 = vmatpush.bf16.msra.mxu1 %v2097_v0  ;;  %2216 = vmatpush.bf16.msra.mxu2 %v2097_v0  ;;  %v2094_v3 = vld [vmem:[%s2716_s1 + $0x20] sm:$0xff]  ;;  %v2093_v4 = vld [vmem:[%s2716_s1 + $0x18] sm:$0xff]  ;;  %v2092_v5 = vld [vmem:[%s2716_s1 + $0x10] sm:$0xff]  ;;  %s2239_s27 = smul.u32 20, %s2720_s20  ;;  %s1553_s19 = sshll.u32 %s2720_s20, 2 }
   0xd   : > { %981 = vmatpush.bf16.msra.mxu0 %v2097_v0  ;;  %2217 = vmatpush.bf16.msra.mxu3 %v2097_v0  ;;  %v2091_v6 = vld [vmem:[%s2716_s1 + $0x8] sm:$0xff]  ;;  %v2090_v7 = vld [vmem:[%s2716_s1] sm:$0xff]  ;;  %v2113_v12 = vld [vmem:[%s2716_s1 + $0xb8] sm:$0xff]  ;;  %s2620_s23 = scalar_lea.vmem %s2718_s3, %s1553_s19 }
   0xe   : > { %s2312_s5 = scalar_lea.vmem %s2715_s0, %s2239_s27  ;;  %v2105_v15 = vld [vmem:[%s2716_s1 + $0x78] sm:$0xff]  ;;  %v2112_v22 = vld [vmem:[%s2716_s1 + $0xb0] sm:$0xff]  ;;  %v2111_v27 = vld [vmem:[%s2716_s1 + $0xa8] sm:$0xff] }
   0xf   : > { %v1636_v8 = vld [vmem:[%s2312_s5 + $0xa0] sm:$0xf]  ;;  %v2037_v9 = vld [vmem:[%s2312_s5 + $0xb0] sm:$0xf0]  ;;  %v2121_v21 = vld [vmem:[%s2716_s1 + $0xf8] sm:$0xff] }
  0x10   : > { %2218 = vmatpush.bf16.msra.mxu1 %v2096_v1  ;;  %2219 = vmatpush.bf16.msra.mxu2 %v2096_v1  ;;  %v1716_v10 = vld [vmem:[%s2312_s5 + $0x140] sm:$0xf]  ;;  %v2057_v11 = vld [vmem:[%s2312_s5 + $0x150] sm:$0xf0]  ;;  %v1637_v18 = vor.u32 %v2037_v9, %v1636_v8  ;;  %v2125_v24 = vld [vmem:[%s2716_s1 + $0x118] sm:$0xff] }
  0x11   : > { %982 = vmatpush.bf16.msra.mxu0 %v2096_v1  ;;  %2220 = vmatpush.bf16.msra.mxu3 %v2096_v1  ;;  %v1556_v13 = vld [vmem:[%s2312_s5] sm:$0xf]  ;;  %v2017_v14 = vld [vmem:[%s2312_s5 + $0x10] sm:$0xf0]  ;;  %v1717_v19 = vor.u32 %v2057_v11, %v1716_v10  ;;  %v2103_v28 = vld [vmem:[%s2716_s1 + $0x68] sm:$0xff] }
  0x12   : > { %v1796_v16 = vld [vmem:[%s2312_s5 + $0x1e0] sm:$0xf]  ;;  %v2077_v17 = vld [vmem:[%s2312_s5 + $0x1f0] sm:$0xf0]  ;;  %v1557_v20 = vor.u32 %v2017_v14, %v1556_v13  ;;  %v2119_v30 = vld [vmem:[%s2716_s1 + $0xe8] sm:$0xff] }
  0x13   : > { %v1797_v23 = vor.u32 %v2077_v17, %v1796_v16  ;;  %v2104_v25 = vld [vmem:[%s2716_s1 + $0x70] sm:$0xff]  ;;  %v2110_v31 = vld [vmem:[%s2716_s1 + $0xa0] sm:$0xff]  ;;  %v2123_v33 = vld [vmem:[%s2716_s1 + $0x108] sm:$0xff] }
  0x14   : > { %2221 = vmatpush.bf16.msra.mxu1 %v2095_v2  ;;  %2222 = vmatpush.bf16.msra.mxu2 %v2095_v2  ;;  %v2120_v26 = vld [vmem:[%s2716_s1 + $0xf0] sm:$0xff]  ;;  %v2102_v32 = vld [vmem:[%s2716_s1 + $0x60] sm:$0xff]  ;;  %v1656_v34 = vld [vmem:[%s2312_s5 + $0xc8] sm:$0xf] }
  0x15   : > { %983 = vmatpush.bf16.msra.mxu0 %v2095_v2  ;;  %2223 = vmatpush.bf16.msra.mxu3 %v2095_v2  ;;  %v2124_v29 = vld [vmem:[%s2716_s1 + $0x110] sm:$0xff]  ;;  %v2042_v35 = vld [vmem:[%s2312_s5 + $0xd8] sm:$0xf0]  ;;  %v1736_v36 = vld [vmem:[%s2312_s5 + $0x168] sm:$0xf] }
  0x16   : > { %v2062_v37 = vld [vmem:[%s2312_s5 + $0x178] sm:$0xf0]  ;;  %v2118_v38 = vld [vmem:[%s2716_s1 + $0xe0] sm:$0xff]  ;;  %v1576_v39 = vld [vmem:[%s2312_s5 + $0x28] sm:$0xf]  ;;  %v1657_v45 = vor.u32 %v2042_v35, %v1656_v34 }
  0x17   : > { %v2022_v40 = vld [vmem:[%s2312_s5 + $0x38] sm:$0xf0]  ;;  %v1816_v42 = vld [vmem:[%s2312_s5 + $0x208] sm:$0xf]  ;;  %v1737_v46 = vor.u32 %v2062_v37, %v1736_v36  ;;  %v2108_v50 = vld [vmem:[%s2716_s1 + $0x90] sm:$0xff] }
  0x18   : > { %2224 = vmatpush.bf16.msra.mxu1 %v2094_v3  ;;  %2225 = vmatpush.bf16.msra.mxu2 %v2094_v3  ;;  %v2109_v41 = vld [vmem:[%s2716_s1 + $0x98] sm:$0xff]  ;;  %v1577_v47 = vor.u32 %v2022_v40, %v1576_v39  ;;  %v2100_v51 = vld [vmem:[%s2716_s1 + $0x50] sm:$0xff]  ;;  %v2107_v53 = vld [vmem:[%s2716_s1 + $0x88] sm:$0xff] }
  0x19   : > { %984 = vmatpush.bf16.msra.mxu0 %v2094_v3  ;;  %2226 = vmatpush.bf16.msra.mxu3 %v2094_v3  ;;  %v2082_v43 = vld [vmem:[%s2312_s5 + $0x218] sm:$0xf0]  ;;  %v2116_v52 = vld [vmem:[%s2716_s1 + $0xd0] sm:$0xff]  ;;  %v2099_v54 = vld [vmem:[%s2716_s1 + $0x48] sm:$0xff] }
  0x1a   : > { %v2101_v44 = vld [vmem:[%s2716_s1 + $0x58] sm:$0xff]  ;;  %v1817_v49 = vor.u32 %v2082_v43, %v1816_v42  ;;  %v2122_v55 = vld [vmem:[%s2716_s1 + $0x100] sm:$0xff]  ;;  %v2115_v56 = vld [vmem:[%s2716_s1 + $0xc8] sm:$0xff] }
  0x1b   : > { %v2117_v48 = vld [vmem:[%s2716_s1 + $0xd8] sm:$0xff]  ;;  %v2106_v57 = vld [vmem:[%s2716_s1 + $0x80] sm:$0xff]  ;;  %v1676_v59 = vld [vmem:[%s2312_s5 + $0xf0] sm:$0xf] }
  0x1c   : > { %2227 = vmatpush.bf16.msra.mxu1 %v2093_v4  ;;  %2228 = vmatpush.bf16.msra.mxu2 %v2093_v4  ;;  %v2098_v58 = vld [vmem:[%s2716_s1 + $0x40] sm:$0xff]  ;;  %v1756_v61 = vld [vmem:[%s2312_s5 + $0x190] sm:$0xf]  ;;  %v1696_v8 = vld [vmem:[%s2312_s5 + $0x118] sm:$0xf] }
  0x1d   : > { %985 = vmatpush.bf16.msra.mxu0 %v2093_v4  ;;  %2229 = vmatpush.bf16.msra.mxu3 %v2093_v4  ;;  %v2047_v60 = vld [vmem:[%s2312_s5 + $0x100] sm:$0xf0]  ;;  %v1596_v0 = vld [vmem:[%s2312_s5 + $0x50] sm:$0xf]  ;;  %v2052_v9 = vld [vmem:[%s2312_s5 + $0x128] sm:$0xf0] }
  0x1e   : > { %v2067_v62 = vld [vmem:[%s2312_s5 + $0x1a0] sm:$0xf0]  ;;  %v1836_v2 = vld [vmem:[%s2312_s5 + $0x230] sm:$0xf]  ;;  %v1677_v4 = vor.u32 %v2047_v60, %v1676_v59  ;;  %v1776_v10 = vld [vmem:[%s2312_s5 + $0x1b8] sm:$0xf]  ;;  %v1697_v16 = vor.u32 %v2052_v9, %v1696_v8 }
  0x1f   : > { %v2114_v63 = vld [vmem:[%s2716_s1 + $0xc0] sm:$0xff]  ;;  %v2072_v11 = vld [vmem:[%s2312_s5 + $0x1c8] sm:$0xf0]  ;;  %v1584_v34 = vld [vmem:[%s2312_s5 + $0x30] sm:$0xf] }
  0x20   : > { %2230 = vmatpush.bf16.msra.mxu1 %v2092_v5  ;;  %2231 = vmatpush.bf16.msra.mxu2 %v2092_v5  ;;  %v2027_v1 = vld [vmem:[%s2312_s5 + $0x60] sm:$0xf0]  ;;  %v2032_v13 = vld [vmem:[%s2312_s5 + $0x88] sm:$0xf0]  ;;  %v1777_v17 = vor.u32 %v2072_v11, %v1776_v10  ;;  %v1592_v36 = vld [vmem:[%s2312_s5 + $0x38] sm:$0xf] }
  0x21   : > { %986 = vmatpush.bf16.msra.mxu0 %v2092_v5  ;;  %2232 = vmatpush.bf16.msra.mxu3 %v2092_v5  ;;  %v2087_v3 = vld [vmem:[%s2312_s5 + $0x240] sm:$0xf0]  ;;  %v1757_v5 = vor.u32 %v2067_v62, %v1756_v61  ;;  %v2016_v14 = vld [vmem:[%s2312_s5 + $0xc] sm:$0xf]  ;;  %v1606_v39 = vld [vmem:[%s2312_s5 + $0x6c] sm:$0xf0] }
  0x22   : > { %v2023_v35 = vld [vmem:[%s2312_s5 + $0x40] sm:$0xf0]  ;;  %v2024_v37 = vld [vmem:[%s2312_s5 + $0x48] sm:$0xf0]  ;;  %v2033_v59 = vld [vmem:[%s2312_s5 + $0x90] sm:$0xf0] }
  0x23   : > { %v1593_v42 = vor.u32 %v2024_v37, %v1592_v36  ;;  %v1632_v60 = vld [vmem:[%s2312_s5 + $0x88] sm:$0xf]  ;;  %v2034_v61 = vld [vmem:[%s2312_s5 + $0x98] sm:$0xf0]  ;;  %v2036_v62 = vld [vmem:[%s2312_s5 + $0xac] sm:$0xf] }
  0x24   : > { %2233 = vmatpush.bf16.msra.mxu1 %v2091_v6  ;;  %2234 = vmatpush.bf16.msra.mxu2 %v2091_v6  ;;  %v2476_v8 = vld [vmem:[%s2717_s2] ss:$0 sm:$0xff]  ;;  %v1652_v9 = vld [vmem:[%s2312_s5 + $0xb0] sm:$0xf]  ;;  %v2039_v10 = vld [vmem:[%s2312_s5 + $0xc0] sm:$0xf0] }
  0x25   : > { %987 = vmatpush.bf16.msra.mxu0 %v2091_v6  ;;  %2235 = vmatpush.bf16.msra.mxu3 %v2091_v6  ;;  %v1597_v6 = vor.u32 %v2027_v1, %v1596_v0  ;;  %v2041_v11 = vld [vmem:[%s2312_s5 + $0xd4] sm:$0xf] }
  0x28   : > { %2236 = vmatpush.bf16.msra.mxu1 %v2090_v7  ;;  %2237 = vmatpush.bf16.msra.mxu2 %v2090_v7 }
  0x29   : > { %988 = vmatpush.bf16.msra.mxu0 %v2090_v7  ;;  %2238 = vmatpush.bf16.msra.mxu3 %v2090_v7  ;;  %v1837_v7 = vor.u32 %v2087_v3, %v1836_v2  ;;  %v1633_v2 = vor.u32 %v2034_v61, %v1632_v60  ;;  %v2051_v60 = vld [vmem:[%s2312_s5 + $0x124] sm:$0xf]  ;;  %v1706_v61 = vld [vmem:[%s2312_s5 + $0x134] sm:$0xf0] }
  0x2b   : > { %1009 = vmatmul.bf16.vlgmr.msra.gmra.mxu1 %v1637_v18  ;;  %1029 = vmatmul.bf16.vlgmr.msra.gmra.mxu2 %v1717_v19 }
  0x2c   : > { %1149 = vmatpush.bf16.msrb.mxu2 %v2113_v12  ;;  %1065 = vmatpush.bf16.msrb.mxu1 %v2105_v15  ;;  %v1616_v12 = vld [vmem:[%s2312_s5 + $0x78] sm:$0xf]  ;;  %v1566_v15 = vld [vmem:[%s2312_s5 + $0x1c] sm:$0xf0] }
  0x2d   : > { %989 = vmatmul.bf16.vlgmr.msra.gmra.mxu0 %v1557_v20  ;;  %1233 = vmatpush.bf16.msrb.mxu3 %v2121_v21  ;;  %v1617_v18 = vor.u32 %v2032_v13, %v1616_v12  ;;  %v1569_v19 = vor.u32 %v2016_v14, %v1566_v15  ;;  %v2015_v20 = vld [vmem:[%s2312_s5 + $0x4] sm:$0xf]  ;;  %v1558_v21 = vld [vmem:[%s2312_s5 + $0x14] sm:$0xf0]  ;;  %v1666_v12 = vld [vmem:[%s2312_s5 + $0xe4] sm:$0xf0] }
  0x2e   : > { %1049 = vmatmul.bf16.vlgmr.msra.gmra.mxu3 %v1797_v23  ;;  %1321 = vmatpush.bf16.msrb.mxu0 %v2125_v24  ;;  %v2018_v23 = vld [vmem:[%s2312_s5 + $0x18] sm:$0xf0]  ;;  %v1572_v24 = vld [vmem:[%s2312_s5 + $0x10] sm:$0xf] }
  0x30   : > { %1150 = vmatpush.bf16.msrb.mxu2 %v2112_v22  ;;  %1066 = vmatpush.bf16.msrb.mxu1 %v2104_v25  ;;  %v1564_v22 = vld [vmem:[%s2312_s5 + $0x8] sm:$0xf]  ;;  %v2019_v25 = vld [vmem:[%s2312_s5 + $0x20] sm:$0xf0] }
  0x31   : > { %1234 = vmatpush.bf16.msrb.mxu3 %v2120_v26  ;;  %v2021_v26 = vld [vmem:[%s2312_s5 + $0x34] sm:$0xf] }
  0x32   : > { %1322 = vmatpush.bf16.msrb.mxu0 %v2124_v29  ;;  %v1565_v29 = vor.u32 %v2018_v23, %v1564_v22 }
  0x34   : > { %1151 = vmatpush.bf16.msrb.mxu2 %v2111_v27  ;;  %1067 = vmatpush.bf16.msrb.mxu1 %v2103_v28  ;;  %v1586_v27 = vld [vmem:[%s2312_s5 + $0x44] sm:$0xf0]  ;;  %v1561_v28 = vor.u32 %v2015_v20, %v1558_v21 }
  0x35   : > { %1235 = vmatpush.bf16.msrb.mxu3 %v2119_v30  ;;  %v1573_v30 = vor.u32 %v2019_v25, %v1572_v24 }
  0x36   : > { %1323 = vmatpush.bf16.msrb.mxu0 %v2123_v33  ;;  %v1578_v33 = vld [vmem:[%s2312_s5 + $0x3c] sm:$0xf0] }
  0x38   : > { %1152 = vmatpush.bf16.msrb.mxu2 %v2110_v31  ;;  %1068 = vmatpush.bf16.msrb.mxu1 %v2102_v32  ;;  %v1589_v31 = vor.u32 %v2021_v26, %v1586_v27  ;;  %v2020_v32 = vld [vmem:[%s2312_s5 + $0x2c] sm:$0xf] }
  0x39   : > { %1236 = vmatpush.bf16.msrb.mxu3 %v2118_v38  ;;  %v2026_v38 = vld [vmem:[%s2312_s5 + $0x5c] sm:$0xf]  ;;  %v1581_v40 = vor.u32 %v2020_v32, %v1578_v33  ;;  %v2040_v27 = vld [vmem:[%s2312_s5 + $0xcc] sm:$0xf] }
  0x3a   : > { %1324 = vmatpush.bf16.msrb.mxu0 %v2122_v55  ;;  %v1609_v43 = vor.u32 %v2026_v38, %v1606_v39  ;;  %v2044_v32 = vld [vmem:[%s2312_s5 + $0xe8] sm:$0xf0] }
  0x3b   : > { %1014 = vmatmul.bf16.gmra.mxu1 %v1657_v45  ;;  %1034 = vmatmul.bf16.gmra.mxu2 %v1737_v46  ;;  %v1598_v45 = vld [vmem:[%s2312_s5 + $0x64] sm:$0xf0]  ;;  %v1604_v46 = vld [vmem:[%s2312_s5 + $0x58] sm:$0xf] }
  0x3c   : > { %1153 = vmatpush.bf16.msrb.mxu2 %v2109_v41  ;;  %1069 = vmatpush.bf16.msrb.mxu1 %v2101_v44  ;;  %v1585_v41 = vor.u32 %v2023_v35, %v1584_v34  ;;  %v2025_v44 = vld [vmem:[%s2312_s5 + $0x54] sm:$0xf]  ;;  %v2046_v34 = vld [vmem:[%s2312_s5 + $0xfc] sm:$0xf]  ;;  %v1686_v35 = vld [vmem:[%s2312_s5 + $0x10c] sm:$0xf0] }
  0x3d   : > { %994 = vmatmul.bf16.gmra.mxu0 %v1577_v47  ;;  %1237 = vmatpush.bf16.msrb.mxu3 %v2117_v48  ;;  %v2028_v47 = vld [vmem:[%s2312_s5 + $0x68] sm:$0xf0]  ;;  %v1612_v48 = vld [vmem:[%s2312_s5 + $0x60] sm:$0xf] }
  0x3e   : > { %1054 = vmatmul.bf16.gmra.mxu3 %v1817_v49  ;;  %v2029_v49 = vld [vmem:[%s2312_s5 + $0x70] sm:$0xf0] }
  0x40   : > { %1154 = vmatpush.bf16.msrb.mxu2 %v2108_v50  ;;  %1070 = vmatpush.bf16.msrb.mxu1 %v2100_v51  ;;  %v2031_v50 = vld [vmem:[%s2312_s5 + $0x84] sm:$0xf]  ;;  %v1626_v51 = vld [vmem:[%s2312_s5 + $0x94] sm:$0xf0] }
  0x41   : > { %1238 = vmatpush.bf16.msrb.mxu3 %v2116_v52  ;;  %v1601_v52 = vor.u32 %v2025_v44, %v1598_v45  ;;  %v1629_v55 = vor.u32 %v2031_v50, %v1626_v51  ;;  %v1689_v45 = vor.u32 %v2046_v34, %v1686_v35 }
  0x44   : > { %1155 = vmatpush.bf16.msrb.mxu2 %v2107_v53  ;;  %1071 = vmatpush.bf16.msrb.mxu1 %v2099_v54  ;;  %v1605_v53 = vor.u32 %v2028_v47, %v1604_v46  ;;  %v1613_v54 = vor.u32 %v2029_v49, %v1612_v48 }
  0x45   : > { %1239 = vmatpush.bf16.msrb.mxu3 %v2115_v56  ;;  %v2030_v56 = vld [vmem:[%s2312_s5 + $0x7c] sm:$0xf] }
  0x48   : > { %1156 = vmatpush.bf16.msrb.mxu2 %v2106_v57  ;;  %1072 = vmatpush.bf16.msrb.mxu1 %v2098_v58  ;;  %v1618_v57 = vld [vmem:[%s2312_s5 + $0x8c] sm:$0xf0]  ;;  %v1624_v58 = vld [vmem:[%s2312_s5 + $0x80] sm:$0xf] }
  0x49   : > { %1240 = vmatpush.bf16.msrb.mxu3 %v2114_v63  ;;  %v1646_v63 = vld [vmem:[%s2312_s5 + $0xbc] sm:$0xf0]  ;;  %v1621_v0 = vor.u32 %v2030_v56, %v1618_v57  ;;  %v1625_v1 = vor.u32 %v2033_v59, %v1624_v58  ;;  %v2048_v56 = vld [vmem:[%s2312_s5 + $0x108] sm:$0xf0]  ;;  %v2049_v58 = vld [vmem:[%s2312_s5 + $0x110] sm:$0xf0] }
  0x4a   : > { %v1649_v3 = vor.u32 %v2036_v62, %v1646_v63  ;;  %v1692_v57 = vld [vmem:[%s2312_s5 + $0x100] sm:$0xf] }
  0x4b   : > { %1019 = vmatmul.bf16.gmra.mxu1 %v1677_v4  ;;  %1039 = vmatmul.bf16.gmra.mxu2 %v1757_v5  ;;  %v2035_v4 = vld [vmem:[%s2312_s5 + $0xa4] sm:$0xf]  ;;  %v1638_v5 = vld [vmem:[%s2312_s5 + $0xb4] sm:$0xf0] }
  0x4c   : > { %v1641_v13 = vor.u32 %v2035_v4, %v1638_v5 }
  0x4d   : > { %999 = vmatmul.bf16.gmra.mxu0 %v1597_v6  ;;  %v1644_v6 = vld [vmem:[%s2312_s5 + $0xa8] sm:$0xf] }
  0x4e   : > { %1059 = vmatmul.bf16.gmra.mxu3 %v1837_v7  ;;  %v2038_v7 = vld [vmem:[%s2312_s5 + $0xb8] sm:$0xf0] }
  0x4f   : > { %v1645_v14 = vor.u32 %v2038_v7, %v1644_v6  ;;  %v1709_v7 = vor.u32 %v2051_v60, %v1706_v61  ;;  %v2059_v60 = vld [vmem:[%s2312_s5 + $0x160] sm:$0xf0] }
  0x5b   : > { %1024 = vmatmul.bf16.gmra.mxu1 %v1697_v16  ;;  %1044 = vmatmul.bf16.gmra.mxu2 %v1777_v17  ;;  %v1653_v16 = vor.u32 %v2039_v10, %v1652_v9 }
  0x5d   : > { %1004 = vmatmul.bf16.gmra.mxu0 %v1617_v18 }
  0x5e   : > { %1241 = vmatmul.bf16.vlgmr.msrb.gmra.mxu3 %v1569_v19  ;;  %v1669_v19 = vor.u32 %v2041_v11, %v1666_v12 }
  0x6b   : > { %1073 = vmatmul.bf16.vlgmr.msrb.gmra.mxu1 %v1561_v28  ;;  %1157 = vmatmul.bf16.vlgmr.msrb.gmra.mxu2 %v1565_v29  ;;  %v1658_v28 = vld [vmem:[%s2312_s5 + $0xdc] sm:$0xf0]  ;;  %v1664_v29 = vld [vmem:[%s2312_s5 + $0xd0] sm:$0xf] }
  0x6c   : > { %v1661_v37 = vor.u32 %v2040_v27, %v1658_v28  ;;  %v2054_v27 = vld [vmem:[%s2312_s5 + $0x138] sm:$0xf0] }
  0x6d   : > { %1998 = vmatmul.msk.bf16.vlgmr.msrb.gmra.mxu0 %vm935_vm0, %v1573_v30  ;;  %v2043_v30 = vld [vmem:[%s2312_s5 + $0xe0] sm:$0xf0] }
  0x6e   : > { %1246 = vmatmul.bf16.gmra.mxu3 %v1589_v31  ;;  %v1672_v31 = vld [vmem:[%s2312_s5 + $0xd8] sm:$0xf]  ;;  %v1665_v38 = vor.u32 %v2043_v30, %v1664_v29  ;;  %v2056_v29 = vld [vmem:[%s2312_s5 + $0x14c] sm:$0xf]  ;;  %v1726_v30 = vld [vmem:[%s2312_s5 + $0x15c] sm:$0xf0] }
  0x7b   : > { %1078 = vmatmul.bf16.gmra.mxu1 %v1581_v40  ;;  %1162 = vmatmul.bf16.gmra.mxu2 %v1585_v41  ;;  %v1673_v40 = vor.u32 %v2044_v32, %v1672_v31 }
  0x7d   : > { %1999 = vmatmul.msk.bf16.gmra.mxu0 %vm935_vm0, %v1593_v42 }
  0x7e   : > { %1251 = vmatmul.bf16.gmra.mxu3 %v1609_v43 }
  0x8b   : > { %1083 = vmatmul.bf16.gmra.mxu1 %v1601_v52  ;;  %1167 = vmatmul.bf16.gmra.mxu2 %v1605_v53  ;;  %v2045_v53 = vld [vmem:[%s2312_s5 + $0xf4] sm:$0xf] }
  0x8d   : > { %2000 = vmatmul.msk.bf16.gmra.mxu0 %vm935_vm0, %v1613_v54  ;;  %v1678_v54 = vld [vmem:[%s2312_s5 + $0x104] sm:$0xf0] }
  0x8e   : > { %1256 = vmatmul.bf16.gmra.mxu3 %v1629_v55  ;;  %v1684_v55 = vld [vmem:[%s2312_s5 + $0xf8] sm:$0xf]  ;;  %v1681_v63 = vor.u32 %v2045_v53, %v1678_v54 }
  0x9b   : > { %1088 = vmatmul.bf16.gmra.mxu1 %v1621_v0  ;;  %1172 = vmatmul.bf16.gmra.mxu2 %v1625_v1  ;;  %v1685_v0 = vor.u32 %v2048_v56, %v1684_v55  ;;  %v2055_v55 = vld [vmem:[%s2312_s5 + $0x144] sm:$0xf]  ;;  %v1718_v56 = vld [vmem:[%s2312_s5 + $0x154] sm:$0xf0] }
  0x9d   : > { %2001 = vmatmul.msk.bf16.gmra.mxu0 %vm935_vm0, %v1633_v2  ;;  %v1693_v2 = vor.u32 %v2049_v58, %v1692_v57  ;;  %v1724_v57 = vld [vmem:[%s2312_s5 + $0x148] sm:$0xf]  ;;  %v2058_v58 = vld [vmem:[%s2312_s5 + $0x158] sm:$0xf0] }
  0x9e   : > { %1261 = vmatmul.bf16.gmra.mxu3 %v1649_v3 }
  0xa8   : > { %v1010_v15 = vpop.f32.mrf.mxu1 }
  0xa9   : > { %v2483_v17 = vadd.f32 %v2476_v8, %v1010_v15 }
  0xaa   : > { %v2485_v18 = vpop.f32.mrf.mxu0 }
  0xab   : > { %1093 = vmatmul.bf16.gmra.mxu1 %v1641_v13  ;;  %1177 = vmatmul.bf16.gmra.mxu2 %v1645_v14 }
  0xad   : > { %2002 = vmatmul.msk.bf16.gmra.mxu0 %vm935_vm0, %v1653_v16  ;;  %v2050_v16 = vld [vmem:[%s2312_s5 + $0x11c] sm:$0xf] }
  0xae   : > { %1266 = vmatmul.bf16.gmra.mxu3 %v1669_v19  ;;  %v1030_v20 = vpop.f32.mrf.mxu2  ;;  %v1698_v19 = vld [vmem:[%s2312_s5 + $0x12c] sm:$0xf0] }
  0xaf   : > { %v2489_v21 = vadd.f32 %v2476_v8, %v1030_v20  ;;  %v1704_v20 = vld [vmem:[%s2312_s5 + $0x120] sm:$0xf]  ;;  %v1701_v32 = vor.u32 %v2050_v16, %v1698_v19  ;;  %v991_v19 = vadd.f32 %v2476_v8, %v2485_v18  ;;  %v1752_v18 = vld [vmem:[%s2312_s5 + $0x178] sm:$0xf] }
  0xb0   : > { %v1012_v22 = vpop.f32.mrf.mxu1 }
  0xb1   : > { %v1050_v23 = vpop.f32.mrf.mxu3  ;;  %v2492_v24 = vadd.f32 %v2476_v8, %v1012_v22  ;;  %v2053_v22 = vld [vmem:[%s2312_s5 + $0x130] sm:$0xf0] }
  0xb2   : > { %v2494_v25 = vpop.f32.mrf.mxu0  ;;  %v2497_v26 = vadd.f32 %v2476_v8, %v1050_v23  ;;  %v1712_v23 = vld [vmem:[%s2312_s5 + $0x128] sm:$0xf] }
  0xb3   : > { %v1713_v35 = vor.u32 %v2054_v27, %v1712_v23 }
  0xb6   : > { %v1032_v33 = vpop.f32.mrf.mxu2 }
  0xb7   : > { %v2508_v36 = vadd.f32 %v2476_v8, %v1032_v33  ;;  %v1705_v33 = vor.u32 %v2053_v22, %v1704_v20 }
  0xb8   : > { %v1015_v39 = vpop.f32.mrf.mxu1 }
  0xb9   : > { %v1052_v41 = vpop.f32.mrf.mxu3  ;;  %v2511_v42 = vadd.f32 %v2476_v8, %v1015_v39 }
  0xba   : > { %v2513_v43 = vpop.f32.mrf.mxu0  ;;  %v2516_v44 = vadd.f32 %v2476_v8, %v1052_v41  ;;  %v1729_v41 = vor.u32 %v2056_v29, %v1726_v30  ;;  %v993_v30 = vadd.f32 %v2476_v8, %v2494_v25 }
  0xbb   : > { %1098 = vmatmul.bf16.gmra.mxu1 %v1661_v37  ;;  %1182 = vmatmul.bf16.gmra.mxu2 %v1665_v38 }
  0xbd   : > { %2003 = vmatmul.msk.bf16.gmra.mxu0 %vm935_vm0, %v1673_v40 }
  0xbe   : > { %1271 = vmatmul.bf16.gmra.mxu3 %v1689_v45  ;;  %v1035_v46 = vpop.f32.mrf.mxu2 }
  0xbf   : > { %v2520_v47 = vadd.f32 %v2476_v8, %v1035_v46 }
  0xc0   : > { %v1017_v48 = vpop.f32.mrf.mxu1 }
  0xc1   : > { %v1055_v49 = vpop.f32.mrf.mxu3  ;;  %v2523_v50 = vadd.f32 %v2476_v8, %v1017_v48 }
  0xc2   : > { %v2525_v51 = vpop.f32.mrf.mxu0  ;;  %v2528_v52 = vadd.f32 %v2476_v8, %v1055_v49 }
  0xc6   : > { %v1037_v59 = vpop.f32.mrf.mxu2 }
  0xc7   : > { %v2539_v62 = vadd.f32 %v2476_v8, %v1037_v59  ;;  %v1732_v59 = vld [vmem:[%s2312_s5 + $0x150] sm:$0xf] }
  0xc8   : > { %v1020_v1 = vpop.f32.mrf.mxu1 }
  0xc9   : > { %v1057_v3 = vpop.f32.mrf.mxu3  ;;  %v2542_v4 = vadd.f32 %v2476_v8, %v1020_v1 }
  0xca   : > { %v2544_v5 = vpop.f32.mrf.mxu0  ;;  %v2547_v6 = vadd.f32 %v2476_v8, %v1057_v3  ;;  %v1725_v3 = vor.u32 %v2058_v58, %v1724_v57 }
  0xcb   : > { %1103 = vmatmul.bf16.gmra.mxu1 %v1681_v63  ;;  %1187 = vmatmul.bf16.gmra.mxu2 %v1685_v0  ;;  %v2061_v63 = vld [vmem:[%s2312_s5 + $0x174] sm:$0xf]  ;;  %v1746_v0 = vld [vmem:[%s2312_s5 + $0x184] sm:$0xf0] }
  0xcc   : > { %v1749_v16 = vor.u32 %v2061_v63, %v1746_v0 }
  0xcd   : > { %2004 = vmatmul.msk.bf16.gmra.mxu0 %vm935_vm0, %v1693_v2  ;;  %v1721_v2 = vor.u32 %v2055_v55, %v1718_v56  ;;  %v2066_v55 = vld [vmem:[%s2312_s5 + $0x19c] sm:$0xf]  ;;  %v1766_v56 = vld [vmem:[%s2312_s5 + $0x1ac] sm:$0xf0] }
  0xce   : > { %1276 = vmatmul.bf16.gmra.mxu3 %v1709_v7  ;;  %v1040_v9 = vpop.f32.mrf.mxu2 }
  0xcf   : > { %v2551_v10 = vadd.f32 %v2476_v8, %v1040_v9  ;;  %v1733_v9 = vor.u32 %v2059_v60, %v1732_v59 }
  0xd0   : > { %v1022_v11 = vpop.f32.mrf.mxu1 }
  0xd1   : > { %v1060_v12 = vpop.f32.mrf.mxu3  ;;  %v2554_v13 = vadd.f32 %v2476_v8, %v1022_v11 }
  0xd2   : > { %v2556_v14 = vpop.f32.mrf.mxu0  ;;  %v2559_v15 = vadd.f32 %v2476_v8, %v1060_v12 }
  0xd6   : > { %v1042_v28 = vpop.f32.mrf.mxu2 }
  0xd7   : > { %v2570_v31 = vadd.f32 %v2476_v8, %v1042_v28 }
  0xd8   : > { %v1025_v34 = vpop.f32.mrf.mxu1 }
  0xd9   : > { %v1062_v37 = vpop.f32.mrf.mxu3  ;;  %v2573_v38 = vadd.f32 %v2476_v8, %v1025_v34  ;;  %v1744_v34 = vld [vmem:[%s2312_s5 + $0x170] sm:$0xf] }
  0xda   : > { %v2575_v39 = vpop.f32.mrf.mxu0  ;;  %v2578_v40 = vadd.f32 %v2476_v8, %v1062_v37 }
  0xdb   : > { %1108 = vmatmul.bf16.gmra.mxu1 %v1701_v32  ;;  %1192 = vmatmul.bf16.gmra.mxu2 %v1705_v33  ;;  %v2060_v32 = vld [vmem:[%s2312_s5 + $0x16c] sm:$0xf]  ;;  %v1738_v33 = vld [vmem:[%s2312_s5 + $0x17c] sm:$0xf0] }
  0xdc   : > { %v1741_v58 = vor.u32 %v2060_v32, %v1738_v33  ;;  %v1764_v32 = vld [vmem:[%s2312_s5 + $0x198] sm:$0xf]  ;;  %v2068_v33 = vld [vmem:[%s2312_s5 + $0x1a8] sm:$0xf0] }
  0xdd   : > { %2005 = vmatmul.msk.bf16.gmra.mxu0 %vm935_vm0, %v1713_v35  ;;  %v2063_v35 = vld [vmem:[%s2312_s5 + $0x180] sm:$0xf0] }
  0xde   : > { %1281 = vmatmul.bf16.gmra.mxu3 %v1729_v41  ;;  %v1045_v45 = vpop.f32.mrf.mxu2  ;;  %v1745_v59 = vor.u32 %v2063_v35, %v1744_v34 }
  0xdf   : > { %v2582_v46 = vadd.f32 %v2476_v8, %v1045_v45  ;;  %v2064_v45 = vld [vmem:[%s2312_s5 + $0x188] sm:$0xf0] }
  0xe0   : > { %v1027_v48 = vpop.f32.mrf.mxu1 }
  0xe1   : > { %v1242_v49 = vpop.f32.mrf.mxu3  ;;  %v2585_v53 = vadd.f32 %v2476_v8, %v1027_v48 }
  0xe2   : > { %v2587_v54 = vpop.f32.mrf.mxu0 }
  0xe6   : > { %v1047_v61 = vpop.f32.mrf.mxu2 }
  0xe7   : > { %v2598_v1 = vadd.f32 %v2476_v8, %v1047_v61  ;;  %v1753_v61 = vor.u32 %v2064_v45, %v1752_v18  ;;  %v2071_v45 = vld [vmem:[%s2312_s5 + $0x1c4] sm:$0xf] }
  0xe8   : > { %v1074_v7 = vpop.f32.mrf.mxu1 }
  0xe9   : > { %v1244_v11 = vpop.f32.mrf.mxu3  ;;  %v1075_v22 = vadd.f32 %v1074_v7, %v991_v19 }
  0xea   : > { %v1326_v12 = vpop.f32.mrf.mxu0 }
  0xeb   : > { %1113 = vmatmul.bf16.gmra.mxu1 %v1721_v2  ;;  %1197 = vmatmul.bf16.gmra.mxu2 %v1725_v3  ;;  %v1769_v3 = vor.u32 %v2066_v55, %v1766_v56 }
  0xed   : > { %2006 = vmatmul.msk.bf16.gmra.mxu0 %vm935_vm0, %v1733_v9 }
  0xee   : > { %1286 = vmatmul.bf16.gmra.mxu3 %v1749_v16  ;;  %v1158_v20 = vpop.f32.mrf.mxu2 }
  0xef   : > { %v1159_v28 = vadd.f32 %v1158_v20, %v1075_v22 }
  0xf0   : > { %v1076_v23 = vpop.f32.mrf.mxu1 }
  0xf1   : > { %v1247_v27 = vpop.f32.mrf.mxu3  ;;  %v1243_v37 = vadd.f32 %v1242_v49, %v1159_v28  ;;  %v1077_v41 = vadd.f32 %v1076_v23, %v993_v30  ;;  %v996_v49 = vadd.f32 %v2476_v8, %v2513_v43  ;;  %v998_v28 = vadd.f32 %v2476_v8, %v2525_v51  ;;  %v1758_v30 = vld [vmem:[%s2312_s5 + $0x1a4] sm:$0xf0] }
  0xf2   : > { %v1328_v29 = vpop.f32.mrf.mxu0 }
  0xf3   : > { %v1327_v0 = vadd.f32 %v1326_v12, %v1243_v37  ;;  %v1772_v37 = vld [vmem:[%s2312_s5 + $0x1a0] sm:$0xf] }
  0xf5   : > { %v1401_v9 = vmax.f32 %v1327_v0, 0.0 }
  0xf6   : > { %v1160_v48 = vpop.f32.mrf.mxu2 }
  0xf7   : > { %v1161_v57 = vadd.f32 %v1160_v48, %v1077_v41  ;;  %v2069_v41 = vld [vmem:[%s2312_s5 + $0x1b0] sm:$0xf0]  ;;  %v1786_v48 = vld [vmem:[%s2312_s5 + $0x1d4] sm:$0xf0] }
  0xf8   : > { %v1079_v60 = vpop.f32.mrf.mxu1 }
  0xf9   : > { %v1249_v63 = vpop.f32.mrf.mxu3  ;;  %v1245_v25 = vadd.f32 %v1244_v11, %v1161_v57  ;;  %v1080_v19 = vadd.f32 %v1079_v60, %v996_v49  ;;  %v1765_v57 = vor.u32 %v2068_v33, %v1764_v32  ;;  %v1792_v32 = vld [vmem:[%s2312_s5 + $0x1c8] sm:$0xf]  ;;  %v2074_v33 = vld [vmem:[%s2312_s5 + $0x1d8] sm:$0xf0] }
  0xfa   : > { %v1331_v2 = vpop.f32.mrf.mxu0 }
  0xfb   : > { %v1329_v7 = vadd.f32 %v1328_v29, %v1245_v25  ;;  %1118 = vmatmul.bf16.gmra.mxu1 %v1741_v58  ;;  %1202 = vmatmul.bf16.gmra.mxu2 %v1745_v59  ;;  %v2065_v29 = vld [vmem:[%s2312_s5 + $0x194] sm:$0xf]  ;;  %v1773_v59 = vor.u32 %v2069_v41, %v1772_v37  ;;  %v1789_v25 = vor.u32 %v2071_v45, %v1786_v48  ;;  %v1806_v37 = vld [vmem:[%s2312_s5 + $0x1fc] sm:$0xf0] }
  0xfc   : > { %v1761_v56 = vor.u32 %v2065_v29, %v1758_v30 }
  0xfd   : > { %2007 = vmatmul.msk.bf16.gmra.mxu0 %vm935_vm0, %v1753_v61  ;;  %v1402_v16 = vmax.f32 %v1329_v7, 0.0 }
  0xfe   : > { %1291 = vmatmul.bf16.gmra.mxu3 %v1769_v3  ;;  %v1163_v11 = vpop.f32.mrf.mxu2 }
  0xff   : > { %v2129_v12 = vpack.c.bf16 %v1402_v16, %v1401_v9  ;;  %v1164_v22 = vadd.f32 %v1163_v11, %v1080_v19 }
 0x100   : > { %v1081_v20 = vpop.f32.mrf.mxu1 }
 0x101   : > { %v1252_v43 = vpop.f32.mrf.mxu3  ;;  %2130 = vst [vmem:[%s2620_s23] sm:$0xff] %v2129_v12   ;;  %v1248_v34 = vadd.f32 %v1247_v27, %v1164_v22  ;;  %v1082_v35 = vadd.f32 %v1081_v20, %v998_v28  ;;  %v1001_v27 = vadd.f32 %v2476_v8, %v2544_v5  ;;  %v1003_v20 = vadd.f32 %v2476_v8, %v2556_v14  ;;  %v2070_v5 = vld [vmem:[%s2312_s5 + $0x1bc] sm:$0xf]  ;;  %v1778_v22 = vld [vmem:[%s2312_s5 + $0x1cc] sm:$0xf0]  ;;  %v2073_v28 = vld [vmem:[%s2312_s5 + $0x1d0] sm:$0xf0] }
 0x102   : > { %v1333_v23 = vpop.f32.mrf.mxu0 }
 0x103   : > { %v1332_v61 = vadd.f32 %v1331_v2, %v1248_v34 }
 0x105   : > { %v1403_v7 = vmax.f32 %v1332_v61, 0.0 }
 0x106   : > { %v1165_v18 = vpop.f32.mrf.mxu2 }
 0x107   : > { %v1166_v55 = vadd.f32 %v1165_v18, %v1082_v35  ;;  %v2076_v35 = vld [vmem:[%s2312_s5 + $0x1ec] sm:$0xf]  ;;  %v1781_v18 = vor.u32 %v2070_v5, %v1778_v22  ;;  %v1812_v5 = vld [vmem:[%s2312_s5 + $0x1f0] sm:$0xf]  ;;  %v2079_v22 = vld [vmem:[%s2312_s5 + $0x200] sm:$0xf0] }
 0x108   : > { %v1084_v58 = vpop.f32.mrf.mxu1 }
 0x109   : > { %v1254_v60 = vpop.f32.mrf.mxu3  ;;  %v1250_v0 = vadd.f32 %v1249_v63, %v1166_v55  ;;  %v1085_v9 = vadd.f32 %v1084_v58, %v1001_v27  ;;  %v1793_v55 = vor.u32 %v2074_v33, %v1792_v32 }
 0x10a   : > { %v1336_v51 = vpop.f32.mrf.mxu0 }
 0x10b   : > { %v1334_v3 = vadd.f32 %v1333_v23, %v1250_v0  ;;  %1123 = vmatmul.bf16.gmra.mxu1 %v1761_v56  ;;  %1207 = vmatmul.bf16.gmra.mxu2 %v1765_v57  ;;  %v1784_v23 = vld [vmem:[%s2312_s5 + $0x1c0] sm:$0xf] }
 0x10c   : > { %v1785_v45 = vor.u32 %v2073_v28, %v1784_v23  ;;  %v2081_v28 = vld [vmem:[%s2312_s5 + $0x214] sm:$0xf] }
 0x10d   : > { %2008 = vmatmul.msk.bf16.gmra.mxu0 %vm935_vm0, %v1773_v59  ;;  %v1404_v49 = vmax.f32 %v1334_v3, 0.0  ;;  %v1809_v59 = vor.u32 %v2076_v35, %v1806_v37  ;;  %v1813_v35 = vor.u32 %v2079_v22, %v1812_v5 }
 0x10e   : > { %1296 = vmatmul.bf16.gmra.mxu3 %v1789_v25  ;;  %v1168_v63 = vpop.f32.mrf.mxu2 }
 0x10f   : > { %v2134_v2 = vpack.c.bf16 %v1404_v49, %v1403_v7  ;;  %v1169_v12 = vadd.f32 %v1168_v63, %v1085_v9  ;;  %v1798_v9 = vld [vmem:[%s2312_s5 + $0x1f4] sm:$0xf0] }
 0x110   : > { %v1086_v16 = vpop.f32.mrf.mxu1 }
 0x111   : > { %v1257_v11 = vpop.f32.mrf.mxu3  ;;  %2201 = vst [vmem:[%s2620_s23 + $0x8] sm:$0xff] %v2134_v2   ;;  %v1253_v29 = vadd.f32 %v1252_v43, %v1169_v12  ;;  %v1087_v30 = vadd.f32 %v1086_v16, %v1003_v20  ;;  %v1006_v43 = vadd.f32 %v2476_v8, %v2575_v39  ;;  %v1008_v2 = vadd.f32 %v2476_v8, %v2587_v54  ;;  %v2075_v39 = vld [vmem:[%s2312_s5 + $0x1e4] sm:$0xf]  ;;  %v1804_v16 = vld [vmem:[%s2312_s5 + $0x1e8] sm:$0xf] }
 0x112   : > { %v1338_v19 = vpop.f32.mrf.mxu0  ;;  %v2078_v12 = vld [vmem:[%s2312_s5 + $0x1f8] sm:$0xf0]  ;;  %v1801_v32 = vor.u32 %v2075_v39, %v1798_v9  ;;  %v1846_v39 = vld [vmem:[%s2312_s5 + $0x24c] sm:$0xf0] }
 0x113   : > { %v1337_v57 = vadd.f32 %v1336_v51, %v1253_v29  ;;  %v1826_v29 = vld [vmem:[%s2312_s5 + $0x224] sm:$0xf0]  ;;  %v1805_v33 = vor.u32 %v2078_v12, %v1804_v16 }
 0x115   : > { %v1405_v0 = vmax.f32 %v1337_v57, 0.0 }
 0x116   : > { %v1170_v34 = vpop.f32.mrf.mxu2 }
 0x117   : > { %v1171_v41 = vadd.f32 %v1170_v34, %v1087_v30 }
 0x118   : > { %v1089_v48 = vpop.f32.mrf.mxu1 }
 0x119   : > { %v1259_v56 = vpop.f32.mrf.mxu3  ;;  %v1255_v58 = vadd.f32 %v1254_v60, %v1171_v41  ;;  %v1090_v3 = vadd.f32 %v1089_v48, %v1006_v43  ;;  %v2080_v43 = vld [vmem:[%s2312_s5 + $0x20c] sm:$0xf] }
 0x11a   : > { %v1341_v14 = vpop.f32.mrf.mxu0 }
 0x11b   : > { %v1339_v61 = vadd.f32 %v1338_v19, %v1255_v58  ;;  %1128 = vmatmul.bf16.gmra.mxu1 %v1781_v18  ;;  %1212 = vmatmul.bf16.gmra.mxu2 %v1785_v45  ;;  %v1829_v18 = vor.u32 %v2081_v28, %v1826_v29 }
 0x11d   : > { %2009 = vmatmul.msk.bf16.gmra.mxu0 %vm935_vm0, %v1793_v55  ;;  %v1406_v25 = vmax.f32 %v1339_v61, 0.0 }
 0x11e   : > { %1301 = vmatmul.bf16.gmra.mxu3 %v1809_v59  ;;  %v1173_v60 = vpop.f32.mrf.mxu2 }
 0x11f   : > { %v2139_v51 = vpack.c.bf16 %v1406_v25, %v1405_v0  ;;  %v1174_v49 = vadd.f32 %v1173_v60, %v1090_v3  ;;  %v1818_v0 = vld [vmem:[%s2312_s5 + $0x21c] sm:$0xf0]  ;;  %v1824_v25 = vld [vmem:[%s2312_s5 + $0x210] sm:$0xf]  ;;  %v2083_v60 = vld [vmem:[%s2312_s5 + $0x220] sm:$0xf0] }
 0x120   : > { %v1091_v27 = vpop.f32.mrf.mxu1  ;;  %v1825_v16 = vor.u32 %v2083_v60, %v1824_v25 }
 0x121   : > { %v1262_v7 = vpop.f32.mrf.mxu3  ;;  %2202 = vst [vmem:[%s2620_s23 + $0x10] sm:$0xff] %v2139_v51   ;;  %v1258_v19 = vadd.f32 %v1257_v11, %v1174_v49  ;;  %v1092_v20 = vadd.f32 %v1091_v27, %v1008_v2  ;;  %v1832_v27 = vld [vmem:[%s2312_s5 + $0x218] sm:$0xf]  ;;  %v2084_v49 = vld [vmem:[%s2312_s5 + $0x228] sm:$0xf0] }
 0x122   : > { %v1343_v63 = vpop.f32.mrf.mxu0  ;;  %v2086_v2 = vld [vmem:[%s2312_s5 + $0x23c] sm:$0xf] }
 0x123   : > { %v1342_v41 = vadd.f32 %v1341_v14, %v1258_v19  ;;  %v1833_v19 = vor.u32 %v2084_v49, %v1832_v27  ;;  %v1849_v28 = vor.u32 %v2086_v2, %v1846_v39 }
 0x125   : > { %v1407_v11 = vmax.f32 %v1342_v41, 0.0 }
 0x126   : > { %v1175_v23 = vpop.f32.mrf.mxu2 }
 0x127   : > { %v1176_v30 = vadd.f32 %v1175_v23, %v1092_v20 }
 0x128   : > { %v1094_v34 = vpop.f32.mrf.mxu1 }
 0x129   : > { %v1264_v37 = vpop.f32.mrf.mxu3  ;;  %v1260_v8 = vadd.f32 %v1259_v56, %v1176_v30  ;;  %v1095_v56 = vadd.f32 %v1094_v34, %v2483_v17  ;;  %v1821_v17 = vor.u32 %v2080_v43, %v1818_v0 }
 0x12a   : > { %v1346_v54 = vpop.f32.mrf.mxu0 }
 0x12b   : > { %v1344_v45 = vadd.f32 %v1343_v63, %v1260_v8  ;;  %1133 = vmatmul.bf16.gmra.mxu1 %v1801_v32  ;;  %1217 = vmatmul.bf16.gmra.mxu2 %v1805_v33  ;;  %v2085_v8 = vld [vmem:[%s2312_s5 + $0x234] sm:$0xf] }
 0x12d   : > { %2010 = vmatmul.msk.bf16.gmra.mxu0 %vm935_vm0, %v1813_v35  ;;  %v1408_v48 = vmax.f32 %v1344_v45, 0.0  ;;  %v2088_v45 = vld [vmem:[%s2312_s5 + $0x248] sm:$0xf0] }
 0x12e   : > { %1306 = vmatmul.bf16.gmra.mxu3 %v1829_v18  ;;  %v1178_v55 = vpop.f32.mrf.mxu2  ;;  %v1844_v18 = vld [vmem:[%s2312_s5 + $0x238] sm:$0xf] }
 0x12f   : > { %v2144_v57 = vpack.c.bf16 %v1408_v48, %v1407_v11  ;;  %v1179_v59 = vadd.f32 %v1178_v55, %v1095_v56  ;;  %v1852_v55 = vld [vmem:[%s2312_s5 + $0x240] sm:$0xf] }
 0x130   : > { %v1096_v58 = vpop.f32.mrf.mxu1 }
 0x131   : > { %v1267_v14 = vpop.f32.mrf.mxu3  ;;  %2203 = vst [vmem:[%s2620_s23 + $0x18] sm:$0xff] %v2144_v57   ;;  %v1263_v51 = vadd.f32 %v1262_v7, %v1179_v59  ;;  %v1097_v3 = vadd.f32 %v1096_v58, %v2492_v24  ;;  %v2089_v57 = vld [vmem:[%s2312_s5 + $0x250] sm:$0xf0] }
 0x132   : > { %v1348_v61 = vpop.f32.mrf.mxu0 }
 0x133   : > { %v1347_v5 = vadd.f32 %v1346_v54, %v1263_v51  ;;  %v1838_v54 = vld [vmem:[%s2312_s5 + $0x244] sm:$0xf0] }
 0x134   : > { %v1841_v59 = vor.u32 %v2085_v8, %v1838_v54 }
 0x135   : > { %v1409_v24 = vmax.f32 %v1347_v5, 0.0 }
 0x136   : > { %v1180_v63 = vpop.f32.mrf.mxu2 }
 0x137   : > { %v1181_v9 = vadd.f32 %v1180_v63, %v1097_v3 }
 0x138   : > { %v1099_v12 = vpop.f32.mrf.mxu1 }
 0x139   : > { %v1269_v20 = vpop.f32.mrf.mxu3  ;;  %v1265_v22 = vadd.f32 %v1264_v37, %v1181_v9  ;;  %v1100_v33 = vadd.f32 %v1099_v12, %v2511_v42  ;;  %v1853_v42 = vor.u32 %v2089_v57, %v1852_v55 }
 0x13a   : > { %v1351_v23 = vpop.f32.mrf.mxu0 }
 0x13b   : > { %v1349_v7 = vadd.f32 %v1348_v61, %v1265_v22  ;;  %1138 = vmatmul.bf16.gmra.mxu1 %v1821_v17  ;;  %1222 = vmatmul.bf16.gmra.mxu2 %v1825_v16  ;;  %v1845_v61 = vor.u32 %v2088_v45, %v1844_v18 }
 0x13d   : > { %2011 = vmatmul.msk.bf16.gmra.mxu0 %vm935_vm0, %v1833_v19  ;;  %v1410_v29 = vmax.f32 %v1349_v7, 0.0 }
 0x13e   : > { %1311 = vmatmul.bf16.gmra.mxu3 %v1849_v28  ;;  %v1183_v30 = vpop.f32.mrf.mxu2 }
 0x13f   : > { %v2149_v32 = vpack.c.bf16 %v1410_v29, %v1409_v24  ;;  %v1184_v37 = vadd.f32 %v1183_v30, %v1100_v33 }
 0x140   : > { %v1101_v34 = vpop.f32.mrf.mxu1 }
 0x141   : > { %v1272_v35 = vpop.f32.mrf.mxu3  ;;  %2204 = vst [vmem:[%s2620_s23 + $0x20] sm:$0xff] %v2149_v32   ;;  %v1268_v11 = vadd.f32 %v1267_v14, %v1184_v37  ;;  %v1102_v48 = vadd.f32 %v1101_v34, %v2523_v50 }
 0x142   : > { %v1353_v41 = vpop.f32.mrf.mxu0 }
 0x143   : > { %v1352_v25 = vadd.f32 %v1351_v23, %v1268_v11 }
 0x145   : > { %v1411_v14 = vmax.f32 %v1352_v25, 0.0 }
 0x146   : > { %v1185_v56 = vpop.f32.mrf.mxu2 }
 0x147   : > { %v1186_v58 = vadd.f32 %v1185_v56, %v1102_v48 }
 0x148   : > { %v1104_v43 = vpop.f32.mrf.mxu1 }
 0x149   : > { %v1274_v0 = vpop.f32.mrf.mxu3  ;;  %v1270_v60 = vadd.f32 %v1269_v20, %v1186_v58  ;;  %v1105_v63 = vadd.f32 %v1104_v43, %v2542_v4 }
 0x14a   : > { %v1356_v51 = vpop.f32.mrf.mxu0 }
 0x14b   : > { %v1354_v3 = vadd.f32 %v1353_v41, %v1270_v60  ;;  %1143 = vmatmul.bf16.gmra.mxu1 %v1841_v59  ;;  %1227 = vmatmul.bf16.gmra.mxu2 %v1845_v61 }
 0x14d   : > { %2012 = vmatmul.msk.bf16.gmra.mxu0 %vm935_vm0, %v1853_v42  ;;  %v1412_v50 = vmax.f32 %v1354_v3, 0.0 }
 0x14e   : > { %v1188_v27 = vpop.f32.mrf.mxu2 }
 0x14f   : > { %v2154_v49 = vpack.c.bf16 %v1412_v50, %v1411_v14  ;;  %v1189_v9 = vadd.f32 %v1188_v27, %v1105_v63 }
 0x150   : > { %v1106_v2 = vpop.f32.mrf.mxu1 }
 0x151   : > { %v1277_v39 = vpop.f32.mrf.mxu3  ;;  %2205 = vst [vmem:[%s2620_s23 + $0x28] sm:$0xff] %v2154_v49   ;;  %v1273_v16 = vadd.f32 %v1272_v35, %v1189_v9  ;;  %v1107_v12 = vadd.f32 %v1106_v2, %v2554_v13 }
 0x152   : > { %v1358_v17 = vpop.f32.mrf.mxu0 }
 0x153   : > { %v1357_v23 = vadd.f32 %v1356_v51, %v1273_v16 }
 0x155   : > { %v1413_v29 = vmax.f32 %v1357_v23, 0.0 }
 0x156   : > { %v1190_v19 = vpop.f32.mrf.mxu2 }
 0x157   : > { %v1191_v20 = vadd.f32 %v1190_v19, %v1107_v12 }
 0x158   : > { %v1109_v5 = vpop.f32.mrf.mxu1 }
 0x159   : > { %v1279_v22 = vpop.f32.mrf.mxu3  ;;  %v1275_v28 = vadd.f32 %v1274_v0, %v1191_v20  ;;  %v1110_v33 = vadd.f32 %v1109_v5, %v2573_v38 }
 0x15a   : > { %v1361_v7 = vpop.f32.mrf.mxu0 }
 0x15b   : > { %v1359_v24 = vadd.f32 %v1358_v17, %v1275_v28 }
 0x15d   : > { %v1414_v30 = vmax.f32 %v1359_v24, 0.0 }
 0x15e   : > { %v1193_v4 = vpop.f32.mrf.mxu2 }
 0x15f   : > { %v2159_v32 = vpack.c.bf16 %v1414_v30, %v1413_v29  ;;  %v1194_v35 = vadd.f32 %v1193_v4, %v1110_v33 }
 0x160   : > { %v1111_v34 = vpop.f32.mrf.mxu1 }
 0x161   : > { %v1282_v37 = vpop.f32.mrf.mxu3  ;;  %2206 = vst [vmem:[%s2620_s23 + $0x30] sm:$0xff] %v2159_v32   ;;  %v1278_v41 = vadd.f32 %v1277_v39, %v1194_v35  ;;  %v1112_v8 = vadd.f32 %v1111_v34, %v2585_v53 }
 0x162   : > { %v1363_v13 = vpop.f32.mrf.mxu0 }
 0x163   : > { %v1362_v48 = vadd.f32 %v1361_v7, %v1278_v41 }
 0x165   : > { %v1415_v58 = vmax.f32 %v1362_v48, 0.0 }
 0x166   : > { %v1195_v54 = vpop.f32.mrf.mxu2 }
 0x167   : > { %v1196_v18 = vadd.f32 %v1195_v54, %v1112_v8 }
 0x168   : > { %v1114_v45 = vpop.f32.mrf.mxu1 }
 0x169   : > { %v1284_v11 = vpop.f32.mrf.mxu3  ;;  %v1280_v55 = vadd.f32 %v1279_v22, %v1196_v18  ;;  %v1115_v43 = vadd.f32 %v1114_v45, %v2489_v21 }
 0x16a   : > { %v1366_v57 = vpop.f32.mrf.mxu0 }
 0x16b   : > { %v1364_v56 = vadd.f32 %v1363_v13, %v1280_v55 }
 0x16d   : > { %v1416_v59 = vmax.f32 %v1364_v56, 0.0 }
 0x16e   : > { %v1198_v38 = vpop.f32.mrf.mxu2 }
 0x16f   : > { %v2164_v61 = vpack.c.bf16 %v1416_v59, %v1415_v58  ;;  %v1199_v25 = vadd.f32 %v1198_v38, %v1115_v43 }
 0x170   : > { %v1116_v42 = vpop.f32.mrf.mxu1 }
 0x171   : > { %v1287_v0 = vpop.f32.mrf.mxu3  ;;  %2207 = vst [vmem:[%s2620_s23 + $0x38] sm:$0xff] %v2164_v61   ;;  %v1283_v60 = vadd.f32 %v1282_v37, %v1199_v25  ;;  %v1117_v51 = vadd.f32 %v1116_v42, %v2508_v36 }
 0x172   : > { %v1368_v53 = vpop.f32.mrf.mxu0 }
 0x173   : > { %v1367_v49 = vadd.f32 %v1366_v57, %v1283_v60 }
 0x175   : > { %v1417_v9 = vmax.f32 %v1367_v49, 0.0 }
 0x176   : > { %v1200_v3 = vpop.f32.mrf.mxu2 }
 0x177   : > { %v1201_v14 = vadd.f32 %v1200_v3, %v1117_v51 }
 0x178   : > { %v1119_v50 = vpop.f32.mrf.mxu1 }
 0x179   : > { %v1289_v27 = vpop.f32.mrf.mxu3  ;;  %v1285_v63 = vadd.f32 %v1284_v11, %v1201_v14  ;;  %v1120_v12 = vadd.f32 %v1119_v50, %v2520_v47 }
 0x17a   : > { %v1371_v2 = vpop.f32.mrf.mxu0 }
 0x17b   : > { %v1369_v39 = vadd.f32 %v1368_v53, %v1285_v63 }
 0x17d   : > { %v1418_v17 = vmax.f32 %v1369_v39, 0.0 }
 0x17e   : > { %v1203_v21 = vpop.f32.mrf.mxu2 }
 0x17f   : > { %v2169_v16 = vpack.c.bf16 %v1418_v17, %v1417_v9  ;;  %v1204_v5 = vadd.f32 %v1203_v21, %v1120_v12 }
 0x180   : > { %v1121_v19 = vpop.f32.mrf.mxu1 }
 0x181   : > { %v1292_v20 = vpop.f32.mrf.mxu3  ;;  %2208 = vst [vmem:[%s2620_s23 + $0x40] sm:$0xff] %v2169_v16   ;;  %v1288_v22 = vadd.f32 %v1287_v0, %v1204_v5  ;;  %v1122_v23 = vadd.f32 %v1121_v19, %v2539_v62 }
 0x182   : > { %v1373_v36 = vpop.f32.mrf.mxu0 }
 0x183   : > { %v1372_v30 = vadd.f32 %v1371_v2, %v1288_v22 }
 0x185   : > { %v1419_v34 = vmax.f32 %v1372_v30, 0.0 }
 0x186   : > { %v1205_v28 = vpop.f32.mrf.mxu2 }
 0x187   : > { %v1206_v7 = vadd.f32 %v1205_v28, %v1122_v23 }
 0x188   : > { %v1124_v24 = vpop.f32.mrf.mxu1 }
 0x189   : > { %v1294_v29 = vpop.f32.mrf.mxu3  ;;  %v1290_v4 = vadd.f32 %v1289_v27, %v1206_v7  ;;  %v1125_v13 = vadd.f32 %v1124_v24, %v2551_v10 }
 0x18a   : > { %v1376_v32 = vpop.f32.mrf.mxu0 }
 0x18b   : > { %v1374_v33 = vadd.f32 %v1373_v36, %v1290_v4 }
 0x18d   : > { %v1420_v37 = vmax.f32 %v1374_v33, 0.0 }
 0x18e   : > { %v1208_v47 = vpop.f32.mrf.mxu2 }
 0x18f   : > { %v2174_v35 = vpack.c.bf16 %v1420_v37, %v1419_v34  ;;  %v1209_v8 = vadd.f32 %v1208_v47, %v1125_v13 }
 0x190   : > { %v1126_v41 = vpop.f32.mrf.mxu1 }
 0x191   : > { %2209 = vst [vmem:[%s2620_s23 + $0x48] sm:$0xff] %v2174_v35   ;;  %v1297_v18 = vpop.f32.mrf.mxu3  ;;  %v1293_v62 = vadd.f32 %v1292_v20, %v1209_v8  ;;  %v1127_v45 = vadd.f32 %v1126_v41, %v2570_v31 }
 0x192   : > { %v1378_v54 = vpop.f32.mrf.mxu0 }
 0x193   : > { %v1377_v57 = vadd.f32 %v1376_v32, %v1293_v62 }
 0x195   : > { %v1421_v61 = vmax.f32 %v1377_v57, 0.0 }
 0x196   : > { %v1210_v11 = vpop.f32.mrf.mxu2 }
 0x197   : > { %v1211_v48 = vadd.f32 %v1210_v11, %v1127_v45 }
 0x198   : > { %v1129_v55 = vpop.f32.mrf.mxu1 }
 0x199   : > { %v1295_v56 = vadd.f32 %v1294_v29, %v1211_v48  ;;  %v1299_v38 = vpop.f32.mrf.mxu3  ;;  %v1130_v0 = vadd.f32 %v1129_v55, %v2582_v46 }
 0x19a   : > { %v1381_v58 = vpop.f32.mrf.mxu0 }
 0x19b   : > { %v1379_v59 = vadd.f32 %v1378_v54, %v1295_v56 }
 0x19d   : > { %v1422_v43 = vmax.f32 %v1379_v59, 0.0 }
 0x19e   : > { %v1213_v10 = vpop.f32.mrf.mxu2 }
 0x19f   : > { %v2179_v42 = vpack.c.bf16 %v1422_v43, %v1421_v61  ;;  %v1214_v53 = vadd.f32 %v1213_v10, %v1130_v0 }
 0x1a0   : > { %v1131_v25 = vpop.f32.mrf.mxu1 }
 0x1a1   : > { %2210 = vst [vmem:[%s2620_s23 + $0x50] sm:$0xff] %v2179_v42   ;;  %v1298_v51 = vadd.f32 %v1297_v18, %v1214_v53  ;;  %v1132_v31 = vadd.f32 %v1131_v25, %v2598_v1  ;;  %v1302_v14 = vpop.f32.mrf.mxu3 }
 0x1a2   : > { %v1383_v60 = vpop.f32.mrf.mxu0 }
 0x1a3   : > { %v1382_v49 = vadd.f32 %v1381_v58, %v1298_v51 }
 0x1a5   : > { %v1423_v9 = vmax.f32 %v1382_v49, 0.0 }
 0x1a6   : > { %v1215_v3 = vpop.f32.mrf.mxu2 }
 0x1a7   : > { %v1216_v50 = vadd.f32 %v1215_v3, %v1132_v31 }
 0x1a8   : > { %v1134_v27 = vpop.f32.mrf.mxu1 }
 0x1a9   : > { %v1300_v63 = vadd.f32 %v1299_v38, %v1216_v50  ;;  %v1135_v16 = vadd.f32 %v1134_v27, %v2497_v26  ;;  %v1304_v19 = vpop.f32.mrf.mxu3 }
 0x1aa   : > { %v1386_v2 = vpop.f32.mrf.mxu0 }
 0x1ab   : > { %v1384_v39 = vadd.f32 %v1383_v60, %v1300_v63 }
 0x1ad   : > { %v1424_v17 = vmax.f32 %v1384_v39, 0.0 }
 0x1ae   : > { %v1218_v21 = vpop.f32.mrf.mxu2 }
 0x1af   : > { %v2184_v46 = vpack.c.bf16 %v1424_v17, %v1423_v9  ;;  %v1219_v20 = vadd.f32 %v1218_v21, %v1135_v16 }
 0x1b0   : > { %v1136_v12 = vpop.f32.mrf.mxu1 }
 0x1b1   : > { %2211 = vst [vmem:[%s2620_s23 + $0x58] sm:$0xff] %v2184_v46   ;;  %v1303_v5 = vadd.f32 %v1302_v14, %v1219_v20  ;;  %v1137_v36 = vadd.f32 %v1136_v12, %v2516_v44  ;;  %v1307_v29 = vpop.f32.mrf.mxu3 }
 0x1b2   : > { %v1388_v1 = vpop.f32.mrf.mxu0 }
 0x1b3   : > { %v1387_v7 = vadd.f32 %v1386_v2, %v1303_v5 }
 0x1b5   : > { %v1425_v32 = vmax.f32 %v1387_v7, 0.0 }
 0x1b6   : > { %v1220_v22 = vpop.f32.mrf.mxu2 }
 0x1b7   : > { %v1221_v23 = vadd.f32 %v1220_v22, %v1137_v36 }
 0x1b8   : > { %v1139_v28 = vpop.f32.mrf.mxu1 }
 0x1b9   : > { %v1305_v24 = vadd.f32 %v1304_v19, %v1221_v23  ;;  %v1140_v37 = vadd.f32 %v1139_v28, %v2528_v52  ;;  %v1309_v13 = vpop.f32.mrf.mxu3 }
 0x1ba   : > { %v1391_v4 = vpop.f32.mrf.mxu0 }
 0x1bb   : > { %v1389_v30 = vadd.f32 %v1388_v1, %v1305_v24 }
 0x1bd   : > { %v1426_v33 = vmax.f32 %v1389_v30, 0.0 }
 0x1be   : > { %v1223_v26 = vpop.f32.mrf.mxu2 }
 0x1bf   : > { %v2189_v34 = vpack.c.bf16 %v1426_v33, %v1425_v32  ;;  %v1224_v35 = vadd.f32 %v1223_v26, %v1140_v37 }
 0x1c0   : > { %v1141_v47 = vpop.f32.mrf.mxu1 }
 0x1c1   : > { %2212 = vst [vmem:[%s2620_s23 + $0x60] sm:$0xff] %v2189_v34   ;;  %v1308_v41 = vadd.f32 %v1307_v29, %v1224_v35  ;;  %v1142_v44 = vadd.f32 %v1141_v47, %v2547_v6  ;;  %v1312_v56 = vpop.f32.mrf.mxu3 }
 0x1c2   : > { %v1393_v8 = vpop.f32.mrf.mxu0 }
 0x1c3   : > { %v1392_v45 = vadd.f32 %v1391_v4, %v1308_v41 }
 0x1c5   : > { %v1427_v55 = vmax.f32 %v1392_v45, 0.0 }
 0x1c6   : > { %v1225_v54 = vpop.f32.mrf.mxu2 }
 0x1c7   : > { %v1226_v18 = vadd.f32 %v1225_v54, %v1142_v44 }
 0x1c8   : > { %v1144_v62 = vpop.f32.mrf.mxu1 }
 0x1c9   : > { %v1310_v11 = vadd.f32 %v1309_v13, %v1226_v18  ;;  %v1145_v59 = vadd.f32 %v1144_v62, %v2559_v15  ;;  %v1314_v25 = vpop.f32.mrf.mxu3 }
 0x1ca   : > { %v1396_v38 = vpop.f32.mrf.mxu0 }
 0x1cb   : > { %v1394_v48 = vadd.f32 %v1393_v8, %v1310_v11 }
 0x1cd   : > { %v1428_v57 = vmax.f32 %v1394_v48, 0.0 }
 0x1ce   : > { %v1228_v58 = vpop.f32.mrf.mxu2 }
 0x1cf   : > { %v2194_v52 = vpack.c.bf16 %v1428_v57, %v1427_v55  ;;  %v1229_v61 = vadd.f32 %v1228_v58, %v1145_v59 }
 0x1d0   : > { %v1146_v43 = vpop.f32.mrf.mxu1 }
 0x1d1   : > { %2213 = vst [vmem:[%s2620_s23 + $0x68] sm:$0xff] %v2194_v52   ;;  %v1313_v6 = vadd.f32 %v1312_v56, %v1229_v61  ;;  %v1147_v10 = vadd.f32 %v1146_v43, %v2578_v40 }
 0x1d2   : > { %v1398_v51 = vpop.f32.mrf.mxu0 }
 0x1d3   : > { %v1397_v53 = vadd.f32 %v1396_v38, %v1313_v6 }
 0x1d5   : > { %v1429_v3 = vmax.f32 %v1397_v53, 0.0 }
 0x1d6   : > { %v1230_v42 = vpop.f32.mrf.mxu2 }
 0x1d7   : > { %v1231_v0 = vadd.f32 %v1230_v42, %v1147_v10 }
 0x1d9   : > { %v1315_v60 = vadd.f32 %v1314_v25, %v1231_v0 }
 0x1db   : > { %v1399_v31 = vadd.f32 %v1398_v51, %v1315_v60 }
 0x1dd   : > { %v1430_v14 = vmax.f32 %v1399_v31, 0.0 }
 0x1df   : > { %v2199_v50 = vpack.c.bf16 %v1430_v14, %v1429_v3 }
 0x1e1   : > { %2214 = vst [vmem:[%s2620_s23 + $0x70] sm:$0xff] %v2199_v50  }
 0x1e2 PF: > { %s13_s12 = sadd.s32 1, %s2255_s12  }
 0x1e3   : > { %p10_p4 = scmp.ge.s32.totalorder %s13_s12, 4  }
 0x1e5   :  { %12 = sbr.rel (!%p10_p4) target bundleno = 1 (0x1), region = 62 }

// kernel: decoder_forward.7
= control target key start
LH: loop header
LB: loop body
LE: loop exit
PB: predicated region body
PF: predicated region fallthrough
CT: control target
= control target key end

     0   :  { %s3053_s12 = smov 0   ;;  %s3055_s13 = smov 0   ;;  %s3839_s0 = inlined_call_operand.vmem [shape: bf16[12,288], index: 0, kind: input, shape index: {}]   ;;  %s3840_s1 = inlined_call_operand.vmem [shape: bf16[288,2048], index: 1, kind: input, shape index: {}]   ;;  %s3841_s2 = inlined_call_operand.vmem [shape: f32[12,1], index: 2, kind: input, shape index: {}]   ;;  %s3842_s3 = inlined_call_operand.vmem [shape: f32[12,2048], index: 3, kind: output, shape index: {}]  }
   0x1   :  { %s3057_s14 = smov 0  }
   0x2 LB: > { %s2142_s15 = sadd.s32 4294967295, %s3030_s14   ;;  %s3070_s16 = sadd.s32 1, %s3030_s14   ;;  %s3030_s14 = sphi %s3057_s14, %s3846_s14   ;;  %s3026_s13 = sphi %s3055_s13, %s3845_s13   ;;  %s3022_s12 = sphi %s3053_s12, %s3844_s12  }
   0x3   : > { %s38_s17 = ssub.s32 %s3030_s14, %s3070_s16  ;;  %s41_s18 = sadd.s32 1, %s3026_s13 }
   0x4   : > { %p39_p0 = scmp.eq.s32.totalorder %s38_s17, 0  ;;  %p48_p1 = scmp.ne.s32.totalorder %s3026_s13, %s3022_s12 }
   0x5   : > { %p49_p2 = scmp.eq.s32.totalorder %s3030_s14, 0  ;;  %p99_p3 = scmp.eq.s32.totalorder %s2142_s15, 1 }
   0x6   : > { %s3081_s19 = scalar_select %p39_p0, %s3026_s13, %s41_s18  }
   0x7   : > { %p50_p4 = por %p49_p2, %p48_p1  ;;  %p3083_p5 = por %p99_p3, %p48_p1 }
   0x8   : > { %p2145_p6 = scmp.ge.s32.totalorder %s3030_s14, 2 }
   0xa   : > { %127 = sbr.rel (%p2145_p6) target bundleno = 163 (0xa3), region = 24 }
   0xf   : > { %130 = sbr.rel (!%p50_p4) target bundleno = 163 (0xa3), region = 28  ;;  %s132_s21 = sand.u32 (%p50_p4), 1, %s3026_s13  }
  0x10   : > { %s2767_s22 = sshll.u32 (%p50_p4), %s3030_s14, 5  ;;  %s2916_s23 = smul.u32 (%p50_p4), 1152, %s132_s21 }
  0x11   : > { %s3093_s26 = scalar_lea.vmem (%p50_p4), %s3840_s1, %s2767_s22 }
  0x12   : > { %v150_v0 = vld [vmem:[%s3093_s26] sm:$0xff] (%p50_p4)  ;;  %v152_v1 = vld [vmem:[%s3093_s26 + $0x8] sm:$0xff] (%p50_p4)  ;;  %v154_v2 = vld [vmem:[%s3093_s26 + $0x10] sm:$0xff] (%p50_p4)  ;;  %s3098_s27 = scalar_lea.vmem (%p50_p4), [#allocation2], %s2916_s23 }
  0x13   : > { %151 = vst [vmem:[%s3098_s27] sm:$0xff] (%p50_p4), %v150_v0  ;;  %v156_v3 = vld [vmem:[%s3093_s26 + $0x18] sm:$0xff] (%p50_p4)  ;;  %v158_v4 = vld [vmem:[%s3093_s26 + $0x40] sm:$0xff] (%p50_p4)  ;;  %v160_v5 = vld [vmem:[%s3093_s26 + $0x48] sm:$0xff] (%p50_p4) }
  0x14   : > { %153 = vst [vmem:[%s3098_s27 + $0x8] sm:$0xff] %v152_v1  ;;  %v162_v6 = vld [vmem:[%s3093_s26 + $0x50] sm:$0xff]  ;;  %v164_v7 = vld [vmem:[%s3093_s26 + $0x58] sm:$0xff]  ;;  %v166_v8 = vld [vmem:[%s3093_s26 + $0x80] sm:$0xff] }
  0x15   : > { %155 = vst [vmem:[%s3098_s27 + $0x10] sm:$0xff] %v154_v2  ;;  %v168_v9 = vld [vmem:[%s3093_s26 + $0x88] sm:$0xff]  ;;  %v170_v10 = vld [vmem:[%s3093_s26 + $0x90] sm:$0xff]  ;;  %v172_v11 = vld [vmem:[%s3093_s26 + $0x98] sm:$0xff] }
  0x16   : > { %157 = vst [vmem:[%s3098_s27 + $0x18] sm:$0xff] %v156_v3  ;;  %v174_v12 = vld [vmem:[%s3093_s26 + $0xc0] sm:$0xff]  ;;  %v176_v13 = vld [vmem:[%s3093_s26 + $0xc8] sm:$0xff]  ;;  %v178_v14 = vld [vmem:[%s3093_s26 + $0xd0] sm:$0xff] }
  0x17   : > { %159 = vst [vmem:[%s3098_s27 + $0x20] sm:$0xff] %v158_v4  ;;  %v180_v15 = vld [vmem:[%s3093_s26 + $0xd8] sm:$0xff]  ;;  %v182_v16 = vld [vmem:[%s3093_s26 + $0x100] sm:$0xff]  ;;  %v184_v17 = vld [vmem:[%s3093_s26 + $0x108] sm:$0xff] }
  0x18   : > { %161 = vst [vmem:[%s3098_s27 + $0x28] sm:$0xff] %v160_v5  ;;  %v186_v18 = vld [vmem:[%s3093_s26 + $0x110] sm:$0xff]  ;;  %v188_v19 = vld [vmem:[%s3093_s26 + $0x118] sm:$0xff]  ;;  %v190_v20 = vld [vmem:[%s3093_s26 + $0x140] sm:$0xff] }
  0x19   : > { %163 = vst [vmem:[%s3098_s27 + $0x30] sm:$0xff] %v162_v6  ;;  %v192_v21 = vld [vmem:[%s3093_s26 + $0x148] sm:$0xff]  ;;  %v194_v22 = vld [vmem:[%s3093_s26 + $0x150] sm:$0xff]  ;;  %v196_v23 = vld [vmem:[%s3093_s26 + $0x158] sm:$0xff] }
  0x1a   : > { %165 = vst [vmem:[%s3098_s27 + $0x38] sm:$0xff] %v164_v7  ;;  %v198_v24 = vld [vmem:[%s3093_s26 + $0x180] sm:$0xff]  ;;  %v200_v25 = vld [vmem:[%s3093_s26 + $0x188] sm:$0xff]  ;;  %v202_v26 = vld [vmem:[%s3093_s26 + $0x190] sm:$0xff] }
  0x1b   : > { %167 = vst [vmem:[%s3098_s27 + $0x40] sm:$0xff] %v166_v8  ;;  %v204_v27 = vld [vmem:[%s3093_s26 + $0x198] sm:$0xff]  ;;  %v206_v28 = vld [vmem:[%s3093_s26 + $0x1c0] sm:$0xff]  ;;  %v208_v29 = vld [vmem:[%s3093_s26 + $0x1c8] sm:$0xff] }
  0x1c   : > { %169 = vst [vmem:[%s3098_s27 + $0x48] sm:$0xff] %v168_v9  ;;  %v210_v30 = vld [vmem:[%s3093_s26 + $0x1d0] sm:$0xff]  ;;  %v212_v31 = vld [vmem:[%s3093_s26 + $0x1d8] sm:$0xff]  ;;  %v214_v32 = vld [vmem:[%s3093_s26 + $0x200] sm:$0xff] }
  0x1d   : > { %171 = vst [vmem:[%s3098_s27 + $0x50] sm:$0xff] %v170_v10  ;;  %v216_v33 = vld [vmem:[%s3093_s26 + $0x208] sm:$0xff]  ;;  %v218_v34 = vld [vmem:[%s3093_s26 + $0x210] sm:$0xff]  ;;  %v220_v35 = vld [vmem:[%s3093_s26 + $0x218] sm:$0xff] }
  0x1e   : > { %173 = vst [vmem:[%s3098_s27 + $0x58] sm:$0xff] %v172_v11  ;;  %v222_v36 = vld [vmem:[%s3093_s26 + $0x240] sm:$0xff]  ;;  %v224_v37 = vld [vmem:[%s3093_s26 + $0x248] sm:$0xff]  ;;  %v226_v38 = vld [vmem:[%s3093_s26 + $0x250] sm:$0xff] }
  0x1f   : > { %175 = vst [vmem:[%s3098_s27 + $0x60] sm:$0xff] %v174_v12  ;;  %v228_v39 = vld [vmem:[%s3093_s26 + $0x258] sm:$0xff]  ;;  %v230_v40 = vld [vmem:[%s3093_s26 + $0x280] sm:$0xff]  ;;  %v232_v41 = vld [vmem:[%s3093_s26 + $0x288] sm:$0xff] }
  0x20   : > { %177 = vst [vmem:[%s3098_s27 + $0x68] sm:$0xff] %v176_v13  ;;  %v234_v42 = vld [vmem:[%s3093_s26 + $0x290] sm:$0xff]  ;;  %v236_v43 = vld [vmem:[%s3093_s26 + $0x298] sm:$0xff]  ;;  %v238_v44 = vld [vmem:[%s3093_s26 + $0x2c0] sm:$0xff] }
  0x21   : > { %179 = vst [vmem:[%s3098_s27 + $0x70] sm:$0xff] %v178_v14  ;;  %v240_v45 = vld [vmem:[%s3093_s26 + $0x2c8] sm:$0xff]  ;;  %v242_v46 = vld [vmem:[%s3093_s26 + $0x2d0] sm:$0xff]  ;;  %v244_v47 = vld [vmem:[%s3093_s26 + $0x2d8] sm:$0xff] }
  0x22   : > { %181 = vst [vmem:[%s3098_s27 + $0x78] sm:$0xff] %v180_v15  ;;  %v246_v48 = vld [vmem:[%s3093_s26 + $0x300] sm:$0xff]  ;;  %v248_v49 = vld [vmem:[%s3093_s26 + $0x308] sm:$0xff]  ;;  %v250_v50 = vld [vmem:[%s3093_s26 + $0x310] sm:$0xff] }
  0x23   : > { %183 = vst [vmem:[%s3098_s27 + $0x80] sm:$0xff] %v182_v16  ;;  %v252_v51 = vld [vmem:[%s3093_s26 + $0x318] sm:$0xff]  ;;  %v254_v52 = vld [vmem:[%s3093_s26 + $0x340] sm:$0xff]  ;;  %v256_v53 = vld [vmem:[%s3093_s26 + $0x348] sm:$0xff] }
  0x24   : > { %185 = vst [vmem:[%s3098_s27 + $0x88] sm:$0xff] %v184_v17  ;;  %v258_v54 = vld [vmem:[%s3093_s26 + $0x350] sm:$0xff]  ;;  %v260_v55 = vld [vmem:[%s3093_s26 + $0x358] sm:$0xff]  ;;  %v262_v56 = vld [vmem:[%s3093_s26 + $0x380] sm:$0xff] }
  0x25   : > { %187 = vst [vmem:[%s3098_s27 + $0x90] sm:$0xff] %v186_v18  ;;  %v264_v57 = vld [vmem:[%s3093_s26 + $0x388] sm:$0xff]  ;;  %v266_v58 = vld [vmem:[%s3093_s26 + $0x390] sm:$0xff]  ;;  %v268_v59 = vld [vmem:[%s3093_s26 + $0x398] sm:$0xff] }
  0x26   : > { %189 = vst [vmem:[%s3098_s27 + $0x98] sm:$0xff] %v188_v19  ;;  %v270_v60 = vld [vmem:[%s3093_s26 + $0x3c0] sm:$0xff]  ;;  %v272_v61 = vld [vmem:[%s3093_s26 + $0x3c8] sm:$0xff]  ;;  %v274_v62 = vld [vmem:[%s3093_s26 + $0x3d0] sm:$0xff] }
  0x27   : > { %191 = vst [vmem:[%s3098_s27 + $0xa0] sm:$0xff] %v190_v20  ;;  %v276_v63 = vld [vmem:[%s3093_s26 + $0x3d8] sm:$0xff]  ;;  %v278_v0 = vld [vmem:[%s3093_s26 + $0x400] sm:$0xff]  ;;  %v280_v1 = vld [vmem:[%s3093_s26 + $0x408] sm:$0xff] }
  0x28   : > { %193 = vst [vmem:[%s3098_s27 + $0xa8] sm:$0xff] %v192_v21  ;;  %v282_v2 = vld [vmem:[%s3093_s26 + $0x410] sm:$0xff]  ;;  %v284_v3 = vld [vmem:[%s3093_s26 + $0x418] sm:$0xff]  ;;  %v286_v4 = vld [vmem:[%s3093_s26 + $0x440] sm:$0xff] }
  0x29   : > { %195 = vst [vmem:[%s3098_s27 + $0xb0] sm:$0xff] %v194_v22  ;;  %v288_v5 = vld [vmem:[%s3093_s26 + $0x448] sm:$0xff]  ;;  %v290_v6 = vld [vmem:[%s3093_s26 + $0x450] sm:$0xff]  ;;  %v292_v7 = vld [vmem:[%s3093_s26 + $0x458] sm:$0xff] }
  0x2a   : > { %197 = vst [vmem:[%s3098_s27 + $0xb8] sm:$0xff] %v196_v23  ;;  %v294_v8 = vld [vmem:[%s3093_s26 + $0x480] sm:$0xff]  ;;  %v296_v9 = vld [vmem:[%s3093_s26 + $0x488] sm:$0xff]  ;;  %v298_v10 = vld [vmem:[%s3093_s26 + $0x490] sm:$0xff] }
  0x2b   : > { %199 = vst [vmem:[%s3098_s27 + $0xc0] sm:$0xff] %v198_v24  ;;  %v300_v11 = vld [vmem:[%s3093_s26 + $0x498] sm:$0xff]  ;;  %v302_v12 = vld [vmem:[%s3093_s26 + $0x4c0] sm:$0xff]  ;;  %v304_v13 = vld [vmem:[%s3093_s26 + $0x4c8] sm:$0xff] }
  0x2c   : > { %201 = vst [vmem:[%s3098_s27 + $0xc8] sm:$0xff] %v200_v25  ;;  %v306_v14 = vld [vmem:[%s3093_s26 + $0x4d0] sm:$0xff]  ;;  %v308_v15 = vld [vmem:[%s3093_s26 + $0x4d8] sm:$0xff]  ;;  %v310_v16 = vld [vmem:[%s3093_s26 + $0x500] sm:$0xff] }
  0x2d   : > { %203 = vst [vmem:[%s3098_s27 + $0xd0] sm:$0xff] %v202_v26  ;;  %v312_v17 = vld [vmem:[%s3093_s26 + $0x508] sm:$0xff]  ;;  %v314_v18 = vld [vmem:[%s3093_s26 + $0x510] sm:$0xff]  ;;  %v316_v19 = vld [vmem:[%s3093_s26 + $0x518] sm:$0xff] }
  0x2e   : > { %205 = vst [vmem:[%s3098_s27 + $0xd8] sm:$0xff] %v204_v27  ;;  %v318_v20 = vld [vmem:[%s3093_s26 + $0x540] sm:$0xff]  ;;  %v320_v21 = vld [vmem:[%s3093_s26 + $0x548] sm:$0xff]  ;;  %v322_v22 = vld [vmem:[%s3093_s26 + $0x550] sm:$0xff] }
  0x2f   : > { %207 = vst [vmem:[%s3098_s27 + $0xe0] sm:$0xff] %v206_v28  ;;  %v324_v23 = vld [vmem:[%s3093_s26 + $0x558] sm:$0xff]  ;;  %v326_v24 = vld [vmem:[%s3093_s26 + $0x580] sm:$0xff]  ;;  %v328_v25 = vld [vmem:[%s3093_s26 + $0x588] sm:$0xff] }
  0x30   : > { %209 = vst [vmem:[%s3098_s27 + $0xe8] sm:$0xff] %v208_v29  ;;  %v330_v26 = vld [vmem:[%s3093_s26 + $0x590] sm:$0xff]  ;;  %v332_v27 = vld [vmem:[%s3093_s26 + $0x598] sm:$0xff]  ;;  %v334_v28 = vld [vmem:[%s3093_s26 + $0x5c0] sm:$0xff] }
  0x31   : > { %211 = vst [vmem:[%s3098_s27 + $0xf0] sm:$0xff] %v210_v30  ;;  %v336_v29 = vld [vmem:[%s3093_s26 + $0x5c8] sm:$0xff]  ;;  %v338_v30 = vld [vmem:[%s3093_s26 + $0x5d0] sm:$0xff] }
  0x32   : > { %213 = vst [vmem:[%s3098_s27 + $0xf8] sm:$0xff] %v212_v31  ;;  %v340_v31 = vld [vmem:[%s3093_s26 + $0x5d8] sm:$0xff] }
  0x33   : > { %215 = vst [vmem:[%s3098_s27 + $0x100] sm:$0xff] %v214_v32  ;;  %v342_v32 = vld [vmem:[%s3093_s26 + $0x600] sm:$0xff] }
  0x34   : > { %217 = vst [vmem:[%s3098_s27 + $0x108] sm:$0xff] %v216_v33  ;;  %v344_v33 = vld [vmem:[%s3093_s26 + $0x608] sm:$0xff] }
  0x35   : > { %219 = vst [vmem:[%s3098_s27 + $0x110] sm:$0xff] %v218_v34  ;;  %v346_v34 = vld [vmem:[%s3093_s26 + $0x610] sm:$0xff] }
  0x36   : > { %221 = vst [vmem:[%s3098_s27 + $0x118] sm:$0xff] %v220_v35  ;;  %v348_v35 = vld [vmem:[%s3093_s26 + $0x618] sm:$0xff] }
  0x37   : > { %223 = vst [vmem:[%s3098_s27 + $0x120] sm:$0xff] %v222_v36  ;;  %v350_v36 = vld [vmem:[%s3093_s26 + $0x640] sm:$0xff] }
  0x38   : > { %225 = vst [vmem:[%s3098_s27 + $0x128] sm:$0xff] %v224_v37  ;;  %v352_v37 = vld [vmem:[%s3093_s26 + $0x648] sm:$0xff] }
  0x39   : > { %227 = vst [vmem:[%s3098_s27 + $0x130] sm:$0xff] %v226_v38  ;;  %v354_v38 = vld [vmem:[%s3093_s26 + $0x650] sm:$0xff] }
  0x3a   : > { %229 = vst [vmem:[%s3098_s27 + $0x138] sm:$0xff] %v228_v39  ;;  %v356_v39 = vld [vmem:[%s3093_s26 + $0x658] sm:$0xff] }
  0x3b   : > { %231 = vst [vmem:[%s3098_s27 + $0x140] sm:$0xff] %v230_v40  ;;  %v358_v40 = vld [vmem:[%s3093_s26 + $0x680] sm:$0xff] }
  0x3c   : > { %233 = vst [vmem:[%s3098_s27 + $0x148] sm:$0xff] %v232_v41  ;;  %v360_v41 = vld [vmem:[%s3093_s26 + $0x688] sm:$0xff] }
  0x3d   : > { %235 = vst [vmem:[%s3098_s27 + $0x150] sm:$0xff] %v234_v42  ;;  %v362_v42 = vld [vmem:[%s3093_s26 + $0x690] sm:$0xff] }
  0x3e   : > { %237 = vst [vmem:[%s3098_s27 + $0x158] sm:$0xff] %v236_v43  ;;  %v364_v43 = vld [vmem:[%s3093_s26 + $0x698] sm:$0xff] }
  0x3f   : > { %239 = vst [vmem:[%s3098_s27 + $0x160] sm:$0xff] %v238_v44  ;;  %v366_v44 = vld [vmem:[%s3093_s26 + $0x6c0] sm:$0xff] }
  0x40   : > { %241 = vst [vmem:[%s3098_s27 + $0x168] sm:$0xff] %v240_v45  ;;  %v368_v45 = vld [vmem:[%s3093_s26 + $0x6c8] sm:$0xff] }
  0x41   : > { %243 = vst [vmem:[%s3098_s27 + $0x170] sm:$0xff] %v242_v46  ;;  %v370_v46 = vld [vmem:[%s3093_s26 + $0x6d0] sm:$0xff] }
  0x42   : > { %245 = vst [vmem:[%s3098_s27 + $0x178] sm:$0xff] %v244_v47  ;;  %v372_v47 = vld [vmem:[%s3093_s26 + $0x6d8] sm:$0xff] }
  0x43   : > { %247 = vst [vmem:[%s3098_s27 + $0x180] sm:$0xff] %v246_v48  ;;  %v374_v48 = vld [vmem:[%s3093_s26 + $0x700] sm:$0xff] }
  0x44   : > { %249 = vst [vmem:[%s3098_s27 + $0x188] sm:$0xff] %v248_v49  ;;  %v376_v49 = vld [vmem:[%s3093_s26 + $0x708] sm:$0xff] }
  0x45   : > { %251 = vst [vmem:[%s3098_s27 + $0x190] sm:$0xff] %v250_v50  ;;  %v378_v50 = vld [vmem:[%s3093_s26 + $0x710] sm:$0xff] }
  0x46   : > { %253 = vst [vmem:[%s3098_s27 + $0x198] sm:$0xff] %v252_v51  ;;  %v380_v51 = vld [vmem:[%s3093_s26 + $0x718] sm:$0xff] }
  0x47   : > { %255 = vst [vmem:[%s3098_s27 + $0x1a0] sm:$0xff] %v254_v52  ;;  %v382_v52 = vld [vmem:[%s3093_s26 + $0x740] sm:$0xff] }
  0x48   : > { %257 = vst [vmem:[%s3098_s27 + $0x1a8] sm:$0xff] %v256_v53  ;;  %v384_v53 = vld [vmem:[%s3093_s26 + $0x748] sm:$0xff] }
  0x49   : > { %259 = vst [vmem:[%s3098_s27 + $0x1b0] sm:$0xff] %v258_v54  ;;  %v386_v54 = vld [vmem:[%s3093_s26 + $0x750] sm:$0xff] }
  0x4a   : > { %261 = vst [vmem:[%s3098_s27 + $0x1b8] sm:$0xff] %v260_v55  ;;  %v388_v55 = vld [vmem:[%s3093_s26 + $0x758] sm:$0xff] }
  0x4b   : > { %263 = vst [vmem:[%s3098_s27 + $0x1c0] sm:$0xff] %v262_v56  ;;  %v390_v56 = vld [vmem:[%s3093_s26 + $0x780] sm:$0xff] }
  0x4c   : > { %265 = vst [vmem:[%s3098_s27 + $0x1c8] sm:$0xff] %v264_v57  ;;  %v392_v57 = vld [vmem:[%s3093_s26 + $0x788] sm:$0xff] }
  0x4d   : > { %267 = vst [vmem:[%s3098_s27 + $0x1d0] sm:$0xff] %v266_v58  ;;  %v394_v58 = vld [vmem:[%s3093_s26 + $0x790] sm:$0xff] }
  0x4e   : > { %269 = vst [vmem:[%s3098_s27 + $0x1d8] sm:$0xff] %v268_v59  ;;  %v396_v59 = vld [vmem:[%s3093_s26 + $0x798] sm:$0xff] }
  0x4f   : > { %271 = vst [vmem:[%s3098_s27 + $0x1e0] sm:$0xff] %v270_v60  ;;  %v398_v60 = vld [vmem:[%s3093_s26 + $0x7c0] sm:$0xff] }
  0x50   : > { %273 = vst [vmem:[%s3098_s27 + $0x1e8] sm:$0xff] %v272_v61  ;;  %v400_v61 = vld [vmem:[%s3093_s26 + $0x7c8] sm:$0xff] }
  0x51   : > { %275 = vst [vmem:[%s3098_s27 + $0x1f0] sm:$0xff] %v274_v62  ;;  %v402_v62 = vld [vmem:[%s3093_s26 + $0x7d0] sm:$0xff] }
  0x52   : > { %277 = vst [vmem:[%s3098_s27 + $0x1f8] sm:$0xff] %v276_v63  ;;  %v404_v63 = vld [vmem:[%s3093_s26 + $0x7d8] sm:$0xff] }
  0x53   : > { %279 = vst [vmem:[%s3098_s27 + $0x200] sm:$0xff] %v278_v0  ;;  %v406_v0 = vld [vmem:[%s3093_s26 + $0x800] sm:$0xff] }
  0x54   : > { %281 = vst [vmem:[%s3098_s27 + $0x208] sm:$0xff] %v280_v1  ;;  %v408_v1 = vld [vmem:[%s3093_s26 + $0x808] sm:$0xff] }
  0x55   : > { %283 = vst [vmem:[%s3098_s27 + $0x210] sm:$0xff] %v282_v2  ;;  %v410_v2 = vld [vmem:[%s3093_s26 + $0x810] sm:$0xff] }
  0x56   : > { %285 = vst [vmem:[%s3098_s27 + $0x218] sm:$0xff] %v284_v3  ;;  %v412_v3 = vld [vmem:[%s3093_s26 + $0x818] sm:$0xff] }
  0x57   : > { %287 = vst [vmem:[%s3098_s27 + $0x220] sm:$0xff] %v286_v4  ;;  %v414_v4 = vld [vmem:[%s3093_s26 + $0x840] sm:$0xff] }
  0x58   : > { %289 = vst [vmem:[%s3098_s27 + $0x228] sm:$0xff] %v288_v5  ;;  %v416_v5 = vld [vmem:[%s3093_s26 + $0x848] sm:$0xff] }
  0x59   : > { %291 = vst [vmem:[%s3098_s27 + $0x230] sm:$0xff] %v290_v6  ;;  %v418_v6 = vld [vmem:[%s3093_s26 + $0x850] sm:$0xff] }
  0x5a   : > { %293 = vst [vmem:[%s3098_s27 + $0x238] sm:$0xff] %v292_v7  ;;  %v420_v7 = vld [vmem:[%s3093_s26 + $0x858] sm:$0xff] }
  0x5b   : > { %295 = vst [vmem:[%s3098_s27 + $0x240] sm:$0xff] %v294_v8  ;;  %v422_v8 = vld [vmem:[%s3093_s26 + $0x880] sm:$0xff] }
  0x5c   : > { %297 = vst [vmem:[%s3098_s27 + $0x248] sm:$0xff] %v296_v9  ;;  %v424_v9 = vld [vmem:[%s3093_s26 + $0x888] sm:$0xff] }
  0x5d   : > { %299 = vst [vmem:[%s3098_s27 + $0x250] sm:$0xff] %v298_v10  ;;  %v426_v10 = vld [vmem:[%s3093_s26 + $0x890] sm:$0xff] }
  0x5e   : > { %301 = vst [vmem:[%s3098_s27 + $0x258] sm:$0xff] %v300_v11  ;;  %v428_v11 = vld [vmem:[%s3093_s26 + $0x898] sm:$0xff] }
  0x5f   : > { %303 = vst [vmem:[%s3098_s27 + $0x260] sm:$0xff] %v302_v12  ;;  %v430_v12 = vld [vmem:[%s3093_s26 + $0x8c0] sm:$0xff] }
  0x60   : > { %305 = vst [vmem:[%s3098_s27 + $0x268] sm:$0xff] %v304_v13  ;;  %v432_v13 = vld [vmem:[%s3093_s26 + $0x8c8] sm:$0xff] }
  0x61   : > { %307 = vst [vmem:[%s3098_s27 + $0x270] sm:$0xff] %v306_v14  ;;  %v434_v14 = vld [vmem:[%s3093_s26 + $0x8d0] sm:$0xff] }
  0x62   : > { %309 = vst [vmem:[%s3098_s27 + $0x278] sm:$0xff] %v308_v15  ;;  %v436_v15 = vld [vmem:[%s3093_s26 + $0x8d8] sm:$0xff] }
  0x63   : > { %311 = vst [vmem:[%s3098_s27 + $0x280] sm:$0xff] %v310_v16 }
  0x64   : > { %313 = vst [vmem:[%s3098_s27 + $0x288] sm:$0xff] %v312_v17 }
  0x65   : > { %315 = vst [vmem:[%s3098_s27 + $0x290] sm:$0xff] %v314_v18 }
  0x66   : > { %317 = vst [vmem:[%s3098_s27 + $0x298] sm:$0xff] %v316_v19 }
  0x67   : > { %319 = vst [vmem:[%s3098_s27 + $0x2a0] sm:$0xff] %v318_v20 }
  0x68   : > { %321 = vst [vmem:[%s3098_s27 + $0x2a8] sm:$0xff] %v320_v21 }
  0x69   : > { %323 = vst [vmem:[%s3098_s27 + $0x2b0] sm:$0xff] %v322_v22 }
  0x6a   : > { %325 = vst [vmem:[%s3098_s27 + $0x2b8] sm:$0xff] %v324_v23 }
  0x6b   : > { %327 = vst [vmem:[%s3098_s27 + $0x2c0] sm:$0xff] %v326_v24 }
  0x6c   : > { %329 = vst [vmem:[%s3098_s27 + $0x2c8] sm:$0xff] %v328_v25 }
  0x6d   : > { %331 = vst [vmem:[%s3098_s27 + $0x2d0] sm:$0xff] %v330_v26 }
  0x6e   : > { %333 = vst [vmem:[%s3098_s27 + $0x2d8] sm:$0xff] %v332_v27 }
  0x6f   : > { %335 = vst [vmem:[%s3098_s27 + $0x2e0] sm:$0xff] %v334_v28 }
  0x70   : > { %337 = vst [vmem:[%s3098_s27 + $0x2e8] sm:$0xff] %v336_v29 }
  0x71   : > { %339 = vst [vmem:[%s3098_s27 + $0x2f0] sm:$0xff] %v338_v30 }
  0x72   : > { %341 = vst [vmem:[%s3098_s27 + $0x2f8] sm:$0xff] %v340_v31 }
  0x73   : > { %343 = vst [vmem:[%s3098_s27 + $0x300] sm:$0xff] %v342_v32 }
  0x74   : > { %345 = vst [vmem:[%s3098_s27 + $0x308] sm:$0xff] %v344_v33 }
  0x75   : > { %347 = vst [vmem:[%s3098_s27 + $0x310] sm:$0xff] %v346_v34 }
  0x76   : > { %349 = vst [vmem:[%s3098_s27 + $0x318] sm:$0xff] %v348_v35 }
  0x77   : > { %351 = vst [vmem:[%s3098_s27 + $0x320] sm:$0xff] %v350_v36 }
  0x78   : > { %353 = vst [vmem:[%s3098_s27 + $0x328] sm:$0xff] %v352_v37 }
  0x79   : > { %355 = vst [vmem:[%s3098_s27 + $0x330] sm:$0xff] %v354_v38 }
  0x7a   : > { %357 = vst [vmem:[%s3098_s27 + $0x338] sm:$0xff] %v356_v39 }
  0x7b   : > { %359 = vst [vmem:[%s3098_s27 + $0x340] sm:$0xff] %v358_v40 }
  0x7c   : > { %361 = vst [vmem:[%s3098_s27 + $0x348] sm:$0xff] %v360_v41 }
  0x7d   : > { %363 = vst [vmem:[%s3098_s27 + $0x350] sm:$0xff] %v362_v42 }
  0x7e   : > { %365 = vst [vmem:[%s3098_s27 + $0x358] sm:$0xff] %v364_v43 }
  0x7f   : > { %367 = vst [vmem:[%s3098_s27 + $0x360] sm:$0xff] %v366_v44 }
  0x80   : > { %369 = vst [vmem:[%s3098_s27 + $0x368] sm:$0xff] %v368_v45 }
  0x81   : > { %371 = vst [vmem:[%s3098_s27 + $0x370] sm:$0xff] %v370_v46 }
  0x82   : > { %373 = vst [vmem:[%s3098_s27 + $0x378] sm:$0xff] %v372_v47 }
  0x83   : > { %375 = vst [vmem:[%s3098_s27 + $0x380] sm:$0xff] %v374_v48 }
  0x84   : > { %377 = vst [vmem:[%s3098_s27 + $0x388] sm:$0xff] %v376_v49 }
  0x85   : > { %379 = vst [vmem:[%s3098_s27 + $0x390] sm:$0xff] %v378_v50 }
  0x86   : > { %381 = vst [vmem:[%s3098_s27 + $0x398] sm:$0xff] %v380_v51 }
  0x87   : > { %383 = vst [vmem:[%s3098_s27 + $0x3a0] sm:$0xff] %v382_v52 }
  0x88   : > { %385 = vst [vmem:[%s3098_s27 + $0x3a8] sm:$0xff] %v384_v53 }
  0x89   : > { %387 = vst [vmem:[%s3098_s27 + $0x3b0] sm:$0xff] %v386_v54 }
  0x8a   : > { %389 = vst [vmem:[%s3098_s27 + $0x3b8] sm:$0xff] %v388_v55 }
  0x8b   : > { %391 = vst [vmem:[%s3098_s27 + $0x3c0] sm:$0xff] %v390_v56 }
  0x8c   : > { %393 = vst [vmem:[%s3098_s27 + $0x3c8] sm:$0xff] %v392_v57 }
  0x8d   : > { %395 = vst [vmem:[%s3098_s27 + $0x3d0] sm:$0xff] %v394_v58 }
  0x8e   : > { %397 = vst [vmem:[%s3098_s27 + $0x3d8] sm:$0xff] %v396_v59 }
  0x8f   : > { %399 = vst [vmem:[%s3098_s27 + $0x3e0] sm:$0xff] %v398_v60 }
  0x90   : > { %401 = vst [vmem:[%s3098_s27 + $0x3e8] sm:$0xff] %v400_v61 }
  0x91   : > { %403 = vst [vmem:[%s3098_s27 + $0x3f0] sm:$0xff] %v402_v62 }
  0x92   : > { %405 = vst [vmem:[%s3098_s27 + $0x3f8] sm:$0xff] %v404_v63 }
  0x93   : > { %407 = vst [vmem:[%s3098_s27 + $0x400] sm:$0xff] %v406_v0 }
  0x94   : > { %409 = vst [vmem:[%s3098_s27 + $0x408] sm:$0xff] %v408_v1 }
  0x95   : > { %411 = vst [vmem:[%s3098_s27 + $0x410] sm:$0xff] %v410_v2 }
  0x96   : > { %413 = vst [vmem:[%s3098_s27 + $0x418] sm:$0xff] %v412_v3 }
  0x97   : > { %415 = vst [vmem:[%s3098_s27 + $0x420] sm:$0xff] %v414_v4 }
  0x98   : > { %417 = vst [vmem:[%s3098_s27 + $0x428] sm:$0xff] %v416_v5 }
  0x99   : > { %419 = vst [vmem:[%s3098_s27 + $0x430] sm:$0xff] %v418_v6 }
  0x9a   : > { %421 = vst [vmem:[%s3098_s27 + $0x438] sm:$0xff] %v420_v7 }
  0x9b   : > { %423 = vst [vmem:[%s3098_s27 + $0x440] sm:$0xff] %v422_v8 }
  0x9c   : > { %425 = vst [vmem:[%s3098_s27 + $0x448] sm:$0xff] %v424_v9 }
  0x9d   : > { %427 = vst [vmem:[%s3098_s27 + $0x450] sm:$0xff] %v426_v10 }
  0x9e   : > { %429 = vst [vmem:[%s3098_s27 + $0x458] sm:$0xff] %v428_v11 }
  0x9f   : > { %431 = vst [vmem:[%s3098_s27 + $0x460] sm:$0xff] %v430_v12 }
  0xa0   : > { %433 = vst [vmem:[%s3098_s27 + $0x468] sm:$0xff] %v432_v13 }
  0xa1   : > { %435 = vst [vmem:[%s3098_s27 + $0x470] sm:$0xff] %v434_v14 }
  0xa2   : > { %437 = vst [vmem:[%s3098_s27 + $0x478] sm:$0xff] %v436_v15 }
  0xa3 PF: > { %p2148_p7 = scmp.ge.s32.totalorder %s3030_s14, 1  ;;  %p442_p8 = scmp.lt.s32.totalorder %s3030_s14, 3 }
  0xa5   : > { %p443_p9 = pnand %p2148_p7, %p442_p8 }
  0xa6   : > { %s449_s28 = sand.u32 (!%p443_p9), 1, %s3022_s12  }
  0xa7   : > { %446 = sbr.rel (%p443_p9) target bundleno = 508 (0x1fc), region = 51  ;;  %s2149_s27 = sshll.u32 (!%p443_p9), %s449_s28, 7 }
  0xa8   : > { %s2917_s29 = smul.u32 (!%p443_p9), 1152, %s449_s28  ;;  %s3754_s12 = scalar_lea.vmem (!%p443_p9), [#allocation3], %s2149_s27 }
  0xaa   : > { %s3390_s30 = scalar_lea.vmem (!%p443_p9), [#allocation2], %s2917_s29 }
  0xac   : > { %v2388_v16 = vld [vmem:[%s3390_s30 + $0x1c0] sm:$0xf]  ;;  %vm1369_vm0 = vcmask 261120   ;;  %v2891_v25 = vld [vmem:[%s3390_s30 + $0x3c4] sm:$0xf]  ;;  %s2915_s28 = sshll.u32 (%p3083_p5), %s2142_s15, 6 }
  0xad   : > { %v2831_v17 = vld [vmem:[%s3390_s30 + $0x1dc] sm:$0xf0]  ;;  %v2646_v26 = vld [vmem:[%s3390_s30 + $0x3e0] sm:$0xf0]  ;;  %v2160_v28 = vld [vmem:[%s3839_s0 + $0x8] sm:$0xf]  ;;  %s2038_s20 = scalar_lea.vmem (%p3083_p5), %s3842_s3, %s2915_s28 }
  0xae   : > { %v2644_v18 = vld [vmem:[%s3390_s30 + $0x3c0] sm:$0xf]  ;;  %v2389_v19 = vor.u32 %v2831_v17, %v2388_v16  ;;  %v2770_v29 = vld [vmem:[%s3839_s0 + $0x10] sm:$0x30]  ;;  %v2649_v30 = vor.u32 %v2891_v25, %v2646_v26  ;;  %v2883_v38 = vld [vmem:[%s3390_s30 + $0x384] sm:$0xf] }
  0xaf   : > { %v2895_v20 = vld [vmem:[%s3390_s30 + $0x3dc] sm:$0xf0]  ;;  %v2614_v40 = vld [vmem:[%s3390_s30 + $0x3a0] sm:$0xf0]  ;;  %v3422_v52 = vor.u32 %v2770_v29, %v2160_v28 }
  0xb0   : > { %v2708_v21 = vld [vmem:[%s3390_s30 + $0x440] sm:$0xf]  ;;  %v2645_v23 = vor.u32 %v2895_v20, %v2644_v18  ;;  %1373 = vmatpush.bf16.msra.mxu0 %v2389_v19  ;;  %1429 = vmatpush.bf16.msra.mxu2 %v2649_v30  ;;  %v2827_v41 = vld [vmem:[%s3390_s30 + $0x1c4] sm:$0xf]  ;;  %v2617_v43 = vor.u32 %v2883_v38, %v2614_v40 }
  0xb1   : > { %v2911_v22 = vld [vmem:[%s3390_s30 + $0x45c] sm:$0xf0]  ;;  %v2390_v42 = vld [vmem:[%s3390_s30 + $0x1e0] sm:$0xf0] }
  0xb2   : > { %v2709_v24 = vor.u32 %v2911_v22, %v2708_v21  ;;  %v2356_v27 = vld [vmem:[%s3390_s30 + $0x180] sm:$0xf]  ;;  %1387 = vmatpush.bf16.msra.mxu1 %v2645_v23  ;;  %v2393_v44 = vor.u32 %v2827_v41, %v2390_v42  ;;  %v2875_v50 = vld [vmem:[%s3390_s30 + $0x344] sm:$0xf] }
  0xb3   : > { %v2823_v31 = vld [vmem:[%s3390_s30 + $0x19c] sm:$0xf0]  ;;  %v2582_v51 = vld [vmem:[%s3390_s30 + $0x360] sm:$0xf0] }
  0xb4   : > { %v2612_v32 = vld [vmem:[%s3390_s30 + $0x380] sm:$0xf]  ;;  %1407 = vmatpush.bf16.msra.mxu3 %v2709_v24  ;;  %v2357_v34 = vor.u32 %v2823_v31, %v2356_v27  ;;  %v2819_v54 = vld [vmem:[%s3390_s30 + $0x184] sm:$0xf]  ;;  %1430 = vmatpush.bf16.msra.mxu2 %v2617_v43  ;;  %v2585_v57 = vor.u32 %v2875_v50, %v2582_v51 }
  0xb5   : > { %v2887_v33 = vld [vmem:[%s3390_s30 + $0x39c] sm:$0xf0]  ;;  %v2358_v55 = vld [vmem:[%s3390_s30 + $0x1a0] sm:$0xf0] }
  0xb6   : > { %v2613_v35 = vor.u32 %v2887_v33, %v2612_v32  ;;  %v2676_v36 = vld [vmem:[%s3390_s30 + $0x400] sm:$0xf]  ;;  %1374 = vmatpush.bf16.msra.mxu0 %v2357_v34  ;;  %v2361_v58 = vor.u32 %v2819_v54, %v2358_v55  ;;  %v2867_v62 = vld [vmem:[%s3390_s30 + $0x304] sm:$0xf]  ;;  %v2832_v54 = vld [vmem:[%s3390_s30 + $0x1e4] sm:$0xf0] }
  0xb7   : > { %v2903_v37 = vld [vmem:[%s3390_s30 + $0x41c] sm:$0xf0]  ;;  %v2550_v63 = vld [vmem:[%s3390_s30 + $0x320] sm:$0xf0]  ;;  %v2716_v55 = vld [vmem:[%s3390_s30 + $0x448] sm:$0xf] }
  0xb8   : > { %v2677_v39 = vor.u32 %v2903_v37, %v2676_v36  ;;  %v2324_v45 = vld [vmem:[%s3390_s30 + $0x140] sm:$0xf]  ;;  %1388 = vmatpush.bf16.msra.mxu1 %v2613_v35  ;;  %v2811_v0 = vld [vmem:[%s3390_s30 + $0x144] sm:$0xf]  ;;  %1431 = vmatpush.bf16.msra.mxu2 %v2585_v57  ;;  %v2553_v6 = vor.u32 %v2867_v62, %v2550_v63  ;;  %v2154_v63 = vld [vmem:[%s3839_s0 + $0xc] sm:$0x30] }
  0xb9   : > { %v2815_v46 = vld [vmem:[%s3390_s30 + $0x15c] sm:$0xf0]  ;;  %v2326_v2 = vld [vmem:[%s3390_s30 + $0x160] sm:$0xf0] }
  0xba   : > { %v2580_v47 = vld [vmem:[%s3390_s30 + $0x340] sm:$0xf]  ;;  %v2325_v48 = vor.u32 %v2815_v46, %v2324_v45  ;;  %1408 = vmatpush.bf16.msra.mxu3 %v2677_v39  ;;  %v2329_v7 = vor.u32 %v2811_v0, %v2326_v2  ;;  %v2859_v10 = vld [vmem:[%s3390_s30 + $0x2c4] sm:$0xf] }
  0xbb   : > { %v2879_v49 = vld [vmem:[%s3390_s30 + $0x35c] sm:$0xf0]  ;;  %v2518_v11 = vld [vmem:[%s3390_s30 + $0x2e0] sm:$0xf0] }
  0xbc   : > { %v2581_v53 = vor.u32 %v2879_v49, %v2580_v47  ;;  %v2292_v56 = vld [vmem:[%s3390_s30 + $0x100] sm:$0xf]  ;;  %1375 = vmatpush.bf16.msra.mxu0 %v2325_v48  ;;  %v2803_v12 = vld [vmem:[%s3390_s30 + $0x104] sm:$0xf]  ;;  %1432 = vmatpush.bf16.msra.mxu2 %v2553_v6  ;;  %v2521_v18 = vor.u32 %v2859_v10, %v2518_v11  ;;  %v2364_v6 = vld [vmem:[%s3390_s30 + $0x188] sm:$0xf] }
  0xbd   : > { %v2807_v59 = vld [vmem:[%s3390_s30 + $0x11c] sm:$0xf0]  ;;  %2738 = vmatmul.msk.bf16.vlgmr.msra.gmra.mxu3 %vm1369_vm0, %v3422_v52  ;;  %v2294_v13 = vld [vmem:[%s3390_s30 + $0x120] sm:$0xf0]  ;;  %v2828_v10 = vld [vmem:[%s3390_s30 + $0x1cc] sm:$0xf] }
  0xbe   : > { %1415 = vmatpush.bf16.msrb.mxu3 %v2393_v44  ;;  %v2548_v60 = vld [vmem:[%s3390_s30 + $0x300] sm:$0xf]  ;;  %v2293_v1 = vor.u32 %v2807_v59, %v2292_v56  ;;  %1389 = vmatpush.bf16.msra.mxu1 %v2581_v53  ;;  %v2297_v19 = vor.u32 %v2803_v12, %v2294_v13  ;;  %v2851_v22 = vld [vmem:[%s3390_s30 + $0x284] sm:$0xf]  ;;  %v2396_v53 = vld [vmem:[%s3390_s30 + $0x1c8] sm:$0xf] }
  0xbf   : > { %v2871_v61 = vld [vmem:[%s3390_s30 + $0x31c] sm:$0xf0]  ;;  %v2486_v23 = vld [vmem:[%s3390_s30 + $0x2a0] sm:$0xf0]  ;;  %v2912_v56 = vld [vmem:[%s3390_s30 + $0x464] sm:$0xf0] }
  0xc0   : > { %v2549_v3 = vor.u32 %v2871_v61, %v2548_v60  ;;  %v2260_v4 = vld [vmem:[%s3390_s30 + $0xc0] sm:$0xf]  ;;  %1376 = vmatpush.bf16.msra.mxu0 %v2293_v1  ;;  %v2795_v24 = vld [vmem:[%s3390_s30 + $0xc4] sm:$0xf]  ;;  %1433 = vmatpush.bf16.msra.mxu2 %v2521_v18  ;;  %v2489_v31 = vor.u32 %v2851_v22, %v2486_v23  ;;  %v2769_v59 = vld [vmem:[%s3839_s0 + $0x8] sm:$0x30] }
  0xc1   : > { %v2799_v5 = vld [vmem:[%s3390_s30 + $0xdc] sm:$0xf0]  ;;  %v2262_v25 = vld [vmem:[%s3390_s30 + $0xe0] sm:$0xf0]  ;;  %v2398_v11 = vld [vmem:[%s3390_s30 + $0x1e8] sm:$0xf0] }
  0xc2   : > { %1416 = vmatpush.bf16.msrb.mxu3 %v2361_v58  ;;  %v2516_v8 = vld [vmem:[%s3390_s30 + $0x2c0] sm:$0xf]  ;;  %v2261_v14 = vor.u32 %v2799_v5, %v2260_v4  ;;  %1390 = vmatpush.bf16.msra.mxu1 %v2549_v3  ;;  %v2265_v32 = vor.u32 %v2795_v24, %v2262_v25  ;;  %v2843_v34 = vld [vmem:[%s3390_s30 + $0x244] sm:$0xf]  ;;  %v2684_v13 = vld [vmem:[%s3390_s30 + $0x408] sm:$0xf]  ;;  %v2401_v22 = vor.u32 %v2828_v10, %v2398_v11 }
  0xc3   : > { %v2863_v9 = vld [vmem:[%s3390_s30 + $0x2dc] sm:$0xf0]  ;;  %v2454_v35 = vld [vmem:[%s3390_s30 + $0x260] sm:$0xf0]  ;;  %v2896_v18 = vld [vmem:[%s3390_s30 + $0x3e4] sm:$0xf0] }
  0xc4   : > { %v2517_v15 = vor.u32 %v2863_v9, %v2516_v8  ;;  %v2228_v16 = vld [vmem:[%s3390_s30 + $0x80] sm:$0xf]  ;;  %1377 = vmatpush.bf16.msra.mxu0 %v2261_v14  ;;  %v2787_v36 = vld [vmem:[%s3390_s30 + $0x84] sm:$0xf]  ;;  %1434 = vmatpush.bf16.msra.mxu2 %v2489_v31  ;;  %v2457_v48 = vor.u32 %v2843_v34, %v2454_v35  ;;  %v2717_v8 = vor.u32 %v2912_v56, %v2716_v55  ;;  %v2824_v9 = vld [vmem:[%s3390_s30 + $0x1a4] sm:$0xf0] }
  0xc5   : > { %v2791_v17 = vld [vmem:[%s3390_s30 + $0x9c] sm:$0xf0]  ;;  %v2230_v37 = vld [vmem:[%s3390_s30 + $0xa0] sm:$0xf0]  ;;  %v2904_v14 = vld [vmem:[%s3390_s30 + $0x424] sm:$0xf0]  ;;  %v2365_v23 = vor.u32 %v2824_v9, %v2364_v6 }
  0xc6   : > { %1417 = vmatpush.bf16.msrb.mxu3 %v2329_v7  ;;  %v2484_v20 = vld [vmem:[%s3390_s30 + $0x280] sm:$0xf]  ;;  %v2229_v26 = vor.u32 %v2791_v17, %v2228_v16  ;;  %1391 = vmatpush.bf16.msra.mxu1 %v2517_v15  ;;  %v2835_v44 = vld [vmem:[%s3390_s30 + $0x204] sm:$0xf]  ;;  %v2233_v49 = vor.u32 %v2787_v36, %v2230_v37  ;;  %v2397_v7 = vor.u32 %v2832_v54, %v2396_v53  ;;  %v2652_v15 = vld [vmem:[%s3390_s30 + $0x3c8] sm:$0xf] }
  0xc7   : > { %v2855_v21 = vld [vmem:[%s3390_s30 + $0x29c] sm:$0xf0]  ;;  %v2422_v45 = vld [vmem:[%s3390_s30 + $0x220] sm:$0xf0]  ;;  %v2685_v24 = vor.u32 %v2904_v14, %v2684_v13  ;;  %v2820_v25 = vld [vmem:[%s3390_s30 + $0x18c] sm:$0xf] }
  0xc8   : > { %v2485_v27 = vor.u32 %v2855_v21, %v2484_v20  ;;  %v2196_v28 = vld [vmem:[%s3390_s30 + $0x40] sm:$0xf]  ;;  %1378 = vmatpush.bf16.msra.mxu0 %v2229_v26  ;;  %v2779_v46 = vld [vmem:[%s3390_s30 + $0x44] sm:$0xf]  ;;  %1435 = vmatpush.bf16.msra.mxu2 %v2457_v48  ;;  %v2425_v2 = vor.u32 %v2835_v44, %v2422_v45  ;;  %v2654_v20 = vld [vmem:[%s3390_s30 + $0x3e8] sm:$0xf0] }
  0xc9   : > { %v2783_v29 = vld [vmem:[%s3390_s30 + $0x5c] sm:$0xf0]  ;;  %v2198_v47 = vld [vmem:[%s3390_s30 + $0x60] sm:$0xf0]  ;;  %v2366_v26 = vld [vmem:[%s3390_s30 + $0x1a8] sm:$0xf0] }
  0xca   : > { %v2452_v30 = vld [vmem:[%s3390_s30 + $0x240] sm:$0xf]  ;;  %1418 = vmatpush.bf16.msrb.mxu3 %v2297_v19  ;;  %v2197_v39 = vor.u32 %v2783_v29, %v2196_v28  ;;  %1392 = vmatpush.bf16.msra.mxu1 %v2485_v27  ;;  %v2907_v50 = vld [vmem:[%s3390_s30 + $0x444] sm:$0xf]  ;;  %v2201_v3 = vor.u32 %v2779_v46, %v2198_v47  ;;  %v2892_v19 = vld [vmem:[%s3390_s30 + $0x3cc] sm:$0xf]  ;;  %v2653_v27 = vor.u32 %v2896_v18, %v2652_v15 }
  0xcb   : > { %v2847_v33 = vld [vmem:[%s3390_s30 + $0x25c] sm:$0xf0]  ;;  %v2710_v51 = vld [vmem:[%s3390_s30 + $0x460] sm:$0xf0]  ;;  %v2657_v28 = vor.u32 %v2892_v19, %v2654_v20  ;;  %v2332_v29 = vld [vmem:[%s3390_s30 + $0x148] sm:$0xf]  ;;  %v2369_v35 = vor.u32 %v2820_v25, %v2366_v26 }
  0xcc   : > { %v2164_v38 = vld [vmem:[%s3390_s30] sm:$0xf]  ;;  %v2453_v43 = vor.u32 %v2847_v33, %v2452_v30  ;;  %1379 = vmatpush.bf16.msra.mxu0 %v2197_v39  ;;  %v2768_v60 = vld [vmem:[%s3839_s0 + $0x4] sm:$0xf]  ;;  %v2713_v62 = vor.u32 %v2907_v50, %v2710_v51  ;;  %1436 = vmatpush.bf16.msra.mxu2 %v2425_v2  ;;  %v2816_v30 = vld [vmem:[%s3390_s30 + $0x164] sm:$0xf0] }
  0xcd   : > { %v2775_v40 = vld [vmem:[%s3390_s30 + $0x1c] sm:$0xf0]  ;;  %v2771_v0 = vld [vmem:[%s3390_s30 + $0x4] sm:$0xf]  ;;  %v3499_v16 = vor.u32 %v2768_v60, %v2154_v63  ;;  %v2620_v31 = vld [vmem:[%s3390_s30 + $0x388] sm:$0xf]  ;;  %v2333_v36 = vor.u32 %v2816_v30, %v2332_v29 }
  0xce   : > { %v2420_v41 = vld [vmem:[%s3390_s30 + $0x200] sm:$0xf]  ;;  %1419 = vmatpush.bf16.msrb.mxu3 %v2265_v32  ;;  %v2165_v57 = vor.u32 %v2775_v40, %v2164_v38  ;;  %1393 = vmatpush.bf16.msra.mxu1 %v2453_v43  ;;  %v2166_v1 = vld [vmem:[%s3390_s30 + $0x20] sm:$0xf0]  ;;  %v2888_v32 = vld [vmem:[%s3390_s30 + $0x3a4] sm:$0xf0] }
  0xcf   : > { %v2839_v42 = vld [vmem:[%s3390_s30 + $0x21c] sm:$0xf0]  ;;  %v2899_v4 = vld [vmem:[%s3390_s30 + $0x404] sm:$0xf]  ;;  %v2169_v21 = vor.u32 %v2771_v0, %v2166_v1  ;;  %1437 = vmatmul.bf16.vlgmr.msra.gmra.mxu2 %v3499_v16  ;;  %v2884_v33 = vld [vmem:[%s3390_s30 + $0x38c] sm:$0xf]  ;;  %v2621_v40 = vor.u32 %v2888_v32, %v2620_v31 }
  0xd0   : > { %v2152_v58 = vld [vmem:[%s3839_s0] sm:$0xf]  ;;  %v2421_v61 = vor.u32 %v2839_v42, %v2420_v41  ;;  %v2678_v5 = vld [vmem:[%s3390_s30 + $0x420] sm:$0xf0]  ;;  %1380 = vmatpush.bf16.msra.mxu0 %v2165_v57  ;;  %1491 = vmatpush.bf16.msrb.mxu2 %v2717_v8  ;;  %v2622_v34 = vld [vmem:[%s3390_s30 + $0x3a8] sm:$0xf0] }
  0xd1   : > { %v3494_v12 = vor.u32 %v2769_v59, %v2152_v58  ;;  %v2681_v17 = vor.u32 %v2899_v4, %v2678_v5  ;;  %v622_v37 = vld [vmem:[%s3841_s2] sm:$0xff]  ;;  %v2812_v38 = vld [vmem:[%s3390_s30 + $0x14c] sm:$0xf]  ;;  %v2625_v41 = vor.u32 %v2884_v33, %v2622_v34  ;;  %v2300_v42 = vld [vmem:[%s3390_s30 + $0x108] sm:$0xf]  ;;  %v3032_v45 = vmov 0  }
  0xd2   : > { %1420 = vmatpush.bf16.msrb.mxu3 %v2233_v49  ;;  %1394 = vmatpush.bf16.msra.mxu1 %v2421_v61  ;;  %v2334_v39 = vld [vmem:[%s3390_s30 + $0x168] sm:$0xf0]  ;;  %v2808_v43 = vld [vmem:[%s3390_s30 + $0x124] sm:$0xf0] }
  0xd3   : > { %1381 = vmatmul.bf16.vlgmr.msra.gmra.mxu0 %v3494_v12  ;;  %v2588_v44 = vld [vmem:[%s3390_s30 + $0x348] sm:$0xf]  ;;  %2943 = vset.pattern.permute.xlu0 %v3032_v45  ;;  %v2876_v47 = vld [vmem:[%s3390_s30 + $0x34c] sm:$0xf]  ;;  %v2337_v49 = vor.u32 %v2812_v38, %v2334_v39  ;;  %v2301_v50 = vor.u32 %v2808_v43, %v2300_v42 }
  0xd4   : > { %1449 = vmatpush.bf16.msrb.mxu0 %v2713_v62  ;;  %1492 = vmatpush.bf16.msrb.mxu2 %v2685_v24  ;;  %v2880_v46 = vld [vmem:[%s3390_s30 + $0x364] sm:$0xf0]  ;;  %v2590_v48 = vld [vmem:[%s3390_s30 + $0x368] sm:$0xf0] }
  0xd5   : > { %1395 = vmatmul.bf16.vlgmr.msra.gmra.mxu1 %v3499_v16  ;;  %626 = vperm.xlu0 %2943, %v622_v37   ;;  %v2804_v51 = vld [vmem:[%s3390_s30 + $0x10c] sm:$0xf]  ;;  %v2589_v54 = vor.u32 %v2880_v46, %v2588_v44  ;;  %v2593_v55 = vor.u32 %v2876_v47, %v2590_v48  ;;  %v2268_v56 = vld [vmem:[%s3390_s30 + $0xc8] sm:$0xf]  ;;  %v2660_v47 = vld [vmem:[%s3390_s30 + $0x3d0] sm:$0xf] }
  0xd6   : > { %1421 = vmatpush.bf16.msrb.mxu3 %v2201_v3  ;;  %1457 = vmatpush.bf16.msrb.mxu1 %v2397_v7  ;;  %v2302_v53 = vld [vmem:[%s3390_s30 + $0x128] sm:$0xf0]  ;;  %v2800_v57 = vld [vmem:[%s3390_s30 + $0xe4] sm:$0xf0]  ;;  %v2897_v48 = vld [vmem:[%s3390_s30 + $0x3ec] sm:$0xf0] }
  0xd7   : > { %v2556_v58 = vld [vmem:[%s3390_s30 + $0x308] sm:$0xf]  ;;  %v2868_v60 = vld [vmem:[%s3390_s30 + $0x30c] sm:$0xf]  ;;  %v2305_v62 = vor.u32 %v2804_v51, %v2302_v53  ;;  %v2269_v63 = vor.u32 %v2800_v57, %v2268_v56  ;;  %v2404_v51 = vld [vmem:[%s3390_s30 + $0x1d0] sm:$0xf] }
  0xd8   : > { %1450 = vmatpush.bf16.msrb.mxu0 %v2681_v17  ;;  %1513 = vmatpush.bf16.msra.mxu2 %v2657_v28  ;;  %v2872_v59 = vld [vmem:[%s3390_s30 + $0x324] sm:$0xf0]  ;;  %v2558_v61 = vld [vmem:[%s3390_s30 + $0x328] sm:$0xf0]  ;;  %v2829_v56 = vld [vmem:[%s3390_s30 + $0x1d4] sm:$0xf] }
  0xd9   : > { %v623_v0 = vld [vmem:[%s3841_s2 + $0x8] sm:$0xf]  ;;  %v2796_v1 = vld [vmem:[%s3390_s30 + $0xcc] sm:$0xf]  ;;  %v2557_v3 = vor.u32 %v2872_v59, %v2556_v58  ;;  %v2561_v4 = vor.u32 %v2868_v60, %v2558_v61  ;;  %v2406_v57 = vld [vmem:[%s3390_s30 + $0x1f0] sm:$0xf0]  ;;  %v2661_v58 = vor.u32 %v2897_v48, %v2660_v47 }
  0xda   : > { %1422 = vmatpush.bf16.msrb.mxu3 %v2169_v21  ;;  %1458 = vmatpush.bf16.msrb.mxu1 %v2365_v23  ;;  %v2270_v2 = vld [vmem:[%s3390_s30 + $0xe8] sm:$0xf0]  ;;  %v2236_v5 = vld [vmem:[%s3390_s30 + $0x88] sm:$0xf]  ;;  %v2885_v47 = vld [vmem:[%s3390_s30 + $0x394] sm:$0xf] }
  0xdb   : > { %v2792_v6 = vld [vmem:[%s3390_s30 + $0xa4] sm:$0xf0]  ;;  %v2860_v9 = vld [vmem:[%s3390_s30 + $0x2cc] sm:$0xf]  ;;  %v2273_v11 = vor.u32 %v2796_v1, %v2270_v2  ;;  %v2409_v2 = vor.u32 %v2829_v56, %v2406_v57  ;;  %v2630_v48 = vld [vmem:[%s3390_s30 + $0x3b0] sm:$0xf0] }
  0xdc   : > { %1499 = vmatpush.bf16.msra.mxu0 %v2401_v22  ;;  %1514 = vmatpush.bf16.msra.mxu2 %v2625_v41  ;;  %v2524_v7 = vld [vmem:[%s3390_s30 + $0x2c8] sm:$0xf]  ;;  %v2526_v10 = vld [vmem:[%s3390_s30 + $0x2e8] sm:$0xf0]  ;;  %v2237_v13 = vor.u32 %v2792_v6, %v2236_v5  ;;  %v2913_v5 = vld [vmem:[%s3390_s30 + $0x46c] sm:$0xf0] }
  0xdd   : > { %1423 = vmatmul.bf16.vlgmr.msrb.gmra.mxu3 %v3494_v12  ;;  %v2864_v8 = vld [vmem:[%s3390_s30 + $0x2e4] sm:$0xf0]  ;;  %631 = vperm.xlu0 %2943, %v623_v0   ;;  %v2788_v14 = vld [vmem:[%s3390_s30 + $0x8c] sm:$0xf]  ;;  %v2529_v18 = vor.u32 %v2860_v9, %v2526_v10  ;;  %v2889_v0 = vld [vmem:[%s3390_s30 + $0x3ac] sm:$0xf0] }
  0xde   : > { %1471 = vmatpush.bf16.msra.mxu3 %v2653_v27  ;;  %1459 = vmatpush.bf16.msrb.mxu1 %v2333_v36  ;;  %v2238_v15 = vld [vmem:[%s3390_s30 + $0xa8] sm:$0xf0]  ;;  %v2525_v17 = vor.u32 %v2864_v8, %v2524_v7  ;;  %v2204_v19 = vld [vmem:[%s3390_s30 + $0x48] sm:$0xf]  ;;  %v2825_v6 = vld [vmem:[%s3390_s30 + $0x1ac] sm:$0xf0] }
  0xdf   : > { %v2784_v20 = vld [vmem:[%s3390_s30 + $0x64] sm:$0xf0]  ;;  %2740 = vmatmul.msk.bf16.vlgmr.msrb.gmra.mxu2 %vm1369_vm0, %v3422_v52  ;;  %v2852_v23 = vld [vmem:[%s3390_s30 + $0x28c] sm:$0xf]  ;;  %v2241_v25 = vor.u32 %v2788_v14, %v2238_v15  ;;  %v2821_v7 = vld [vmem:[%s3390_s30 + $0x194] sm:$0xf] }
  0xe0   : > { %1500 = vmatpush.bf16.msra.mxu0 %v2369_v35  ;;  %1515 = vmatpush.bf16.msra.mxu2 %v2593_v55  ;;  %v2492_v21 = vld [vmem:[%s3390_s30 + $0x288] sm:$0xf]  ;;  %v2494_v24 = vld [vmem:[%s3390_s30 + $0x2a8] sm:$0xf0]  ;;  %v2205_v26 = vor.u32 %v2784_v20, %v2204_v19  ;;  %v2833_v55 = vld [vmem:[%s3390_s30 + $0x1ec] sm:$0xf0] }
  0xe1   : > { %v2856_v22 = vld [vmem:[%s3390_s30 + $0x2a4] sm:$0xf0]  ;;  %v2780_v27 = vld [vmem:[%s3390_s30 + $0x4c] sm:$0xf]  ;;  %v2497_v30 = vor.u32 %v2852_v23, %v2494_v24  ;;  %v2405_v1 = vor.u32 %v2833_v55, %v2404_v51  ;;  %v2374_v8 = vld [vmem:[%s3390_s30 + $0x1b0] sm:$0xf0] }
  0xe2   : > { %1472 = vmatpush.bf16.msra.mxu3 %v2621_v40  ;;  %1460 = vmatpush.bf16.msrb.mxu1 %v2301_v50  ;;  %v2206_v28 = vld [vmem:[%s3390_s30 + $0x68] sm:$0xf0]  ;;  %v2493_v29 = vor.u32 %v2856_v22, %v2492_v21  ;;  %v2172_v31 = vld [vmem:[%s3390_s30 + $0x8] sm:$0xf]  ;;  %v2692_v19 = vld [vmem:[%s3390_s30 + $0x410] sm:$0xf] }
  0xe3   : > { %2739 = vmatmul.msk.bf16.vlgmr.msrb.gmra.mxu0 %vm1369_vm0, %v3422_v52  ;;  %v2776_v32 = vld [vmem:[%s3390_s30 + $0x24] sm:$0xf0]  ;;  %v2844_v35 = vld [vmem:[%s3390_s30 + $0x24c] sm:$0xf]  ;;  %v2209_v37 = vor.u32 %v2780_v27, %v2206_v28  ;;  %v2905_v20 = vld [vmem:[%s3390_s30 + $0x42c] sm:$0xf0] }
  0xe4   : > { %1501 = vmatpush.bf16.msra.mxu0 %v2337_v49  ;;  %1516 = vmatpush.bf16.msra.mxu2 %v2561_v4  ;;  %v2460_v33 = vld [vmem:[%s3390_s30 + $0x248] sm:$0xf]  ;;  %v2462_v36 = vld [vmem:[%s3390_s30 + $0x268] sm:$0xf0]  ;;  %v2173_v40 = vor.u32 %v2776_v32, %v2172_v31  ;;  %v2724_v4 = vld [vmem:[%s3390_s30 + $0x450] sm:$0xf]  ;;  %v2693_v27 = vor.u32 %v2905_v20, %v2692_v19 }
  0xe5   : > { %v2848_v34 = vld [vmem:[%s3390_s30 + $0x264] sm:$0xf0]  ;;  %v2908_v38 = vld [vmem:[%s3390_s30 + $0x44c] sm:$0xf]  ;;  %v2465_v45 = vor.u32 %v2844_v35, %v2462_v36  ;;  %v2725_v14 = vor.u32 %v2913_v5, %v2724_v4  ;;  %v2817_v21 = vld [vmem:[%s3390_s30 + $0x16c] sm:$0xf0] }
  0xe6   : > { %1473 = vmatpush.bf16.msra.mxu3 %v2589_v54  ;;  %1461 = vmatpush.bf16.msrb.mxu1 %v2269_v63  ;;  %v2718_v39 = vld [vmem:[%s3390_s30 + $0x468] sm:$0xf0]  ;;  %v2428_v41 = vld [vmem:[%s3390_s30 + $0x208] sm:$0xf]  ;;  %v2461_v44 = vor.u32 %v2848_v34, %v2460_v33  ;;  %v2628_v63 = vld [vmem:[%s3390_s30 + $0x390] sm:$0xf] }
  0xe7   : > { %v2772_v42 = vld [vmem:[%s3390_s30 + $0xc] sm:$0xf]  ;;  %v2840_v46 = vld [vmem:[%s3390_s30 + $0x224] sm:$0xf0]  ;;  %v2721_v53 = vor.u32 %v2908_v38, %v2718_v39  ;;  %v2629_v10 = vor.u32 %v2889_v0, %v2628_v63  ;;  %v2813_v22 = vld [vmem:[%s3390_s30 + $0x154] sm:$0xf] }
  0xe8   : > { %1502 = vmatpush.bf16.msra.mxu0 %v2305_v62  ;;  %1517 = vmatpush.bf16.msra.mxu2 %v2529_v18  ;;  %v2174_v43 = vld [vmem:[%s3390_s30 + $0x28] sm:$0xf0]  ;;  %v2429_v61 = vor.u32 %v2840_v46, %v2428_v41  ;;  %v2340_v18 = vld [vmem:[%s3390_s30 + $0x150] sm:$0xf]  ;;  %v2342_v23 = vld [vmem:[%s3390_s30 + $0x170] sm:$0xf0] }
  0xe9   : > { %v2836_v49 = vld [vmem:[%s3390_s30 + $0x20c] sm:$0xf]  ;;  %v2177_v54 = vor.u32 %v2772_v42, %v2174_v43  ;;  %v2341_v28 = vor.u32 %v2817_v21, %v2340_v18  ;;  %v2809_v31 = vld [vmem:[%s3390_s30 + $0x12c] sm:$0xf0]  ;;  %v2805_v32 = vld [vmem:[%s3390_s30 + $0x114] sm:$0xf] }
  0xea   : > { %1474 = vmatpush.bf16.msra.mxu3 %v2557_v3  ;;  %1462 = vmatpush.bf16.msrb.mxu1 %v2237_v13  ;;  %v2430_v50 = vld [vmem:[%s3390_s30 + $0x228] sm:$0xf0]  ;;  %v2372_v3 = vld [vmem:[%s3390_s30 + $0x190] sm:$0xf]  ;;  %v2310_v33 = vld [vmem:[%s3390_s30 + $0x130] sm:$0xf0] }
  0xeb   : > { %v2900_v59 = vld [vmem:[%s3390_s30 + $0x40c] sm:$0xf]  ;;  %v2433_v62 = vor.u32 %v2836_v49, %v2430_v50  ;;  %v2881_v13 = vld [vmem:[%s3390_s30 + $0x36c] sm:$0xf0]  ;;  %v2373_v15 = vor.u32 %v2825_v6, %v2372_v3  ;;  %v2893_v35 = vld [vmem:[%s3390_s30 + $0x3d4] sm:$0xf] }
  0xec   : > { %1503 = vmatpush.bf16.msra.mxu0 %v2273_v11  ;;  %1518 = vmatpush.bf16.msra.mxu2 %v2497_v30  ;;  %v2686_v60 = vld [vmem:[%s3390_s30 + $0x428] sm:$0xf0]  ;;  %v2596_v11 = vld [vmem:[%s3390_s30 + $0x350] sm:$0xf]  ;;  %v2662_v36 = vld [vmem:[%s3390_s30 + $0x3f0] sm:$0xf0] }
  0xed   : > { %v2689_v9 = vor.u32 %v2900_v59, %v2686_v60  ;;  %v2597_v24 = vor.u32 %v2881_v13, %v2596_v11  ;;  %v2308_v30 = vld [vmem:[%s3390_s30 + $0x110] sm:$0xf]  ;;  %v2797_v43 = vld [vmem:[%s3390_s30 + $0xd4] sm:$0xf]  ;;  %v2834_v18 = vld [vmem:[%s3390_s30 + $0x1f4] sm:$0xf0] }
  0xee   : > { %1475 = vmatpush.bf16.msra.mxu3 %v2525_v17  ;;  %1463 = vmatpush.bf16.msrb.mxu1 %v2205_v26  ;;  %v2377_v17 = vor.u32 %v2821_v7, %v2374_v8  ;;  %v2873_v26 = vld [vmem:[%s3390_s30 + $0x32c] sm:$0xf0]  ;;  %v2309_v39 = vor.u32 %v2809_v31, %v2308_v30  ;;  %v2789_v56 = vld [vmem:[%s3390_s30 + $0x94] sm:$0xf]  ;;  %v2914_v30 = vld [vmem:[%s3390_s30 + $0x474] sm:$0xf0] }
  0xef   : > { %v2865_v38 = vld [vmem:[%s3390_s30 + $0x2ec] sm:$0xf0]  ;;  %v2246_v57 = vld [vmem:[%s3390_s30 + $0xb0] sm:$0xf0] }
  0xf0   : > { %1504 = vmatpush.bf16.msra.mxu0 %v2241_v25  ;;  %1519 = vmatpush.bf16.msra.mxu2 %v2465_v45  ;;  %v2564_v25 = vld [vmem:[%s3390_s30 + $0x310] sm:$0xf]  ;;  %v2665_v45 = vor.u32 %v2893_v35, %v2662_v36  ;;  %v2877_v60 = vld [vmem:[%s3390_s30 + $0x354] sm:$0xf]  ;;  %v2380_v35 = vld [vmem:[%s3390_s30 + $0x198] sm:$0xf] }
  0xf1   : > { %v2565_v34 = vor.u32 %v2873_v26, %v2564_v25  ;;  %v2276_v41 = vld [vmem:[%s3390_s30 + $0xd0] sm:$0xf]  ;;  %v2781_v4 = vld [vmem:[%s3390_s30 + $0x54] sm:$0xf]  ;;  %v2826_v36 = vld [vmem:[%s3390_s30 + $0x1b4] sm:$0xf0] }
  0xf2   : > { %1476 = vmatpush.bf16.msra.mxu3 %v2493_v29  ;;  %1464 = vmatpush.bf16.msrb.mxu1 %v2173_v40  ;;  %v2345_v29 = vor.u32 %v2813_v22, %v2342_v23  ;;  %v2313_v40 = vor.u32 %v2805_v32, %v2310_v33  ;;  %v2801_v42 = vld [vmem:[%s3390_s30 + $0xec] sm:$0xf0]  ;;  %v2214_v5 = vld [vmem:[%s3390_s30 + $0x70] sm:$0xf0] }
  0xf3   : > { %v2500_v49 = vld [vmem:[%s3390_s30 + $0x290] sm:$0xf]  ;;  %v2277_v51 = vor.u32 %v2801_v42, %v2276_v41  ;;  %v2869_v8 = vld [vmem:[%s3390_s30 + $0x314] sm:$0xf]  ;;  %v2700_v42 = vld [vmem:[%s3390_s30 + $0x418] sm:$0xf] }
  0xf4   : > { %1505 = vmatpush.bf16.msra.mxu0 %v2209_v37  ;;  %1520 = vmatpush.bf16.msra.mxu2 %v2433_v62  ;;  %v2532_v37 = vld [vmem:[%s3390_s30 + $0x2d0] sm:$0xf]  ;;  %v2773_v20 = vld [vmem:[%s3390_s30 + $0x14] sm:$0xf] }
  0xf5   : > { %1465 = vmatmul.bf16.vlgmr.msrb.gmra.mxu1 %v3494_v12  ;;  %v2533_v46 = vor.u32 %v2865_v38, %v2532_v37  ;;  %v2857_v50 = vld [vmem:[%s3390_s30 + $0x2ac] sm:$0xf0]  ;;  %v2182_v21 = vld [vmem:[%s3390_s30 + $0x30] sm:$0xf0] }
  0xf6   : > { %1477 = vmatpush.bf16.msra.mxu3 %v2461_v44  ;;  %1533 = vmatpush.bf16.msra.mxu1 %v2721_v53  ;;  %v2278_v44 = vld [vmem:[%s3390_s30 + $0xf0] sm:$0xf0]  ;;  %v2793_v55 = vld [vmem:[%s3390_s30 + $0xac] sm:$0xf0]  ;;  %v2501_v59 = vor.u32 %v2857_v50, %v2500_v49  ;;  %v2185_v32 = vor.u32 %v2773_v20, %v2182_v21  ;;  %v2348_v50 = vld [vmem:[%s3390_s30 + $0x158] sm:$0xf] }
  0xf7   : > { %1521 = vmatmul.bf16.vlgmr.msra.gmra.mxu2 %v3499_v16  ;;  %v2281_v53 = vor.u32 %v2797_v43, %v2278_v44  ;;  %v2468_v62 = vld [vmem:[%s3390_s30 + $0x250] sm:$0xf]  ;;  %v2909_v25 = vld [vmem:[%s3390_s30 + $0x454] sm:$0xf]  ;;  %v2906_v43 = vld [vmem:[%s3390_s30 + $0x434] sm:$0xf0] }
  0xf8   : > { %1506 = vmatpush.bf16.msra.mxu0 %v2177_v54  ;;  %1583 = vmatpush.bf16.msrb.mxu2 %v2409_v2  ;;  %v2244_v54 = vld [vmem:[%s3390_s30 + $0x90] sm:$0xf]  ;;  %v2726_v26 = vld [vmem:[%s3390_s30 + $0x470] sm:$0xf0]  ;;  %v2668_v44 = vld [vmem:[%s3390_s30 + $0x3d8] sm:$0xf] }
  0xf9   : > { %v2849_v63 = vld [vmem:[%s3390_s30 + $0x26c] sm:$0xf0]  ;;  %v2245_v0 = vor.u32 %v2793_v55, %v2244_v54  ;;  %v2729_v33 = vor.u32 %v2909_v25, %v2726_v26  ;;  %v2694_v41 = vld [vmem:[%s3390_s30 + $0x430] sm:$0xf0]  ;;  %v2701_v54 = vor.u32 %v2906_v43, %v2700_v42  ;;  %v2572_v21 = vld [vmem:[%s3390_s30 + $0x318] sm:$0xf] }
  0xfa   : > { %1478 = vmatpush.bf16.msra.mxu3 %v2429_v61  ;;  %1534 = vmatpush.bf16.msra.mxu1 %v2689_v9  ;;  %v2598_v61 = vld [vmem:[%s3390_s30 + $0x370] sm:$0xf0]  ;;  %v2212_v2 = vld [vmem:[%s3390_s30 + $0x50] sm:$0xf]  ;;  %v2469_v7 = vor.u32 %v2849_v63, %v2468_v62  ;;  %v2886_v62 = vld [vmem:[%s3390_s30 + $0x39c] sm:$0xf] }
  0xfb   : > { %1507 = vmatmul.bf16.vlgmr.msra.gmra.mxu0 %v3494_v12  ;;  %v2785_v3 = vld [vmem:[%s3390_s30 + $0x6c] sm:$0xf0]  ;;  %v2601_v6 = vor.u32 %v2877_v60, %v2598_v61  ;;  %v2566_v9 = vld [vmem:[%s3390_s30 + $0x330] sm:$0xf0]  ;;  %v2890_v61 = vld [vmem:[%s3390_s30 + $0x3b4] sm:$0xf0] }
  0xfc   : > { %1555 = vmatpush.bf16.msrb.mxu0 %v2661_v58  ;;  %1584 = vmatpush.bf16.msrb.mxu2 %v2377_v17  ;;  %v2633_v58 = vor.u32 %v2885_v47, %v2630_v48  ;;  %v2841_v11 = vld [vmem:[%s3390_s30 + $0x22c] sm:$0xf0]  ;;  %v2213_v13 = vor.u32 %v2785_v3, %v2212_v2  ;;  %v2412_v17 = vld [vmem:[%s3390_s30 + $0x1d8] sm:$0xf]  ;;  %v2569_v22 = vor.u32 %v2869_v8, %v2566_v9  ;;  %v2894_v47 = vld [vmem:[%s3390_s30 + $0x3dc] sm:$0xf] }
  0xfd   : > { %1479 = vmatmul.bf16.vlgmr.msra.gmra.mxu3 %v3499_v16  ;;  %v2777_v19 = vld [vmem:[%s3390_s30 + $0x2c] sm:$0xf0]  ;;  %v2670_v48 = vld [vmem:[%s3390_s30 + $0x3f8] sm:$0xf0]  ;;  %v2837_v3 = vld [vmem:[%s3390_s30 + $0x214] sm:$0xf] }
  0xfe   : > { %1541 = vmatpush.bf16.msrb.mxu3 %v2405_v1  ;;  %1575 = vmatpush.bf16.msrb.mxu1 %v2725_v14  ;;  %v2249_v1 = vor.u32 %v2789_v56, %v2246_v57  ;;  %v2217_v14 = vor.u32 %v2781_v4, %v2214_v5  ;;  %v2673_v56 = vor.u32 %v2894_v47, %v2670_v48  ;;  %v2845_v57 = vld [vmem:[%s3390_s30 + $0x254] sm:$0xf]  ;;  %v2638_v63 = vld [vmem:[%s3390_s30 + $0x3b8] sm:$0xf0]  ;;  %v2882_v8 = vld [vmem:[%s3390_s30 + $0x374] sm:$0xf0] }
  0xff   : > { %v2641_v5 = vor.u32 %v2886_v62, %v2638_v63  ;;  %v2822_v25 = vld [vmem:[%s3390_s30 + $0x19c] sm:$0xf]  ;;  %v2786_v42 = vld [vmem:[%s3390_s30 + $0x74] sm:$0xf0] }
 0x100   : > { %1556 = vmatpush.bf16.msrb.mxu0 %v2629_v10  ;;  %1585 = vmatpush.bf16.msrb.mxu2 %v2345_v29  ;;  %v2436_v10 = vld [vmem:[%s3390_s30 + $0x210] sm:$0xf]  ;;  %v2732_v29 = vld [vmem:[%s3390_s30 + $0x458] sm:$0xf]  ;;  %v2382_v26 = vld [vmem:[%s3390_s30 + $0x1b8] sm:$0xf0] }
 0x101   : > { %v2437_v23 = vor.u32 %v2841_v11, %v2436_v10  ;;  %v2733_v38 = vor.u32 %v2914_v30, %v2732_v29  ;;  %v2830_v10 = vld [vmem:[%s3390_s30 + $0x1dc] sm:$0xf]  ;;  %v2252_v29 = vld [vmem:[%s3390_s30 + $0x98] sm:$0xf] }
 0x102   : > { %1542 = vmatpush.bf16.msrb.mxu3 %v2373_v15  ;;  %1576 = vmatpush.bf16.msrb.mxu1 %v2693_v27  ;;  %v2180_v15 = vld [vmem:[%s3390_s30 + $0x10] sm:$0xf]  ;;  %v2534_v27 = vld [vmem:[%s3390_s30 + $0x2f0] sm:$0xf0]  ;;  %v2414_v11 = vld [vmem:[%s3390_s30 + $0x1f8] sm:$0xf0] }
 0x103   : > { %v2181_v31 = vor.u32 %v2777_v19, %v2180_v15  ;;  %v2284_v15 = vld [vmem:[%s3390_s30 + $0xd8] sm:$0xf]  ;;  %v2417_v20 = vor.u32 %v2830_v10, %v2414_v11  ;;  %v2806_v48 = vld [vmem:[%s3390_s30 + $0x11c] sm:$0xf] }
 0x104   : > { %1557 = vmatpush.bf16.msrb.mxu0 %v2597_v24  ;;  %1586 = vmatpush.bf16.msrb.mxu2 %v2313_v40  ;;  %v2861_v24 = vld [vmem:[%s3390_s30 + $0x2d4] sm:$0xf]  ;;  %v2794_v30 = vld [vmem:[%s3390_s30 + $0xb4] sm:$0xf0]  ;;  %v2798_v63 = vld [vmem:[%s3390_s30 + $0xdc] sm:$0xf] }
 0x105   : > { %2741 = vmatmul.msk.bf16.vlgmr.msra.gmra.mxu1 %vm1369_vm0, %v3422_v52  ;;  %v2537_v37 = vor.u32 %v2861_v24, %v2534_v27  ;;  %v2901_v40 = vld [vmem:[%s3390_s30 + $0x414] sm:$0xf]  ;;  %v2874_v24 = vld [vmem:[%s3390_s30 + $0x334] sm:$0xf0]  ;;  %v2870_v27 = vld [vmem:[%s3390_s30 + $0x31c] sm:$0xf] }
 0x106   : > { %1543 = vmatpush.bf16.msrb.mxu3 %v2341_v28  ;;  %1597 = vmatpush.bf16.msra.mxu1 %v2665_v45  ;;  %v2413_v28 = vor.u32 %v2834_v18, %v2412_v17  ;;  %v2381_v45 = vor.u32 %v2826_v36, %v2380_v35  ;;  %v2697_v49 = vor.u32 %v2901_v40, %v2694_v41  ;;  %v2802_v17 = vld [vmem:[%s3390_s30 + $0xf4] sm:$0xf0]  ;;  %v2814_v36 = vld [vmem:[%s3390_s30 + $0x15c] sm:$0xf] }
 0x107   : > { %v2866_v35 = vld [vmem:[%s3390_s30 + $0x2f4] sm:$0xf0]  ;;  %v2542_v40 = vld [vmem:[%s3390_s30 + $0x2f8] sm:$0xf0] }
 0x108   : > { %1558 = vmatpush.bf16.msrb.mxu0 %v2565_v34  ;;  %1587 = vmatpush.bf16.msrb.mxu2 %v2281_v53  ;;  %v2853_v34 = vld [vmem:[%s3390_s30 + $0x294] sm:$0xf]  ;;  %v2220_v41 = vld [vmem:[%s3390_s30 + $0x58] sm:$0xf] }
 0x109   : > { %v2858_v47 = vld [vmem:[%s3390_s30 + $0x2b4] sm:$0xf0] }
 0x10a   : > { %1544 = vmatpush.bf16.msrb.mxu3 %v2309_v39  ;;  %1598 = vmatpush.bf16.msra.mxu1 %v2633_v58  ;;  %v2502_v39 = vld [vmem:[%s3390_s30 + $0x2b0] sm:$0xf0]  ;;  %v2850_v62 = vld [vmem:[%s3390_s30 + $0x274] sm:$0xf0] }
 0x10b   : > { %v2505_v53 = vor.u32 %v2853_v34, %v2502_v39  ;;  %v2470_v58 = vld [vmem:[%s3390_s30 + $0x270] sm:$0xf0]  ;;  %v2862_v39 = vld [vmem:[%s3390_s30 + $0x2dc] sm:$0xf]  ;;  %v2842_v11 = vld [vmem:[%s3390_s30 + $0x234] sm:$0xf0] }
 0x10c   : > { %1559 = vmatpush.bf16.msrb.mxu0 %v2533_v46  ;;  %1588 = vmatpush.bf16.msrb.mxu2 %v2249_v1  ;;  %v2898_v46 = vld [vmem:[%s3390_s30 + $0x3f4] sm:$0xf0]  ;;  %v2473_v2 = vor.u32 %v2845_v57, %v2470_v58 }
 0x10d   : > { %v2669_v55 = vor.u32 %v2898_v46, %v2668_v44  ;;  %v2810_v1 = vld [vmem:[%s3390_s30 + $0x134] sm:$0xf0]  ;;  %v2545_v46 = vor.u32 %v2862_v39, %v2542_v40 }
 0x10e   : > { %1545 = vmatpush.bf16.msrb.mxu3 %v2277_v51  ;;  %1599 = vmatpush.bf16.msra.mxu1 %v2601_v6  ;;  %v2818_v51 = vld [vmem:[%s3390_s30 + $0x174] sm:$0xf0]  ;;  %v2438_v6 = vld [vmem:[%s3390_s30 + $0x230] sm:$0xf0] }
 0x10f   : > { %v2349_v60 = vor.u32 %v2818_v51, %v2348_v50  ;;  %v2441_v18 = vor.u32 %v2837_v3, %v2438_v6  ;;  %v2221_v50 = vor.u32 %v2786_v42, %v2220_v41  ;;  %v2854_v51 = vld [vmem:[%s3390_s30 + $0x29c] sm:$0xf]  ;;  %v2476_v58 = vld [vmem:[%s3390_s30 + $0x258] sm:$0xf] }
 0x110   : > { %1560 = vmatpush.bf16.msrb.mxu0 %v2501_v59  ;;  %1589 = vmatpush.bf16.msrb.mxu2 %v2217_v14  ;;  %v2636_v59 = vld [vmem:[%s3390_s30 + $0x398] sm:$0xf]  ;;  %v2606_v14 = vld [vmem:[%s3390_s30 + $0x378] sm:$0xf0] }
 0x111   : > { %v2637_v4 = vor.u32 %v2890_v61, %v2636_v59  ;;  %v2910_v59 = vld [vmem:[%s3390_s30 + $0x45c] sm:$0xf] }
 0x112   : > { %1546 = vmatpush.bf16.msrb.mxu3 %v2245_v0  ;;  %1600 = vmatpush.bf16.msra.mxu1 %v2569_v22  ;;  %v2316_v0 = vld [vmem:[%s3390_s30 + $0x118] sm:$0xf]  ;;  %v2478_v3 = vld [vmem:[%s3390_s30 + $0x278] sm:$0xf0] }
 0x113   : > { %v2317_v9 = vor.u32 %v2810_v1, %v2316_v0  ;;  %v2286_v0 = vld [vmem:[%s3390_s30 + $0xf8] sm:$0xf0] }
 0x114   : > { %1561 = vmatpush.bf16.msrb.mxu0 %v2469_v7  ;;  %1590 = vmatpush.bf16.msrb.mxu2 %v2185_v32  ;;  %v2604_v7 = vld [vmem:[%s3390_s30 + $0x358] sm:$0xf]  ;;  %v2385_v32 = vor.u32 %v2822_v25, %v2382_v26  ;;  %v2289_v6 = vor.u32 %v2798_v63, %v2286_v0  ;;  %v2774_v25 = vld [vmem:[%s3390_s30 + $0x1c] sm:$0xf] }
 0x115   : > { %2742 = vmatmul.msk.bf16.vlgmr.msrb.gmra.mxu1 %vm1369_vm0, %v3422_v52  ;;  %v2605_v19 = vor.u32 %v2882_v8, %v2604_v7  ;;  %v2444_v7 = vld [vmem:[%s3390_s30 + $0x218] sm:$0xf]  ;;  %v2902_v8 = vld [vmem:[%s3390_s30 + $0x41c] sm:$0xf] }
 0x116   : > { %1547 = vmatpush.bf16.msrb.mxu3 %v2213_v13  ;;  %1601 = vmatpush.bf16.msra.mxu1 %v2537_v37  ;;  %v2878_v13 = vld [vmem:[%s3390_s30 + $0x35c] sm:$0xf] }
 0x117   : > { %1591 = vmatmul.bf16.vlgmr.msrb.gmra.mxu2 %v3494_v12  ;;  %v2609_v22 = vor.u32 %v2878_v13, %v2606_v14  ;;  %v2350_v37 = vld [vmem:[%s3390_s30 + $0x178] sm:$0xf0] }
 0x118   : > { %1562 = vmatpush.bf16.msrb.mxu0 %v2437_v23  ;;  %1659 = vmatpush.bf16.msra.mxu2 %v2733_v38  ;;  %v2285_v23 = vor.u32 %v2802_v17, %v2284_v15  ;;  %v2253_v38 = vor.u32 %v2794_v30, %v2252_v29  ;;  %v2353_v44 = vor.u32 %v2814_v36, %v2350_v37  ;;  %v2790_v13 = vld [vmem:[%s3390_s30 + $0x9c] sm:$0xf] }
 0x119   : > { %v2254_v14 = vld [vmem:[%s3390_s30 + $0xb8] sm:$0xf0] }
 0x11a   : > { %1548 = vmatpush.bf16.msrb.mxu3 %v2181_v31  ;;  %1602 = vmatpush.bf16.msra.mxu1 %v2505_v53  ;;  %v2573_v31 = vor.u32 %v2874_v24, %v2572_v21  ;;  %v2510_v53 = vld [vmem:[%s3390_s30 + $0x2b8] sm:$0xf0] }
 0x11b   : > { %1563 = vmatmul.bf16.vlgmr.msrb.gmra.mxu0 %v3499_v16  ;;  %v2513_v61 = vor.u32 %v2854_v51, %v2510_v53  ;;  %v2838_v15 = vld [vmem:[%s3390_s30 + $0x21c] sm:$0xf] }
 0x11c   : > { %1625 = vmatpush.bf16.msra.mxu0 %v2413_v28  ;;  %1660 = vmatpush.bf16.msra.mxu2 %v2701_v54  ;;  %v2574_v28 = vld [vmem:[%s3390_s30 + $0x338] sm:$0xf0]  ;;  %v2188_v54 = vld [vmem:[%s3390_s30 + $0x18] sm:$0xf] }
 0x11d   : > { %1549 = vmatmul.bf16.vlgmr.msrb.gmra.mxu3 %v3494_v12  ;;  %v2577_v34 = vor.u32 %v2870_v27, %v2574_v28  ;;  %v2446_v17 = vld [vmem:[%s3390_s30 + $0x238] sm:$0xf0] }
 0x11e   : > { %1617 = vmatpush.bf16.msra.mxu3 %v2729_v33  ;;  %1603 = vmatpush.bf16.msra.mxu1 %v2473_v2  ;;  %v2540_v33 = vld [vmem:[%s3390_s30 + $0x2d8] sm:$0xf]  ;;  %v2846_v2 = vld [vmem:[%s3390_s30 + $0x25c] sm:$0xf]  ;;  %v2449_v21 = vor.u32 %v2838_v15, %v2446_v17 }
 0x11f   : > { %v2541_v43 = vor.u32 %v2866_v35, %v2540_v33  ;;  %v2481_v10 = vor.u32 %v2846_v2, %v2478_v3  ;;  %v2190_v26 = vld [vmem:[%s3390_s30 + $0x38] sm:$0xf0] }
 0x120   : > { %1626 = vmatpush.bf16.msra.mxu0 %v2381_v45  ;;  %1681 = vmatpush.bf16.msrb.mxu2 %v2673_v56  ;;  %v2508_v45 = vld [vmem:[%s3390_s30 + $0x298] sm:$0xf]  ;;  %v2193_v27 = vor.u32 %v2774_v25, %v2190_v26 }
 0x121   : > { %v2509_v56 = vor.u32 %v2858_v47, %v2508_v45 }
 0x122   : > { %1618 = vmatpush.bf16.msra.mxu3 %v2697_v49  ;;  %1604 = vmatpush.bf16.msra.mxu1 %v2441_v18  ;;  %v2318_v49 = vld [vmem:[%s3390_s30 + $0x138] sm:$0xf0] }
 0x123   : > { %v2321_v57 = vor.u32 %v2806_v48, %v2318_v49 }
 0x124   : > { %1627 = vmatpush.bf16.msra.mxu0 %v2349_v60  ;;  %1682 = vmatpush.bf16.msrb.mxu2 %v2641_v5  ;;  %v2734_v60 = vld [vmem:[%s3390_s30 + $0x478] sm:$0xf0]  ;;  %v2477_v5 = vor.u32 %v2850_v62, %v2476_v58 }
 0x125   : > { %1605 = vmatmul.bf16.vlgmr.msra.gmra.mxu1 %v3499_v16 }
 0x126   : > { %1639 = vmatpush.bf16.msrb.mxu3 %v2669_v55  ;;  %1667 = vmatpush.bf16.msrb.mxu1 %v2417_v20  ;;  %v2778_v55 = vld [vmem:[%s3390_s30 + $0x34] sm:$0xf0]  ;;  %v2257_v20 = vor.u32 %v2790_v13, %v2254_v14 }
 0x127   : > { %2744 = vmatmul.msk.bf16.vlgmr.msra.gmra.mxu2 %vm1369_vm0, %v3422_v52  ;;  %v2189_v1 = vor.u32 %v2778_v55, %v2188_v54 }
 0x128   : > { %1628 = vmatpush.bf16.msra.mxu0 %v2317_v9  ;;  %1683 = vmatpush.bf16.msrb.mxu2 %v2609_v22  ;;  %v2702_v9 = vld [vmem:[%s3390_s30 + $0x438] sm:$0xf0] }
 0x129   : > { %v2705_v18 = vor.u32 %v2902_v8, %v2702_v9  ;;  %v2782_v22 = vld [vmem:[%s3390_s30 + $0x5c] sm:$0xf] }
 0x12a   : > { %1640 = vmatpush.bf16.msrb.mxu3 %v2637_v4  ;;  %1668 = vmatpush.bf16.msrb.mxu1 %v2385_v32  ;;  %v2737_v4 = vor.u32 %v2910_v59, %v2734_v60 }
 0x12c   : > { %1629 = vmatpush.bf16.msra.mxu0 %v2285_v23  ;;  %1684 = vmatpush.bf16.msrb.mxu2 %v2577_v34  ;;  %v2222_v23 = vld [vmem:[%s3390_s30 + $0x78] sm:$0xf0] }
 0x12d   : > { %2743 = vmatmul.msk.bf16.vlgmr.msra.gmra.mxu3 %vm1369_vm0, %v3422_v52  ;;  %v2225_v24 = vor.u32 %v2782_v22, %v2222_v23 }
 0x12e   : > { %1641 = vmatpush.bf16.msrb.mxu3 %v2605_v19  ;;  %1669 = vmatpush.bf16.msrb.mxu1 %v2353_v44  ;;  %v2445_v19 = vor.u32 %v2842_v11, %v2444_v7 }
 0x130   : > { %1630 = vmatpush.bf16.msra.mxu0 %v2253_v38  ;;  %1685 = vmatpush.bf16.msrb.mxu2 %v2545_v46 }
 0x132   : > { %1642 = vmatpush.bf16.msrb.mxu3 %v2573_v31  ;;  %1670 = vmatpush.bf16.msrb.mxu1 %v2321_v57 }
 0x134   : > { %1631 = vmatpush.bf16.msra.mxu0 %v2221_v50  ;;  %1686 = vmatpush.bf16.msrb.mxu2 %v2513_v61 }
 0x136   : > { %1643 = vmatpush.bf16.msrb.mxu3 %v2541_v43  ;;  %1671 = vmatpush.bf16.msrb.mxu1 %v2289_v6 }
 0x138   : > { %1632 = vmatpush.bf16.msra.mxu0 %v2189_v1  ;;  %1687 = vmatpush.bf16.msrb.mxu2 %v2481_v10 }
 0x13a   : > { %1644 = vmatpush.bf16.msrb.mxu3 %v2509_v56  ;;  %1672 = vmatpush.bf16.msrb.mxu1 %v2257_v20 }
 0x13b   : > { %1633 = vmatmul.bf16.vlgmr.msra.gmra.mxu0 %v3494_v12 }
 0x13c   : > { %1701 = vmatpush.bf16.msrb.mxu0 %v2737_v4  ;;  %1688 = vmatpush.bf16.msrb.mxu2 %v2449_v21 }
 0x13e   : > { %1645 = vmatpush.bf16.msrb.mxu3 %v2477_v5  ;;  %1673 = vmatpush.bf16.msrb.mxu1 %v2225_v24 }
 0x13f   : > { %1689 = vmatmul.bf16.vlgmr.msrb.gmra.mxu2 %v3499_v16 }
 0x140   : > { %1702 = vmatpush.bf16.msrb.mxu0 %v2705_v18  ;;  %v1410_v28 = vpop.f32.mrf.mxu3 }
 0x142   : > { %1646 = vmatpush.bf16.msrb.mxu3 %v2445_v19  ;;  %1674 = vmatpush.bf16.msrb.mxu1 %v2193_v27 }
 0x145   : > { %1647 = vmatmul.bf16.vlgmr.msrb.gmra.mxu3 %v3499_v16  ;;  %1675 = vmatmul.bf16.vlgmr.msrb.gmra.mxu1 %v3494_v12 }
 0x147   : > { %v3742_v29 = vpop.permute.xlu0 %626 }
 0x148   : > { %v1412_v33 = vpop.f32.mrf.mxu3 }
 0x14b   : > { %2745 = vmatmul.msk.bf16.vlgmr.msrb.gmra.mxu0 %vm1369_vm0, %v3422_v52 }
 0x14f   : > { %v3745_v36 = vpop.permute.xlu0 %631 }
 0x150   : > { %v1382_v30 = vpop.f32.mrf.mxu0 }
 0x151   : > { %v1383_v32 = vadd.f32 %v1382_v30, %v3742_v29 }
 0x152   : > { %v1396_v31 = vpop.f32.mrf.mxu1  ;;  %v1438_v37 = vpop.f32.mrf.mxu2 }
 0x153   : > { %v1397_v34 = vadd.f32 %v1396_v31, %v1383_v32 }
 0x155   : > { %v1411_v35 = vadd.f32 %v1410_v28, %v1397_v34 }
 0x157   : > { %v2746_v16 = vmul.f32 -1.442695, %v1411_v35 }
 0x158   : > { %v1384_v38 = vpop.f32.mrf.mxu0 }
 0x159   : > { %2944 = vpow2.f32 %v2746_v16  ;;  %v1385_v12 = vadd.f32 %v1384_v38, %v3745_v36 }
 0x15a   : > { %v1398_v39 = vpop.f32.mrf.mxu1  ;;  %v1440_v45 = vpop.f32.mrf.mxu2 }
 0x15b   : > { %v1399_v52 = vadd.f32 %v1398_v39, %v1385_v12 }
 0x15d   : > { %v1413_v42 = vadd.f32 %v1412_v33, %v1399_v52 }
 0x15f   : > { %v2945_v43 = vpop.eup %2944  ;;  %v2754_v44 = vmul.f32 -1.442695, %v1413_v42 }
 0x160   : > { %v1424_v40 = vpop.f32.mrf.mxu3  ;;  %v1757_v47 = vadd.f32 1.0, %v2945_v43  ;;  %v1452_v48 = vpop.f32.mrf.mxu0 }
 0x161   : > { %v1425_v41 = vadd.f32 %v1424_v40, %v3742_v29  ;;  %2946 = vpow2.f32 %v2754_v44 }
 0x162   : > { %2948 = vrcp.f32 %v1757_v47  ;;  %v1494_v56 = vpop.f32.mrf.mxu2  ;;  %v1784_v63 = vand.u32 2147483648, %v1757_v47  ;;  %v1782_v2 = vand.u32 2147483647, %v1757_v47  ;;  %vm1778_vm2 = vweird.f32 %v1757_v47 }
 0x163   : > { %v1439_v46 = vadd.f32 %v1438_v37, %v1425_v41 }
 0x164   : > { %v1785_v8 = vor.u32 1.1754944e-38, %v1784_v63  ;;  %vm1783_vm4 = vcmp.eq.f32.partialorder %v1782_v2, 8.507059e+37 }
 0x165   : > { %v1453_v49 = vadd.f32 %v1452_v48, %v1439_v46 }
 0x167   : > { %v2747_v53 = vmul.f32 -1.442695, %v1453_v49  ;;  %v2947_v54 = vpop.eup %2946 }
 0x168   : > { %v1426_v50 = vpop.f32.mrf.mxu3  ;;  %v2949_v57 = vpop.eup %2948  ;;  %v1765_v58 = vadd.f32 1.0, %v2947_v54 }
 0x169   : > { %v1427_v51 = vadd.f32 %v1426_v50, %v3745_v36  ;;  %2950 = vpow2.f32 %v2747_v53  ;;  %v1774_v59 = vmul.f32 %v2949_v57, %v1757_v47  ;;  %v1454_v60 = vpop.f32.mrf.mxu0  ;;  %vm1779_vm1 = vweird.f32 %v2949_v57 }
 0x16a   : > { %2952 = vrcp.f32 %v1765_v58  ;;  %vm1780_vm3 = vmor %vm1778_vm2, %vm1779_vm1  ;;  %v3752_v9 = vpop.f32.mrf.mxu2  ;;  %v1904_v17 = vand.u32 2147483648, %v1765_v58  ;;  %v1902_v20 = vand.u32 2147483647, %v1765_v58  ;;  %vm1898_vm6 = vweird.f32 %v1765_v58 }
 0x16b   : > { %v1441_v55 = vadd.f32 %v1440_v45, %v1427_v51  ;;  %v1775_v61 = vsub.f32 1.0, %v1774_v59 }
 0x16c   : > { %v1905_v27 = vor.u32 1.1754944e-38, %v1904_v17  ;;  %vm1903_vm8 = vcmp.eq.f32.partialorder %v1902_v20, 8.507059e+37 }
 0x16d   : > { %v1455_v62 = vadd.f32 %v1454_v60, %v1441_v55  ;;  %v1776_v1 = vmul.f32 %v2949_v57, %v1775_v61 }
 0x16f   : > { %v2951_v0 = vpop.eup %2950  ;;  %v2755_v3 = vmul.f32 -1.442695, %v1455_v62  ;;  %v1777_v6 = vadd.f32 %v2949_v57, %v1776_v1 }
 0x170   : > { %v1758_v4 = vadd.f32 1.0, %v2951_v0  ;;  %v2953_v7 = vpop.eup %2952 }
 0x171   : > { %2954 = vpow2.f32 %v2755_v3  ;;  %v1781_v10 = vsel %vm1780_vm3, %v2949_v57, %v1777_v6  ;;  %v1894_v11 = vmul.f32 %v2953_v7, %v1765_v58  ;;  %vm1899_vm5 = vweird.f32 %v2953_v7 }
 0x172   : > { %v1466_v5 = vpop.f32.mrf.mxu1  ;;  %2956 = vrcp.f32 %v1758_v4  ;;  %v1786_v13 = vsel %vm1783_vm4, %v1785_v8, %v1781_v10  ;;  %vm1900_vm7 = vmor %vm1898_vm6, %vm1899_vm5  ;;  %v1797_v34 = vand.u32 2147483647, %v1758_v4  ;;  %v1799_v35 = vand.u32 2147483648, %v1758_v4 }
 0x173   : > { %2013 = vst [vmem:[%s3754_s12] sm:$0xff] %v1786_v13  ;;  %v1895_v15 = vsub.f32 1.0, %v1894_v11  ;;  %v1467_v28 = vadd.f32 %v1466_v5, %v3742_v29  ;;  %vm1793_vm10 = vweird.f32 %v1758_v4 }
 0x174   : > { %vm1798_vm12 = vcmp.eq.f32.partialorder %v1797_v34, 8.507059e+37  ;;  %v1800_v42 = vor.u32 1.1754944e-38, %v1799_v35 }
 0x175   : > { %v1896_v19 = vmul.f32 %v2953_v7, %v1895_v15 }
 0x177   : > { %v2955_v18 = vpop.eup %2954  ;;  %v1897_v24 = vadd.f32 %v2953_v7, %v1896_v19 }
 0x178   : > { %v1508_v14 = vpop.f32.mrf.mxu0  ;;  %v2957_v21 = vpop.eup %2956  ;;  %v1766_v22 = vadd.f32 1.0, %v2955_v18 }
 0x179   : > { %v1789_v25 = vmul.f32 %v2957_v21, %v1758_v4  ;;  %v1509_v26 = vadd.f32 %v1508_v14, %v3742_v29  ;;  %v1901_v30 = vsel %vm1900_vm7, %v2953_v7, %v1897_v24  ;;  %vm1794_vm9 = vweird.f32 %v2957_v21 }
 0x17a   : > { %v1468_v23 = vpop.f32.mrf.mxu1  ;;  %2958 = vrcp.f32 %v1766_v22  ;;  %v1906_v33 = vsel %vm1903_vm8, %v1905_v27, %v1901_v30  ;;  %v1522_v37 = vpop.f32.mrf.mxu2  ;;  %vm1795_vm11 = vmor %vm1793_vm10, %vm1794_vm9  ;;  %v1917_v55 = vand.u32 2147483647, %v1766_v22  ;;  %vm1913_vm14 = vweird.f32 %v1766_v22 }
 0x17b   : > { %v1790_v31 = vsub.f32 1.0, %v1789_v25  ;;  %2021 = vst [vmem:[%s3754_s12 + $0x40] sm:$0xf] %v1906_v33  ;;  %v1523_v39 = vadd.f32 %v1522_v37, %v1509_v26  ;;  %v1469_v50 = vadd.f32 %v1468_v23, %v3745_v36 }
 0x17c   : > { %vm1918_vm0 = vcmp.eq.f32.partialorder %v1917_v55, 8.507059e+37 }
 0x17d   : > { %v1791_v38 = vmul.f32 %v2957_v21, %v1790_v31 }
 0x17f   : > { %v1792_v40 = vadd.f32 %v2957_v21, %v1791_v38 }
 0x180   : > { %v1480_v32 = vpop.f32.mrf.mxu3  ;;  %v1510_v52 = vpop.f32.mrf.mxu0 }
 0x181   : > { %v1481_v16 = vadd.f32 %v1480_v32, %v1467_v28  ;;  %v2959_v41 = vpop.eup %2958  ;;  %v1796_v45 = vsel %vm1795_vm11, %v2957_v21, %v1792_v40  ;;  %v1511_v48 = vadd.f32 %v1510_v52, %v3745_v36 }
 0x182   : > { %v1536_v44 = vpop.f32.mrf.mxu1  ;;  %v1909_v46 = vmul.f32 %v2959_v41, %v1766_v22  ;;  %v1801_v49 = vsel %vm1798_vm12, %v1800_v42, %v1796_v45  ;;  %v1524_v58 = vpop.f32.mrf.mxu2  ;;  %vm1914_vm13 = vweird.f32 %v2959_v41 }
 0x183   : > { %v1495_v12 = vadd.f32 %v1494_v56, %v1481_v16  ;;  %v1537_v47 = vadd.f32 %v1536_v44, %v1523_v39  ;;  %2014 = vst [vmem:[%s3754_s12 + $0x8] sm:$0xff] %v1801_v49  ;;  %v1919_v56 = vand.u32 2147483648, %v1766_v22  ;;  %v1525_v60 = vadd.f32 %v1524_v58, %v1511_v48  ;;  %vm1915_vm15 = vmor %vm1913_vm14, %vm1914_vm13 }
 0x184   : > { %v1910_v51 = vsub.f32 1.0, %v1909_v46 }
 0x185   : > { %v2748_v43 = vmul.f32 -1.442695, %v1495_v12  ;;  %v2749_v53 = vmul.f32 -1.442695, %v1537_v47  ;;  %v1920_v0 = vor.u32 1.1754944e-38, %v1919_v56 }
 0x186   : > { %v1911_v59 = vmul.f32 %v2959_v41, %v1910_v51 }
 0x187   : > { %2960 = vpow2.f32 %v2748_v43 }
 0x188   : > { %v1482_v54 = vpop.f32.mrf.mxu3  ;;  %2962 = vpow2.f32 %v2749_v53  ;;  %v1912_v62 = vadd.f32 %v2959_v41, %v1911_v59 }
 0x189   : > { %v1483_v57 = vadd.f32 %v1482_v54, %v1469_v50 }
 0x18a   : > { %v1538_v2 = vpop.f32.mrf.mxu1  ;;  %v1916_v3 = vsel %vm1915_vm15, %v2959_v41, %v1912_v62 }
 0x18b   : > { %v1497_v61 = vadd.f32 %v3752_v9, %v1483_v57  ;;  %v1539_v5 = vadd.f32 %v1538_v2, %v1525_v60  ;;  %v1921_v6 = vsel %vm1918_vm0, %v1920_v0, %v1916_v3 }
 0x18c   : > { %2022 = vst [vmem:[%s3754_s12 + $0x48] sm:$0xf] %v1921_v6 }
 0x18d   : > { %v2961_v63 = vpop.eup %2960  ;;  %v2756_v1 = vmul.f32 -1.442695, %v1497_v61  ;;  %v2757_v10 = vmul.f32 -1.442695, %v1539_v5 }
 0x18e   : > { %v1759_v4 = vadd.f32 1.0, %v2961_v63  ;;  %v2963_v7 = vpop.eup %2962 }
 0x18f   : > { %2964 = vpow2.f32 %v2756_v1  ;;  %v1760_v8 = vadd.f32 1.0, %v2963_v7 }
 0x190   : > { %2966 = vrcp.f32 %v1759_v4  ;;  %v1814_v19 = vand.u32 2147483648, %v1759_v4  ;;  %v1812_v23 = vand.u32 2147483647, %v1759_v4  ;;  %vm1808_vm2 = vweird.f32 %v1759_v4 }
 0x191   : > { %2968 = vrcp.f32 %v1760_v8  ;;  %v1829_v28 = vand.u32 2147483648, %v1760_v8  ;;  %v1827_v34 = vand.u32 2147483647, %v1760_v8  ;;  %vm1823_vm6 = vweird.f32 %v1760_v8 }
 0x192   : > { %2970 = vpow2.f32 %v2757_v10  ;;  %v1578_v11 = vpop.f32.mrf.mxu1  ;;  %v1815_v27 = vor.u32 1.1754944e-38, %v1814_v19  ;;  %vm1813_vm5 = vcmp.eq.f32.partialorder %v1812_v23, 8.507059e+37 }
 0x193   : > { %v1830_v41 = vor.u32 1.1754944e-38, %v1829_v28  ;;  %vm1828_vm8 = vcmp.eq.f32.partialorder %v1827_v34, 8.507059e+37 }
 0x195   : > { %v2965_v9 = vpop.eup %2964 }
 0x196   : > { %v2967_v13 = vpop.eup %2966  ;;  %v1767_v14 = vadd.f32 1.0, %v2965_v9 }
 0x197   : > { %v1804_v15 = vmul.f32 %v2967_v13, %v1759_v4  ;;  %v2969_v17 = vpop.eup %2968  ;;  %vm1809_vm1 = vweird.f32 %v2967_v13 }
 0x198   : > { %2972 = vrcp.f32 %v1767_v14  ;;  %v2971_v20 = vpop.eup %2970  ;;  %v1819_v21 = vmul.f32 %v2969_v17, %v1760_v8  ;;  %v1564_v31 = vpop.f32.mrf.mxu0  ;;  %vm1810_vm3 = vmor %vm1808_vm2, %vm1809_vm1  ;;  %vm1824_vm4 = vweird.f32 %v2969_v17  ;;  %v1934_v44 = vand.u32 2147483648, %v1767_v14 }
 0x199   : > { %v1805_v18 = vsub.f32 1.0, %v1804_v15  ;;  %v3765_v24 = vadd.f32 1.0, %v2971_v20  ;;  %vm1825_vm7 = vmor %vm1823_vm6, %vm1824_vm4  ;;  %v1932_v49 = vand.u32 2147483647, %v1767_v14  ;;  %vm1928_vm10 = vweird.f32 %v1767_v14 }
 0x19a   : > { %v1820_v25 = vsub.f32 1.0, %v1819_v21  ;;  %v1592_v16 = vpop.f32.mrf.mxu2  ;;  %v1580_v39 = vpop.f32.mrf.mxu1  ;;  %v1935_v55 = vor.u32 1.1754944e-38, %v1934_v44 }
 0x19b   : > { %v1806_v22 = vmul.f32 %v2967_v13, %v1805_v18  ;;  %2974 = vrcp.f32 %v3765_v24  ;;  %vm1933_vm12 = vcmp.eq.f32.partialorder %v1932_v49, 8.507059e+37  ;;  %v1947_v60 = vand.u32 2147483647, %v3765_v24 }
 0x19c   : > { %v1821_v33 = vmul.f32 %v2969_v17, %v1820_v25  ;;  %v1949_v61 = vand.u32 2147483648, %v3765_v24  ;;  %vm1943_vm14 = vweird.f32 %v3765_v24  ;;  %v1593_v4 = vadd.f32 %v1592_v16, %v3742_v29 }
 0x19d   : > { %v1807_v26 = vadd.f32 %v2967_v13, %v1806_v22  ;;  %vm1948_vm0 = vcmp.eq.f32.partialorder %v1947_v60, 8.507059e+37 }
 0x19e   : > { %v2973_v32 = vpop.eup %2972  ;;  %v1822_v52 = vadd.f32 %v2969_v17, %v1821_v33  ;;  %v1950_v6 = vor.u32 1.1754944e-38, %v1949_v61 }
 0x19f   : > { %v1811_v37 = vsel %vm1810_vm3, %v2967_v13, %v1807_v26  ;;  %v1924_v38 = vmul.f32 %v2973_v32, %v1767_v14  ;;  %vm1929_vm9 = vweird.f32 %v2973_v32 }
 0x1a0   : > { %v1550_v30 = vpop.f32.mrf.mxu3  ;;  %v1816_v12 = vsel %vm1813_vm5, %v1815_v27, %v1811_v37  ;;  %v1826_v43 = vsel %vm1825_vm7, %v2969_v17, %v1822_v52  ;;  %vm1930_vm11 = vmor %vm1928_vm10, %vm1929_vm9  ;;  %v1566_v62 = vpop.f32.mrf.mxu0 }
 0x1a1   : > { %v1551_v35 = vadd.f32 %v1550_v30, %v3742_v29  ;;  %2015 = vst [vmem:[%s3754_s12 + $0x10] sm:$0xff] %v1816_v12  ;;  %v1925_v42 = vsub.f32 1.0, %v1924_v38  ;;  %v2975_v46 = vpop.eup %2974  ;;  %v1831_v47 = vsel %vm1828_vm8, %v1830_v41, %v1826_v43 }
 0x1a2   : > { %2016 = vst [vmem:[%s3754_s12 + $0x18] sm:$0xff] %v1831_v47  ;;  %v1939_v50 = vmul.f32 %v2975_v46, %v3765_v24  ;;  %v1594_v58 = vpop.f32.mrf.mxu2  ;;  %vm1944_vm13 = vweird.f32 %v2975_v46  ;;  %v1606_v2 = vpop.f32.mrf.mxu1 }
 0x1a3   : > { %v1565_v40 = vadd.f32 %v1564_v31, %v1551_v35  ;;  %v1926_v48 = vmul.f32 %v2973_v32, %v1925_v42  ;;  %vm1945_vm15 = vmor %vm1943_vm14, %vm1944_vm13  ;;  %v1607_v13 = vadd.f32 %v1606_v2, %v1593_v4  ;;  %v1595_v21 = vadd.f32 %v1594_v58, %v3745_v36 }
 0x1a4   : > { %v1940_v56 = vsub.f32 1.0, %v1939_v50 }
 0x1a5   : > { %v1579_v45 = vadd.f32 %v1578_v11, %v1565_v40  ;;  %v1927_v53 = vadd.f32 %v2973_v32, %v1926_v48 }
 0x1a6   : > { %v1941_v0 = vmul.f32 %v2975_v46, %v1940_v56 }
 0x1a7   : > { %v2750_v51 = vmul.f32 -1.442695, %v1579_v45  ;;  %v1931_v59 = vsel %vm1930_vm11, %v2973_v32, %v1927_v53 }
 0x1a8   : > { %v1552_v54 = vpop.f32.mrf.mxu3  ;;  %v1936_v63 = vsel %vm1933_vm12, %v1935_v55, %v1931_v59  ;;  %v1942_v3 = vadd.f32 %v2975_v46, %v1941_v0 }
 0x1a9   : > { %2976 = vpow2.f32 %v2750_v51  ;;  %v1553_v57 = vadd.f32 %v1552_v54, %v3745_v36  ;;  %2023 = vst [vmem:[%s3754_s12 + $0x50] sm:$0xf] %v1936_v63 }
 0x1aa   : > { %v1946_v8 = vsel %vm1945_vm15, %v2975_v46, %v1942_v3  ;;  %v1662_v17 = vpop.f32.mrf.mxu2  ;;  %v1608_v19 = vpop.f32.mrf.mxu1 }
 0x1ab   : > { %v1567_v1 = vadd.f32 %v1566_v62, %v1553_v57  ;;  %v1951_v9 = vsel %vm1948_vm0, %v1950_v6, %v1946_v8  ;;  %v1609_v26 = vadd.f32 %v1608_v19, %v1595_v21 }
 0x1ac   : > { %2024 = vst [vmem:[%s3754_s12 + $0x58] sm:$0xf] %v1951_v9 }
 0x1ad   : > { %v1581_v5 = vadd.f32 %v1580_v39, %v1567_v1 }
 0x1af   : > { %v2977_v7 = vpop.eup %2976  ;;  %v2758_v10 = vmul.f32 -1.442695, %v1581_v5 }
 0x1b0   : > { %v1761_v11 = vadd.f32 1.0, %v2977_v7  ;;  %v1620_v14 = vpop.f32.mrf.mxu3 }
 0x1b1   : > { %2978 = vpow2.f32 %v2758_v10  ;;  %v1621_v15 = vadd.f32 %v1620_v14, %v1607_v13 }
 0x1b2   : > { %2980 = vrcp.f32 %v1761_v11  ;;  %v1844_v31 = vand.u32 2147483648, %v1761_v11  ;;  %v1842_v34 = vand.u32 2147483647, %v1761_v11  ;;  %v1664_v16 = vpop.f32.mrf.mxu2  ;;  %vm1838_vm2 = vweird.f32 %v1761_v11 }
 0x1b3   : > { %v2751_v18 = vmul.f32 -1.442695, %v1621_v15 }
 0x1b4   : > { %v1845_v52 = vor.u32 1.1754944e-38, %v1844_v31  ;;  %vm1843_vm4 = vcmp.eq.f32.partialorder %v1842_v34, 8.507059e+37 }
 0x1b5   : > { %2982 = vpow2.f32 %v2751_v18 }
 0x1b7   : > { %v2979_v20 = vpop.eup %2978 }
 0x1b8   : > { %v1634_v22 = vpop.f32.mrf.mxu0  ;;  %v2981_v23 = vpop.eup %2980  ;;  %v1769_v24 = vadd.f32 1.0, %v2979_v20 }
 0x1b9   : > { %v1834_v25 = vmul.f32 %v2981_v23, %v1761_v11  ;;  %v1622_v27 = vpop.f32.mrf.mxu3  ;;  %vm1839_vm1 = vweird.f32 %v2981_v23  ;;  %v1635_v43 = vadd.f32 %v1634_v22, %v3742_v29 }
 0x1ba   : > { %2984 = vrcp.f32 %v1769_v24  ;;  %v1623_v30 = vadd.f32 %v1622_v27, %v1609_v26  ;;  %vm1840_vm3 = vmor %vm1838_vm2, %vm1839_vm1  ;;  %v1962_v46 = vand.u32 2147483647, %v1769_v24  ;;  %v1964_v47 = vand.u32 2147483648, %v1769_v24 }
 0x1bb   : > { %v1835_v28 = vsub.f32 1.0, %v1834_v25  ;;  %v2983_v32 = vpop.eup %2982  ;;  %vm1958_vm6 = vweird.f32 %v1769_v24 }
 0x1bc   : > { %v2759_v35 = vmul.f32 -1.442695, %v1623_v30  ;;  %v3780_v37 = vadd.f32 1.0, %v2983_v32  ;;  %vm1963_vm8 = vcmp.eq.f32.partialorder %v1962_v46, 8.507059e+37  ;;  %v1965_v61 = vor.u32 1.1754944e-38, %v1964_v47 }
 0x1bd   : > { %v1836_v33 = vmul.f32 %v2981_v23, %v1835_v28 }
 0x1be   : > { %2986 = vpow2.f32 %v2759_v35  ;;  %v1857_v3 = vand.u32 2147483647, %v3780_v37  ;;  %vm1853_vm10 = vweird.f32 %v3780_v37 }
 0x1bf   : > { %v1837_v38 = vadd.f32 %v2981_v23, %v1836_v33  ;;  %2988 = vrcp.f32 %v3780_v37 }
 0x1c0   : > { %v1636_v39 = vpop.f32.mrf.mxu0  ;;  %v2985_v12 = vpop.eup %2984  ;;  %vm1858_vm12 = vcmp.eq.f32.partialorder %v1857_v3, 8.507059e+37 }
 0x1c1   : > { %v1841_v40 = vsel %vm1840_vm3, %v2981_v23, %v1837_v38  ;;  %v1954_v41 = vmul.f32 %v2985_v12, %v1769_v24  ;;  %vm1959_vm5 = vweird.f32 %v2985_v12  ;;  %v1637_v4 = vadd.f32 %v1636_v39, %v3745_v36 }
 0x1c2   : > { %v1846_v42 = vsel %vm1843_vm4, %v1845_v52, %v1841_v40  ;;  %v1690_v51 = vpop.f32.mrf.mxu2  ;;  %v1676_v53 = vpop.f32.mrf.mxu1  ;;  %vm1960_vm7 = vmor %vm1958_vm6, %vm1959_vm5 }
 0x1c3   : > { %2017 = vst [vmem:[%s3754_s12 + $0x20] sm:$0xff] %v1846_v42  ;;  %v1955_v44 = vsub.f32 1.0, %v1954_v41  ;;  %v1677_v57 = vadd.f32 %v1676_v53, %v3742_v29  ;;  %v1859_v29 = vand.u32 2147483648, %v3780_v37 }
 0x1c4   : > { %v2987_v49 = vpop.eup %2986 }
 0x1c5   : > { %v1956_v50 = vmul.f32 %v2985_v12, %v1955_v44  ;;  %v2989_v54 = vpop.eup %2988  ;;  %v3785_v55 = vadd.f32 1.0, %v2987_v49  ;;  %v1691_v1 = vadd.f32 %v1690_v51, %v1677_v57  ;;  %v1860_v14 = vor.u32 1.1754944e-38, %v1859_v29 }
 0x1c6   : > { %v1849_v59 = vmul.f32 %v2989_v54, %v3780_v37  ;;  %vm1854_vm9 = vweird.f32 %v2989_v54 }
 0x1c7   : > { %v1957_v58 = vadd.f32 %v2985_v12, %v1956_v50  ;;  %2990 = vrcp.f32 %v3785_v55  ;;  %vm1855_vm11 = vmor %vm1853_vm10, %vm1854_vm9  ;;  %v1979_v27 = vand.u32 2147483648, %v3785_v55  ;;  %vm1973_vm14 = vweird.f32 %v3785_v55 }
 0x1c8   : > { %v1648_v45 = vpop.f32.mrf.mxu3  ;;  %v1704_v60 = vpop.f32.mrf.mxu0  ;;  %v1850_v63 = vsub.f32 1.0, %v1849_v59 }
 0x1c9   : > { %v1649_v48 = vadd.f32 %v1648_v45, %v1635_v43  ;;  %v1961_v62 = vsel %vm1960_vm7, %v2985_v12, %v1957_v58  ;;  %v1705_v6 = vadd.f32 %v1704_v60, %v1691_v1  ;;  %v1980_v35 = vor.u32 1.1754944e-38, %v1979_v27  ;;  %v2067_v27 = vld [vmem:[%s3754_s12 + $0x40] sm:$0xff] (%p3083_p5) }
 0x1ca   : > { %v1966_v2 = vsel %vm1963_vm8, %v1965_v61, %v1961_v62  ;;  %v1851_v5 = vmul.f32 %v2989_v54, %v1850_v63  ;;  %v1678_v11 = vpop.f32.mrf.mxu1  ;;  %v1692_v20 = vpop.f32.mrf.mxu2  ;;  %2068 = vst [vmem:[%s2038_s20 + $0x80] sm:$0xff] (%p3083_p5), %v2067_v27 }
 0x1cb   : > { %v1663_v56 = vadd.f32 %v1662_v17, %v1649_v48  ;;  %2025 = vst [vmem:[%s3754_s12 + $0x60] sm:$0xf] %v1966_v2  ;;  %v2753_v9 = vmul.f32 -1.442695, %v1705_v6  ;;  %v1679_v17 = vadd.f32 %v1678_v11, %v3745_v36  ;;  %v1977_v36 = vand.u32 2147483647, %v3785_v55 }
 0x1cc   : > { %v1852_v10 = vadd.f32 %v2989_v54, %v1851_v5 }
 0x1cd   : > { %v2752_v0 = vmul.f32 -1.442695, %v1663_v56  ;;  %v2991_v13 = vpop.eup %2990  ;;  %v1693_v24 = vadd.f32 %v1692_v20, %v1679_v17  ;;  %vm1978_vm0 = vcmp.eq.f32.partialorder %v1977_v36, 8.507059e+37  ;;  %v2053_v20 = vld [vmem:[%s3754_s12 + $0x8] sm:$0xff] (%p3083_p5) }
 0x1ce   : > { %v1856_v18 = vsel %vm1855_vm11, %v2989_v54, %v1852_v10  ;;  %v1969_v19 = vmul.f32 %v2991_v13, %v3785_v55  ;;  %vm1974_vm13 = vweird.f32 %v2991_v13  ;;  %2054 = vst [vmem:[%s2038_s20 + $0x8] sm:$0xff] (%p3083_p5), %v2053_v20 }
 0x1cf   : > { %2992 = vpow2.f32 %v2752_v0  ;;  %v1861_v22 = vsel %vm1858_vm12, %v1860_v14, %v1856_v18  ;;  %vm1975_vm15 = vmor %vm1973_vm14, %vm1974_vm13 }
 0x1d0   : > { %v1650_v7 = vpop.f32.mrf.mxu3  ;;  %2994 = vpow2.f32 %v2753_v9  ;;  %v1706_v21 = vpop.f32.mrf.mxu0  ;;  %2018 = vst [vmem:[%s3754_s12 + $0x28] sm:$0xff] %v1861_v22  ;;  %v1970_v26 = vsub.f32 1.0, %v1969_v19  ;;  %v2051_v19 = vld [vmem:[%s3754_s12] sm:$0xff] (%p3083_p5)  ;;  %v2057_v22 = vld [vmem:[%s3754_s12 + $0x18] sm:$0xff] (%p3083_p5) }
 0x1d1   : > { %v1651_v8 = vadd.f32 %v1650_v7, %v1637_v4  ;;  %v1707_v30 = vadd.f32 %v1706_v21, %v1693_v24  ;;  %v2055_v21 = vld [vmem:[%s3754_s12 + $0x10] sm:$0xff] (%p3083_p5)  ;;  %2052 = vst [vmem:[%s2038_s20] sm:$0xff] (%p3083_p5), %v2051_v19 }
 0x1d2   : > { %v1971_v31 = vmul.f32 %v2991_v13, %v1970_v26  ;;  %2056 = vst [vmem:[%s2038_s20 + $0x10] sm:$0xff] (%p3083_p5), %v2055_v21  ;;  %v2075_v36 = vld [vmem:[%s3754_s12 + $0x60] sm:$0xff] (%p3083_p5) }
 0x1d3   : > { %v1665_v15 = vadd.f32 %v1664_v16, %v1651_v8  ;;  %v2761_v34 = vmul.f32 -1.442695, %v1707_v30  ;;  %2058 = vst [vmem:[%s2038_s20 + $0x18] sm:$0xff] (%p3083_p5), %v2057_v22  ;;  %v2071_v30 = vld [vmem:[%s3754_s12 + $0x50] sm:$0xff] (%p3083_p5) }
 0x1d4   : > { %v1972_v33 = vadd.f32 %v2991_v13, %v1971_v31  ;;  %v2073_v31 = vld [vmem:[%s3754_s12 + $0x58] sm:$0xff] (%p3083_p5)  ;;  %2072 = vst [vmem:[%s2038_s20 + $0x90] sm:$0xff] (%p3083_p5), %v2071_v30 }
 0x1d5   : > { %v2760_v23 = vmul.f32 -1.442695, %v1665_v15  ;;  %v2993_v25 = vpop.eup %2992  ;;  %2074 = vst [vmem:[%s2038_s20 + $0x98] sm:$0xff] (%p3083_p5), %v2073_v31 }
 0x1d6   : > { %v1763_v28 = vadd.f32 1.0, %v2993_v25  ;;  %v2995_v32 = vpop.eup %2994  ;;  %v1976_v37 = vsel %vm1975_vm15, %v2991_v13, %v1972_v33  ;;  %2076 = vst [vmem:[%s2038_s20 + $0xa0] sm:$0xff] (%p3083_p5), %v2075_v36 }
 0x1d7   : > { %2996 = vpow2.f32 %v2760_v23  ;;  %v1764_v16 = vadd.f32 1.0, %v2995_v32  ;;  %v1981_v39 = vsel %vm1978_vm0, %v1980_v35, %v1976_v37  ;;  %v2059_v23 = vld [vmem:[%s3754_s12 + $0x20] sm:$0xff] (%p3083_p5)  ;;  %v2061_v24 = vld [vmem:[%s3754_s12 + $0x28] sm:$0xff] (%p3083_p5) }
 0x1d8   : > { %2998 = vrcp.f32 %v1763_v28  ;;  %2026 = vst [vmem:[%s3754_s12 + $0x68] sm:$0xf] %v1981_v39  ;;  %v1872_v44 = vand.u32 2147483647, %v1763_v28  ;;  %v1874_v45 = vand.u32 2147483648, %v1763_v28  ;;  %vm1868_vm2 = vweird.f32 %v1763_v28 }
 0x1d9   : > { %3000 = vpow2.f32 %v2761_v34  ;;  %v1889_v54 = vand.u32 2147483648, %v1764_v16  ;;  %v1887_v58 = vand.u32 2147483647, %v1764_v16  ;;  %vm1883_vm6 = vweird.f32 %v1764_v16  ;;  %2060 = vst [vmem:[%s2038_s20 + $0x20] sm:$0xff] (%p3083_p5), %v2059_v23 }
 0x1da   : > { %3002 = vrcp.f32 %v1764_v16  ;;  %vm1873_vm4 = vcmp.eq.f32.partialorder %v1872_v44, 8.507059e+37  ;;  %v1875_v53 = vor.u32 1.1754944e-38, %v1874_v45  ;;  %2062 = vst [vmem:[%s2038_s20 + $0x28] sm:$0xff] (%p3083_p5), %v2061_v24 }
 0x1db   : > { %v1890_v0 = vor.u32 1.1754944e-38, %v1889_v54  ;;  %vm1888_vm9 = vcmp.eq.f32.partialorder %v1887_v58, 8.507059e+37 }
 0x1dd   : > { %v2997_v38 = vpop.eup %2996 }
 0x1de   : > { %v1771_v12 = vadd.f32 1.0, %v2997_v38  ;;  %v2999_v52 = vpop.eup %2998 }
 0x1df   : > { %v1864_v40 = vmul.f32 %v2999_v52, %v1763_v28  ;;  %v3001_v41 = vpop.eup %3000  ;;  %vm1869_vm1 = vweird.f32 %v2999_v52  ;;  %v2069_v28 = vld [vmem:[%s3754_s12 + $0x48] sm:$0xff] (%p3083_p5) }
 0x1e0   : > { %3004 = vrcp.f32 %v1771_v12  ;;  %v3003_v43 = vpop.eup %3002  ;;  %v1772_v46 = vadd.f32 1.0, %v3001_v41  ;;  %vm1870_vm3 = vmor %vm1868_vm2, %vm1869_vm1  ;;  %v1994_v62 = vand.u32 2147483648, %v1771_v12  ;;  %v1992_v2 = vand.u32 2147483647, %v1771_v12  ;;  %2070 = vst [vmem:[%s2038_s20 + $0x88] sm:$0xff] (%p3083_p5), %v2069_v28  ;;  %v2077_v32 = vld [vmem:[%s3754_s12 + $0x68] sm:$0xff] (%p3083_p5) }
 0x1e1   : > { %v1865_v42 = vsub.f32 1.0, %v1864_v40  ;;  %v1879_v48 = vmul.f32 %v3003_v43, %v1764_v16  ;;  %vm1884_vm5 = vweird.f32 %v3003_v43  ;;  %vm1988_vm10 = vweird.f32 %v1771_v12  ;;  %2078 = vst [vmem:[%s2038_s20 + $0xa8] sm:$0xff] (%p3083_p5), %v2077_v32 }
 0x1e2   : > { %3006 = vrcp.f32 %v1772_v46  ;;  %vm1885_vm7 = vmor %vm1883_vm6, %vm1884_vm5  ;;  %v1995_v6 = vor.u32 1.1754944e-38, %v1994_v62  ;;  %vm1993_vm12 = vcmp.eq.f32.partialorder %v1992_v2, 8.507059e+37  ;;  %v2009_v10 = vand.u32 2147483648, %v1772_v46 }
 0x1e3   : > { %v1866_v47 = vmul.f32 %v2999_v52, %v1865_v42  ;;  %v1880_v51 = vsub.f32 1.0, %v1879_v48  ;;  %v2007_v13 = vand.u32 2147483647, %v1772_v46  ;;  %vm2003_vm14 = vweird.f32 %v1772_v46 }
 0x1e4   : > { %v2010_v15 = vor.u32 1.1754944e-38, %v2009_v10 }
 0x1e5   : > { %v1867_v50 = vadd.f32 %v2999_v52, %v1866_v47  ;;  %v1881_v57 = vmul.f32 %v3003_v43, %v1880_v51  ;;  %vm2008_vm0 = vcmp.eq.f32.partialorder %v2007_v13, 8.507059e+37 }
 0x1e6   : > { %v3005_v49 = vpop.eup %3004 }
 0x1e7   : > { %v1984_v55 = vmul.f32 %v3005_v49, %v1771_v12  ;;  %v1871_v56 = vsel %vm1870_vm3, %v2999_v52, %v1867_v50  ;;  %v1882_v61 = vadd.f32 %v3003_v43, %v1881_v57  ;;  %vm1989_vm8 = vweird.f32 %v3005_v49 }
 0x1e8   : > { %v1876_v59 = vsel %vm1873_vm4, %v1875_v53, %v1871_v56  ;;  %v3007_v63 = vpop.eup %3006  ;;  %vm1990_vm11 = vmor %vm1988_vm10, %vm1989_vm8 }
 0x1e9   : > { %v1985_v60 = vsub.f32 1.0, %v1984_v55  ;;  %2019 = vst [vmem:[%s3754_s12 + $0x30] sm:$0xff] %v1876_v59  ;;  %v1886_v3 = vsel %vm1885_vm7, %v3003_v43, %v1882_v61  ;;  %v1999_v29 = vmul.f32 %v3007_v63, %v1772_v46  ;;  %vm2004_vm13 = vweird.f32 %v3007_v63 }
 0x1ea   : > { %v1891_v4 = vsel %vm1888_vm9, %v1890_v0, %v1886_v3  ;;  %vm2005_vm15 = vmor %vm2003_vm14, %vm2004_vm13 }
 0x1eb   : > { %v1986_v1 = vmul.f32 %v3005_v49, %v1985_v60  ;;  %2020 = vst [vmem:[%s3754_s12 + $0x38] sm:$0xff] %v1891_v4  ;;  %v2000_v7 = vsub.f32 1.0, %v1999_v29 }
 0x1ed   : > { %v1987_v5 = vadd.f32 %v3005_v49, %v1986_v1  ;;  %v2001_v11 = vmul.f32 %v3007_v63, %v2000_v7 }
 0x1ef   : > { %v1991_v8 = vsel %vm1990_vm11, %v3005_v49, %v1987_v5  ;;  %v2002_v14 = vadd.f32 %v3007_v63, %v2001_v11  ;;  %2035 = sbr.rel (!%p3083_p5) target bundleno = 508 (0x1fc), region = 59 }
 0x1f0   : > { %v1996_v9 = vsel %vm1993_vm12, %v1995_v6, %v1991_v8  ;;  %v2063_v25 = vld [vmem:[%s3754_s12 + $0x30] sm:$0xff] (%p3083_p5) }
 0x1f1   : > { %2027 = vst [vmem:[%s3754_s12 + $0x70] sm:$0xf] %v1996_v9  ;;  %v2006_v17 = vsel %vm2005_vm15, %v3007_v63, %v2002_v14 }
 0x1f2   : > { %v2011_v18 = vsel %vm2008_vm0, %v2010_v15, %v2006_v17  ;;  %v2065_v26 = vld [vmem:[%s3754_s12 + $0x38] sm:$0xff] (%p3083_p5)  ;;  %2064 = vst [vmem:[%s2038_s20 + $0x30] sm:$0xff] (%p3083_p5), %v2063_v25 }
 0x1f3   : > { %2028 = vst [vmem:[%s3754_s12 + $0x78] sm:$0xf] %v2011_v18 }
 0x1f4   : > { %2066 = vst [vmem:[%s2038_s20 + $0x38] sm:$0xff] %v2065_v26 }
 0x1f8   : > { %v2079_v33 = vld [vmem:[%s3754_s12 + $0x70] sm:$0xff] }
 0x1f9   : > { %2080 = vst [vmem:[%s2038_s20 + $0xb0] sm:$0xff] %v2079_v33 }
 0x1fa   : > { %v2081_v34 = vld [vmem:[%s3754_s12 + $0x78] sm:$0xff] }
 0x1fb   : > { %2082 = vst [vmem:[%s2038_s20 + $0xb8] sm:$0xff] %v2081_v34 }
 0x1fc PF: > { %p10_p10 = scmp.ge.s32.totalorder %s3070_s16, 4   ;;  %s3844_s12 = smov %s3026_s13 }
 0x1fd   : > { %s3845_s13 = smov %s3081_s19  ;;  %s3846_s14 = smov %s3070_s16 }
 0x1fe   :  { %12 = sbr.rel (!%p10_p10) target bundleno = 2 (0x2), region = 113 }

</bundles_post_ra>
